<compile_context>
chip_gen: v7x
topology: tpu7x:2x2x1
jax: 0.10.0
libtpu: 0.0.40
codegen_flags: <defaults>
</compile_context>

<pallas_src>
import math

import jax
import jax.numpy as jnp
from jax.experimental import pallas as pl
from jax.experimental.pallas import tpu as pltpu

TEMPERATURE = 0.1                 # RelaxedBernoulli temperature from the module
INV_TEMP = 1.0 / TEMPERATURE

_N_FIRST = 15                     # weight refs for layer 0 (single w_cin)
_N_REST = 16                      # weight refs for layers >= 1 (w_cin split)


def _layer_arg_list(p, first):
    if first:
        cin = [p["w_cin"]]
    else:
        cin = [p["w_cin_c"], p["w_cin_h"]]
    return cin + [
        p["b_cin"],
        p["w1a"], p["w1b"], p["b1"],
        p["w2"], p["b2"],
        p["w3"], p["b3"],
        p["w4"], p["b4"],
        p["w_ih"], p["b_ih"],
        p["w_hh"], p["b_hh"],
    ]


def _build_fused_kernel(num_layers, B, S, H):
    H2, H3 = 2 * H, 3 * H
    counts = [_N_FIRST] + [_N_REST] * (num_layers - 1)
    total_w = sum(counts)

    def kernel(x_ref, noise_ref, *refs):
        w_refs = refs[:total_w]
        ccat_ref, hcat_ref, hout_ref = refs[total_w:]

        # Layer-0 inputs gathered once, laid out s-major: row = s*B + b.
        xin = jnp.concatenate([x_ref[:, s, :] for s in range(S)], axis=0)

        prev_c = None                                   # (S*B, H) prev-layer c_concat
        prev_h = None                                   # (S*B, H) prev-layer h_concat
        h_carry = jnp.zeros((B, H), jnp.float32)        # h0 of layer 0 is zeros

        off = 0
        for l in range(num_layers):
            # ---- hoisted weight loads (once per layer, not per timestep) ----
            vals = [r[...] for r in w_refs[off:off + counts[l]]]
            off += counts[l]
            if l == 0:
                w_cin = vals[0]
                rest = vals[1:]
            else:
                w_cin_c, w_cin_h = vals[0], vals[1]
                rest = vals[2:]
            (b_cin, w1a, w1b, b1, w2, b2, w3, b3, w4, b4,
             w_ih, b_ih, w_hh, b_hh) = rest

            noise_l = noise_ref[l]                      # (B, S) logistic noise

            # ---- precompute everything that ignores the recurrent state ----
            if l == 0:
                cin_all = jnp.tanh(
                    jnp.dot(xin.astype(jnp.bfloat16), w_cin,
                            preferred_element_type=jnp.float32) + b_cin)
            else:
                # layer_cin of the next layer with its (2H, H) weight split so
                # the cat([c_cat, h_cat]) never materializes.
                cin_all = jnp.tanh(
                    jnp.dot(prev_c.astype(jnp.bfloat16), w_cin_c,
                            preferred_element_type=jnp.float32)
                    + jnp.dot(prev_h.astype(jnp.bfloat16), w_cin_h,
                              preferred_element_type=jnp.float32)
                    + b_cin)                            # (S*B, H) f32
            # c_in-half of the first MLP Linear, for all steps, bias folded in.
            z1b_all = (jnp.dot(cin_all.astype(jnp.bfloat16), w1b,
                               preferred_element_type=jnp.float32) + b1)   # (S*B, 2H)

            # ---- hoisted bias broadcasts (VPU stays f32) --------------------
            b2b = jnp.broadcast_to(b2, (B, H2))
            b3b = jnp.broadcast_to(b3, (B, H2))
            b4b = jnp.broadcast_to(b4, (B, 1))
            bihb = jnp.broadcast_to(b_ih, (B, H3))
            bhhb = jnp.broadcast_to(b_hh, (B, H3))

            def gru(cc, hh):
                # 2 stacked-gate matmuls instead of 6 per-gate matmuls.
                gi = jnp.dot(cc.astype(jnp.bfloat16), w_ih,
                             preferred_element_type=jnp.float32) + bihb
                gh = jnp.dot(hh.astype(jnp.bfloat16), w_hh,
                             preferred_element_type=jnp.float32) + bhhb
                r = jax.nn.sigmoid(gi[:, :H] + gh[:, :H])
                z = jax.nn.sigmoid(gi[:, H:H2] + gh[:, H:H2])
                ng = jnp.tanh(gi[:, H2:] + r * gh[:, H2:])
                return (1.0 - z) * ng + z * hh

            c = jnp.zeros((B, H), jnp.float32)
            h = h_carry
            n = jnp.zeros((B, 1), jnp.float32)
            c_list, h_list = [], []

            # S is small & static -> unrolled sequential recurrence.
            for s in range(S):
                c_in = cin_all[s * B:(s + 1) * B, :]    # (B, H)
                z1b = z1b_all[s * B:(s + 1) * B, :]     # (B, 2H)

                # layer_c MLP (first Linear split; c_in half precomputed).
                z1 = jnp.maximum(
                    jnp.dot(c.astype(jnp.bfloat16), w1a,
                            preferred_element_type=jnp.float32) + z1b, 0.0)
                z2 = jnp.maximum(
                    jnp.dot(z1.astype(jnp.bfloat16), w2,
                            preferred_element_type=jnp.float32) + b2b, 0.0)
                z3 = jnp.maximum(
                    jnp.dot(z2.astype(jnp.bfloat16), w3,
                            preferred_element_type=jnp.float32) + b3b, 0.0)
                # Linear(2H -> 1) kept as broadcast-mul + lane reduction.
                logit = jnp.sum(z3 * w4, axis=1, keepdims=True) + b4b    # (B, 1)

                # RelaxedBernoulli(T=0.1, logits).sample(); multiply, not divide.
                alpha = jax.nn.sigmoid(
                    (logit + noise_l[:, s:s + 1]) * INV_TEMP)            # (B, 1)

                gru_h = gru(c, h)
                one_m_a = 1.0 - alpha
                h = h * one_m_a + alpha * gru_h
                new_n = n * one_m_a + 1.0
                c = (c * (n * one_m_a) + c_in) / new_n
                n = new_n

                c_list.append(c_in)
                h_list.append(h)

            # Extra un-gated GRU step after the time loop (matches reference).
            h_carry = gru(c, h)

            if l + 1 < num_layers:
                # Inter-layer handoff stays on-chip (s-major rows), no stores.
                prev_c = jnp.concatenate(c_list, axis=0)
                prev_h = jnp.concatenate(h_list, axis=0)
            else:
                # Lane-dense single stores: (B, S*H) slabs, reshaped outside.
                ccat_ref[...] = jnp.concatenate(c_list, axis=1)
                hcat_ref[...] = jnp.concatenate(h_list, axis=1)
                hout_ref[...] = h_carry

    return kernel


def custom_rnn_forward(x, noises, layer_params):
    """Fused stacked CUSTOM_RNN_LAYER forward in a single pallas_call.

    Returns (c_concat, h_concat, h) of the final layer, matching the PyTorch
    layer's outputs.  `noises` is (num_layers, B, S) logistic noise for the
    RelaxedBernoulli samples.
    """
    B, S, _ = x.shape
    L = len(layer_params)
    H = layer_params[0]["b_cin"].shape[1]

    args = [x, noises]
    for i, p in enumerate(layer_params):
        args += _layer_arg_list(p, first=(i == 0))

    vmem = pl.BlockSpec(memory_space=pltpu.MemorySpace.VMEM)
    out_shapes = (
        jax.ShapeDtypeStruct((B, S * H), jnp.float32),   # c_concat slab
        jax.ShapeDtypeStruct((B, S * H), jnp.float32),   # h_concat slab
        jax.ShapeDtypeStruct((B, H), jnp.float32),       # final h
    )
    ccat, hcat, h = pl.pallas_call(
        _build_fused_kernel(L, B, S, H),
        out_shape=out_shapes,
        in_specs=[vmem] * len(args),
        out_specs=(vmem, vmem, vmem),
    )(*args)
    return ccat.reshape(B, S, H), hcat.reshape(B, S, H), h


def _uniform(key, shape, bound, dtype=jnp.float32):
    return jax.random.uniform(key, shape, jnp.float32, -bound, bound).astype(dtype)


def init_layer_params(key, input_size, hidden_size, first):
    """Synthetic params matching the PyTorch module's shapes.

    MXU-bound weights are stored pre-transposed (in, out), gate-stacked for the
    GRU, split for the concat-eliminating matmuls, and cast to bf16."""
    H = hidden_size
    ks = jax.random.split(key, 20)
    sd_h = 1.0 / math.sqrt(H)
    sd_2h = 1.0 / math.sqrt(2 * H)
    sd_in = 1.0 / math.sqrt(input_size)
    p = {}
    if first:
        p["w_cin"] = _uniform(ks[0], (input_size, H), sd_in, jnp.bfloat16)
        p["b_cin"] = _uniform(ks[2], (1, H), sd_in)
    else:
        # Linear(2H, H) split into the c_concat / h_concat halves.
        p["w_cin_c"] = _uniform(ks[0], (H, H), sd_2h, jnp.bfloat16)
        p["w_cin_h"] = _uniform(ks[1], (H, H), sd_2h, jnp.bfloat16)
        p["b_cin"] = _uniform(ks[2], (1, H), sd_2h)
    # layer_c MLP: Linear(2H,2H) x3 + Linear(2H,1); first Linear split in two.
    p["w1a"] = _uniform(ks[3], (H, 2 * H), sd_2h, jnp.bfloat16)
    p["w1b"] = _uniform(ks[4], (H, 2 * H), sd_2h, jnp.bfloat16)
    p["b1"] = _uniform(ks[5], (1, 2 * H), sd_2h)
    p["w2"] = _uniform(ks[6], (2 * H, 2 * H), sd_2h, jnp.bfloat16)
    p["b2"] = _uniform(ks[7], (1, 2 * H), sd_2h)
    p["w3"] = _uniform(ks[8], (2 * H, 2 * H), sd_2h, jnp.bfloat16)
    p["b3"] = _uniform(ks[9], (1, 2 * H), sd_2h)
    p["w4"] = _uniform(ks[10], (1, 2 * H), sd_2h)          # VPU reduce -> keep f32
    p["b4"] = _uniform(ks[11], (1, 1), sd_2h)
    # GRUCell(H, H): gates stacked [r | z | n], pre-transposed to (H, 3H).
    p["w_ih"] = _uniform(ks[12], (H, 3 * H), sd_h, jnp.bfloat16)
    p["b_ih"] = _uniform(ks[13], (1, 3 * H), sd_h)
    p["w_hh"] = _uniform(ks[14], (H, 3 * H), sd_h, jnp.bfloat16)
    p["b_hh"] = _uniform(ks[15], (1, 3 * H), sd_h)
    return p


def make_logistic_noise(key, num_layers, B, S):
    """Logistic noise L = log(u) - log(1-u) used by RelaxedBernoulli.sample()."""
    eps = 1e-6
    u = jax.random.uniform(key, (num_layers, B, S), jnp.float32, eps, 1.0 - eps)
    return jnp.log(u) - jnp.log1p(-u)


if __name__ == "__main__":
    B, S = 2, 8
    input_size, hidden_size, num_layers = 16, 32, 2

    root = jax.random.PRNGKey(0)
    k_x, k_params, k_noise = jax.random.split(root, 3)

    x = jax.random.normal(k_x, (B, S, input_size), jnp.float32)

    pkeys = jax.random.split(k_params, num_layers)
    layer_params = [init_layer_params(pkeys[0], input_size, hidden_size, True)]
    for i in range(1, num_layers):
        layer_params.append(
            init_layer_params(pkeys[i], 2 * hidden_size, hidden_size, False))

    noises = make_logistic_noise(k_noise, num_layers, B, S)

    c_cat, h_cat, h = custom_rnn_forward(x, noises, layer_params)
    c_cat, h_cat, h = jax.block_until_ready((c_cat, h_cat, h))

    assert c_cat.shape == (B, S, hidden_size)
    assert h_cat.shape == (B, S, hidden_size)
    assert h.shape == (B, hidden_size) and h.dtype == jnp.float32
    assert bool(jnp.all(jnp.isfinite(c_cat)))
    assert bool(jnp.all(jnp.isfinite(h_cat)))
    assert bool(jnp.all(jnp.isfinite(h)))
    print("KERNEL_OK")
</pallas_src>

<mosaic_0001>
module attributes {stable_mosaic.version = 11 : i64} {
  func.func @kernel(%arg0: memref<2x8x16xf32, #tpu.memory_space<vmem>>, %arg1: memref<2x2x8xf32, #tpu.memory_space<vmem>>, %arg2: memref<16x32xbf16, #tpu.memory_space<vmem>>, %arg3: memref<1x32xf32, #tpu.memory_space<vmem>>, %arg4: memref<32x64xbf16, #tpu.memory_space<vmem>>, %arg5: memref<32x64xbf16, #tpu.memory_space<vmem>>, %arg6: memref<1x64xf32, #tpu.memory_space<vmem>>, %arg7: memref<64x64xbf16, #tpu.memory_space<vmem>>, %arg8: memref<1x64xf32, #tpu.memory_space<vmem>>, %arg9: memref<64x64xbf16, #tpu.memory_space<vmem>>, %arg10: memref<1x64xf32, #tpu.memory_space<vmem>>, %arg11: memref<1x64xf32, #tpu.memory_space<vmem>>, %arg12: memref<1x1xf32, #tpu.memory_space<vmem>>, %arg13: memref<32x96xbf16, #tpu.memory_space<vmem>>, %arg14: memref<1x96xf32, #tpu.memory_space<vmem>>, %arg15: memref<32x96xbf16, #tpu.memory_space<vmem>>, %arg16: memref<1x96xf32, #tpu.memory_space<vmem>>, %arg17: memref<32x32xbf16, #tpu.memory_space<vmem>>, %arg18: memref<32x32xbf16, #tpu.memory_space<vmem>>, %arg19: memref<1x32xf32, #tpu.memory_space<vmem>>, %arg20: memref<32x64xbf16, #tpu.memory_space<vmem>>, %arg21: memref<32x64xbf16, #tpu.memory_space<vmem>>, %arg22: memref<1x64xf32, #tpu.memory_space<vmem>>, %arg23: memref<64x64xbf16, #tpu.memory_space<vmem>>, %arg24: memref<1x64xf32, #tpu.memory_space<vmem>>, %arg25: memref<64x64xbf16, #tpu.memory_space<vmem>>, %arg26: memref<1x64xf32, #tpu.memory_space<vmem>>, %arg27: memref<1x64xf32, #tpu.memory_space<vmem>>, %arg28: memref<1x1xf32, #tpu.memory_space<vmem>>, %arg29: memref<32x96xbf16, #tpu.memory_space<vmem>>, %arg30: memref<1x96xf32, #tpu.memory_space<vmem>>, %arg31: memref<32x96xbf16, #tpu.memory_space<vmem>>, %arg32: memref<1x96xf32, #tpu.memory_space<vmem>>, %arg33: memref<2x256xf32, #tpu.memory_space<vmem>>, %arg34: memref<2x256xf32, #tpu.memory_space<vmem>>, %arg35: memref<2x32xf32, #tpu.memory_space<vmem>>) attributes {dimension_semantics = [], scalar_prefetch = 0 : i64, scratch_operands = 0 : i64, tpu.core_type = #tpu.core_type<tc>} {
    %c0 = arith.constant 0 : index
    %c0_0 = arith.constant 0 : index
    %c0_1 = arith.constant 0 : index
    %0 = vector.load %arg0[%c0, %c0_0, %c0_1] : memref<2x8x16xf32, #tpu.memory_space<vmem>>, vector<2x1x16xf32>
    %1 = vector.shape_cast %0 : vector<2x1x16xf32> to vector<2x16xf32>
    %c0_2 = arith.constant 0 : index
    %c1 = arith.constant 1 : index
    %c0_3 = arith.constant 0 : index
    %2 = vector.load %arg0[%c0_2, %c1, %c0_3] : memref<2x8x16xf32, #tpu.memory_space<vmem>>, vector<2x1x16xf32>
    %3 = vector.shape_cast %2 : vector<2x1x16xf32> to vector<2x16xf32>
    %c0_4 = arith.constant 0 : index
    %c2 = arith.constant 2 : index
    %c0_5 = arith.constant 0 : index
    %4 = vector.load %arg0[%c0_4, %c2, %c0_5] : memref<2x8x16xf32, #tpu.memory_space<vmem>>, vector<2x1x16xf32>
    %5 = vector.shape_cast %4 : vector<2x1x16xf32> to vector<2x16xf32>
    %c0_6 = arith.constant 0 : index
    %c3 = arith.constant 3 : index
    %c0_7 = arith.constant 0 : index
    %6 = vector.load %arg0[%c0_6, %c3, %c0_7] : memref<2x8x16xf32, #tpu.memory_space<vmem>>, vector<2x1x16xf32>
    %7 = vector.shape_cast %6 : vector<2x1x16xf32> to vector<2x16xf32>
    %c0_8 = arith.constant 0 : index
    %c4 = arith.constant 4 : index
    %c0_9 = arith.constant 0 : index
    %8 = vector.load %arg0[%c0_8, %c4, %c0_9] : memref<2x8x16xf32, #tpu.memory_space<vmem>>, vector<2x1x16xf32>
    %9 = vector.shape_cast %8 : vector<2x1x16xf32> to vector<2x16xf32>
    %c0_10 = arith.constant 0 : index
    %c5 = arith.constant 5 : index
    %c0_11 = arith.constant 0 : index
    %10 = vector.load %arg0[%c0_10, %c5, %c0_11] : memref<2x8x16xf32, #tpu.memory_space<vmem>>, vector<2x1x16xf32>
    %11 = vector.shape_cast %10 : vector<2x1x16xf32> to vector<2x16xf32>
    %c0_12 = arith.constant 0 : index
    %c6 = arith.constant 6 : index
    %c0_13 = arith.constant 0 : index
    %12 = vector.load %arg0[%c0_12, %c6, %c0_13] : memref<2x8x16xf32, #tpu.memory_space<vmem>>, vector<2x1x16xf32>
    %13 = vector.shape_cast %12 : vector<2x1x16xf32> to vector<2x16xf32>
    %c0_14 = arith.constant 0 : index
    %c7 = arith.constant 7 : index
    %c0_15 = arith.constant 0 : index
    %14 = vector.load %arg0[%c0_14, %c7, %c0_15] : memref<2x8x16xf32, #tpu.memory_space<vmem>>, vector<2x1x16xf32>
    %15 = vector.shape_cast %14 : vector<2x1x16xf32> to vector<2x16xf32>
    %16 = tpu.concatenate %1, %3, %5, %7, %9, %11, %13, %15 in 0 : vector<2x16xf32>, vector<2x16xf32>, vector<2x16xf32>, vector<2x16xf32>, vector<2x16xf32>, vector<2x16xf32>, vector<2x16xf32>, vector<2x16xf32> -> vector<16x16xf32>
    %cst = arith.constant 0.000000e+00 : f32
    %17 = vector.broadcast %cst : f32 to vector<2x32xf32>
    %c0_16 = arith.constant 0 : index
    %c0_17 = arith.constant 0 : index
    %18 = vector.load %arg2[%c0_16, %c0_17] : memref<16x32xbf16, #tpu.memory_space<vmem>>, vector<16x32xbf16>
    %c0_18 = arith.constant 0 : index
    %c0_19 = arith.constant 0 : index
    %19 = vector.load %arg3[%c0_18, %c0_19] : memref<1x32xf32, #tpu.memory_space<vmem>>, vector<1x32xf32>
    %c0_20 = arith.constant 0 : index
    %c0_21 = arith.constant 0 : index
    %20 = vector.load %arg4[%c0_20, %c0_21] : memref<32x64xbf16, #tpu.memory_space<vmem>>, vector<32x64xbf16>
    %c0_22 = arith.constant 0 : index
    %c0_23 = arith.constant 0 : index
    %21 = vector.load %arg5[%c0_22, %c0_23] : memref<32x64xbf16, #tpu.memory_space<vmem>>, vector<32x64xbf16>
    %c0_24 = arith.constant 0 : index
    %c0_25 = arith.constant 0 : index
    %22 = vector.load %arg6[%c0_24, %c0_25] : memref<1x64xf32, #tpu.memory_space<vmem>>, vector<1x64xf32>
    %c0_26 = arith.constant 0 : index
    %c0_27 = arith.constant 0 : index
    %23 = vector.load %arg7[%c0_26, %c0_27] : memref<64x64xbf16, #tpu.memory_space<vmem>>, vector<64x64xbf16>
    %c0_28 = arith.constant 0 : index
    %c0_29 = arith.constant 0 : index
    %24 = vector.load %arg8[%c0_28, %c0_29] : memref<1x64xf32, #tpu.memory_space<vmem>>, vector<1x64xf32>
    %c0_30 = arith.constant 0 : index
    %c0_31 = arith.constant 0 : index
    %25 = vector.load %arg9[%c0_30, %c0_31] : memref<64x64xbf16, #tpu.memory_space<vmem>>, vector<64x64xbf16>
    %c0_32 = arith.constant 0 : index
    %c0_33 = arith.constant 0 : index
    %26 = vector.load %arg10[%c0_32, %c0_33] : memref<1x64xf32, #tpu.memory_space<vmem>>, vector<1x64xf32>
    %c0_34 = arith.constant 0 : index
    %c0_35 = arith.constant 0 : index
    %27 = vector.load %arg11[%c0_34, %c0_35] : memref<1x64xf32, #tpu.memory_space<vmem>>, vector<1x64xf32>
    %c0_36 = arith.constant 0 : index
    %c0_37 = arith.constant 0 : index
    %28 = vector.load %arg12[%c0_36, %c0_37] : memref<1x1xf32, #tpu.memory_space<vmem>>, vector<1x1xf32>
    %c0_38 = arith.constant 0 : index
    %c0_39 = arith.constant 0 : index
    %29 = vector.load %arg13[%c0_38, %c0_39] : memref<32x96xbf16, #tpu.memory_space<vmem>>, vector<32x96xbf16>
    %c0_40 = arith.constant 0 : index
    %c0_41 = arith.constant 0 : index
    %30 = vector.load %arg14[%c0_40, %c0_41] : memref<1x96xf32, #tpu.memory_space<vmem>>, vector<1x96xf32>
    %c0_42 = arith.constant 0 : index
    %c0_43 = arith.constant 0 : index
    %31 = vector.load %arg15[%c0_42, %c0_43] : memref<32x96xbf16, #tpu.memory_space<vmem>>, vector<32x96xbf16>
    %c0_44 = arith.constant 0 : index
    %c0_45 = arith.constant 0 : index
    %32 = vector.load %arg16[%c0_44, %c0_45] : memref<1x96xf32, #tpu.memory_space<vmem>>, vector<1x96xf32>
    %c0_46 = arith.constant 0 : index
    %c0_47 = arith.constant 0 : index
    %c0_48 = arith.constant 0 : index
    %33 = vector.load %arg1[%c0_46, %c0_47, %c0_48] : memref<2x2x8xf32, #tpu.memory_space<vmem>>, vector<1x2x8xf32>
    %34 = vector.shape_cast %33 : vector<1x2x8xf32> to vector<2x8xf32>
    %35 = arith.truncf %16 : vector<16x16xf32> to vector<16x16xbf16>
    %cst_49 = arith.constant dense<0.000000e+00> : vector<16x32xf32>
    %36 = tpu.matmul %35, %18, %cst_49 {dimension_numbers = #tpu.dot_dimension_numbers<[1], [0], [0], [1], [0, 0, 1, 1], [], []>} : vector<16x16xbf16>, vector<16x32xbf16>, vector<16x32xf32> -> vector<16x32xf32>
    %37 = vector.broadcast %19 : vector<1x32xf32> to vector<16x32xf32>
    %38 = arith.addf %36, %37 : vector<16x32xf32>
    %39 = math.tanh %38 : vector<16x32xf32>
    %40 = arith.truncf %39 : vector<16x32xf32> to vector<16x32xbf16>
    %cst_50 = arith.constant dense<0.000000e+00> : vector<16x64xf32>
    %41 = tpu.matmul %40, %21, %cst_50 {dimension_numbers = #tpu.dot_dimension_numbers<[1], [0], [0], [1], [0, 0, 1, 1], [], []>} : vector<16x32xbf16>, vector<32x64xbf16>, vector<16x64xf32> -> vector<16x64xf32>
    %42 = vector.broadcast %22 : vector<1x64xf32> to vector<16x64xf32>
    %43 = arith.addf %41, %42 : vector<16x64xf32>
    %44 = vector.shape_cast %24 : vector<1x64xf32> to vector<1x64xf32>
    %45 = vector.broadcast %44 : vector<1x64xf32> to vector<2x64xf32>
    %46 = vector.shape_cast %26 : vector<1x64xf32> to vector<1x64xf32>
    %47 = vector.broadcast %46 : vector<1x64xf32> to vector<2x64xf32>
    %48 = vector.shape_cast %28 : vector<1x1xf32> to vector<1x1xf32>
    %49 = vector.broadcast %48 : vector<1x1xf32> to vector<2x1xf32>
    %50 = vector.shape_cast %30 : vector<1x96xf32> to vector<1x96xf32>
    %51 = vector.broadcast %50 : vector<1x96xf32> to vector<2x96xf32>
    %52 = vector.shape_cast %32 : vector<1x96xf32> to vector<1x96xf32>
    %53 = vector.broadcast %52 : vector<1x96xf32> to vector<2x96xf32>
    %cst_51 = arith.constant 0.000000e+00 : f32
    %54 = vector.broadcast %cst_51 : f32 to vector<2x32xf32>
    %cst_52 = arith.constant 0.000000e+00 : f32
    %55 = vector.broadcast %cst_52 : f32 to vector<2x1xf32>
    %56 = vector.extract_strided_slice %39 {offsets = [0, 0], sizes = [2, 32], strides = [1, 1]} : vector<16x32xf32> to vector<2x32xf32>
    %57 = vector.extract_strided_slice %43 {offsets = [0, 0], sizes = [2, 64], strides = [1, 1]} : vector<16x64xf32> to vector<2x64xf32>
    %58 = arith.truncf %54 : vector<2x32xf32> to vector<2x32xbf16>
    %cst_53 = arith.constant dense<0.000000e+00> : vector<2x64xf32>
    %59 = tpu.matmul %58, %20, %cst_53 {dimension_numbers = #tpu.dot_dimension_numbers<[1], [0], [0], [1], [0, 0, 1, 1], [], []>} : vector<2x32xbf16>, vector<32x64xbf16>, vector<2x64xf32> -> vector<2x64xf32>
    %60 = arith.addf %59, %57 : vector<2x64xf32>
    %cst_54 = arith.constant 0.000000e+00 : f32
    %61 = vector.broadcast %cst_54 : f32 to vector<2x64xf32>
    %62 = arith.maximumf %60, %61 : vector<2x64xf32>
    %63 = arith.truncf %62 : vector<2x64xf32> to vector<2x64xbf16>
    %cst_55 = arith.constant dense<0.000000e+00> : vector<2x64xf32>
    %64 = tpu.matmul %63, %23, %cst_55 {dimension_numbers = #tpu.dot_dimension_numbers<[1], [0], [0], [1], [0, 0, 1, 1], [], []>} : vector<2x64xbf16>, vector<64x64xbf16>, vector<2x64xf32> -> vector<2x64xf32>
    %65 = arith.addf %64, %45 : vector<2x64xf32>
    %cst_56 = arith.constant 0.000000e+00 : f32
    %66 = vector.broadcast %cst_56 : f32 to vector<2x64xf32>
    %67 = arith.maximumf %65, %66 : vector<2x64xf32>
    %68 = arith.truncf %67 : vector<2x64xf32> to vector<2x64xbf16>
    %cst_57 = arith.constant dense<0.000000e+00> : vector<2x64xf32>
    %69 = tpu.matmul %68, %25, %cst_57 {dimension_numbers = #tpu.dot_dimension_numbers<[1], [0], [0], [1], [0, 0, 1, 1], [], []>} : vector<2x64xbf16>, vector<64x64xbf16>, vector<2x64xf32> -> vector<2x64xf32>
    %70 = arith.addf %69, %47 : vector<2x64xf32>
    %cst_58 = arith.constant 0.000000e+00 : f32
    %71 = vector.broadcast %cst_58 : f32 to vector<2x64xf32>
    %72 = arith.maximumf %70, %71 : vector<2x64xf32>
    %73 = vector.broadcast %27 : vector<1x64xf32> to vector<2x64xf32>
    %74 = arith.mulf %72, %73 : vector<2x64xf32>
    %cst_59 = arith.constant dense<0.000000e+00> : vector<2xf32>
    %75 = vector.multi_reduction <add>, %74, %cst_59 [1] : vector<2x64xf32> to vector<2xf32>
    %76 = vector.shape_cast %75 : vector<2xf32> to vector<2x1xf32>
    %77 = arith.addf %76, %49 : vector<2x1xf32>
    %78 = vector.extract_strided_slice %34 {offsets = [0, 0], sizes = [2, 1], strides = [1, 1]} : vector<2x8xf32> to vector<2x1xf32>
    %79 = arith.addf %77, %78 : vector<2x1xf32>
    %cst_60 = arith.constant 1.000000e+01 : f32
    %80 = vector.broadcast %cst_60 : f32 to vector<2x1xf32>
    %81 = arith.mulf %79, %80 : vector<2x1xf32>
    %82 = arith.negf %81 : vector<2x1xf32>
    %83 = math.exp %82 : vector<2x1xf32>
    %cst_61 = arith.constant 1.000000e+00 : f32
    %84 = vector.broadcast %cst_61 : f32 to vector<2x1xf32>
    %85 = arith.addf %84, %83 : vector<2x1xf32>
    %86 = arith.divf %84, %85 : vector<2x1xf32>
    %87 = arith.truncf %54 : vector<2x32xf32> to vector<2x32xbf16>
    %cst_62 = arith.constant dense<0.000000e+00> : vector<2x96xf32>
    %88 = tpu.matmul %87, %29, %cst_62 {dimension_numbers = #tpu.dot_dimension_numbers<[1], [0], [0], [1], [0, 0, 1, 1], [], []>} : vector<2x32xbf16>, vector<32x96xbf16>, vector<2x96xf32> -> vector<2x96xf32>
    %89 = arith.addf %88, %51 : vector<2x96xf32>
    %90 = arith.truncf %17 : vector<2x32xf32> to vector<2x32xbf16>
    %cst_63 = arith.constant dense<0.000000e+00> : vector<2x96xf32>
    %91 = tpu.matmul %90, %31, %cst_63 {dimension_numbers = #tpu.dot_dimension_numbers<[1], [0], [0], [1], [0, 0, 1, 1], [], []>} : vector<2x32xbf16>, vector<32x96xbf16>, vector<2x96xf32> -> vector<2x96xf32>
    %92 = arith.addf %91, %53 : vector<2x96xf32>
    %93 = vector.extract_strided_slice %89 {offsets = [0, 0], sizes = [2, 32], strides = [1, 1]} : vector<2x96xf32> to vector<2x32xf32>
    %94 = vector.extract_strided_slice %92 {offsets = [0, 0], sizes = [2, 32], strides = [1, 1]} : vector<2x96xf32> to vector<2x32xf32>
    %95 = arith.addf %93, %94 : vector<2x32xf32>
    %96 = arith.negf %95 : vector<2x32xf32>
    %97 = math.exp %96 : vector<2x32xf32>
    %cst_64 = arith.constant 1.000000e+00 : f32
    %98 = vector.broadcast %cst_64 : f32 to vector<2x32xf32>
    %99 = arith.addf %98, %97 : vector<2x32xf32>
    %100 = arith.divf %98, %99 : vector<2x32xf32>
    %101 = vector.extract_strided_slice %89 {offsets = [0, 32], sizes = [2, 32], strides = [1, 1]} : vector<2x96xf32> to vector<2x32xf32>
    %102 = vector.extract_strided_slice %92 {offsets = [0, 32], sizes = [2, 32], strides = [1, 1]} : vector<2x96xf32> to vector<2x32xf32>
    %103 = arith.addf %101, %102 : vector<2x32xf32>
    %104 = arith.negf %103 : vector<2x32xf32>
    %105 = math.exp %104 : vector<2x32xf32>
    %cst_65 = arith.constant 1.000000e+00 : f32
    %106 = vector.broadcast %cst_65 : f32 to vector<2x32xf32>
    %107 = arith.addf %106, %105 : vector<2x32xf32>
    %108 = arith.divf %106, %107 : vector<2x32xf32>
    %109 = vector.extract_strided_slice %89 {offsets = [0, 64], sizes = [2, 32], strides = [1, 1]} : vector<2x96xf32> to vector<2x32xf32>
    %110 = vector.extract_strided_slice %92 {offsets = [0, 64], sizes = [2, 32], strides = [1, 1]} : vector<2x96xf32> to vector<2x32xf32>
    %111 = arith.mulf %100, %110 : vector<2x32xf32>
    %112 = arith.addf %109, %111 : vector<2x32xf32>
    %113 = math.tanh %112 : vector<2x32xf32>
    %cst_66 = arith.constant 1.000000e+00 : f32
    %114 = vector.broadcast %cst_66 : f32 to vector<2x32xf32>
    %115 = arith.subf %114, %108 : vector<2x32xf32>
    %116 = arith.mulf %115, %113 : vector<2x32xf32>
    %117 = arith.mulf %108, %17 : vector<2x32xf32>
    %118 = arith.addf %116, %117 : vector<2x32xf32>
    %cst_67 = arith.constant 1.000000e+00 : f32
    %119 = vector.broadcast %cst_67 : f32 to vector<2x1xf32>
    %120 = arith.subf %119, %86 : vector<2x1xf32>
    %121 = vector.broadcast %120 : vector<2x1xf32> to vector<2x32xf32>
    %122 = arith.mulf %17, %121 : vector<2x32xf32>
    %123 = vector.broadcast %86 : vector<2x1xf32> to vector<2x32xf32>
    %124 = arith.mulf %123, %118 : vector<2x32xf32>
    %125 = arith.addf %122, %124 : vector<2x32xf32>
    %126 = arith.mulf %55, %120 : vector<2x1xf32>
    %cst_68 = arith.constant 1.000000e+00 : f32
    %127 = vector.broadcast %cst_68 : f32 to vector<2x1xf32>
    %128 = arith.addf %126, %127 : vector<2x1xf32>
    %129 = arith.mulf %55, %120 : vector<2x1xf32>
    %130 = vector.broadcast %129 : vector<2x1xf32> to vector<2x32xf32>
    %131 = arith.mulf %54, %130 : vector<2x32xf32>
    %132 = arith.addf %131, %56 : vector<2x32xf32>
    %133 = vector.broadcast %128 : vector<2x1xf32> to vector<2x32xf32>
    %134 = arith.divf %132, %133 : vector<2x32xf32>
    %135 = vector.extract_strided_slice %39 {offsets = [2, 0], sizes = [2, 32], strides = [1, 1]} : vector<16x32xf32> to vector<2x32xf32>
    %136 = vector.extract_strided_slice %43 {offsets = [2, 0], sizes = [2, 64], strides = [1, 1]} : vector<16x64xf32> to vector<2x64xf32>
    %137 = arith.truncf %134 : vector<2x32xf32> to vector<2x32xbf16>
    %cst_69 = arith.constant dense<0.000000e+00> : vector<2x64xf32>
    %138 = tpu.matmul %137, %20, %cst_69 {dimension_numbers = #tpu.dot_dimension_numbers<[1], [0], [0], [1], [0, 0, 1, 1], [], []>} : vector<2x32xbf16>, vector<32x64xbf16>, vector<2x64xf32> -> vector<2x64xf32>
    %139 = arith.addf %138, %136 : vector<2x64xf32>
    %cst_70 = arith.constant 0.000000e+00 : f32
    %140 = vector.broadcast %cst_70 : f32 to vector<2x64xf32>
    %141 = arith.maximumf %139, %140 : vector<2x64xf32>
    %142 = arith.truncf %141 : vector<2x64xf32> to vector<2x64xbf16>
    %cst_71 = arith.constant dense<0.000000e+00> : vector<2x64xf32>
    %143 = tpu.matmul %142, %23, %cst_71 {dimension_numbers = #tpu.dot_dimension_numbers<[1], [0], [0], [1], [0, 0, 1, 1], [], []>} : vector<2x64xbf16>, vector<64x64xbf16>, vector<2x64xf32> -> vector<2x64xf32>
    %144 = arith.addf %143, %45 : vector<2x64xf32>
    %cst_72 = arith.constant 0.000000e+00 : f32
    %145 = vector.broadcast %cst_72 : f32 to vector<2x64xf32>
    %146 = arith.maximumf %144, %145 : vector<2x64xf32>
    %147 = arith.truncf %146 : vector<2x64xf32> to vector<2x64xbf16>
    %cst_73 = arith.constant dense<0.000000e+00> : vector<2x64xf32>
    %148 = tpu.matmul %147, %25, %cst_73 {dimension_numbers = #tpu.dot_dimension_numbers<[1], [0], [0], [1], [0, 0, 1, 1], [], []>} : vector<2x64xbf16>, vector<64x64xbf16>, vector<2x64xf32> -> vector<2x64xf32>
    %149 = arith.addf %148, %47 : vector<2x64xf32>
    %cst_74 = arith.constant 0.000000e+00 : f32
    %150 = vector.broadcast %cst_74 : f32 to vector<2x64xf32>
    %151 = arith.maximumf %149, %150 : vector<2x64xf32>
    %152 = vector.broadcast %27 : vector<1x64xf32> to vector<2x64xf32>
    %153 = arith.mulf %151, %152 : vector<2x64xf32>
    %cst_75 = arith.constant dense<0.000000e+00> : vector<2xf32>
    %154 = vector.multi_reduction <add>, %153, %cst_75 [1] : vector<2x64xf32> to vector<2xf32>
    %155 = vector.shape_cast %154 : vector<2xf32> to vector<2x1xf32>
    %156 = arith.addf %155, %49 : vector<2x1xf32>
    %157 = vector.extract_strided_slice %34 {offsets = [0, 1], sizes = [2, 1], strides = [1, 1]} : vector<2x8xf32> to vector<2x1xf32>
    %158 = arith.addf %156, %157 : vector<2x1xf32>
    %cst_76 = arith.constant 1.000000e+01 : f32
    %159 = vector.broadcast %cst_76 : f32 to vector<2x1xf32>
    %160 = arith.mulf %158, %159 : vector<2x1xf32>
    %161 = arith.negf %160 : vector<2x1xf32>
    %162 = math.exp %161 : vector<2x1xf32>
    %cst_77 = arith.constant 1.000000e+00 : f32
    %163 = vector.broadcast %cst_77 : f32 to vector<2x1xf32>
    %164 = arith.addf %163, %162 : vector<2x1xf32>
    %165 = arith.divf %163, %164 : vector<2x1xf32>
    %166 = arith.truncf %134 : vector<2x32xf32> to vector<2x32xbf16>
    %cst_78 = arith.constant dense<0.000000e+00> : vector<2x96xf32>
    %167 = tpu.matmul %166, %29, %cst_78 {dimension_numbers = #tpu.dot_dimension_numbers<[1], [0], [0], [1], [0, 0, 1, 1], [], []>} : vector<2x32xbf16>, vector<32x96xbf16>, vector<2x96xf32> -> vector<2x96xf32>
    %168 = arith.addf %167, %51 : vector<2x96xf32>
    %169 = arith.truncf %125 : vector<2x32xf32> to vector<2x32xbf16>
    %cst_79 = arith.constant dense<0.000000e+00> : vector<2x96xf32>
    %170 = tpu.matmul %169, %31, %cst_79 {dimension_numbers = #tpu.dot_dimension_numbers<[1], [0], [0], [1], [0, 0, 1, 1], [], []>} : vector<2x32xbf16>, vector<32x96xbf16>, vector<2x96xf32> -> vector<2x96xf32>
    %171 = arith.addf %170, %53 : vector<2x96xf32>
    %172 = vector.extract_strided_slice %168 {offsets = [0, 0], sizes = [2, 32], strides = [1, 1]} : vector<2x96xf32> to vector<2x32xf32>
    %173 = vector.extract_strided_slice %171 {offsets = [0, 0], sizes = [2, 32], strides = [1, 1]} : vector<2x96xf32> to vector<2x32xf32>
    %174 = arith.addf %172, %173 : vector<2x32xf32>
    %175 = arith.negf %174 : vector<2x32xf32>
    %176 = math.exp %175 : vector<2x32xf32>
    %cst_80 = arith.constant 1.000000e+00 : f32
    %177 = vector.broadcast %cst_80 : f32 to vector<2x32xf32>
    %178 = arith.addf %177, %176 : vector<2x32xf32>
    %179 = arith.divf %177, %178 : vector<2x32xf32>
    %180 = vector.extract_strided_slice %168 {offsets = [0, 32], sizes = [2, 32], strides = [1, 1]} : vector<2x96xf32> to vector<2x32xf32>
    %181 = vector.extract_strided_slice %171 {offsets = [0, 32], sizes = [2, 32], strides = [1, 1]} : vector<2x96xf32> to vector<2x32xf32>
    %182 = arith.addf %180, %181 : vector<2x32xf32>
    %183 = arith.negf %182 : vector<2x32xf32>
    %184 = math.exp %183 : vector<2x32xf32>
    %cst_81 = arith.constant 1.000000e+00 : f32
    %185 = vector.broadcast %cst_81 : f32 to vector<2x32xf32>
    %186 = arith.addf %185, %184 : vector<2x32xf32>
    %187 = arith.divf %185, %186 : vector<2x32xf32>
    %188 = vector.extract_strided_slice %168 {offsets = [0, 64], sizes = [2, 32], strides = [1, 1]} : vector<2x96xf32> to vector<2x32xf32>
    %189 = vector.extract_strided_slice %171 {offsets = [0, 64], sizes = [2, 32], strides = [1, 1]} : vector<2x96xf32> to vector<2x32xf32>
    %190 = arith.mulf %179, %189 : vector<2x32xf32>
    %191 = arith.addf %188, %190 : vector<2x32xf32>
    %192 = math.tanh %191 : vector<2x32xf32>
    %cst_82 = arith.constant 1.000000e+00 : f32
    %193 = vector.broadcast %cst_82 : f32 to vector<2x32xf32>
    %194 = arith.subf %193, %187 : vector<2x32xf32>
    %195 = arith.mulf %194, %192 : vector<2x32xf32>
    %196 = arith.mulf %187, %125 : vector<2x32xf32>
    %197 = arith.addf %195, %196 : vector<2x32xf32>
    %cst_83 = arith.constant 1.000000e+00 : f32
    %198 = vector.broadcast %cst_83 : f32 to vector<2x1xf32>
    %199 = arith.subf %198, %165 : vector<2x1xf32>
    %200 = vector.broadcast %199 : vector<2x1xf32> to vector<2x32xf32>
    %201 = arith.mulf %125, %200 : vector<2x32xf32>
    %202 = vector.broadcast %165 : vector<2x1xf32> to vector<2x32xf32>
    %203 = arith.mulf %202, %197 : vector<2x32xf32>
    %204 = arith.addf %201, %203 : vector<2x32xf32>
    %205 = arith.mulf %128, %199 : vector<2x1xf32>
    %cst_84 = arith.constant 1.000000e+00 : f32
    %206 = vector.broadcast %cst_84 : f32 to vector<2x1xf32>
    %207 = arith.addf %205, %206 : vector<2x1xf32>
    %208 = arith.mulf %128, %199 : vector<2x1xf32>
    %209 = vector.broadcast %208 : vector<2x1xf32> to vector<2x32xf32>
    %210 = arith.mulf %134, %209 : vector<2x32xf32>
    %211 = arith.addf %210, %135 : vector<2x32xf32>
    %212 = vector.broadcast %207 : vector<2x1xf32> to vector<2x32xf32>
    %213 = arith.divf %211, %212 : vector<2x32xf32>
    %214 = vector.extract_strided_slice %39 {offsets = [4, 0], sizes = [2, 32], strides = [1, 1]} : vector<16x32xf32> to vector<2x32xf32>
    %215 = vector.extract_strided_slice %43 {offsets = [4, 0], sizes = [2, 64], strides = [1, 1]} : vector<16x64xf32> to vector<2x64xf32>
    %216 = arith.truncf %213 : vector<2x32xf32> to vector<2x32xbf16>
    %cst_85 = arith.constant dense<0.000000e+00> : vector<2x64xf32>
    %217 = tpu.matmul %216, %20, %cst_85 {dimension_numbers = #tpu.dot_dimension_numbers<[1], [0], [0], [1], [0, 0, 1, 1], [], []>} : vector<2x32xbf16>, vector<32x64xbf16>, vector<2x64xf32> -> vector<2x64xf32>
    %218 = arith.addf %217, %215 : vector<2x64xf32>
    %cst_86 = arith.constant 0.000000e+00 : f32
    %219 = vector.broadcast %cst_86 : f32 to vector<2x64xf32>
    %220 = arith.maximumf %218, %219 : vector<2x64xf32>
    %221 = arith.truncf %220 : vector<2x64xf32> to vector<2x64xbf16>
    %cst_87 = arith.constant dense<0.000000e+00> : vector<2x64xf32>
    %222 = tpu.matmul %221, %23, %cst_87 {dimension_numbers = #tpu.dot_dimension_numbers<[1], [0], [0], [1], [0, 0, 1, 1], [], []>} : vector<2x64xbf16>, vector<64x64xbf16>, vector<2x64xf32> -> vector<2x64xf32>
    %223 = arith.addf %222, %45 : vector<2x64xf32>
    %cst_88 = arith.constant 0.000000e+00 : f32
    %224 = vector.broadcast %cst_88 : f32 to vector<2x64xf32>
    %225 = arith.maximumf %223, %224 : vector<2x64xf32>
    %226 = arith.truncf %225 : vector<2x64xf32> to vector<2x64xbf16>
    %cst_89 = arith.constant dense<0.000000e+00> : vector<2x64xf32>
    %227 = tpu.matmul %226, %25, %cst_89 {dimension_numbers = #tpu.dot_dimension_numbers<[1], [0], [0], [1], [0, 0, 1, 1], [], []>} : vector<2x64xbf16>, vector<64x64xbf16>, vector<2x64xf32> -> vector<2x64xf32>
    %228 = arith.addf %227, %47 : vector<2x64xf32>
    %cst_90 = arith.constant 0.000000e+00 : f32
    %229 = vector.broadcast %cst_90 : f32 to vector<2x64xf32>
    %230 = arith.maximumf %228, %229 : vector<2x64xf32>
    %231 = vector.broadcast %27 : vector<1x64xf32> to vector<2x64xf32>
    %232 = arith.mulf %230, %231 : vector<2x64xf32>
    %cst_91 = arith.constant dense<0.000000e+00> : vector<2xf32>
    %233 = vector.multi_reduction <add>, %232, %cst_91 [1] : vector<2x64xf32> to vector<2xf32>
    %234 = vector.shape_cast %233 : vector<2xf32> to vector<2x1xf32>
    %235 = arith.addf %234, %49 : vector<2x1xf32>
    %236 = vector.extract_strided_slice %34 {offsets = [0, 2], sizes = [2, 1], strides = [1, 1]} : vector<2x8xf32> to vector<2x1xf32>
    %237 = arith.addf %235, %236 : vector<2x1xf32>
    %cst_92 = arith.constant 1.000000e+01 : f32
    %238 = vector.broadcast %cst_92 : f32 to vector<2x1xf32>
    %239 = arith.mulf %237, %238 : vector<2x1xf32>
    %240 = arith.negf %239 : vector<2x1xf32>
    %241 = math.exp %240 : vector<2x1xf32>
    %cst_93 = arith.constant 1.000000e+00 : f32
    %242 = vector.broadcast %cst_93 : f32 to vector<2x1xf32>
    %243 = arith.addf %242, %241 : vector<2x1xf32>
    %244 = arith.divf %242, %243 : vector<2x1xf32>
    %245 = arith.truncf %213 : vector<2x32xf32> to vector<2x32xbf16>
    %cst_94 = arith.constant dense<0.000000e+00> : vector<2x96xf32>
    %246 = tpu.matmul %245, %29, %cst_94 {dimension_numbers = #tpu.dot_dimension_numbers<[1], [0], [0], [1], [0, 0, 1, 1], [], []>} : vector<2x32xbf16>, vector<32x96xbf16>, vector<2x96xf32> -> vector<2x96xf32>
    %247 = arith.addf %246, %51 : vector<2x96xf32>
    %248 = arith.truncf %204 : vector<2x32xf32> to vector<2x32xbf16>
    %cst_95 = arith.constant dense<0.000000e+00> : vector<2x96xf32>
    %249 = tpu.matmul %248, %31, %cst_95 {dimension_numbers = #tpu.dot_dimension_numbers<[1], [0], [0], [1], [0, 0, 1, 1], [], []>} : vector<2x32xbf16>, vector<32x96xbf16>, vector<2x96xf32> -> vector<2x96xf32>
    %250 = arith.addf %249, %53 : vector<2x96xf32>
    %251 = vector.extract_strided_slice %247 {offsets = [0, 0], sizes = [2, 32], strides = [1, 1]} : vector<2x96xf32> to vector<2x32xf32>
    %252 = vector.extract_strided_slice %250 {offsets = [0, 0], sizes = [2, 32], strides = [1, 1]} : vector<2x96xf32> to vector<2x32xf32>
    %253 = arith.addf %251, %252 : vector<2x32xf32>
    %254 = arith.negf %253 : vector<2x32xf32>
    %255 = math.exp %254 : vector<2x32xf32>
    %cst_96 = arith.constant 1.000000e+00 : f32
    %256 = vector.broadcast %cst_96 : f32 to vector<2x32xf32>
    %257 = arith.addf %256, %255 : vector<2x32xf32>
    %258 = arith.divf %256, %257 : vector<2x32xf32>
    %259 = vector.extract_strided_slice %247 {offsets = [0, 32], sizes = [2, 32], strides = [1, 1]} : vector<2x96xf32> to vector<2x32xf32>
    %260 = vector.extract_strided_slice %250 {offsets = [0, 32], sizes = [2, 32], strides = [1, 1]} : vector<2x96xf32> to vector<2x32xf32>
    %261 = arith.addf %259, %260 : vector<2x32xf32>
    %262 = arith.negf %261 : vector<2x32xf32>
    %263 = math.exp %262 : vector<2x32xf32>
    %cst_97 = arith.constant 1.000000e+00 : f32
    %264 = vector.broadcast %cst_97 : f32 to vector<2x32xf32>
    %265 = arith.addf %264, %263 : vector<2x32xf32>
    %266 = arith.divf %264, %265 : vector<2x32xf32>
    %267 = vector.extract_strided_slice %247 {offsets = [0, 64], sizes = [2, 32], strides = [1, 1]} : vector<2x96xf32> to vector<2x32xf32>
    %268 = vector.extract_strided_slice %250 {offsets = [0, 64], sizes = [2, 32], strides = [1, 1]} : vector<2x96xf32> to vector<2x32xf32>
    %269 = arith.mulf %258, %268 : vector<2x32xf32>
    %270 = arith.addf %267, %269 : vector<2x32xf32>
    %271 = math.tanh %270 : vector<2x32xf32>
    %cst_98 = arith.constant 1.000000e+00 : f32
    %272 = vector.broadcast %cst_98 : f32 to vector<2x32xf32>
    %273 = arith.subf %272, %266 : vector<2x32xf32>
    %274 = arith.mulf %273, %271 : vector<2x32xf32>
    %275 = arith.mulf %266, %204 : vector<2x32xf32>
    %276 = arith.addf %274, %275 : vector<2x32xf32>
    %cst_99 = arith.constant 1.000000e+00 : f32
    %277 = vector.broadcast %cst_99 : f32 to vector<2x1xf32>
    %278 = arith.subf %277, %244 : vector<2x1xf32>
    %279 = vector.broadcast %278 : vector<2x1xf32> to vector<2x32xf32>
    %280 = arith.mulf %204, %279 : vector<2x32xf32>
    %281 = vector.broadcast %244 : vector<2x1xf32> to vector<2x32xf32>
    %282 = arith.mulf %281, %276 : vector<2x32xf32>
    %283 = arith.addf %280, %282 : vector<2x32xf32>
    %284 = arith.mulf %207, %278 : vector<2x1xf32>
    %cst_100 = arith.constant 1.000000e+00 : f32
    %285 = vector.broadcast %cst_100 : f32 to vector<2x1xf32>
    %286 = arith.addf %284, %285 : vector<2x1xf32>
    %287 = arith.mulf %207, %278 : vector<2x1xf32>
    %288 = vector.broadcast %287 : vector<2x1xf32> to vector<2x32xf32>
    %289 = arith.mulf %213, %288 : vector<2x32xf32>
    %290 = arith.addf %289, %214 : vector<2x32xf32>
    %291 = vector.broadcast %286 : vector<2x1xf32> to vector<2x32xf32>
    %292 = arith.divf %290, %291 : vector<2x32xf32>
    %293 = vector.extract_strided_slice %39 {offsets = [6, 0], sizes = [2, 32], strides = [1, 1]} : vector<16x32xf32> to vector<2x32xf32>
    %294 = vector.extract_strided_slice %43 {offsets = [6, 0], sizes = [2, 64], strides = [1, 1]} : vector<16x64xf32> to vector<2x64xf32>
    %295 = arith.truncf %292 : vector<2x32xf32> to vector<2x32xbf16>
    %cst_101 = arith.constant dense<0.000000e+00> : vector<2x64xf32>
    %296 = tpu.matmul %295, %20, %cst_101 {dimension_numbers = #tpu.dot_dimension_numbers<[1], [0], [0], [1], [0, 0, 1, 1], [], []>} : vector<2x32xbf16>, vector<32x64xbf16>, vector<2x64xf32> -> vector<2x64xf32>
    %297 = arith.addf %296, %294 : vector<2x64xf32>
    %cst_102 = arith.constant 0.000000e+00 : f32
    %298 = vector.broadcast %cst_102 : f32 to vector<2x64xf32>
    %299 = arith.maximumf %297, %298 : vector<2x64xf32>
    %300 = arith.truncf %299 : vector<2x64xf32> to vector<2x64xbf16>
    %cst_103 = arith.constant dense<0.000000e+00> : vector<2x64xf32>
    %301 = tpu.matmul %300, %23, %cst_103 {dimension_numbers = #tpu.dot_dimension_numbers<[1], [0], [0], [1], [0, 0, 1, 1], [], []>} : vector<2x64xbf16>, vector<64x64xbf16>, vector<2x64xf32> -> vector<2x64xf32>
    %302 = arith.addf %301, %45 : vector<2x64xf32>
    %cst_104 = arith.constant 0.000000e+00 : f32
    %303 = vector.broadcast %cst_104 : f32 to vector<2x64xf32>
    %304 = arith.maximumf %302, %303 : vector<2x64xf32>
    %305 = arith.truncf %304 : vector<2x64xf32> to vector<2x64xbf16>
    %cst_105 = arith.constant dense<0.000000e+00> : vector<2x64xf32>
    %306 = tpu.matmul %305, %25, %cst_105 {dimension_numbers = #tpu.dot_dimension_numbers<[1], [0], [0], [1], [0, 0, 1, 1], [], []>} : vector<2x64xbf16>, vector<64x64xbf16>, vector<2x64xf32> -> vector<2x64xf32>
    %307 = arith.addf %306, %47 : vector<2x64xf32>
    %cst_106 = arith.constant 0.000000e+00 : f32
    %308 = vector.broadcast %cst_106 : f32 to vector<2x64xf32>
    %309 = arith.maximumf %307, %308 : vector<2x64xf32>
    %310 = vector.broadcast %27 : vector<1x64xf32> to vector<2x64xf32>
    %311 = arith.mulf %309, %310 : vector<2x64xf32>
    %cst_107 = arith.constant dense<0.000000e+00> : vector<2xf32>
    %312 = vector.multi_reduction <add>, %311, %cst_107 [1] : vector<2x64xf32> to vector<2xf32>
    %313 = vector.shape_cast %312 : vector<2xf32> to vector<2x1xf32>
    %314 = arith.addf %313, %49 : vector<2x1xf32>
    %315 = vector.extract_strided_slice %34 {offsets = [0, 3], sizes = [2, 1], strides = [1, 1]} : vector<2x8xf32> to vector<2x1xf32>
    %316 = arith.addf %314, %315 : vector<2x1xf32>
    %cst_108 = arith.constant 1.000000e+01 : f32
    %317 = vector.broadcast %cst_108 : f32 to vector<2x1xf32>
    %318 = arith.mulf %316, %317 : vector<2x1xf32>
    %319 = arith.negf %318 : vector<2x1xf32>
    %320 = math.exp %319 : vector<2x1xf32>
    %cst_109 = arith.constant 1.000000e+00 : f32
    %321 = vector.broadcast %cst_109 : f32 to vector<2x1xf32>
    %322 = arith.addf %321, %320 : vector<2x1xf32>
    %323 = arith.divf %321, %322 : vector<2x1xf32>
    %324 = arith.truncf %292 : vector<2x32xf32> to vector<2x32xbf16>
    %cst_110 = arith.constant dense<0.000000e+00> : vector<2x96xf32>
    %325 = tpu.matmul %324, %29, %cst_110 {dimension_numbers = #tpu.dot_dimension_numbers<[1], [0], [0], [1], [0, 0, 1, 1], [], []>} : vector<2x32xbf16>, vector<32x96xbf16>, vector<2x96xf32> -> vector<2x96xf32>
    %326 = arith.addf %325, %51 : vector<2x96xf32>
    %327 = arith.truncf %283 : vector<2x32xf32> to vector<2x32xbf16>
    %cst_111 = arith.constant dense<0.000000e+00> : vector<2x96xf32>
    %328 = tpu.matmul %327, %31, %cst_111 {dimension_numbers = #tpu.dot_dimension_numbers<[1], [0], [0], [1], [0, 0, 1, 1], [], []>} : vector<2x32xbf16>, vector<32x96xbf16>, vector<2x96xf32> -> vector<2x96xf32>
    %329 = arith.addf %328, %53 : vector<2x96xf32>
    %330 = vector.extract_strided_slice %326 {offsets = [0, 0], sizes = [2, 32], strides = [1, 1]} : vector<2x96xf32> to vector<2x32xf32>
    %331 = vector.extract_strided_slice %329 {offsets = [0, 0], sizes = [2, 32], strides = [1, 1]} : vector<2x96xf32> to vector<2x32xf32>
    %332 = arith.addf %330, %331 : vector<2x32xf32>
    %333 = arith.negf %332 : vector<2x32xf32>
    %334 = math.exp %333 : vector<2x32xf32>
    %cst_112 = arith.constant 1.000000e+00 : f32
    %335 = vector.broadcast %cst_112 : f32 to vector<2x32xf32>
    %336 = arith.addf %335, %334 : vector<2x32xf32>
    %337 = arith.divf %335, %336 : vector<2x32xf32>
    %338 = vector.extract_strided_slice %326 {offsets = [0, 32], sizes = [2, 32], strides = [1, 1]} : vector<2x96xf32> to vector<2x32xf32>
    %339 = vector.extract_strided_slice %329 {offsets = [0, 32], sizes = [2, 32], strides = [1, 1]} : vector<2x96xf32> to vector<2x32xf32>
    %340 = arith.addf %338, %339 : vector<2x32xf32>
    %341 = arith.negf %340 : vector<2x32xf32>
    %342 = math.exp %341 : vector<2x32xf32>
    %cst_113 = arith.constant 1.000000e+00 : f32
    %343 = vector.broadcast %cst_113 : f32 to vector<2x32xf32>
    %344 = arith.addf %343, %342 : vector<2x32xf32>
    %345 = arith.divf %343, %344 : vector<2x32xf32>
    %346 = vector.extract_strided_slice %326 {offsets = [0, 64], sizes = [2, 32], strides = [1, 1]} : vector<2x96xf32> to vector<2x32xf32>
    %347 = vector.extract_strided_slice %329 {offsets = [0, 64], sizes = [2, 32], strides = [1, 1]} : vector<2x96xf32> to vector<2x32xf32>
    %348 = arith.mulf %337, %347 : vector<2x32xf32>
    %349 = arith.addf %346, %348 : vector<2x32xf32>
    %350 = math.tanh %349 : vector<2x32xf32>
    %cst_114 = arith.constant 1.000000e+00 : f32
    %351 = vector.broadcast %cst_114 : f32 to vector<2x32xf32>
    %352 = arith.subf %351, %345 : vector<2x32xf32>
    %353 = arith.mulf %352, %350 : vector<2x32xf32>
    %354 = arith.mulf %345, %283 : vector<2x32xf32>
    %355 = arith.addf %353, %354 : vector<2x32xf32>
    %cst_115 = arith.constant 1.000000e+00 : f32
    %356 = vector.broadcast %cst_115 : f32 to vector<2x1xf32>
    %357 = arith.subf %356, %323 : vector<2x1xf32>
    %358 = vector.broadcast %357 : vector<2x1xf32> to vector<2x32xf32>
    %359 = arith.mulf %283, %358 : vector<2x32xf32>
    %360 = vector.broadcast %323 : vector<2x1xf32> to vector<2x32xf32>
    %361 = arith.mulf %360, %355 : vector<2x32xf32>
    %362 = arith.addf %359, %361 : vector<2x32xf32>
    %363 = arith.mulf %286, %357 : vector<2x1xf32>
    %cst_116 = arith.constant 1.000000e+00 : f32
    %364 = vector.broadcast %cst_116 : f32 to vector<2x1xf32>
    %365 = arith.addf %363, %364 : vector<2x1xf32>
    %366 = arith.mulf %286, %357 : vector<2x1xf32>
    %367 = vector.broadcast %366 : vector<2x1xf32> to vector<2x32xf32>
    %368 = arith.mulf %292, %367 : vector<2x32xf32>
    %369 = arith.addf %368, %293 : vector<2x32xf32>
    %370 = vector.broadcast %365 : vector<2x1xf32> to vector<2x32xf32>
    %371 = arith.divf %369, %370 : vector<2x32xf32>
    %372 = vector.extract_strided_slice %39 {offsets = [8, 0], sizes = [2, 32], strides = [1, 1]} : vector<16x32xf32> to vector<2x32xf32>
    %373 = vector.extract_strided_slice %43 {offsets = [8, 0], sizes = [2, 64], strides = [1, 1]} : vector<16x64xf32> to vector<2x64xf32>
    %374 = arith.truncf %371 : vector<2x32xf32> to vector<2x32xbf16>
    %cst_117 = arith.constant dense<0.000000e+00> : vector<2x64xf32>
    %375 = tpu.matmul %374, %20, %cst_117 {dimension_numbers = #tpu.dot_dimension_numbers<[1], [0], [0], [1], [0, 0, 1, 1], [], []>} : vector<2x32xbf16>, vector<32x64xbf16>, vector<2x64xf32> -> vector<2x64xf32>
    %376 = arith.addf %375, %373 : vector<2x64xf32>
    %cst_118 = arith.constant 0.000000e+00 : f32
    %377 = vector.broadcast %cst_118 : f32 to vector<2x64xf32>
    %378 = arith.maximumf %376, %377 : vector<2x64xf32>
    %379 = arith.truncf %378 : vector<2x64xf32> to vector<2x64xbf16>
    %cst_119 = arith.constant dense<0.000000e+00> : vector<2x64xf32>
    %380 = tpu.matmul %379, %23, %cst_119 {dimension_numbers = #tpu.dot_dimension_numbers<[1], [0], [0], [1], [0, 0, 1, 1], [], []>} : vector<2x64xbf16>, vector<64x64xbf16>, vector<2x64xf32> -> vector<2x64xf32>
    %381 = arith.addf %380, %45 : vector<2x64xf32>
    %cst_120 = arith.constant 0.000000e+00 : f32
    %382 = vector.broadcast %cst_120 : f32 to vector<2x64xf32>
    %383 = arith.maximumf %381, %382 : vector<2x64xf32>
    %384 = arith.truncf %383 : vector<2x64xf32> to vector<2x64xbf16>
    %cst_121 = arith.constant dense<0.000000e+00> : vector<2x64xf32>
    %385 = tpu.matmul %384, %25, %cst_121 {dimension_numbers = #tpu.dot_dimension_numbers<[1], [0], [0], [1], [0, 0, 1, 1], [], []>} : vector<2x64xbf16>, vector<64x64xbf16>, vector<2x64xf32> -> vector<2x64xf32>
    %386 = arith.addf %385, %47 : vector<2x64xf32>
    %cst_122 = arith.constant 0.000000e+00 : f32
    %387 = vector.broadcast %cst_122 : f32 to vector<2x64xf32>
    %388 = arith.maximumf %386, %387 : vector<2x64xf32>
    %389 = vector.broadcast %27 : vector<1x64xf32> to vector<2x64xf32>
    %390 = arith.mulf %388, %389 : vector<2x64xf32>
    %cst_123 = arith.constant dense<0.000000e+00> : vector<2xf32>
    %391 = vector.multi_reduction <add>, %390, %cst_123 [1] : vector<2x64xf32> to vector<2xf32>
    %392 = vector.shape_cast %391 : vector<2xf32> to vector<2x1xf32>
    %393 = arith.addf %392, %49 : vector<2x1xf32>
    %394 = vector.extract_strided_slice %34 {offsets = [0, 4], sizes = [2, 1], strides = [1, 1]} : vector<2x8xf32> to vector<2x1xf32>
    %395 = arith.addf %393, %394 : vector<2x1xf32>
    %cst_124 = arith.constant 1.000000e+01 : f32
    %396 = vector.broadcast %cst_124 : f32 to vector<2x1xf32>
    %397 = arith.mulf %395, %396 : vector<2x1xf32>
    %398 = arith.negf %397 : vector<2x1xf32>
    %399 = math.exp %398 : vector<2x1xf32>
    %cst_125 = arith.constant 1.000000e+00 : f32
    %400 = vector.broadcast %cst_125 : f32 to vector<2x1xf32>
    %401 = arith.addf %400, %399 : vector<2x1xf32>
    %402 = arith.divf %400, %401 : vector<2x1xf32>
    %403 = arith.truncf %371 : vector<2x32xf32> to vector<2x32xbf16>
    %cst_126 = arith.constant dense<0.000000e+00> : vector<2x96xf32>
    %404 = tpu.matmul %403, %29, %cst_126 {dimension_numbers = #tpu.dot_dimension_numbers<[1], [0], [0], [1], [0, 0, 1, 1], [], []>} : vector<2x32xbf16>, vector<32x96xbf16>, vector<2x96xf32> -> vector<2x96xf32>
    %405 = arith.addf %404, %51 : vector<2x96xf32>
    %406 = arith.truncf %362 : vector<2x32xf32> to vector<2x32xbf16>
    %cst_127 = arith.constant dense<0.000000e+00> : vector<2x96xf32>
    %407 = tpu.matmul %406, %31, %cst_127 {dimension_numbers = #tpu.dot_dimension_numbers<[1], [0], [0], [1], [0, 0, 1, 1], [], []>} : vector<2x32xbf16>, vector<32x96xbf16>, vector<2x96xf32> -> vector<2x96xf32>
    %408 = arith.addf %407, %53 : vector<2x96xf32>
    %409 = vector.extract_strided_slice %405 {offsets = [0, 0], sizes = [2, 32], strides = [1, 1]} : vector<2x96xf32> to vector<2x32xf32>
    %410 = vector.extract_strided_slice %408 {offsets = [0, 0], sizes = [2, 32], strides = [1, 1]} : vector<2x96xf32> to vector<2x32xf32>
    %411 = arith.addf %409, %410 : vector<2x32xf32>
    %412 = arith.negf %411 : vector<2x32xf32>
    %413 = math.exp %412 : vector<2x32xf32>
    %cst_128 = arith.constant 1.000000e+00 : f32
    %414 = vector.broadcast %cst_128 : f32 to vector<2x32xf32>
    %415 = arith.addf %414, %413 : vector<2x32xf32>
    %416 = arith.divf %414, %415 : vector<2x32xf32>
    %417 = vector.extract_strided_slice %405 {offsets = [0, 32], sizes = [2, 32], strides = [1, 1]} : vector<2x96xf32> to vector<2x32xf32>
    %418 = vector.extract_strided_slice %408 {offsets = [0, 32], sizes = [2, 32], strides = [1, 1]} : vector<2x96xf32> to vector<2x32xf32>
    %419 = arith.addf %417, %418 : vector<2x32xf32>
    %420 = arith.negf %419 : vector<2x32xf32>
    %421 = math.exp %420 : vector<2x32xf32>
    %cst_129 = arith.constant 1.000000e+00 : f32
    %422 = vector.broadcast %cst_129 : f32 to vector<2x32xf32>
    %423 = arith.addf %422, %421 : vector<2x32xf32>
    %424 = arith.divf %422, %423 : vector<2x32xf32>
    %425 = vector.extract_strided_slice %405 {offsets = [0, 64], sizes = [2, 32], strides = [1, 1]} : vector<2x96xf32> to vector<2x32xf32>
    %426 = vector.extract_strided_slice %408 {offsets = [0, 64], sizes = [2, 32], strides = [1, 1]} : vector<2x96xf32> to vector<2x32xf32>
    %427 = arith.mulf %416, %426 : vector<2x32xf32>
    %428 = arith.addf %425, %427 : vector<2x32xf32>
    %429 = math.tanh %428 : vector<2x32xf32>
    %cst_130 = arith.constant 1.000000e+00 : f32
    %430 = vector.broadcast %cst_130 : f32 to vector<2x32xf32>
    %431 = arith.subf %430, %424 : vector<2x32xf32>
    %432 = arith.mulf %431, %429 : vector<2x32xf32>
    %433 = arith.mulf %424, %362 : vector<2x32xf32>
    %434 = arith.addf %432, %433 : vector<2x32xf32>
    %cst_131 = arith.constant 1.000000e+00 : f32
    %435 = vector.broadcast %cst_131 : f32 to vector<2x1xf32>
    %436 = arith.subf %435, %402 : vector<2x1xf32>
    %437 = vector.broadcast %436 : vector<2x1xf32> to vector<2x32xf32>
    %438 = arith.mulf %362, %437 : vector<2x32xf32>
    %439 = vector.broadcast %402 : vector<2x1xf32> to vector<2x32xf32>
    %440 = arith.mulf %439, %434 : vector<2x32xf32>
    %441 = arith.addf %438, %440 : vector<2x32xf32>
    %442 = arith.mulf %365, %436 : vector<2x1xf32>
    %cst_132 = arith.constant 1.000000e+00 : f32
    %443 = vector.broadcast %cst_132 : f32 to vector<2x1xf32>
    %444 = arith.addf %442, %443 : vector<2x1xf32>
    %445 = arith.mulf %365, %436 : vector<2x1xf32>
    %446 = vector.broadcast %445 : vector<2x1xf32> to vector<2x32xf32>
    %447 = arith.mulf %371, %446 : vector<2x32xf32>
    %448 = arith.addf %447, %372 : vector<2x32xf32>
    %449 = vector.broadcast %444 : vector<2x1xf32> to vector<2x32xf32>
    %450 = arith.divf %448, %449 : vector<2x32xf32>
    %451 = vector.extract_strided_slice %39 {offsets = [10, 0], sizes = [2, 32], strides = [1, 1]} : vector<16x32xf32> to vector<2x32xf32>
    %452 = vector.extract_strided_slice %43 {offsets = [10, 0], sizes = [2, 64], strides = [1, 1]} : vector<16x64xf32> to vector<2x64xf32>
    %453 = arith.truncf %450 : vector<2x32xf32> to vector<2x32xbf16>
    %cst_133 = arith.constant dense<0.000000e+00> : vector<2x64xf32>
    %454 = tpu.matmul %453, %20, %cst_133 {dimension_numbers = #tpu.dot_dimension_numbers<[1], [0], [0], [1], [0, 0, 1, 1], [], []>} : vector<2x32xbf16>, vector<32x64xbf16>, vector<2x64xf32> -> vector<2x64xf32>
    %455 = arith.addf %454, %452 : vector<2x64xf32>
    %cst_134 = arith.constant 0.000000e+00 : f32
    %456 = vector.broadcast %cst_134 : f32 to vector<2x64xf32>
    %457 = arith.maximumf %455, %456 : vector<2x64xf32>
    %458 = arith.truncf %457 : vector<2x64xf32> to vector<2x64xbf16>
    %cst_135 = arith.constant dense<0.000000e+00> : vector<2x64xf32>
    %459 = tpu.matmul %458, %23, %cst_135 {dimension_numbers = #tpu.dot_dimension_numbers<[1], [0], [0], [1], [0, 0, 1, 1], [], []>} : vector<2x64xbf16>, vector<64x64xbf16>, vector<2x64xf32> -> vector<2x64xf32>
    %460 = arith.addf %459, %45 : vector<2x64xf32>
    %cst_136 = arith.constant 0.000000e+00 : f32
    %461 = vector.broadcast %cst_136 : f32 to vector<2x64xf32>
    %462 = arith.maximumf %460, %461 : vector<2x64xf32>
    %463 = arith.truncf %462 : vector<2x64xf32> to vector<2x64xbf16>
    %cst_137 = arith.constant dense<0.000000e+00> : vector<2x64xf32>
    %464 = tpu.matmul %463, %25, %cst_137 {dimension_numbers = #tpu.dot_dimension_numbers<[1], [0], [0], [1], [0, 0, 1, 1], [], []>} : vector<2x64xbf16>, vector<64x64xbf16>, vector<2x64xf32> -> vector<2x64xf32>
    %465 = arith.addf %464, %47 : vector<2x64xf32>
    %cst_138 = arith.constant 0.000000e+00 : f32
    %466 = vector.broadcast %cst_138 : f32 to vector<2x64xf32>
    %467 = arith.maximumf %465, %466 : vector<2x64xf32>
    %468 = vector.broadcast %27 : vector<1x64xf32> to vector<2x64xf32>
    %469 = arith.mulf %467, %468 : vector<2x64xf32>
    %cst_139 = arith.constant dense<0.000000e+00> : vector<2xf32>
    %470 = vector.multi_reduction <add>, %469, %cst_139 [1] : vector<2x64xf32> to vector<2xf32>
    %471 = vector.shape_cast %470 : vector<2xf32> to vector<2x1xf32>
    %472 = arith.addf %471, %49 : vector<2x1xf32>
    %473 = vector.extract_strided_slice %34 {offsets = [0, 5], sizes = [2, 1], strides = [1, 1]} : vector<2x8xf32> to vector<2x1xf32>
    %474 = arith.addf %472, %473 : vector<2x1xf32>
    %cst_140 = arith.constant 1.000000e+01 : f32
    %475 = vector.broadcast %cst_140 : f32 to vector<2x1xf32>
    %476 = arith.mulf %474, %475 : vector<2x1xf32>
    %477 = arith.negf %476 : vector<2x1xf32>
    %478 = math.exp %477 : vector<2x1xf32>
    %cst_141 = arith.constant 1.000000e+00 : f32
    %479 = vector.broadcast %cst_141 : f32 to vector<2x1xf32>
    %480 = arith.addf %479, %478 : vector<2x1xf32>
    %481 = arith.divf %479, %480 : vector<2x1xf32>
    %482 = arith.truncf %450 : vector<2x32xf32> to vector<2x32xbf16>
    %cst_142 = arith.constant dense<0.000000e+00> : vector<2x96xf32>
    %483 = tpu.matmul %482, %29, %cst_142 {dimension_numbers = #tpu.dot_dimension_numbers<[1], [0], [0], [1], [0, 0, 1, 1], [], []>} : vector<2x32xbf16>, vector<32x96xbf16>, vector<2x96xf32> -> vector<2x96xf32>
    %484 = arith.addf %483, %51 : vector<2x96xf32>
    %485 = arith.truncf %441 : vector<2x32xf32> to vector<2x32xbf16>
    %cst_143 = arith.constant dense<0.000000e+00> : vector<2x96xf32>
    %486 = tpu.matmul %485, %31, %cst_143 {dimension_numbers = #tpu.dot_dimension_numbers<[1], [0], [0], [1], [0, 0, 1, 1], [], []>} : vector<2x32xbf16>, vector<32x96xbf16>, vector<2x96xf32> -> vector<2x96xf32>
    %487 = arith.addf %486, %53 : vector<2x96xf32>
    %488 = vector.extract_strided_slice %484 {offsets = [0, 0], sizes = [2, 32], strides = [1, 1]} : vector<2x96xf32> to vector<2x32xf32>
    %489 = vector.extract_strided_slice %487 {offsets = [0, 0], sizes = [2, 32], strides = [1, 1]} : vector<2x96xf32> to vector<2x32xf32>
    %490 = arith.addf %488, %489 : vector<2x32xf32>
    %491 = arith.negf %490 : vector<2x32xf32>
    %492 = math.exp %491 : vector<2x32xf32>
    %cst_144 = arith.constant 1.000000e+00 : f32
    %493 = vector.broadcast %cst_144 : f32 to vector<2x32xf32>
    %494 = arith.addf %493, %492 : vector<2x32xf32>
    %495 = arith.divf %493, %494 : vector<2x32xf32>
    %496 = vector.extract_strided_slice %484 {offsets = [0, 32], sizes = [2, 32], strides = [1, 1]} : vector<2x96xf32> to vector<2x32xf32>
    %497 = vector.extract_strided_slice %487 {offsets = [0, 32], sizes = [2, 32], strides = [1, 1]} : vector<2x96xf32> to vector<2x32xf32>
    %498 = arith.addf %496, %497 : vector<2x32xf32>
    %499 = arith.negf %498 : vector<2x32xf32>
    %500 = math.exp %499 : vector<2x32xf32>
    %cst_145 = arith.constant 1.000000e+00 : f32
    %501 = vector.broadcast %cst_145 : f32 to vector<2x32xf32>
    %502 = arith.addf %501, %500 : vector<2x32xf32>
    %503 = arith.divf %501, %502 : vector<2x32xf32>
    %504 = vector.extract_strided_slice %484 {offsets = [0, 64], sizes = [2, 32], strides = [1, 1]} : vector<2x96xf32> to vector<2x32xf32>
    %505 = vector.extract_strided_slice %487 {offsets = [0, 64], sizes = [2, 32], strides = [1, 1]} : vector<2x96xf32> to vector<2x32xf32>
    %506 = arith.mulf %495, %505 : vector<2x32xf32>
    %507 = arith.addf %504, %506 : vector<2x32xf32>
    %508 = math.tanh %507 : vector<2x32xf32>
    %cst_146 = arith.constant 1.000000e+00 : f32
    %509 = vector.broadcast %cst_146 : f32 to vector<2x32xf32>
    %510 = arith.subf %509, %503 : vector<2x32xf32>
    %511 = arith.mulf %510, %508 : vector<2x32xf32>
    %512 = arith.mulf %503, %441 : vector<2x32xf32>
    %513 = arith.addf %511, %512 : vector<2x32xf32>
    %cst_147 = arith.constant 1.000000e+00 : f32
    %514 = vector.broadcast %cst_147 : f32 to vector<2x1xf32>
    %515 = arith.subf %514, %481 : vector<2x1xf32>
    %516 = vector.broadcast %515 : vector<2x1xf32> to vector<2x32xf32>
    %517 = arith.mulf %441, %516 : vector<2x32xf32>
    %518 = vector.broadcast %481 : vector<2x1xf32> to vector<2x32xf32>
    %519 = arith.mulf %518, %513 : vector<2x32xf32>
    %520 = arith.addf %517, %519 : vector<2x32xf32>
    %521 = arith.mulf %444, %515 : vector<2x1xf32>
    %cst_148 = arith.constant 1.000000e+00 : f32
    %522 = vector.broadcast %cst_148 : f32 to vector<2x1xf32>
    %523 = arith.addf %521, %522 : vector<2x1xf32>
    %524 = arith.mulf %444, %515 : vector<2x1xf32>
    %525 = vector.broadcast %524 : vector<2x1xf32> to vector<2x32xf32>
    %526 = arith.mulf %450, %525 : vector<2x32xf32>
    %527 = arith.addf %526, %451 : vector<2x32xf32>
    %528 = vector.broadcast %523 : vector<2x1xf32> to vector<2x32xf32>
    %529 = arith.divf %527, %528 : vector<2x32xf32>
    %530 = vector.extract_strided_slice %39 {offsets = [12, 0], sizes = [2, 32], strides = [1, 1]} : vector<16x32xf32> to vector<2x32xf32>
    %531 = vector.extract_strided_slice %43 {offsets = [12, 0], sizes = [2, 64], strides = [1, 1]} : vector<16x64xf32> to vector<2x64xf32>
    %532 = arith.truncf %529 : vector<2x32xf32> to vector<2x32xbf16>
    %cst_149 = arith.constant dense<0.000000e+00> : vector<2x64xf32>
    %533 = tpu.matmul %532, %20, %cst_149 {dimension_numbers = #tpu.dot_dimension_numbers<[1], [0], [0], [1], [0, 0, 1, 1], [], []>} : vector<2x32xbf16>, vector<32x64xbf16>, vector<2x64xf32> -> vector<2x64xf32>
    %534 = arith.addf %533, %531 : vector<2x64xf32>
    %cst_150 = arith.constant 0.000000e+00 : f32
    %535 = vector.broadcast %cst_150 : f32 to vector<2x64xf32>
    %536 = arith.maximumf %534, %535 : vector<2x64xf32>
    %537 = arith.truncf %536 : vector<2x64xf32> to vector<2x64xbf16>
    %cst_151 = arith.constant dense<0.000000e+00> : vector<2x64xf32>
    %538 = tpu.matmul %537, %23, %cst_151 {dimension_numbers = #tpu.dot_dimension_numbers<[1], [0], [0], [1], [0, 0, 1, 1], [], []>} : vector<2x64xbf16>, vector<64x64xbf16>, vector<2x64xf32> -> vector<2x64xf32>
    %539 = arith.addf %538, %45 : vector<2x64xf32>
    %cst_152 = arith.constant 0.000000e+00 : f32
    %540 = vector.broadcast %cst_152 : f32 to vector<2x64xf32>
    %541 = arith.maximumf %539, %540 : vector<2x64xf32>
    %542 = arith.truncf %541 : vector<2x64xf32> to vector<2x64xbf16>
    %cst_153 = arith.constant dense<0.000000e+00> : vector<2x64xf32>
    %543 = tpu.matmul %542, %25, %cst_153 {dimension_numbers = #tpu.dot_dimension_numbers<[1], [0], [0], [1], [0, 0, 1, 1], [], []>} : vector<2x64xbf16>, vector<64x64xbf16>, vector<2x64xf32> -> vector<2x64xf32>
    %544 = arith.addf %543, %47 : vector<2x64xf32>
    %cst_154 = arith.constant 0.000000e+00 : f32
    %545 = vector.broadcast %cst_154 : f32 to vector<2x64xf32>
    %546 = arith.maximumf %544, %545 : vector<2x64xf32>
    %547 = vector.broadcast %27 : vector<1x64xf32> to vector<2x64xf32>
    %548 = arith.mulf %546, %547 : vector<2x64xf32>
    %cst_155 = arith.constant dense<0.000000e+00> : vector<2xf32>
    %549 = vector.multi_reduction <add>, %548, %cst_155 [1] : vector<2x64xf32> to vector<2xf32>
    %550 = vector.shape_cast %549 : vector<2xf32> to vector<2x1xf32>
    %551 = arith.addf %550, %49 : vector<2x1xf32>
    %552 = vector.extract_strided_slice %34 {offsets = [0, 6], sizes = [2, 1], strides = [1, 1]} : vector<2x8xf32> to vector<2x1xf32>
    %553 = arith.addf %551, %552 : vector<2x1xf32>
    %cst_156 = arith.constant 1.000000e+01 : f32
    %554 = vector.broadcast %cst_156 : f32 to vector<2x1xf32>
    %555 = arith.mulf %553, %554 : vector<2x1xf32>
    %556 = arith.negf %555 : vector<2x1xf32>
    %557 = math.exp %556 : vector<2x1xf32>
    %cst_157 = arith.constant 1.000000e+00 : f32
    %558 = vector.broadcast %cst_157 : f32 to vector<2x1xf32>
    %559 = arith.addf %558, %557 : vector<2x1xf32>
    %560 = arith.divf %558, %559 : vector<2x1xf32>
    %561 = arith.truncf %529 : vector<2x32xf32> to vector<2x32xbf16>
    %cst_158 = arith.constant dense<0.000000e+00> : vector<2x96xf32>
    %562 = tpu.matmul %561, %29, %cst_158 {dimension_numbers = #tpu.dot_dimension_numbers<[1], [0], [0], [1], [0, 0, 1, 1], [], []>} : vector<2x32xbf16>, vector<32x96xbf16>, vector<2x96xf32> -> vector<2x96xf32>
    %563 = arith.addf %562, %51 : vector<2x96xf32>
    %564 = arith.truncf %520 : vector<2x32xf32> to vector<2x32xbf16>
    %cst_159 = arith.constant dense<0.000000e+00> : vector<2x96xf32>
    %565 = tpu.matmul %564, %31, %cst_159 {dimension_numbers = #tpu.dot_dimension_numbers<[1], [0], [0], [1], [0, 0, 1, 1], [], []>} : vector<2x32xbf16>, vector<32x96xbf16>, vector<2x96xf32> -> vector<2x96xf32>
    %566 = arith.addf %565, %53 : vector<2x96xf32>
    %567 = vector.extract_strided_slice %563 {offsets = [0, 0], sizes = [2, 32], strides = [1, 1]} : vector<2x96xf32> to vector<2x32xf32>
    %568 = vector.extract_strided_slice %566 {offsets = [0, 0], sizes = [2, 32], strides = [1, 1]} : vector<2x96xf32> to vector<2x32xf32>
    %569 = arith.addf %567, %568 : vector<2x32xf32>
    %570 = arith.negf %569 : vector<2x32xf32>
    %571 = math.exp %570 : vector<2x32xf32>
    %cst_160 = arith.constant 1.000000e+00 : f32
    %572 = vector.broadcast %cst_160 : f32 to vector<2x32xf32>
    %573 = arith.addf %572, %571 : vector<2x32xf32>
    %574 = arith.divf %572, %573 : vector<2x32xf32>
    %575 = vector.extract_strided_slice %563 {offsets = [0, 32], sizes = [2, 32], strides = [1, 1]} : vector<2x96xf32> to vector<2x32xf32>
    %576 = vector.extract_strided_slice %566 {offsets = [0, 32], sizes = [2, 32], strides = [1, 1]} : vector<2x96xf32> to vector<2x32xf32>
    %577 = arith.addf %575, %576 : vector<2x32xf32>
    %578 = arith.negf %577 : vector<2x32xf32>
    %579 = math.exp %578 : vector<2x32xf32>
    %cst_161 = arith.constant 1.000000e+00 : f32
    %580 = vector.broadcast %cst_161 : f32 to vector<2x32xf32>
    %581 = arith.addf %580, %579 : vector<2x32xf32>
    %582 = arith.divf %580, %581 : vector<2x32xf32>
    %583 = vector.extract_strided_slice %563 {offsets = [0, 64], sizes = [2, 32], strides = [1, 1]} : vector<2x96xf32> to vector<2x32xf32>
    %584 = vector.extract_strided_slice %566 {offsets = [0, 64], sizes = [2, 32], strides = [1, 1]} : vector<2x96xf32> to vector<2x32xf32>
    %585 = arith.mulf %574, %584 : vector<2x32xf32>
    %586 = arith.addf %583, %585 : vector<2x32xf32>
    %587 = math.tanh %586 : vector<2x32xf32>
    %cst_162 = arith.constant 1.000000e+00 : f32
    %588 = vector.broadcast %cst_162 : f32 to vector<2x32xf32>
    %589 = arith.subf %588, %582 : vector<2x32xf32>
    %590 = arith.mulf %589, %587 : vector<2x32xf32>
    %591 = arith.mulf %582, %520 : vector<2x32xf32>
    %592 = arith.addf %590, %591 : vector<2x32xf32>
    %cst_163 = arith.constant 1.000000e+00 : f32
    %593 = vector.broadcast %cst_163 : f32 to vector<2x1xf32>
    %594 = arith.subf %593, %560 : vector<2x1xf32>
    %595 = vector.broadcast %594 : vector<2x1xf32> to vector<2x32xf32>
    %596 = arith.mulf %520, %595 : vector<2x32xf32>
    %597 = vector.broadcast %560 : vector<2x1xf32> to vector<2x32xf32>
    %598 = arith.mulf %597, %592 : vector<2x32xf32>
    %599 = arith.addf %596, %598 : vector<2x32xf32>
    %600 = arith.mulf %523, %594 : vector<2x1xf32>
    %cst_164 = arith.constant 1.000000e+00 : f32
    %601 = vector.broadcast %cst_164 : f32 to vector<2x1xf32>
    %602 = arith.addf %600, %601 : vector<2x1xf32>
    %603 = arith.mulf %523, %594 : vector<2x1xf32>
    %604 = vector.broadcast %603 : vector<2x1xf32> to vector<2x32xf32>
    %605 = arith.mulf %529, %604 : vector<2x32xf32>
    %606 = arith.addf %605, %530 : vector<2x32xf32>
    %607 = vector.broadcast %602 : vector<2x1xf32> to vector<2x32xf32>
    %608 = arith.divf %606, %607 : vector<2x32xf32>
    %609 = vector.extract_strided_slice %39 {offsets = [14, 0], sizes = [2, 32], strides = [1, 1]} : vector<16x32xf32> to vector<2x32xf32>
    %610 = vector.extract_strided_slice %43 {offsets = [14, 0], sizes = [2, 64], strides = [1, 1]} : vector<16x64xf32> to vector<2x64xf32>
    %611 = arith.truncf %608 : vector<2x32xf32> to vector<2x32xbf16>
    %cst_165 = arith.constant dense<0.000000e+00> : vector<2x64xf32>
    %612 = tpu.matmul %611, %20, %cst_165 {dimension_numbers = #tpu.dot_dimension_numbers<[1], [0], [0], [1], [0, 0, 1, 1], [], []>} : vector<2x32xbf16>, vector<32x64xbf16>, vector<2x64xf32> -> vector<2x64xf32>
    %613 = arith.addf %612, %610 : vector<2x64xf32>
    %cst_166 = arith.constant 0.000000e+00 : f32
    %614 = vector.broadcast %cst_166 : f32 to vector<2x64xf32>
    %615 = arith.maximumf %613, %614 : vector<2x64xf32>
    %616 = arith.truncf %615 : vector<2x64xf32> to vector<2x64xbf16>
    %cst_167 = arith.constant dense<0.000000e+00> : vector<2x64xf32>
    %617 = tpu.matmul %616, %23, %cst_167 {dimension_numbers = #tpu.dot_dimension_numbers<[1], [0], [0], [1], [0, 0, 1, 1], [], []>} : vector<2x64xbf16>, vector<64x64xbf16>, vector<2x64xf32> -> vector<2x64xf32>
    %618 = arith.addf %617, %45 : vector<2x64xf32>
    %cst_168 = arith.constant 0.000000e+00 : f32
    %619 = vector.broadcast %cst_168 : f32 to vector<2x64xf32>
    %620 = arith.maximumf %618, %619 : vector<2x64xf32>
    %621 = arith.truncf %620 : vector<2x64xf32> to vector<2x64xbf16>
    %cst_169 = arith.constant dense<0.000000e+00> : vector<2x64xf32>
    %622 = tpu.matmul %621, %25, %cst_169 {dimension_numbers = #tpu.dot_dimension_numbers<[1], [0], [0], [1], [0, 0, 1, 1], [], []>} : vector<2x64xbf16>, vector<64x64xbf16>, vector<2x64xf32> -> vector<2x64xf32>
    %623 = arith.addf %622, %47 : vector<2x64xf32>
    %cst_170 = arith.constant 0.000000e+00 : f32
    %624 = vector.broadcast %cst_170 : f32 to vector<2x64xf32>
    %625 = arith.maximumf %623, %624 : vector<2x64xf32>
    %626 = vector.broadcast %27 : vector<1x64xf32> to vector<2x64xf32>
    %627 = arith.mulf %625, %626 : vector<2x64xf32>
    %cst_171 = arith.constant dense<0.000000e+00> : vector<2xf32>
    %628 = vector.multi_reduction <add>, %627, %cst_171 [1] : vector<2x64xf32> to vector<2xf32>
    %629 = vector.shape_cast %628 : vector<2xf32> to vector<2x1xf32>
    %630 = arith.addf %629, %49 : vector<2x1xf32>
    %631 = vector.extract_strided_slice %34 {offsets = [0, 7], sizes = [2, 1], strides = [1, 1]} : vector<2x8xf32> to vector<2x1xf32>
    %632 = arith.addf %630, %631 : vector<2x1xf32>
    %cst_172 = arith.constant 1.000000e+01 : f32
    %633 = vector.broadcast %cst_172 : f32 to vector<2x1xf32>
    %634 = arith.mulf %632, %633 : vector<2x1xf32>
    %635 = arith.negf %634 : vector<2x1xf32>
    %636 = math.exp %635 : vector<2x1xf32>
    %cst_173 = arith.constant 1.000000e+00 : f32
    %637 = vector.broadcast %cst_173 : f32 to vector<2x1xf32>
    %638 = arith.addf %637, %636 : vector<2x1xf32>
    %639 = arith.divf %637, %638 : vector<2x1xf32>
    %640 = arith.truncf %608 : vector<2x32xf32> to vector<2x32xbf16>
    %cst_174 = arith.constant dense<0.000000e+00> : vector<2x96xf32>
    %641 = tpu.matmul %640, %29, %cst_174 {dimension_numbers = #tpu.dot_dimension_numbers<[1], [0], [0], [1], [0, 0, 1, 1], [], []>} : vector<2x32xbf16>, vector<32x96xbf16>, vector<2x96xf32> -> vector<2x96xf32>
    %642 = arith.addf %641, %51 : vector<2x96xf32>
    %643 = arith.truncf %599 : vector<2x32xf32> to vector<2x32xbf16>
    %cst_175 = arith.constant dense<0.000000e+00> : vector<2x96xf32>
    %644 = tpu.matmul %643, %31, %cst_175 {dimension_numbers = #tpu.dot_dimension_numbers<[1], [0], [0], [1], [0, 0, 1, 1], [], []>} : vector<2x32xbf16>, vector<32x96xbf16>, vector<2x96xf32> -> vector<2x96xf32>
    %645 = arith.addf %644, %53 : vector<2x96xf32>
    %646 = vector.extract_strided_slice %642 {offsets = [0, 0], sizes = [2, 32], strides = [1, 1]} : vector<2x96xf32> to vector<2x32xf32>
    %647 = vector.extract_strided_slice %645 {offsets = [0, 0], sizes = [2, 32], strides = [1, 1]} : vector<2x96xf32> to vector<2x32xf32>
    %648 = arith.addf %646, %647 : vector<2x32xf32>
    %649 = arith.negf %648 : vector<2x32xf32>
    %650 = math.exp %649 : vector<2x32xf32>
    %cst_176 = arith.constant 1.000000e+00 : f32
    %651 = vector.broadcast %cst_176 : f32 to vector<2x32xf32>
    %652 = arith.addf %651, %650 : vector<2x32xf32>
    %653 = arith.divf %651, %652 : vector<2x32xf32>
    %654 = vector.extract_strided_slice %642 {offsets = [0, 32], sizes = [2, 32], strides = [1, 1]} : vector<2x96xf32> to vector<2x32xf32>
    %655 = vector.extract_strided_slice %645 {offsets = [0, 32], sizes = [2, 32], strides = [1, 1]} : vector<2x96xf32> to vector<2x32xf32>
    %656 = arith.addf %654, %655 : vector<2x32xf32>
    %657 = arith.negf %656 : vector<2x32xf32>
    %658 = math.exp %657 : vector<2x32xf32>
    %cst_177 = arith.constant 1.000000e+00 : f32
    %659 = vector.broadcast %cst_177 : f32 to vector<2x32xf32>
    %660 = arith.addf %659, %658 : vector<2x32xf32>
    %661 = arith.divf %659, %660 : vector<2x32xf32>
    %662 = vector.extract_strided_slice %642 {offsets = [0, 64], sizes = [2, 32], strides = [1, 1]} : vector<2x96xf32> to vector<2x32xf32>
    %663 = vector.extract_strided_slice %645 {offsets = [0, 64], sizes = [2, 32], strides = [1, 1]} : vector<2x96xf32> to vector<2x32xf32>
    %664 = arith.mulf %653, %663 : vector<2x32xf32>
    %665 = arith.addf %662, %664 : vector<2x32xf32>
    %666 = math.tanh %665 : vector<2x32xf32>
    %cst_178 = arith.constant 1.000000e+00 : f32
    %667 = vector.broadcast %cst_178 : f32 to vector<2x32xf32>
    %668 = arith.subf %667, %661 : vector<2x32xf32>
    %669 = arith.mulf %668, %666 : vector<2x32xf32>
    %670 = arith.mulf %661, %599 : vector<2x32xf32>
    %671 = arith.addf %669, %670 : vector<2x32xf32>
    %cst_179 = arith.constant 1.000000e+00 : f32
    %672 = vector.broadcast %cst_179 : f32 to vector<2x1xf32>
    %673 = arith.subf %672, %639 : vector<2x1xf32>
    %674 = vector.broadcast %673 : vector<2x1xf32> to vector<2x32xf32>
    %675 = arith.mulf %599, %674 : vector<2x32xf32>
    %676 = vector.broadcast %639 : vector<2x1xf32> to vector<2x32xf32>
    %677 = arith.mulf %676, %671 : vector<2x32xf32>
    %678 = arith.addf %675, %677 : vector<2x32xf32>
    %679 = arith.mulf %602, %673 : vector<2x1xf32>
    %cst_180 = arith.constant 1.000000e+00 : f32
    %680 = vector.broadcast %cst_180 : f32 to vector<2x1xf32>
    %681 = arith.addf %679, %680 : vector<2x1xf32>
    %682 = arith.mulf %602, %673 : vector<2x1xf32>
    %683 = vector.broadcast %682 : vector<2x1xf32> to vector<2x32xf32>
    %684 = arith.mulf %608, %683 : vector<2x32xf32>
    %685 = arith.addf %684, %609 : vector<2x32xf32>
    %686 = vector.broadcast %681 : vector<2x1xf32> to vector<2x32xf32>
    %687 = arith.divf %685, %686 : vector<2x32xf32>
    %688 = arith.truncf %687 : vector<2x32xf32> to vector<2x32xbf16>
    %cst_181 = arith.constant dense<0.000000e+00> : vector<2x96xf32>
    %689 = tpu.matmul %688, %29, %cst_181 {dimension_numbers = #tpu.dot_dimension_numbers<[1], [0], [0], [1], [0, 0, 1, 1], [], []>} : vector<2x32xbf16>, vector<32x96xbf16>, vector<2x96xf32> -> vector<2x96xf32>
    %690 = arith.addf %689, %51 : vector<2x96xf32>
    %691 = arith.truncf %678 : vector<2x32xf32> to vector<2x32xbf16>
    %cst_182 = arith.constant dense<0.000000e+00> : vector<2x96xf32>
    %692 = tpu.matmul %691, %31, %cst_182 {dimension_numbers = #tpu.dot_dimension_numbers<[1], [0], [0], [1], [0, 0, 1, 1], [], []>} : vector<2x32xbf16>, vector<32x96xbf16>, vector<2x96xf32> -> vector<2x96xf32>
    %693 = arith.addf %692, %53 : vector<2x96xf32>
    %694 = vector.extract_strided_slice %690 {offsets = [0, 0], sizes = [2, 32], strides = [1, 1]} : vector<2x96xf32> to vector<2x32xf32>
    %695 = vector.extract_strided_slice %693 {offsets = [0, 0], sizes = [2, 32], strides = [1, 1]} : vector<2x96xf32> to vector<2x32xf32>
    %696 = arith.addf %694, %695 : vector<2x32xf32>
    %697 = arith.negf %696 : vector<2x32xf32>
    %698 = math.exp %697 : vector<2x32xf32>
    %cst_183 = arith.constant 1.000000e+00 : f32
    %699 = vector.broadcast %cst_183 : f32 to vector<2x32xf32>
    %700 = arith.addf %699, %698 : vector<2x32xf32>
    %701 = arith.divf %699, %700 : vector<2x32xf32>
    %702 = vector.extract_strided_slice %690 {offsets = [0, 32], sizes = [2, 32], strides = [1, 1]} : vector<2x96xf32> to vector<2x32xf32>
    %703 = vector.extract_strided_slice %693 {offsets = [0, 32], sizes = [2, 32], strides = [1, 1]} : vector<2x96xf32> to vector<2x32xf32>
    %704 = arith.addf %702, %703 : vector<2x32xf32>
    %705 = arith.negf %704 : vector<2x32xf32>
    %706 = math.exp %705 : vector<2x32xf32>
    %cst_184 = arith.constant 1.000000e+00 : f32
    %707 = vector.broadcast %cst_184 : f32 to vector<2x32xf32>
    %708 = arith.addf %707, %706 : vector<2x32xf32>
    %709 = arith.divf %707, %708 : vector<2x32xf32>
    %710 = vector.extract_strided_slice %690 {offsets = [0, 64], sizes = [2, 32], strides = [1, 1]} : vector<2x96xf32> to vector<2x32xf32>
    %711 = vector.extract_strided_slice %693 {offsets = [0, 64], sizes = [2, 32], strides = [1, 1]} : vector<2x96xf32> to vector<2x32xf32>
    %712 = arith.mulf %701, %711 : vector<2x32xf32>
    %713 = arith.addf %710, %712 : vector<2x32xf32>
    %714 = math.tanh %713 : vector<2x32xf32>
    %cst_185 = arith.constant 1.000000e+00 : f32
    %715 = vector.broadcast %cst_185 : f32 to vector<2x32xf32>
    %716 = arith.subf %715, %709 : vector<2x32xf32>
    %717 = arith.mulf %716, %714 : vector<2x32xf32>
    %718 = arith.mulf %709, %678 : vector<2x32xf32>
    %719 = arith.addf %717, %718 : vector<2x32xf32>
    %720 = tpu.concatenate %56, %135, %214, %293, %372, %451, %530, %609 in 0 : vector<2x32xf32>, vector<2x32xf32>, vector<2x32xf32>, vector<2x32xf32>, vector<2x32xf32>, vector<2x32xf32>, vector<2x32xf32>, vector<2x32xf32> -> vector<16x32xf32>
    %721 = tpu.concatenate %125, %204, %283, %362, %441, %520, %599, %678 in 0 : vector<2x32xf32>, vector<2x32xf32>, vector<2x32xf32>, vector<2x32xf32>, vector<2x32xf32>, vector<2x32xf32>, vector<2x32xf32>, vector<2x32xf32> -> vector<16x32xf32>
    %c0_186 = arith.constant 0 : index
    %c0_187 = arith.constant 0 : index
    %722 = vector.load %arg17[%c0_186, %c0_187] : memref<32x32xbf16, #tpu.memory_space<vmem>>, vector<32x32xbf16>
    %c0_188 = arith.constant 0 : index
    %c0_189 = arith.constant 0 : index
    %723 = vector.load %arg18[%c0_188, %c0_189] : memref<32x32xbf16, #tpu.memory_space<vmem>>, vector<32x32xbf16>
    %c0_190 = arith.constant 0 : index
    %c0_191 = arith.constant 0 : index
    %724 = vector.load %arg19[%c0_190, %c0_191] : memref<1x32xf32, #tpu.memory_space<vmem>>, vector<1x32xf32>
    %c0_192 = arith.constant 0 : index
    %c0_193 = arith.constant 0 : index
    %725 = vector.load %arg20[%c0_192, %c0_193] : memref<32x64xbf16, #tpu.memory_space<vmem>>, vector<32x64xbf16>
    %c0_194 = arith.constant 0 : index
    %c0_195 = arith.constant 0 : index
    %726 = vector.load %arg21[%c0_194, %c0_195] : memref<32x64xbf16, #tpu.memory_space<vmem>>, vector<32x64xbf16>
    %c0_196 = arith.constant 0 : index
    %c0_197 = arith.constant 0 : index
    %727 = vector.load %arg22[%c0_196, %c0_197] : memref<1x64xf32, #tpu.memory_space<vmem>>, vector<1x64xf32>
    %c0_198 = arith.constant 0 : index
    %c0_199 = arith.constant 0 : index
    %728 = vector.load %arg23[%c0_198, %c0_199] : memref<64x64xbf16, #tpu.memory_space<vmem>>, vector<64x64xbf16>
    %c0_200 = arith.constant 0 : index
    %c0_201 = arith.constant 0 : index
    %729 = vector.load %arg24[%c0_200, %c0_201] : memref<1x64xf32, #tpu.memory_space<vmem>>, vector<1x64xf32>
    %c0_202 = arith.constant 0 : index
    %c0_203 = arith.constant 0 : index
    %730 = vector.load %arg25[%c0_202, %c0_203] : memref<64x64xbf16, #tpu.memory_space<vmem>>, vector<64x64xbf16>
    %c0_204 = arith.constant 0 : index
    %c0_205 = arith.constant 0 : index
    %731 = vector.load %arg26[%c0_204, %c0_205] : memref<1x64xf32, #tpu.memory_space<vmem>>, vector<1x64xf32>
    %c0_206 = arith.constant 0 : index
    %c0_207 = arith.constant 0 : index
    %732 = vector.load %arg27[%c0_206, %c0_207] : memref<1x64xf32, #tpu.memory_space<vmem>>, vector<1x64xf32>
    %c0_208 = arith.constant 0 : index
    %c0_209 = arith.constant 0 : index
    %733 = vector.load %arg28[%c0_208, %c0_209] : memref<1x1xf32, #tpu.memory_space<vmem>>, vector<1x1xf32>
    %c0_210 = arith.constant 0 : index
    %c0_211 = arith.constant 0 : index
    %734 = vector.load %arg29[%c0_210, %c0_211] : memref<32x96xbf16, #tpu.memory_space<vmem>>, vector<32x96xbf16>
    %c0_212 = arith.constant 0 : index
    %c0_213 = arith.constant 0 : index
    %735 = vector.load %arg30[%c0_212, %c0_213] : memref<1x96xf32, #tpu.memory_space<vmem>>, vector<1x96xf32>
    %c0_214 = arith.constant 0 : index
    %c0_215 = arith.constant 0 : index
    %736 = vector.load %arg31[%c0_214, %c0_215] : memref<32x96xbf16, #tpu.memory_space<vmem>>, vector<32x96xbf16>
    %c0_216 = arith.constant 0 : index
    %c0_217 = arith.constant 0 : index
    %737 = vector.load %arg32[%c0_216, %c0_217] : memref<1x96xf32, #tpu.memory_space<vmem>>, vector<1x96xf32>
    %c1_218 = arith.constant 1 : index
    %c0_219 = arith.constant 0 : index
    %c0_220 = arith.constant 0 : index
    %738 = vector.load %arg1[%c1_218, %c0_219, %c0_220] : memref<2x2x8xf32, #tpu.memory_space<vmem>>, vector<1x2x8xf32>
    %739 = vector.shape_cast %738 : vector<1x2x8xf32> to vector<2x8xf32>
    %740 = arith.truncf %720 : vector<16x32xf32> to vector<16x32xbf16>
    %cst_221 = arith.constant dense<0.000000e+00> : vector<16x32xf32>
    %741 = tpu.matmul %740, %722, %cst_221 {dimension_numbers = #tpu.dot_dimension_numbers<[1], [0], [0], [1], [0, 0, 1, 1], [], []>} : vector<16x32xbf16>, vector<32x32xbf16>, vector<16x32xf32> -> vector<16x32xf32>
    %742 = arith.truncf %721 : vector<16x32xf32> to vector<16x32xbf16>
    %cst_222 = arith.constant dense<0.000000e+00> : vector<16x32xf32>
    %743 = tpu.matmul %742, %723, %cst_222 {dimension_numbers = #tpu.dot_dimension_numbers<[1], [0], [0], [1], [0, 0, 1, 1], [], []>} : vector<16x32xbf16>, vector<32x32xbf16>, vector<16x32xf32> -> vector<16x32xf32>
    %744 = arith.addf %741, %743 : vector<16x32xf32>
    %745 = vector.broadcast %724 : vector<1x32xf32> to vector<16x32xf32>
    %746 = arith.addf %744, %745 : vector<16x32xf32>
    %747 = math.tanh %746 : vector<16x32xf32>
    %748 = arith.truncf %747 : vector<16x32xf32> to vector<16x32xbf16>
    %cst_223 = arith.constant dense<0.000000e+00> : vector<16x64xf32>
    %749 = tpu.matmul %748, %726, %cst_223 {dimension_numbers = #tpu.dot_dimension_numbers<[1], [0], [0], [1], [0, 0, 1, 1], [], []>} : vector<16x32xbf16>, vector<32x64xbf16>, vector<16x64xf32> -> vector<16x64xf32>
    %750 = vector.broadcast %727 : vector<1x64xf32> to vector<16x64xf32>
    %751 = arith.addf %749, %750 : vector<16x64xf32>
    %752 = vector.shape_cast %729 : vector<1x64xf32> to vector<1x64xf32>
    %753 = vector.broadcast %752 : vector<1x64xf32> to vector<2x64xf32>
    %754 = vector.shape_cast %731 : vector<1x64xf32> to vector<1x64xf32>
    %755 = vector.broadcast %754 : vector<1x64xf32> to vector<2x64xf32>
    %756 = vector.shape_cast %733 : vector<1x1xf32> to vector<1x1xf32>
    %757 = vector.broadcast %756 : vector<1x1xf32> to vector<2x1xf32>
    %758 = vector.shape_cast %735 : vector<1x96xf32> to vector<1x96xf32>
    %759 = vector.broadcast %758 : vector<1x96xf32> to vector<2x96xf32>
    %760 = vector.shape_cast %737 : vector<1x96xf32> to vector<1x96xf32>
    %761 = vector.broadcast %760 : vector<1x96xf32> to vector<2x96xf32>
    %cst_224 = arith.constant 0.000000e+00 : f32
    %762 = vector.broadcast %cst_224 : f32 to vector<2x32xf32>
    %cst_225 = arith.constant 0.000000e+00 : f32
    %763 = vector.broadcast %cst_225 : f32 to vector<2x1xf32>
    %764 = vector.extract_strided_slice %747 {offsets = [0, 0], sizes = [2, 32], strides = [1, 1]} : vector<16x32xf32> to vector<2x32xf32>
    %765 = vector.extract_strided_slice %751 {offsets = [0, 0], sizes = [2, 64], strides = [1, 1]} : vector<16x64xf32> to vector<2x64xf32>
    %766 = arith.truncf %762 : vector<2x32xf32> to vector<2x32xbf16>
    %cst_226 = arith.constant dense<0.000000e+00> : vector<2x64xf32>
    %767 = tpu.matmul %766, %725, %cst_226 {dimension_numbers = #tpu.dot_dimension_numbers<[1], [0], [0], [1], [0, 0, 1, 1], [], []>} : vector<2x32xbf16>, vector<32x64xbf16>, vector<2x64xf32> -> vector<2x64xf32>
    %768 = arith.addf %767, %765 : vector<2x64xf32>
    %cst_227 = arith.constant 0.000000e+00 : f32
    %769 = vector.broadcast %cst_227 : f32 to vector<2x64xf32>
    %770 = arith.maximumf %768, %769 : vector<2x64xf32>
    %771 = arith.truncf %770 : vector<2x64xf32> to vector<2x64xbf16>
    %cst_228 = arith.constant dense<0.000000e+00> : vector<2x64xf32>
    %772 = tpu.matmul %771, %728, %cst_228 {dimension_numbers = #tpu.dot_dimension_numbers<[1], [0], [0], [1], [0, 0, 1, 1], [], []>} : vector<2x64xbf16>, vector<64x64xbf16>, vector<2x64xf32> -> vector<2x64xf32>
    %773 = arith.addf %772, %753 : vector<2x64xf32>
    %cst_229 = arith.constant 0.000000e+00 : f32
    %774 = vector.broadcast %cst_229 : f32 to vector<2x64xf32>
    %775 = arith.maximumf %773, %774 : vector<2x64xf32>
    %776 = arith.truncf %775 : vector<2x64xf32> to vector<2x64xbf16>
    %cst_230 = arith.constant dense<0.000000e+00> : vector<2x64xf32>
    %777 = tpu.matmul %776, %730, %cst_230 {dimension_numbers = #tpu.dot_dimension_numbers<[1], [0], [0], [1], [0, 0, 1, 1], [], []>} : vector<2x64xbf16>, vector<64x64xbf16>, vector<2x64xf32> -> vector<2x64xf32>
    %778 = arith.addf %777, %755 : vector<2x64xf32>
    %cst_231 = arith.constant 0.000000e+00 : f32
    %779 = vector.broadcast %cst_231 : f32 to vector<2x64xf32>
    %780 = arith.maximumf %778, %779 : vector<2x64xf32>
    %781 = vector.broadcast %732 : vector<1x64xf32> to vector<2x64xf32>
    %782 = arith.mulf %780, %781 : vector<2x64xf32>
    %cst_232 = arith.constant dense<0.000000e+00> : vector<2xf32>
    %783 = vector.multi_reduction <add>, %782, %cst_232 [1] : vector<2x64xf32> to vector<2xf32>
    %784 = vector.shape_cast %783 : vector<2xf32> to vector<2x1xf32>
    %785 = arith.addf %784, %757 : vector<2x1xf32>
    %786 = vector.extract_strided_slice %739 {offsets = [0, 0], sizes = [2, 1], strides = [1, 1]} : vector<2x8xf32> to vector<2x1xf32>
    %787 = arith.addf %785, %786 : vector<2x1xf32>
    %cst_233 = arith.constant 1.000000e+01 : f32
    %788 = vector.broadcast %cst_233 : f32 to vector<2x1xf32>
    %789 = arith.mulf %787, %788 : vector<2x1xf32>
    %790 = arith.negf %789 : vector<2x1xf32>
    %791 = math.exp %790 : vector<2x1xf32>
    %cst_234 = arith.constant 1.000000e+00 : f32
    %792 = vector.broadcast %cst_234 : f32 to vector<2x1xf32>
    %793 = arith.addf %792, %791 : vector<2x1xf32>
    %794 = arith.divf %792, %793 : vector<2x1xf32>
    %795 = arith.truncf %762 : vector<2x32xf32> to vector<2x32xbf16>
    %cst_235 = arith.constant dense<0.000000e+00> : vector<2x96xf32>
    %796 = tpu.matmul %795, %734, %cst_235 {dimension_numbers = #tpu.dot_dimension_numbers<[1], [0], [0], [1], [0, 0, 1, 1], [], []>} : vector<2x32xbf16>, vector<32x96xbf16>, vector<2x96xf32> -> vector<2x96xf32>
    %797 = arith.addf %796, %759 : vector<2x96xf32>
    %798 = arith.truncf %719 : vector<2x32xf32> to vector<2x32xbf16>
    %cst_236 = arith.constant dense<0.000000e+00> : vector<2x96xf32>
    %799 = tpu.matmul %798, %736, %cst_236 {dimension_numbers = #tpu.dot_dimension_numbers<[1], [0], [0], [1], [0, 0, 1, 1], [], []>} : vector<2x32xbf16>, vector<32x96xbf16>, vector<2x96xf32> -> vector<2x96xf32>
    %800 = arith.addf %799, %761 : vector<2x96xf32>
    %801 = vector.extract_strided_slice %797 {offsets = [0, 0], sizes = [2, 32], strides = [1, 1]} : vector<2x96xf32> to vector<2x32xf32>
    %802 = vector.extract_strided_slice %800 {offsets = [0, 0], sizes = [2, 32], strides = [1, 1]} : vector<2x96xf32> to vector<2x32xf32>
    %803 = arith.addf %801, %802 : vector<2x32xf32>
    %804 = arith.negf %803 : vector<2x32xf32>
    %805 = math.exp %804 : vector<2x32xf32>
    %cst_237 = arith.constant 1.000000e+00 : f32
    %806 = vector.broadcast %cst_237 : f32 to vector<2x32xf32>
    %807 = arith.addf %806, %805 : vector<2x32xf32>
    %808 = arith.divf %806, %807 : vector<2x32xf32>
    %809 = vector.extract_strided_slice %797 {offsets = [0, 32], sizes = [2, 32], strides = [1, 1]} : vector<2x96xf32> to vector<2x32xf32>
    %810 = vector.extract_strided_slice %800 {offsets = [0, 32], sizes = [2, 32], strides = [1, 1]} : vector<2x96xf32> to vector<2x32xf32>
    %811 = arith.addf %809, %810 : vector<2x32xf32>
    %812 = arith.negf %811 : vector<2x32xf32>
    %813 = math.exp %812 : vector<2x32xf32>
    %cst_238 = arith.constant 1.000000e+00 : f32
    %814 = vector.broadcast %cst_238 : f32 to vector<2x32xf32>
    %815 = arith.addf %814, %813 : vector<2x32xf32>
    %816 = arith.divf %814, %815 : vector<2x32xf32>
    %817 = vector.extract_strided_slice %797 {offsets = [0, 64], sizes = [2, 32], strides = [1, 1]} : vector<2x96xf32> to vector<2x32xf32>
    %818 = vector.extract_strided_slice %800 {offsets = [0, 64], sizes = [2, 32], strides = [1, 1]} : vector<2x96xf32> to vector<2x32xf32>
    %819 = arith.mulf %808, %818 : vector<2x32xf32>
    %820 = arith.addf %817, %819 : vector<2x32xf32>
    %821 = math.tanh %820 : vector<2x32xf32>
    %cst_239 = arith.constant 1.000000e+00 : f32
    %822 = vector.broadcast %cst_239 : f32 to vector<2x32xf32>
    %823 = arith.subf %822, %816 : vector<2x32xf32>
    %824 = arith.mulf %823, %821 : vector<2x32xf32>
    %825 = arith.mulf %816, %719 : vector<2x32xf32>
    %826 = arith.addf %824, %825 : vector<2x32xf32>
    %cst_240 = arith.constant 1.000000e+00 : f32
    %827 = vector.broadcast %cst_240 : f32 to vector<2x1xf32>
    %828 = arith.subf %827, %794 : vector<2x1xf32>
    %829 = vector.broadcast %828 : vector<2x1xf32> to vector<2x32xf32>
    %830 = arith.mulf %719, %829 : vector<2x32xf32>
    %831 = vector.broadcast %794 : vector<2x1xf32> to vector<2x32xf32>
    %832 = arith.mulf %831, %826 : vector<2x32xf32>
    %833 = arith.addf %830, %832 : vector<2x32xf32>
    %834 = arith.mulf %763, %828 : vector<2x1xf32>
    %cst_241 = arith.constant 1.000000e+00 : f32
    %835 = vector.broadcast %cst_241 : f32 to vector<2x1xf32>
    %836 = arith.addf %834, %835 : vector<2x1xf32>
    %837 = arith.mulf %763, %828 : vector<2x1xf32>
    %838 = vector.broadcast %837 : vector<2x1xf32> to vector<2x32xf32>
    %839 = arith.mulf %762, %838 : vector<2x32xf32>
    %840 = arith.addf %839, %764 : vector<2x32xf32>
    %841 = vector.broadcast %836 : vector<2x1xf32> to vector<2x32xf32>
    %842 = arith.divf %840, %841 : vector<2x32xf32>
    %843 = vector.extract_strided_slice %747 {offsets = [2, 0], sizes = [2, 32], strides = [1, 1]} : vector<16x32xf32> to vector<2x32xf32>
    %844 = vector.extract_strided_slice %751 {offsets = [2, 0], sizes = [2, 64], strides = [1, 1]} : vector<16x64xf32> to vector<2x64xf32>
    %845 = arith.truncf %842 : vector<2x32xf32> to vector<2x32xbf16>
    %cst_242 = arith.constant dense<0.000000e+00> : vector<2x64xf32>
    %846 = tpu.matmul %845, %725, %cst_242 {dimension_numbers = #tpu.dot_dimension_numbers<[1], [0], [0], [1], [0, 0, 1, 1], [], []>} : vector<2x32xbf16>, vector<32x64xbf16>, vector<2x64xf32> -> vector<2x64xf32>
    %847 = arith.addf %846, %844 : vector<2x64xf32>
    %cst_243 = arith.constant 0.000000e+00 : f32
    %848 = vector.broadcast %cst_243 : f32 to vector<2x64xf32>
    %849 = arith.maximumf %847, %848 : vector<2x64xf32>
    %850 = arith.truncf %849 : vector<2x64xf32> to vector<2x64xbf16>
    %cst_244 = arith.constant dense<0.000000e+00> : vector<2x64xf32>
    %851 = tpu.matmul %850, %728, %cst_244 {dimension_numbers = #tpu.dot_dimension_numbers<[1], [0], [0], [1], [0, 0, 1, 1], [], []>} : vector<2x64xbf16>, vector<64x64xbf16>, vector<2x64xf32> -> vector<2x64xf32>
    %852 = arith.addf %851, %753 : vector<2x64xf32>
    %cst_245 = arith.constant 0.000000e+00 : f32
    %853 = vector.broadcast %cst_245 : f32 to vector<2x64xf32>
    %854 = arith.maximumf %852, %853 : vector<2x64xf32>
    %855 = arith.truncf %854 : vector<2x64xf32> to vector<2x64xbf16>
    %cst_246 = arith.constant dense<0.000000e+00> : vector<2x64xf32>
    %856 = tpu.matmul %855, %730, %cst_246 {dimension_numbers = #tpu.dot_dimension_numbers<[1], [0], [0], [1], [0, 0, 1, 1], [], []>} : vector<2x64xbf16>, vector<64x64xbf16>, vector<2x64xf32> -> vector<2x64xf32>
    %857 = arith.addf %856, %755 : vector<2x64xf32>
    %cst_247 = arith.constant 0.000000e+00 : f32
    %858 = vector.broadcast %cst_247 : f32 to vector<2x64xf32>
    %859 = arith.maximumf %857, %858 : vector<2x64xf32>
    %860 = vector.broadcast %732 : vector<1x64xf32> to vector<2x64xf32>
    %861 = arith.mulf %859, %860 : vector<2x64xf32>
    %cst_248 = arith.constant dense<0.000000e+00> : vector<2xf32>
    %862 = vector.multi_reduction <add>, %861, %cst_248 [1] : vector<2x64xf32> to vector<2xf32>
    %863 = vector.shape_cast %862 : vector<2xf32> to vector<2x1xf32>
    %864 = arith.addf %863, %757 : vector<2x1xf32>
    %865 = vector.extract_strided_slice %739 {offsets = [0, 1], sizes = [2, 1], strides = [1, 1]} : vector<2x8xf32> to vector<2x1xf32>
    %866 = arith.addf %864, %865 : vector<2x1xf32>
    %cst_249 = arith.constant 1.000000e+01 : f32
    %867 = vector.broadcast %cst_249 : f32 to vector<2x1xf32>
    %868 = arith.mulf %866, %867 : vector<2x1xf32>
    %869 = arith.negf %868 : vector<2x1xf32>
    %870 = math.exp %869 : vector<2x1xf32>
    %cst_250 = arith.constant 1.000000e+00 : f32
    %871 = vector.broadcast %cst_250 : f32 to vector<2x1xf32>
    %872 = arith.addf %871, %870 : vector<2x1xf32>
    %873 = arith.divf %871, %872 : vector<2x1xf32>
    %874 = arith.truncf %842 : vector<2x32xf32> to vector<2x32xbf16>
    %cst_251 = arith.constant dense<0.000000e+00> : vector<2x96xf32>
    %875 = tpu.matmul %874, %734, %cst_251 {dimension_numbers = #tpu.dot_dimension_numbers<[1], [0], [0], [1], [0, 0, 1, 1], [], []>} : vector<2x32xbf16>, vector<32x96xbf16>, vector<2x96xf32> -> vector<2x96xf32>
    %876 = arith.addf %875, %759 : vector<2x96xf32>
    %877 = arith.truncf %833 : vector<2x32xf32> to vector<2x32xbf16>
    %cst_252 = arith.constant dense<0.000000e+00> : vector<2x96xf32>
    %878 = tpu.matmul %877, %736, %cst_252 {dimension_numbers = #tpu.dot_dimension_numbers<[1], [0], [0], [1], [0, 0, 1, 1], [], []>} : vector<2x32xbf16>, vector<32x96xbf16>, vector<2x96xf32> -> vector<2x96xf32>
    %879 = arith.addf %878, %761 : vector<2x96xf32>
    %880 = vector.extract_strided_slice %876 {offsets = [0, 0], sizes = [2, 32], strides = [1, 1]} : vector<2x96xf32> to vector<2x32xf32>
    %881 = vector.extract_strided_slice %879 {offsets = [0, 0], sizes = [2, 32], strides = [1, 1]} : vector<2x96xf32> to vector<2x32xf32>
    %882 = arith.addf %880, %881 : vector<2x32xf32>
    %883 = arith.negf %882 : vector<2x32xf32>
    %884 = math.exp %883 : vector<2x32xf32>
    %cst_253 = arith.constant 1.000000e+00 : f32
    %885 = vector.broadcast %cst_253 : f32 to vector<2x32xf32>
    %886 = arith.addf %885, %884 : vector<2x32xf32>
    %887 = arith.divf %885, %886 : vector<2x32xf32>
    %888 = vector.extract_strided_slice %876 {offsets = [0, 32], sizes = [2, 32], strides = [1, 1]} : vector<2x96xf32> to vector<2x32xf32>
    %889 = vector.extract_strided_slice %879 {offsets = [0, 32], sizes = [2, 32], strides = [1, 1]} : vector<2x96xf32> to vector<2x32xf32>
    %890 = arith.addf %888, %889 : vector<2x32xf32>
    %891 = arith.negf %890 : vector<2x32xf32>
    %892 = math.exp %891 : vector<2x32xf32>
    %cst_254 = arith.constant 1.000000e+00 : f32
    %893 = vector.broadcast %cst_254 : f32 to vector<2x32xf32>
    %894 = arith.addf %893, %892 : vector<2x32xf32>
    %895 = arith.divf %893, %894 : vector<2x32xf32>
    %896 = vector.extract_strided_slice %876 {offsets = [0, 64], sizes = [2, 32], strides = [1, 1]} : vector<2x96xf32> to vector<2x32xf32>
    %897 = vector.extract_strided_slice %879 {offsets = [0, 64], sizes = [2, 32], strides = [1, 1]} : vector<2x96xf32> to vector<2x32xf32>
    %898 = arith.mulf %887, %897 : vector<2x32xf32>
    %899 = arith.addf %896, %898 : vector<2x32xf32>
    %900 = math.tanh %899 : vector<2x32xf32>
    %cst_255 = arith.constant 1.000000e+00 : f32
    %901 = vector.broadcast %cst_255 : f32 to vector<2x32xf32>
    %902 = arith.subf %901, %895 : vector<2x32xf32>
    %903 = arith.mulf %902, %900 : vector<2x32xf32>
    %904 = arith.mulf %895, %833 : vector<2x32xf32>
    %905 = arith.addf %903, %904 : vector<2x32xf32>
    %cst_256 = arith.constant 1.000000e+00 : f32
    %906 = vector.broadcast %cst_256 : f32 to vector<2x1xf32>
    %907 = arith.subf %906, %873 : vector<2x1xf32>
    %908 = vector.broadcast %907 : vector<2x1xf32> to vector<2x32xf32>
    %909 = arith.mulf %833, %908 : vector<2x32xf32>
    %910 = vector.broadcast %873 : vector<2x1xf32> to vector<2x32xf32>
    %911 = arith.mulf %910, %905 : vector<2x32xf32>
    %912 = arith.addf %909, %911 : vector<2x32xf32>
    %913 = arith.mulf %836, %907 : vector<2x1xf32>
    %cst_257 = arith.constant 1.000000e+00 : f32
    %914 = vector.broadcast %cst_257 : f32 to vector<2x1xf32>
    %915 = arith.addf %913, %914 : vector<2x1xf32>
    %916 = arith.mulf %836, %907 : vector<2x1xf32>
    %917 = vector.broadcast %916 : vector<2x1xf32> to vector<2x32xf32>
    %918 = arith.mulf %842, %917 : vector<2x32xf32>
    %919 = arith.addf %918, %843 : vector<2x32xf32>
    %920 = vector.broadcast %915 : vector<2x1xf32> to vector<2x32xf32>
    %921 = arith.divf %919, %920 : vector<2x32xf32>
    %922 = vector.extract_strided_slice %747 {offsets = [4, 0], sizes = [2, 32], strides = [1, 1]} : vector<16x32xf32> to vector<2x32xf32>
    %923 = vector.extract_strided_slice %751 {offsets = [4, 0], sizes = [2, 64], strides = [1, 1]} : vector<16x64xf32> to vector<2x64xf32>
    %924 = arith.truncf %921 : vector<2x32xf32> to vector<2x32xbf16>
    %cst_258 = arith.constant dense<0.000000e+00> : vector<2x64xf32>
    %925 = tpu.matmul %924, %725, %cst_258 {dimension_numbers = #tpu.dot_dimension_numbers<[1], [0], [0], [1], [0, 0, 1, 1], [], []>} : vector<2x32xbf16>, vector<32x64xbf16>, vector<2x64xf32> -> vector<2x64xf32>
    %926 = arith.addf %925, %923 : vector<2x64xf32>
    %cst_259 = arith.constant 0.000000e+00 : f32
    %927 = vector.broadcast %cst_259 : f32 to vector<2x64xf32>
    %928 = arith.maximumf %926, %927 : vector<2x64xf32>
    %929 = arith.truncf %928 : vector<2x64xf32> to vector<2x64xbf16>
    %cst_260 = arith.constant dense<0.000000e+00> : vector<2x64xf32>
    %930 = tpu.matmul %929, %728, %cst_260 {dimension_numbers = #tpu.dot_dimension_numbers<[1], [0], [0], [1], [0, 0, 1, 1], [], []>} : vector<2x64xbf16>, vector<64x64xbf16>, vector<2x64xf32> -> vector<2x64xf32>
    %931 = arith.addf %930, %753 : vector<2x64xf32>
    %cst_261 = arith.constant 0.000000e+00 : f32
    %932 = vector.broadcast %cst_261 : f32 to vector<2x64xf32>
    %933 = arith.maximumf %931, %932 : vector<2x64xf32>
    %934 = arith.truncf %933 : vector<2x64xf32> to vector<2x64xbf16>
    %cst_262 = arith.constant dense<0.000000e+00> : vector<2x64xf32>
    %935 = tpu.matmul %934, %730, %cst_262 {dimension_numbers = #tpu.dot_dimension_numbers<[1], [0], [0], [1], [0, 0, 1, 1], [], []>} : vector<2x64xbf16>, vector<64x64xbf16>, vector<2x64xf32> -> vector<2x64xf32>
    %936 = arith.addf %935, %755 : vector<2x64xf32>
    %cst_263 = arith.constant 0.000000e+00 : f32
    %937 = vector.broadcast %cst_263 : f32 to vector<2x64xf32>
    %938 = arith.maximumf %936, %937 : vector<2x64xf32>
    %939 = vector.broadcast %732 : vector<1x64xf32> to vector<2x64xf32>
    %940 = arith.mulf %938, %939 : vector<2x64xf32>
    %cst_264 = arith.constant dense<0.000000e+00> : vector<2xf32>
    %941 = vector.multi_reduction <add>, %940, %cst_264 [1] : vector<2x64xf32> to vector<2xf32>
    %942 = vector.shape_cast %941 : vector<2xf32> to vector<2x1xf32>
    %943 = arith.addf %942, %757 : vector<2x1xf32>
    %944 = vector.extract_strided_slice %739 {offsets = [0, 2], sizes = [2, 1], strides = [1, 1]} : vector<2x8xf32> to vector<2x1xf32>
    %945 = arith.addf %943, %944 : vector<2x1xf32>
    %cst_265 = arith.constant 1.000000e+01 : f32
    %946 = vector.broadcast %cst_265 : f32 to vector<2x1xf32>
    %947 = arith.mulf %945, %946 : vector<2x1xf32>
    %948 = arith.negf %947 : vector<2x1xf32>
    %949 = math.exp %948 : vector<2x1xf32>
    %cst_266 = arith.constant 1.000000e+00 : f32
    %950 = vector.broadcast %cst_266 : f32 to vector<2x1xf32>
    %951 = arith.addf %950, %949 : vector<2x1xf32>
    %952 = arith.divf %950, %951 : vector<2x1xf32>
    %953 = arith.truncf %921 : vector<2x32xf32> to vector<2x32xbf16>
    %cst_267 = arith.constant dense<0.000000e+00> : vector<2x96xf32>
    %954 = tpu.matmul %953, %734, %cst_267 {dimension_numbers = #tpu.dot_dimension_numbers<[1], [0], [0], [1], [0, 0, 1, 1], [], []>} : vector<2x32xbf16>, vector<32x96xbf16>, vector<2x96xf32> -> vector<2x96xf32>
    %955 = arith.addf %954, %759 : vector<2x96xf32>
    %956 = arith.truncf %912 : vector<2x32xf32> to vector<2x32xbf16>
    %cst_268 = arith.constant dense<0.000000e+00> : vector<2x96xf32>
    %957 = tpu.matmul %956, %736, %cst_268 {dimension_numbers = #tpu.dot_dimension_numbers<[1], [0], [0], [1], [0, 0, 1, 1], [], []>} : vector<2x32xbf16>, vector<32x96xbf16>, vector<2x96xf32> -> vector<2x96xf32>
    %958 = arith.addf %957, %761 : vector<2x96xf32>
    %959 = vector.extract_strided_slice %955 {offsets = [0, 0], sizes = [2, 32], strides = [1, 1]} : vector<2x96xf32> to vector<2x32xf32>
    %960 = vector.extract_strided_slice %958 {offsets = [0, 0], sizes = [2, 32], strides = [1, 1]} : vector<2x96xf32> to vector<2x32xf32>
    %961 = arith.addf %959, %960 : vector<2x32xf32>
    %962 = arith.negf %961 : vector<2x32xf32>
    %963 = math.exp %962 : vector<2x32xf32>
    %cst_269 = arith.constant 1.000000e+00 : f32
    %964 = vector.broadcast %cst_269 : f32 to vector<2x32xf32>
    %965 = arith.addf %964, %963 : vector<2x32xf32>
    %966 = arith.divf %964, %965 : vector<2x32xf32>
    %967 = vector.extract_strided_slice %955 {offsets = [0, 32], sizes = [2, 32], strides = [1, 1]} : vector<2x96xf32> to vector<2x32xf32>
    %968 = vector.extract_strided_slice %958 {offsets = [0, 32], sizes = [2, 32], strides = [1, 1]} : vector<2x96xf32> to vector<2x32xf32>
    %969 = arith.addf %967, %968 : vector<2x32xf32>
    %970 = arith.negf %969 : vector<2x32xf32>
    %971 = math.exp %970 : vector<2x32xf32>
    %cst_270 = arith.constant 1.000000e+00 : f32
    %972 = vector.broadcast %cst_270 : f32 to vector<2x32xf32>
    %973 = arith.addf %972, %971 : vector<2x32xf32>
    %974 = arith.divf %972, %973 : vector<2x32xf32>
    %975 = vector.extract_strided_slice %955 {offsets = [0, 64], sizes = [2, 32], strides = [1, 1]} : vector<2x96xf32> to vector<2x32xf32>
    %976 = vector.extract_strided_slice %958 {offsets = [0, 64], sizes = [2, 32], strides = [1, 1]} : vector<2x96xf32> to vector<2x32xf32>
    %977 = arith.mulf %966, %976 : vector<2x32xf32>
    %978 = arith.addf %975, %977 : vector<2x32xf32>
    %979 = math.tanh %978 : vector<2x32xf32>
    %cst_271 = arith.constant 1.000000e+00 : f32
    %980 = vector.broadcast %cst_271 : f32 to vector<2x32xf32>
    %981 = arith.subf %980, %974 : vector<2x32xf32>
    %982 = arith.mulf %981, %979 : vector<2x32xf32>
    %983 = arith.mulf %974, %912 : vector<2x32xf32>
    %984 = arith.addf %982, %983 : vector<2x32xf32>
    %cst_272 = arith.constant 1.000000e+00 : f32
    %985 = vector.broadcast %cst_272 : f32 to vector<2x1xf32>
    %986 = arith.subf %985, %952 : vector<2x1xf32>
    %987 = vector.broadcast %986 : vector<2x1xf32> to vector<2x32xf32>
    %988 = arith.mulf %912, %987 : vector<2x32xf32>
    %989 = vector.broadcast %952 : vector<2x1xf32> to vector<2x32xf32>
    %990 = arith.mulf %989, %984 : vector<2x32xf32>
    %991 = arith.addf %988, %990 : vector<2x32xf32>
    %992 = arith.mulf %915, %986 : vector<2x1xf32>
    %cst_273 = arith.constant 1.000000e+00 : f32
    %993 = vector.broadcast %cst_273 : f32 to vector<2x1xf32>
    %994 = arith.addf %992, %993 : vector<2x1xf32>
    %995 = arith.mulf %915, %986 : vector<2x1xf32>
    %996 = vector.broadcast %995 : vector<2x1xf32> to vector<2x32xf32>
    %997 = arith.mulf %921, %996 : vector<2x32xf32>
    %998 = arith.addf %997, %922 : vector<2x32xf32>
    %999 = vector.broadcast %994 : vector<2x1xf32> to vector<2x32xf32>
    %1000 = arith.divf %998, %999 : vector<2x32xf32>
    %1001 = vector.extract_strided_slice %747 {offsets = [6, 0], sizes = [2, 32], strides = [1, 1]} : vector<16x32xf32> to vector<2x32xf32>
    %1002 = vector.extract_strided_slice %751 {offsets = [6, 0], sizes = [2, 64], strides = [1, 1]} : vector<16x64xf32> to vector<2x64xf32>
    %1003 = arith.truncf %1000 : vector<2x32xf32> to vector<2x32xbf16>
    %cst_274 = arith.constant dense<0.000000e+00> : vector<2x64xf32>
    %1004 = tpu.matmul %1003, %725, %cst_274 {dimension_numbers = #tpu.dot_dimension_numbers<[1], [0], [0], [1], [0, 0, 1, 1], [], []>} : vector<2x32xbf16>, vector<32x64xbf16>, vector<2x64xf32> -> vector<2x64xf32>
    %1005 = arith.addf %1004, %1002 : vector<2x64xf32>
    %cst_275 = arith.constant 0.000000e+00 : f32
    %1006 = vector.broadcast %cst_275 : f32 to vector<2x64xf32>
    %1007 = arith.maximumf %1005, %1006 : vector<2x64xf32>
    %1008 = arith.truncf %1007 : vector<2x64xf32> to vector<2x64xbf16>
    %cst_276 = arith.constant dense<0.000000e+00> : vector<2x64xf32>
    %1009 = tpu.matmul %1008, %728, %cst_276 {dimension_numbers = #tpu.dot_dimension_numbers<[1], [0], [0], [1], [0, 0, 1, 1], [], []>} : vector<2x64xbf16>, vector<64x64xbf16>, vector<2x64xf32> -> vector<2x64xf32>
    %1010 = arith.addf %1009, %753 : vector<2x64xf32>
    %cst_277 = arith.constant 0.000000e+00 : f32
    %1011 = vector.broadcast %cst_277 : f32 to vector<2x64xf32>
    %1012 = arith.maximumf %1010, %1011 : vector<2x64xf32>
    %1013 = arith.truncf %1012 : vector<2x64xf32> to vector<2x64xbf16>
    %cst_278 = arith.constant dense<0.000000e+00> : vector<2x64xf32>
    %1014 = tpu.matmul %1013, %730, %cst_278 {dimension_numbers = #tpu.dot_dimension_numbers<[1], [0], [0], [1], [0, 0, 1, 1], [], []>} : vector<2x64xbf16>, vector<64x64xbf16>, vector<2x64xf32> -> vector<2x64xf32>
    %1015 = arith.addf %1014, %755 : vector<2x64xf32>
    %cst_279 = arith.constant 0.000000e+00 : f32
    %1016 = vector.broadcast %cst_279 : f32 to vector<2x64xf32>
    %1017 = arith.maximumf %1015, %1016 : vector<2x64xf32>
    %1018 = vector.broadcast %732 : vector<1x64xf32> to vector<2x64xf32>
    %1019 = arith.mulf %1017, %1018 : vector<2x64xf32>
    %cst_280 = arith.constant dense<0.000000e+00> : vector<2xf32>
    %1020 = vector.multi_reduction <add>, %1019, %cst_280 [1] : vector<2x64xf32> to vector<2xf32>
    %1021 = vector.shape_cast %1020 : vector<2xf32> to vector<2x1xf32>
    %1022 = arith.addf %1021, %757 : vector<2x1xf32>
    %1023 = vector.extract_strided_slice %739 {offsets = [0, 3], sizes = [2, 1], strides = [1, 1]} : vector<2x8xf32> to vector<2x1xf32>
    %1024 = arith.addf %1022, %1023 : vector<2x1xf32>
    %cst_281 = arith.constant 1.000000e+01 : f32
    %1025 = vector.broadcast %cst_281 : f32 to vector<2x1xf32>
    %1026 = arith.mulf %1024, %1025 : vector<2x1xf32>
    %1027 = arith.negf %1026 : vector<2x1xf32>
    %1028 = math.exp %1027 : vector<2x1xf32>
    %cst_282 = arith.constant 1.000000e+00 : f32
    %1029 = vector.broadcast %cst_282 : f32 to vector<2x1xf32>
    %1030 = arith.addf %1029, %1028 : vector<2x1xf32>
    %1031 = arith.divf %1029, %1030 : vector<2x1xf32>
    %1032 = arith.truncf %1000 : vector<2x32xf32> to vector<2x32xbf16>
    %cst_283 = arith.constant dense<0.000000e+00> : vector<2x96xf32>
    %1033 = tpu.matmul %1032, %734, %cst_283 {dimension_numbers = #tpu.dot_dimension_numbers<[1], [0], [0], [1], [0, 0, 1, 1], [], []>} : vector<2x32xbf16>, vector<32x96xbf16>, vector<2x96xf32> -> vector<2x96xf32>
    %1034 = arith.addf %1033, %759 : vector<2x96xf32>
    %1035 = arith.truncf %991 : vector<2x32xf32> to vector<2x32xbf16>
    %cst_284 = arith.constant dense<0.000000e+00> : vector<2x96xf32>
    %1036 = tpu.matmul %1035, %736, %cst_284 {dimension_numbers = #tpu.dot_dimension_numbers<[1], [0], [0], [1], [0, 0, 1, 1], [], []>} : vector<2x32xbf16>, vector<32x96xbf16>, vector<2x96xf32> -> vector<2x96xf32>
    %1037 = arith.addf %1036, %761 : vector<2x96xf32>
    %1038 = vector.extract_strided_slice %1034 {offsets = [0, 0], sizes = [2, 32], strides = [1, 1]} : vector<2x96xf32> to vector<2x32xf32>
    %1039 = vector.extract_strided_slice %1037 {offsets = [0, 0], sizes = [2, 32], strides = [1, 1]} : vector<2x96xf32> to vector<2x32xf32>
    %1040 = arith.addf %1038, %1039 : vector<2x32xf32>
    %1041 = arith.negf %1040 : vector<2x32xf32>
    %1042 = math.exp %1041 : vector<2x32xf32>
    %cst_285 = arith.constant 1.000000e+00 : f32
    %1043 = vector.broadcast %cst_285 : f32 to vector<2x32xf32>
    %1044 = arith.addf %1043, %1042 : vector<2x32xf32>
    %1045 = arith.divf %1043, %1044 : vector<2x32xf32>
    %1046 = vector.extract_strided_slice %1034 {offsets = [0, 32], sizes = [2, 32], strides = [1, 1]} : vector<2x96xf32> to vector<2x32xf32>
    %1047 = vector.extract_strided_slice %1037 {offsets = [0, 32], sizes = [2, 32], strides = [1, 1]} : vector<2x96xf32> to vector<2x32xf32>
    %1048 = arith.addf %1046, %1047 : vector<2x32xf32>
    %1049 = arith.negf %1048 : vector<2x32xf32>
    %1050 = math.exp %1049 : vector<2x32xf32>
    %cst_286 = arith.constant 1.000000e+00 : f32
    %1051 = vector.broadcast %cst_286 : f32 to vector<2x32xf32>
    %1052 = arith.addf %1051, %1050 : vector<2x32xf32>
    %1053 = arith.divf %1051, %1052 : vector<2x32xf32>
    %1054 = vector.extract_strided_slice %1034 {offsets = [0, 64], sizes = [2, 32], strides = [1, 1]} : vector<2x96xf32> to vector<2x32xf32>
    %1055 = vector.extract_strided_slice %1037 {offsets = [0, 64], sizes = [2, 32], strides = [1, 1]} : vector<2x96xf32> to vector<2x32xf32>
    %1056 = arith.mulf %1045, %1055 : vector<2x32xf32>
    %1057 = arith.addf %1054, %1056 : vector<2x32xf32>
    %1058 = math.tanh %1057 : vector<2x32xf32>
    %cst_287 = arith.constant 1.000000e+00 : f32
    %1059 = vector.broadcast %cst_287 : f32 to vector<2x32xf32>
    %1060 = arith.subf %1059, %1053 : vector<2x32xf32>
    %1061 = arith.mulf %1060, %1058 : vector<2x32xf32>
    %1062 = arith.mulf %1053, %991 : vector<2x32xf32>
    %1063 = arith.addf %1061, %1062 : vector<2x32xf32>
    %cst_288 = arith.constant 1.000000e+00 : f32
    %1064 = vector.broadcast %cst_288 : f32 to vector<2x1xf32>
    %1065 = arith.subf %1064, %1031 : vector<2x1xf32>
    %1066 = vector.broadcast %1065 : vector<2x1xf32> to vector<2x32xf32>
    %1067 = arith.mulf %991, %1066 : vector<2x32xf32>
    %1068 = vector.broadcast %1031 : vector<2x1xf32> to vector<2x32xf32>
    %1069 = arith.mulf %1068, %1063 : vector<2x32xf32>
    %1070 = arith.addf %1067, %1069 : vector<2x32xf32>
    %1071 = arith.mulf %994, %1065 : vector<2x1xf32>
    %cst_289 = arith.constant 1.000000e+00 : f32
    %1072 = vector.broadcast %cst_289 : f32 to vector<2x1xf32>
    %1073 = arith.addf %1071, %1072 : vector<2x1xf32>
    %1074 = arith.mulf %994, %1065 : vector<2x1xf32>
    %1075 = vector.broadcast %1074 : vector<2x1xf32> to vector<2x32xf32>
    %1076 = arith.mulf %1000, %1075 : vector<2x32xf32>
    %1077 = arith.addf %1076, %1001 : vector<2x32xf32>
    %1078 = vector.broadcast %1073 : vector<2x1xf32> to vector<2x32xf32>
    %1079 = arith.divf %1077, %1078 : vector<2x32xf32>
    %1080 = vector.extract_strided_slice %747 {offsets = [8, 0], sizes = [2, 32], strides = [1, 1]} : vector<16x32xf32> to vector<2x32xf32>
    %1081 = vector.extract_strided_slice %751 {offsets = [8, 0], sizes = [2, 64], strides = [1, 1]} : vector<16x64xf32> to vector<2x64xf32>
    %1082 = arith.truncf %1079 : vector<2x32xf32> to vector<2x32xbf16>
    %cst_290 = arith.constant dense<0.000000e+00> : vector<2x64xf32>
    %1083 = tpu.matmul %1082, %725, %cst_290 {dimension_numbers = #tpu.dot_dimension_numbers<[1], [0], [0], [1], [0, 0, 1, 1], [], []>} : vector<2x32xbf16>, vector<32x64xbf16>, vector<2x64xf32> -> vector<2x64xf32>
    %1084 = arith.addf %1083, %1081 : vector<2x64xf32>
    %cst_291 = arith.constant 0.000000e+00 : f32
    %1085 = vector.broadcast %cst_291 : f32 to vector<2x64xf32>
    %1086 = arith.maximumf %1084, %1085 : vector<2x64xf32>
    %1087 = arith.truncf %1086 : vector<2x64xf32> to vector<2x64xbf16>
    %cst_292 = arith.constant dense<0.000000e+00> : vector<2x64xf32>
    %1088 = tpu.matmul %1087, %728, %cst_292 {dimension_numbers = #tpu.dot_dimension_numbers<[1], [0], [0], [1], [0, 0, 1, 1], [], []>} : vector<2x64xbf16>, vector<64x64xbf16>, vector<2x64xf32> -> vector<2x64xf32>
    %1089 = arith.addf %1088, %753 : vector<2x64xf32>
    %cst_293 = arith.constant 0.000000e+00 : f32
    %1090 = vector.broadcast %cst_293 : f32 to vector<2x64xf32>
    %1091 = arith.maximumf %1089, %1090 : vector<2x64xf32>
    %1092 = arith.truncf %1091 : vector<2x64xf32> to vector<2x64xbf16>
    %cst_294 = arith.constant dense<0.000000e+00> : vector<2x64xf32>
    %1093 = tpu.matmul %1092, %730, %cst_294 {dimension_numbers = #tpu.dot_dimension_numbers<[1], [0], [0], [1], [0, 0, 1, 1], [], []>} : vector<2x64xbf16>, vector<64x64xbf16>, vector<2x64xf32> -> vector<2x64xf32>
    %1094 = arith.addf %1093, %755 : vector<2x64xf32>
    %cst_295 = arith.constant 0.000000e+00 : f32
    %1095 = vector.broadcast %cst_295 : f32 to vector<2x64xf32>
    %1096 = arith.maximumf %1094, %1095 : vector<2x64xf32>
    %1097 = vector.broadcast %732 : vector<1x64xf32> to vector<2x64xf32>
    %1098 = arith.mulf %1096, %1097 : vector<2x64xf32>
    %cst_296 = arith.constant dense<0.000000e+00> : vector<2xf32>
    %1099 = vector.multi_reduction <add>, %1098, %cst_296 [1] : vector<2x64xf32> to vector<2xf32>
    %1100 = vector.shape_cast %1099 : vector<2xf32> to vector<2x1xf32>
    %1101 = arith.addf %1100, %757 : vector<2x1xf32>
    %1102 = vector.extract_strided_slice %739 {offsets = [0, 4], sizes = [2, 1], strides = [1, 1]} : vector<2x8xf32> to vector<2x1xf32>
    %1103 = arith.addf %1101, %1102 : vector<2x1xf32>
    %cst_297 = arith.constant 1.000000e+01 : f32
    %1104 = vector.broadcast %cst_297 : f32 to vector<2x1xf32>
    %1105 = arith.mulf %1103, %1104 : vector<2x1xf32>
    %1106 = arith.negf %1105 : vector<2x1xf32>
    %1107 = math.exp %1106 : vector<2x1xf32>
    %cst_298 = arith.constant 1.000000e+00 : f32
    %1108 = vector.broadcast %cst_298 : f32 to vector<2x1xf32>
    %1109 = arith.addf %1108, %1107 : vector<2x1xf32>
    %1110 = arith.divf %1108, %1109 : vector<2x1xf32>
    %1111 = arith.truncf %1079 : vector<2x32xf32> to vector<2x32xbf16>
    %cst_299 = arith.constant dense<0.000000e+00> : vector<2x96xf32>
    %1112 = tpu.matmul %1111, %734, %cst_299 {dimension_numbers = #tpu.dot_dimension_numbers<[1], [0], [0], [1], [0, 0, 1, 1], [], []>} : vector<2x32xbf16>, vector<32x96xbf16>, vector<2x96xf32> -> vector<2x96xf32>
    %1113 = arith.addf %1112, %759 : vector<2x96xf32>
    %1114 = arith.truncf %1070 : vector<2x32xf32> to vector<2x32xbf16>
    %cst_300 = arith.constant dense<0.000000e+00> : vector<2x96xf32>
    %1115 = tpu.matmul %1114, %736, %cst_300 {dimension_numbers = #tpu.dot_dimension_numbers<[1], [0], [0], [1], [0, 0, 1, 1], [], []>} : vector<2x32xbf16>, vector<32x96xbf16>, vector<2x96xf32> -> vector<2x96xf32>
    %1116 = arith.addf %1115, %761 : vector<2x96xf32>
    %1117 = vector.extract_strided_slice %1113 {offsets = [0, 0], sizes = [2, 32], strides = [1, 1]} : vector<2x96xf32> to vector<2x32xf32>
    %1118 = vector.extract_strided_slice %1116 {offsets = [0, 0], sizes = [2, 32], strides = [1, 1]} : vector<2x96xf32> to vector<2x32xf32>
    %1119 = arith.addf %1117, %1118 : vector<2x32xf32>
    %1120 = arith.negf %1119 : vector<2x32xf32>
    %1121 = math.exp %1120 : vector<2x32xf32>
    %cst_301 = arith.constant 1.000000e+00 : f32
    %1122 = vector.broadcast %cst_301 : f32 to vector<2x32xf32>
    %1123 = arith.addf %1122, %1121 : vector<2x32xf32>
    %1124 = arith.divf %1122, %1123 : vector<2x32xf32>
    %1125 = vector.extract_strided_slice %1113 {offsets = [0, 32], sizes = [2, 32], strides = [1, 1]} : vector<2x96xf32> to vector<2x32xf32>
    %1126 = vector.extract_strided_slice %1116 {offsets = [0, 32], sizes = [2, 32], strides = [1, 1]} : vector<2x96xf32> to vector<2x32xf32>
    %1127 = arith.addf %1125, %1126 : vector<2x32xf32>
    %1128 = arith.negf %1127 : vector<2x32xf32>
    %1129 = math.exp %1128 : vector<2x32xf32>
    %cst_302 = arith.constant 1.000000e+00 : f32
    %1130 = vector.broadcast %cst_302 : f32 to vector<2x32xf32>
    %1131 = arith.addf %1130, %1129 : vector<2x32xf32>
    %1132 = arith.divf %1130, %1131 : vector<2x32xf32>
    %1133 = vector.extract_strided_slice %1113 {offsets = [0, 64], sizes = [2, 32], strides = [1, 1]} : vector<2x96xf32> to vector<2x32xf32>
    %1134 = vector.extract_strided_slice %1116 {offsets = [0, 64], sizes = [2, 32], strides = [1, 1]} : vector<2x96xf32> to vector<2x32xf32>
    %1135 = arith.mulf %1124, %1134 : vector<2x32xf32>
    %1136 = arith.addf %1133, %1135 : vector<2x32xf32>
    %1137 = math.tanh %1136 : vector<2x32xf32>
    %cst_303 = arith.constant 1.000000e+00 : f32
    %1138 = vector.broadcast %cst_303 : f32 to vector<2x32xf32>
    %1139 = arith.subf %1138, %1132 : vector<2x32xf32>
    %1140 = arith.mulf %1139, %1137 : vector<2x32xf32>
    %1141 = arith.mulf %1132, %1070 : vector<2x32xf32>
    %1142 = arith.addf %1140, %1141 : vector<2x32xf32>
    %cst_304 = arith.constant 1.000000e+00 : f32
    %1143 = vector.broadcast %cst_304 : f32 to vector<2x1xf32>
    %1144 = arith.subf %1143, %1110 : vector<2x1xf32>
    %1145 = vector.broadcast %1144 : vector<2x1xf32> to vector<2x32xf32>
    %1146 = arith.mulf %1070, %1145 : vector<2x32xf32>
    %1147 = vector.broadcast %1110 : vector<2x1xf32> to vector<2x32xf32>
    %1148 = arith.mulf %1147, %1142 : vector<2x32xf32>
    %1149 = arith.addf %1146, %1148 : vector<2x32xf32>
    %1150 = arith.mulf %1073, %1144 : vector<2x1xf32>
    %cst_305 = arith.constant 1.000000e+00 : f32
    %1151 = vector.broadcast %cst_305 : f32 to vector<2x1xf32>
    %1152 = arith.addf %1150, %1151 : vector<2x1xf32>
    %1153 = arith.mulf %1073, %1144 : vector<2x1xf32>
    %1154 = vector.broadcast %1153 : vector<2x1xf32> to vector<2x32xf32>
    %1155 = arith.mulf %1079, %1154 : vector<2x32xf32>
    %1156 = arith.addf %1155, %1080 : vector<2x32xf32>
    %1157 = vector.broadcast %1152 : vector<2x1xf32> to vector<2x32xf32>
    %1158 = arith.divf %1156, %1157 : vector<2x32xf32>
    %1159 = vector.extract_strided_slice %747 {offsets = [10, 0], sizes = [2, 32], strides = [1, 1]} : vector<16x32xf32> to vector<2x32xf32>
    %1160 = vector.extract_strided_slice %751 {offsets = [10, 0], sizes = [2, 64], strides = [1, 1]} : vector<16x64xf32> to vector<2x64xf32>
    %1161 = arith.truncf %1158 : vector<2x32xf32> to vector<2x32xbf16>
    %cst_306 = arith.constant dense<0.000000e+00> : vector<2x64xf32>
    %1162 = tpu.matmul %1161, %725, %cst_306 {dimension_numbers = #tpu.dot_dimension_numbers<[1], [0], [0], [1], [0, 0, 1, 1], [], []>} : vector<2x32xbf16>, vector<32x64xbf16>, vector<2x64xf32> -> vector<2x64xf32>
    %1163 = arith.addf %1162, %1160 : vector<2x64xf32>
    %cst_307 = arith.constant 0.000000e+00 : f32
    %1164 = vector.broadcast %cst_307 : f32 to vector<2x64xf32>
    %1165 = arith.maximumf %1163, %1164 : vector<2x64xf32>
    %1166 = arith.truncf %1165 : vector<2x64xf32> to vector<2x64xbf16>
    %cst_308 = arith.constant dense<0.000000e+00> : vector<2x64xf32>
    %1167 = tpu.matmul %1166, %728, %cst_308 {dimension_numbers = #tpu.dot_dimension_numbers<[1], [0], [0], [1], [0, 0, 1, 1], [], []>} : vector<2x64xbf16>, vector<64x64xbf16>, vector<2x64xf32> -> vector<2x64xf32>
    %1168 = arith.addf %1167, %753 : vector<2x64xf32>
    %cst_309 = arith.constant 0.000000e+00 : f32
    %1169 = vector.broadcast %cst_309 : f32 to vector<2x64xf32>
    %1170 = arith.maximumf %1168, %1169 : vector<2x64xf32>
    %1171 = arith.truncf %1170 : vector<2x64xf32> to vector<2x64xbf16>
    %cst_310 = arith.constant dense<0.000000e+00> : vector<2x64xf32>
    %1172 = tpu.matmul %1171, %730, %cst_310 {dimension_numbers = #tpu.dot_dimension_numbers<[1], [0], [0], [1], [0, 0, 1, 1], [], []>} : vector<2x64xbf16>, vector<64x64xbf16>, vector<2x64xf32> -> vector<2x64xf32>
    %1173 = arith.addf %1172, %755 : vector<2x64xf32>
    %cst_311 = arith.constant 0.000000e+00 : f32
    %1174 = vector.broadcast %cst_311 : f32 to vector<2x64xf32>
    %1175 = arith.maximumf %1173, %1174 : vector<2x64xf32>
    %1176 = vector.broadcast %732 : vector<1x64xf32> to vector<2x64xf32>
    %1177 = arith.mulf %1175, %1176 : vector<2x64xf32>
    %cst_312 = arith.constant dense<0.000000e+00> : vector<2xf32>
    %1178 = vector.multi_reduction <add>, %1177, %cst_312 [1] : vector<2x64xf32> to vector<2xf32>
    %1179 = vector.shape_cast %1178 : vector<2xf32> to vector<2x1xf32>
    %1180 = arith.addf %1179, %757 : vector<2x1xf32>
    %1181 = vector.extract_strided_slice %739 {offsets = [0, 5], sizes = [2, 1], strides = [1, 1]} : vector<2x8xf32> to vector<2x1xf32>
    %1182 = arith.addf %1180, %1181 : vector<2x1xf32>
    %cst_313 = arith.constant 1.000000e+01 : f32
    %1183 = vector.broadcast %cst_313 : f32 to vector<2x1xf32>
    %1184 = arith.mulf %1182, %1183 : vector<2x1xf32>
    %1185 = arith.negf %1184 : vector<2x1xf32>
    %1186 = math.exp %1185 : vector<2x1xf32>
    %cst_314 = arith.constant 1.000000e+00 : f32
    %1187 = vector.broadcast %cst_314 : f32 to vector<2x1xf32>
    %1188 = arith.addf %1187, %1186 : vector<2x1xf32>
    %1189 = arith.divf %1187, %1188 : vector<2x1xf32>
    %1190 = arith.truncf %1158 : vector<2x32xf32> to vector<2x32xbf16>
    %cst_315 = arith.constant dense<0.000000e+00> : vector<2x96xf32>
    %1191 = tpu.matmul %1190, %734, %cst_315 {dimension_numbers = #tpu.dot_dimension_numbers<[1], [0], [0], [1], [0, 0, 1, 1], [], []>} : vector<2x32xbf16>, vector<32x96xbf16>, vector<2x96xf32> -> vector<2x96xf32>
    %1192 = arith.addf %1191, %759 : vector<2x96xf32>
    %1193 = arith.truncf %1149 : vector<2x32xf32> to vector<2x32xbf16>
    %cst_316 = arith.constant dense<0.000000e+00> : vector<2x96xf32>
    %1194 = tpu.matmul %1193, %736, %cst_316 {dimension_numbers = #tpu.dot_dimension_numbers<[1], [0], [0], [1], [0, 0, 1, 1], [], []>} : vector<2x32xbf16>, vector<32x96xbf16>, vector<2x96xf32> -> vector<2x96xf32>
    %1195 = arith.addf %1194, %761 : vector<2x96xf32>
    %1196 = vector.extract_strided_slice %1192 {offsets = [0, 0], sizes = [2, 32], strides = [1, 1]} : vector<2x96xf32> to vector<2x32xf32>
    %1197 = vector.extract_strided_slice %1195 {offsets = [0, 0], sizes = [2, 32], strides = [1, 1]} : vector<2x96xf32> to vector<2x32xf32>
    %1198 = arith.addf %1196, %1197 : vector<2x32xf32>
    %1199 = arith.negf %1198 : vector<2x32xf32>
    %1200 = math.exp %1199 : vector<2x32xf32>
    %cst_317 = arith.constant 1.000000e+00 : f32
    %1201 = vector.broadcast %cst_317 : f32 to vector<2x32xf32>
    %1202 = arith.addf %1201, %1200 : vector<2x32xf32>
    %1203 = arith.divf %1201, %1202 : vector<2x32xf32>
    %1204 = vector.extract_strided_slice %1192 {offsets = [0, 32], sizes = [2, 32], strides = [1, 1]} : vector<2x96xf32> to vector<2x32xf32>
    %1205 = vector.extract_strided_slice %1195 {offsets = [0, 32], sizes = [2, 32], strides = [1, 1]} : vector<2x96xf32> to vector<2x32xf32>
    %1206 = arith.addf %1204, %1205 : vector<2x32xf32>
    %1207 = arith.negf %1206 : vector<2x32xf32>
    %1208 = math.exp %1207 : vector<2x32xf32>
    %cst_318 = arith.constant 1.000000e+00 : f32
    %1209 = vector.broadcast %cst_318 : f32 to vector<2x32xf32>
    %1210 = arith.addf %1209, %1208 : vector<2x32xf32>
    %1211 = arith.divf %1209, %1210 : vector<2x32xf32>
    %1212 = vector.extract_strided_slice %1192 {offsets = [0, 64], sizes = [2, 32], strides = [1, 1]} : vector<2x96xf32> to vector<2x32xf32>
    %1213 = vector.extract_strided_slice %1195 {offsets = [0, 64], sizes = [2, 32], strides = [1, 1]} : vector<2x96xf32> to vector<2x32xf32>
    %1214 = arith.mulf %1203, %1213 : vector<2x32xf32>
    %1215 = arith.addf %1212, %1214 : vector<2x32xf32>
    %1216 = math.tanh %1215 : vector<2x32xf32>
    %cst_319 = arith.constant 1.000000e+00 : f32
    %1217 = vector.broadcast %cst_319 : f32 to vector<2x32xf32>
    %1218 = arith.subf %1217, %1211 : vector<2x32xf32>
    %1219 = arith.mulf %1218, %1216 : vector<2x32xf32>
    %1220 = arith.mulf %1211, %1149 : vector<2x32xf32>
    %1221 = arith.addf %1219, %1220 : vector<2x32xf32>
    %cst_320 = arith.constant 1.000000e+00 : f32
    %1222 = vector.broadcast %cst_320 : f32 to vector<2x1xf32>
    %1223 = arith.subf %1222, %1189 : vector<2x1xf32>
    %1224 = vector.broadcast %1223 : vector<2x1xf32> to vector<2x32xf32>
    %1225 = arith.mulf %1149, %1224 : vector<2x32xf32>
    %1226 = vector.broadcast %1189 : vector<2x1xf32> to vector<2x32xf32>
    %1227 = arith.mulf %1226, %1221 : vector<2x32xf32>
    %1228 = arith.addf %1225, %1227 : vector<2x32xf32>
    %1229 = arith.mulf %1152, %1223 : vector<2x1xf32>
    %cst_321 = arith.constant 1.000000e+00 : f32
    %1230 = vector.broadcast %cst_321 : f32 to vector<2x1xf32>
    %1231 = arith.addf %1229, %1230 : vector<2x1xf32>
    %1232 = arith.mulf %1152, %1223 : vector<2x1xf32>
    %1233 = vector.broadcast %1232 : vector<2x1xf32> to vector<2x32xf32>
    %1234 = arith.mulf %1158, %1233 : vector<2x32xf32>
    %1235 = arith.addf %1234, %1159 : vector<2x32xf32>
    %1236 = vector.broadcast %1231 : vector<2x1xf32> to vector<2x32xf32>
    %1237 = arith.divf %1235, %1236 : vector<2x32xf32>
    %1238 = vector.extract_strided_slice %747 {offsets = [12, 0], sizes = [2, 32], strides = [1, 1]} : vector<16x32xf32> to vector<2x32xf32>
    %1239 = vector.extract_strided_slice %751 {offsets = [12, 0], sizes = [2, 64], strides = [1, 1]} : vector<16x64xf32> to vector<2x64xf32>
    %1240 = arith.truncf %1237 : vector<2x32xf32> to vector<2x32xbf16>
    %cst_322 = arith.constant dense<0.000000e+00> : vector<2x64xf32>
    %1241 = tpu.matmul %1240, %725, %cst_322 {dimension_numbers = #tpu.dot_dimension_numbers<[1], [0], [0], [1], [0, 0, 1, 1], [], []>} : vector<2x32xbf16>, vector<32x64xbf16>, vector<2x64xf32> -> vector<2x64xf32>
    %1242 = arith.addf %1241, %1239 : vector<2x64xf32>
    %cst_323 = arith.constant 0.000000e+00 : f32
    %1243 = vector.broadcast %cst_323 : f32 to vector<2x64xf32>
    %1244 = arith.maximumf %1242, %1243 : vector<2x64xf32>
    %1245 = arith.truncf %1244 : vector<2x64xf32> to vector<2x64xbf16>
    %cst_324 = arith.constant dense<0.000000e+00> : vector<2x64xf32>
    %1246 = tpu.matmul %1245, %728, %cst_324 {dimension_numbers = #tpu.dot_dimension_numbers<[1], [0], [0], [1], [0, 0, 1, 1], [], []>} : vector<2x64xbf16>, vector<64x64xbf16>, vector<2x64xf32> -> vector<2x64xf32>
    %1247 = arith.addf %1246, %753 : vector<2x64xf32>
    %cst_325 = arith.constant 0.000000e+00 : f32
    %1248 = vector.broadcast %cst_325 : f32 to vector<2x64xf32>
    %1249 = arith.maximumf %1247, %1248 : vector<2x64xf32>
    %1250 = arith.truncf %1249 : vector<2x64xf32> to vector<2x64xbf16>
    %cst_326 = arith.constant dense<0.000000e+00> : vector<2x64xf32>
    %1251 = tpu.matmul %1250, %730, %cst_326 {dimension_numbers = #tpu.dot_dimension_numbers<[1], [0], [0], [1], [0, 0, 1, 1], [], []>} : vector<2x64xbf16>, vector<64x64xbf16>, vector<2x64xf32> -> vector<2x64xf32>
    %1252 = arith.addf %1251, %755 : vector<2x64xf32>
    %cst_327 = arith.constant 0.000000e+00 : f32
    %1253 = vector.broadcast %cst_327 : f32 to vector<2x64xf32>
    %1254 = arith.maximumf %1252, %1253 : vector<2x64xf32>
    %1255 = vector.broadcast %732 : vector<1x64xf32> to vector<2x64xf32>
    %1256 = arith.mulf %1254, %1255 : vector<2x64xf32>
    %cst_328 = arith.constant dense<0.000000e+00> : vector<2xf32>
    %1257 = vector.multi_reduction <add>, %1256, %cst_328 [1] : vector<2x64xf32> to vector<2xf32>
    %1258 = vector.shape_cast %1257 : vector<2xf32> to vector<2x1xf32>
    %1259 = arith.addf %1258, %757 : vector<2x1xf32>
    %1260 = vector.extract_strided_slice %739 {offsets = [0, 6], sizes = [2, 1], strides = [1, 1]} : vector<2x8xf32> to vector<2x1xf32>
    %1261 = arith.addf %1259, %1260 : vector<2x1xf32>
    %cst_329 = arith.constant 1.000000e+01 : f32
    %1262 = vector.broadcast %cst_329 : f32 to vector<2x1xf32>
    %1263 = arith.mulf %1261, %1262 : vector<2x1xf32>
    %1264 = arith.negf %1263 : vector<2x1xf32>
    %1265 = math.exp %1264 : vector<2x1xf32>
    %cst_330 = arith.constant 1.000000e+00 : f32
    %1266 = vector.broadcast %cst_330 : f32 to vector<2x1xf32>
    %1267 = arith.addf %1266, %1265 : vector<2x1xf32>
    %1268 = arith.divf %1266, %1267 : vector<2x1xf32>
    %1269 = arith.truncf %1237 : vector<2x32xf32> to vector<2x32xbf16>
    %cst_331 = arith.constant dense<0.000000e+00> : vector<2x96xf32>
    %1270 = tpu.matmul %1269, %734, %cst_331 {dimension_numbers = #tpu.dot_dimension_numbers<[1], [0], [0], [1], [0, 0, 1, 1], [], []>} : vector<2x32xbf16>, vector<32x96xbf16>, vector<2x96xf32> -> vector<2x96xf32>
    %1271 = arith.addf %1270, %759 : vector<2x96xf32>
    %1272 = arith.truncf %1228 : vector<2x32xf32> to vector<2x32xbf16>
    %cst_332 = arith.constant dense<0.000000e+00> : vector<2x96xf32>
    %1273 = tpu.matmul %1272, %736, %cst_332 {dimension_numbers = #tpu.dot_dimension_numbers<[1], [0], [0], [1], [0, 0, 1, 1], [], []>} : vector<2x32xbf16>, vector<32x96xbf16>, vector<2x96xf32> -> vector<2x96xf32>
    %1274 = arith.addf %1273, %761 : vector<2x96xf32>
    %1275 = vector.extract_strided_slice %1271 {offsets = [0, 0], sizes = [2, 32], strides = [1, 1]} : vector<2x96xf32> to vector<2x32xf32>
    %1276 = vector.extract_strided_slice %1274 {offsets = [0, 0], sizes = [2, 32], strides = [1, 1]} : vector<2x96xf32> to vector<2x32xf32>
    %1277 = arith.addf %1275, %1276 : vector<2x32xf32>
    %1278 = arith.negf %1277 : vector<2x32xf32>
    %1279 = math.exp %1278 : vector<2x32xf32>
    %cst_333 = arith.constant 1.000000e+00 : f32
    %1280 = vector.broadcast %cst_333 : f32 to vector<2x32xf32>
    %1281 = arith.addf %1280, %1279 : vector<2x32xf32>
    %1282 = arith.divf %1280, %1281 : vector<2x32xf32>
    %1283 = vector.extract_strided_slice %1271 {offsets = [0, 32], sizes = [2, 32], strides = [1, 1]} : vector<2x96xf32> to vector<2x32xf32>
    %1284 = vector.extract_strided_slice %1274 {offsets = [0, 32], sizes = [2, 32], strides = [1, 1]} : vector<2x96xf32> to vector<2x32xf32>
    %1285 = arith.addf %1283, %1284 : vector<2x32xf32>
    %1286 = arith.negf %1285 : vector<2x32xf32>
    %1287 = math.exp %1286 : vector<2x32xf32>
    %cst_334 = arith.constant 1.000000e+00 : f32
    %1288 = vector.broadcast %cst_334 : f32 to vector<2x32xf32>
    %1289 = arith.addf %1288, %1287 : vector<2x32xf32>
    %1290 = arith.divf %1288, %1289 : vector<2x32xf32>
    %1291 = vector.extract_strided_slice %1271 {offsets = [0, 64], sizes = [2, 32], strides = [1, 1]} : vector<2x96xf32> to vector<2x32xf32>
    %1292 = vector.extract_strided_slice %1274 {offsets = [0, 64], sizes = [2, 32], strides = [1, 1]} : vector<2x96xf32> to vector<2x32xf32>
    %1293 = arith.mulf %1282, %1292 : vector<2x32xf32>
    %1294 = arith.addf %1291, %1293 : vector<2x32xf32>
    %1295 = math.tanh %1294 : vector<2x32xf32>
    %cst_335 = arith.constant 1.000000e+00 : f32
    %1296 = vector.broadcast %cst_335 : f32 to vector<2x32xf32>
    %1297 = arith.subf %1296, %1290 : vector<2x32xf32>
    %1298 = arith.mulf %1297, %1295 : vector<2x32xf32>
    %1299 = arith.mulf %1290, %1228 : vector<2x32xf32>
    %1300 = arith.addf %1298, %1299 : vector<2x32xf32>
    %cst_336 = arith.constant 1.000000e+00 : f32
    %1301 = vector.broadcast %cst_336 : f32 to vector<2x1xf32>
    %1302 = arith.subf %1301, %1268 : vector<2x1xf32>
    %1303 = vector.broadcast %1302 : vector<2x1xf32> to vector<2x32xf32>
    %1304 = arith.mulf %1228, %1303 : vector<2x32xf32>
    %1305 = vector.broadcast %1268 : vector<2x1xf32> to vector<2x32xf32>
    %1306 = arith.mulf %1305, %1300 : vector<2x32xf32>
    %1307 = arith.addf %1304, %1306 : vector<2x32xf32>
    %1308 = arith.mulf %1231, %1302 : vector<2x1xf32>
    %cst_337 = arith.constant 1.000000e+00 : f32
    %1309 = vector.broadcast %cst_337 : f32 to vector<2x1xf32>
    %1310 = arith.addf %1308, %1309 : vector<2x1xf32>
    %1311 = arith.mulf %1231, %1302 : vector<2x1xf32>
    %1312 = vector.broadcast %1311 : vector<2x1xf32> to vector<2x32xf32>
    %1313 = arith.mulf %1237, %1312 : vector<2x32xf32>
    %1314 = arith.addf %1313, %1238 : vector<2x32xf32>
    %1315 = vector.broadcast %1310 : vector<2x1xf32> to vector<2x32xf32>
    %1316 = arith.divf %1314, %1315 : vector<2x32xf32>
    %1317 = vector.extract_strided_slice %747 {offsets = [14, 0], sizes = [2, 32], strides = [1, 1]} : vector<16x32xf32> to vector<2x32xf32>
    %1318 = vector.extract_strided_slice %751 {offsets = [14, 0], sizes = [2, 64], strides = [1, 1]} : vector<16x64xf32> to vector<2x64xf32>
    %1319 = arith.truncf %1316 : vector<2x32xf32> to vector<2x32xbf16>
    %cst_338 = arith.constant dense<0.000000e+00> : vector<2x64xf32>
    %1320 = tpu.matmul %1319, %725, %cst_338 {dimension_numbers = #tpu.dot_dimension_numbers<[1], [0], [0], [1], [0, 0, 1, 1], [], []>} : vector<2x32xbf16>, vector<32x64xbf16>, vector<2x64xf32> -> vector<2x64xf32>
    %1321 = arith.addf %1320, %1318 : vector<2x64xf32>
    %cst_339 = arith.constant 0.000000e+00 : f32
    %1322 = vector.broadcast %cst_339 : f32 to vector<2x64xf32>
    %1323 = arith.maximumf %1321, %1322 : vector<2x64xf32>
    %1324 = arith.truncf %1323 : vector<2x64xf32> to vector<2x64xbf16>
    %cst_340 = arith.constant dense<0.000000e+00> : vector<2x64xf32>
    %1325 = tpu.matmul %1324, %728, %cst_340 {dimension_numbers = #tpu.dot_dimension_numbers<[1], [0], [0], [1], [0, 0, 1, 1], [], []>} : vector<2x64xbf16>, vector<64x64xbf16>, vector<2x64xf32> -> vector<2x64xf32>
    %1326 = arith.addf %1325, %753 : vector<2x64xf32>
    %cst_341 = arith.constant 0.000000e+00 : f32
    %1327 = vector.broadcast %cst_341 : f32 to vector<2x64xf32>
    %1328 = arith.maximumf %1326, %1327 : vector<2x64xf32>
    %1329 = arith.truncf %1328 : vector<2x64xf32> to vector<2x64xbf16>
    %cst_342 = arith.constant dense<0.000000e+00> : vector<2x64xf32>
    %1330 = tpu.matmul %1329, %730, %cst_342 {dimension_numbers = #tpu.dot_dimension_numbers<[1], [0], [0], [1], [0, 0, 1, 1], [], []>} : vector<2x64xbf16>, vector<64x64xbf16>, vector<2x64xf32> -> vector<2x64xf32>
    %1331 = arith.addf %1330, %755 : vector<2x64xf32>
    %cst_343 = arith.constant 0.000000e+00 : f32
    %1332 = vector.broadcast %cst_343 : f32 to vector<2x64xf32>
    %1333 = arith.maximumf %1331, %1332 : vector<2x64xf32>
    %1334 = vector.broadcast %732 : vector<1x64xf32> to vector<2x64xf32>
    %1335 = arith.mulf %1333, %1334 : vector<2x64xf32>
    %cst_344 = arith.constant dense<0.000000e+00> : vector<2xf32>
    %1336 = vector.multi_reduction <add>, %1335, %cst_344 [1] : vector<2x64xf32> to vector<2xf32>
    %1337 = vector.shape_cast %1336 : vector<2xf32> to vector<2x1xf32>
    %1338 = arith.addf %1337, %757 : vector<2x1xf32>
    %1339 = vector.extract_strided_slice %739 {offsets = [0, 7], sizes = [2, 1], strides = [1, 1]} : vector<2x8xf32> to vector<2x1xf32>
    %1340 = arith.addf %1338, %1339 : vector<2x1xf32>
    %cst_345 = arith.constant 1.000000e+01 : f32
    %1341 = vector.broadcast %cst_345 : f32 to vector<2x1xf32>
    %1342 = arith.mulf %1340, %1341 : vector<2x1xf32>
    %1343 = arith.negf %1342 : vector<2x1xf32>
    %1344 = math.exp %1343 : vector<2x1xf32>
    %cst_346 = arith.constant 1.000000e+00 : f32
    %1345 = vector.broadcast %cst_346 : f32 to vector<2x1xf32>
    %1346 = arith.addf %1345, %1344 : vector<2x1xf32>
    %1347 = arith.divf %1345, %1346 : vector<2x1xf32>
    %1348 = arith.truncf %1316 : vector<2x32xf32> to vector<2x32xbf16>
    %cst_347 = arith.constant dense<0.000000e+00> : vector<2x96xf32>
    %1349 = tpu.matmul %1348, %734, %cst_347 {dimension_numbers = #tpu.dot_dimension_numbers<[1], [0], [0], [1], [0, 0, 1, 1], [], []>} : vector<2x32xbf16>, vector<32x96xbf16>, vector<2x96xf32> -> vector<2x96xf32>
    %1350 = arith.addf %1349, %759 : vector<2x96xf32>
    %1351 = arith.truncf %1307 : vector<2x32xf32> to vector<2x32xbf16>
    %cst_348 = arith.constant dense<0.000000e+00> : vector<2x96xf32>
    %1352 = tpu.matmul %1351, %736, %cst_348 {dimension_numbers = #tpu.dot_dimension_numbers<[1], [0], [0], [1], [0, 0, 1, 1], [], []>} : vector<2x32xbf16>, vector<32x96xbf16>, vector<2x96xf32> -> vector<2x96xf32>
    %1353 = arith.addf %1352, %761 : vector<2x96xf32>
    %1354 = vector.extract_strided_slice %1350 {offsets = [0, 0], sizes = [2, 32], strides = [1, 1]} : vector<2x96xf32> to vector<2x32xf32>
    %1355 = vector.extract_strided_slice %1353 {offsets = [0, 0], sizes = [2, 32], strides = [1, 1]} : vector<2x96xf32> to vector<2x32xf32>
    %1356 = arith.addf %1354, %1355 : vector<2x32xf32>
    %1357 = arith.negf %1356 : vector<2x32xf32>
    %1358 = math.exp %1357 : vector<2x32xf32>
    %cst_349 = arith.constant 1.000000e+00 : f32
    %1359 = vector.broadcast %cst_349 : f32 to vector<2x32xf32>
    %1360 = arith.addf %1359, %1358 : vector<2x32xf32>
    %1361 = arith.divf %1359, %1360 : vector<2x32xf32>
    %1362 = vector.extract_strided_slice %1350 {offsets = [0, 32], sizes = [2, 32], strides = [1, 1]} : vector<2x96xf32> to vector<2x32xf32>
    %1363 = vector.extract_strided_slice %1353 {offsets = [0, 32], sizes = [2, 32], strides = [1, 1]} : vector<2x96xf32> to vector<2x32xf32>
    %1364 = arith.addf %1362, %1363 : vector<2x32xf32>
    %1365 = arith.negf %1364 : vector<2x32xf32>
    %1366 = math.exp %1365 : vector<2x32xf32>
    %cst_350 = arith.constant 1.000000e+00 : f32
    %1367 = vector.broadcast %cst_350 : f32 to vector<2x32xf32>
    %1368 = arith.addf %1367, %1366 : vector<2x32xf32>
    %1369 = arith.divf %1367, %1368 : vector<2x32xf32>
    %1370 = vector.extract_strided_slice %1350 {offsets = [0, 64], sizes = [2, 32], strides = [1, 1]} : vector<2x96xf32> to vector<2x32xf32>
    %1371 = vector.extract_strided_slice %1353 {offsets = [0, 64], sizes = [2, 32], strides = [1, 1]} : vector<2x96xf32> to vector<2x32xf32>
    %1372 = arith.mulf %1361, %1371 : vector<2x32xf32>
    %1373 = arith.addf %1370, %1372 : vector<2x32xf32>
    %1374 = math.tanh %1373 : vector<2x32xf32>
    %cst_351 = arith.constant 1.000000e+00 : f32
    %1375 = vector.broadcast %cst_351 : f32 to vector<2x32xf32>
    %1376 = arith.subf %1375, %1369 : vector<2x32xf32>
    %1377 = arith.mulf %1376, %1374 : vector<2x32xf32>
    %1378 = arith.mulf %1369, %1307 : vector<2x32xf32>
    %1379 = arith.addf %1377, %1378 : vector<2x32xf32>
    %cst_352 = arith.constant 1.000000e+00 : f32
    %1380 = vector.broadcast %cst_352 : f32 to vector<2x1xf32>
    %1381 = arith.subf %1380, %1347 : vector<2x1xf32>
    %1382 = vector.broadcast %1381 : vector<2x1xf32> to vector<2x32xf32>
    %1383 = arith.mulf %1307, %1382 : vector<2x32xf32>
    %1384 = vector.broadcast %1347 : vector<2x1xf32> to vector<2x32xf32>
    %1385 = arith.mulf %1384, %1379 : vector<2x32xf32>
    %1386 = arith.addf %1383, %1385 : vector<2x32xf32>
    %1387 = arith.mulf %1310, %1381 : vector<2x1xf32>
    %cst_353 = arith.constant 1.000000e+00 : f32
    %1388 = vector.broadcast %cst_353 : f32 to vector<2x1xf32>
    %1389 = arith.addf %1387, %1388 : vector<2x1xf32>
    %1390 = arith.mulf %1310, %1381 : vector<2x1xf32>
    %1391 = vector.broadcast %1390 : vector<2x1xf32> to vector<2x32xf32>
    %1392 = arith.mulf %1316, %1391 : vector<2x32xf32>
    %1393 = arith.addf %1392, %1317 : vector<2x32xf32>
    %1394 = vector.broadcast %1389 : vector<2x1xf32> to vector<2x32xf32>
    %1395 = arith.divf %1393, %1394 : vector<2x32xf32>
    %1396 = arith.truncf %1395 : vector<2x32xf32> to vector<2x32xbf16>
    %cst_354 = arith.constant dense<0.000000e+00> : vector<2x96xf32>
    %1397 = tpu.matmul %1396, %734, %cst_354 {dimension_numbers = #tpu.dot_dimension_numbers<[1], [0], [0], [1], [0, 0, 1, 1], [], []>} : vector<2x32xbf16>, vector<32x96xbf16>, vector<2x96xf32> -> vector<2x96xf32>
    %1398 = arith.addf %1397, %759 : vector<2x96xf32>
    %1399 = arith.truncf %1386 : vector<2x32xf32> to vector<2x32xbf16>
    %cst_355 = arith.constant dense<0.000000e+00> : vector<2x96xf32>
    %1400 = tpu.matmul %1399, %736, %cst_355 {dimension_numbers = #tpu.dot_dimension_numbers<[1], [0], [0], [1], [0, 0, 1, 1], [], []>} : vector<2x32xbf16>, vector<32x96xbf16>, vector<2x96xf32> -> vector<2x96xf32>
    %1401 = arith.addf %1400, %761 : vector<2x96xf32>
    %1402 = vector.extract_strided_slice %1398 {offsets = [0, 0], sizes = [2, 32], strides = [1, 1]} : vector<2x96xf32> to vector<2x32xf32>
    %1403 = vector.extract_strided_slice %1401 {offsets = [0, 0], sizes = [2, 32], strides = [1, 1]} : vector<2x96xf32> to vector<2x32xf32>
    %1404 = arith.addf %1402, %1403 : vector<2x32xf32>
    %1405 = arith.negf %1404 : vector<2x32xf32>
    %1406 = math.exp %1405 : vector<2x32xf32>
    %cst_356 = arith.constant 1.000000e+00 : f32
    %1407 = vector.broadcast %cst_356 : f32 to vector<2x32xf32>
    %1408 = arith.addf %1407, %1406 : vector<2x32xf32>
    %1409 = arith.divf %1407, %1408 : vector<2x32xf32>
    %1410 = vector.extract_strided_slice %1398 {offsets = [0, 32], sizes = [2, 32], strides = [1, 1]} : vector<2x96xf32> to vector<2x32xf32>
    %1411 = vector.extract_strided_slice %1401 {offsets = [0, 32], sizes = [2, 32], strides = [1, 1]} : vector<2x96xf32> to vector<2x32xf32>
    %1412 = arith.addf %1410, %1411 : vector<2x32xf32>
    %1413 = arith.negf %1412 : vector<2x32xf32>
    %1414 = math.exp %1413 : vector<2x32xf32>
    %cst_357 = arith.constant 1.000000e+00 : f32
    %1415 = vector.broadcast %cst_357 : f32 to vector<2x32xf32>
    %1416 = arith.addf %1415, %1414 : vector<2x32xf32>
    %1417 = arith.divf %1415, %1416 : vector<2x32xf32>
    %1418 = vector.extract_strided_slice %1398 {offsets = [0, 64], sizes = [2, 32], strides = [1, 1]} : vector<2x96xf32> to vector<2x32xf32>
    %1419 = vector.extract_strided_slice %1401 {offsets = [0, 64], sizes = [2, 32], strides = [1, 1]} : vector<2x96xf32> to vector<2x32xf32>
    %1420 = arith.mulf %1409, %1419 : vector<2x32xf32>
    %1421 = arith.addf %1418, %1420 : vector<2x32xf32>
    %1422 = math.tanh %1421 : vector<2x32xf32>
    %cst_358 = arith.constant 1.000000e+00 : f32
    %1423 = vector.broadcast %cst_358 : f32 to vector<2x32xf32>
    %1424 = arith.subf %1423, %1417 : vector<2x32xf32>
    %1425 = arith.mulf %1424, %1422 : vector<2x32xf32>
    %1426 = arith.mulf %1417, %1386 : vector<2x32xf32>
    %1427 = arith.addf %1425, %1426 : vector<2x32xf32>
    %1428 = tpu.concatenate %764, %843, %922, %1001, %1080, %1159, %1238, %1317 in 1 : vector<2x32xf32>, vector<2x32xf32>, vector<2x32xf32>, vector<2x32xf32>, vector<2x32xf32>, vector<2x32xf32>, vector<2x32xf32>, vector<2x32xf32> -> vector<2x256xf32>
    %c0_359 = arith.constant 0 : index
    %c0_360 = arith.constant 0 : index
    %1429 = vector.load %arg33[%c0_359, %c0_360] : memref<2x256xf32, #tpu.memory_space<vmem>>, vector<2x256xf32>
    tpu.vector_store %arg33[%c0_359, %c0_360], %1428 {strides = array<i32>} : memref<2x256xf32, #tpu.memory_space<vmem>>, vector<2x256xf32>,
    %1430 = tpu.concatenate %833, %912, %991, %1070, %1149, %1228, %1307, %1386 in 1 : vector<2x32xf32>, vector<2x32xf32>, vector<2x32xf32>, vector<2x32xf32>, vector<2x32xf32>, vector<2x32xf32>, vector<2x32xf32>, vector<2x32xf32> -> vector<2x256xf32>
    %c0_361 = arith.constant 0 : index
    %c0_362 = arith.constant 0 : index
    %1431 = vector.load %arg34[%c0_361, %c0_362] : memref<2x256xf32, #tpu.memory_space<vmem>>, vector<2x256xf32>
    tpu.vector_store %arg34[%c0_361, %c0_362], %1430 {strides = array<i32>} : memref<2x256xf32, #tpu.memory_space<vmem>>, vector<2x256xf32>,
    %c0_363 = arith.constant 0 : index
    %c0_364 = arith.constant 0 : index
    %1432 = vector.load %arg35[%c0_363, %c0_364] : memref<2x32xf32, #tpu.memory_space<vmem>>, vector<2x32xf32>
    tpu.vector_store %arg35[%c0_363, %c0_364], %1427 {strides = array<i32>} : memref<2x32xf32, #tpu.memory_space<vmem>>, vector<2x32xf32>,
    return
  }
}

</mosaic_0001>

<bundles_post_ra>
// kernel: tpu_custom_call.1
= control target key start
LH: loop header
LB: loop body
LE: loop exit
PB: predicated region body
PF: predicated region fallthrough
CT: control target
= control target key end

     0   :  { %s8720_s6 = smov 1   ;;  %s8721_s10 = smov 2   ;;  %s10822_s0 = inlined_call_operand.smem [shape: u32[36], index: -1, kind: input, shape index: {}] }
   0x1   :  { %s8808_s5 = sld [smem:[%s10822_s0]]   ;;  %s8722_s14 = smov 3  }
   0x2   :  { %s8813_s9 = sld [smem:[%s10822_s0 + %s8720_s6]]   ;;  %s8723_s18 = smov 4  }
   0x3   :  { %s8818_s13 = sld [smem:[%s10822_s0 + %s8721_s10]]   ;;  %s8724_s22 = smov 5  }
   0x4   :  { %s8823_s17 = sld [smem:[%s10822_s0 + %s8722_s14]]   ;;  %s8725_s26 = smov 6  }
   0x5   :  { %s8828_s21 = sld [smem:[%s10822_s0 + %s8723_s18]]   ;;  %s8726_s30 = smov 7  }
   0x6   :  { %s8833_s25 = sld [smem:[%s10822_s0 + %s8724_s22]]   ;;  %s8727_s4 = smov 8  }
   0x7   :  { %s8838_s29 = sld [smem:[%s10822_s0 + %s8725_s26]]   ;;  %s8728_s10 = smov 9  }
   0x8   :  { %s8843_s3 = sld [smem:[%s10822_s0 + %s8726_s30]]   ;;  %s8729_s15 = smov 10  }
   0x9   :  { %s8848_s8 = sld [smem:[%s10822_s0 + %s8727_s4]]   ;;  %s8730_s20 = smov 11  }
   0xa   :  { %s8853_s14 = sld [smem:[%s10822_s0 + %s8728_s10]]   ;;  %s8731_s26 = smov 12  }
   0xb   :  { %10839 = sst [smem:[#allocation62_spill]] %s8828_s21  ;;  %s8732_s1 = smov 13  }
   0xc   :  { %s8858_s19 = sld [smem:[%s10822_s0 + %s8729_s15]]   ;;  %s8733_s7 = smov 14  }
   0xd   :  { %10840 = sst [smem:[#allocation63_spill]] %s8838_s29  ;;  %s8734_s15 = smov 15  }
   0xe   :  { %10841 = sst [smem:[#allocation64_spill]] %s8843_s3  ;;  %s8735_s22 = smov 16  }
   0xf   :  { %s8863_s24 = sld [smem:[%s10822_s0 + %s8730_s20]]   ;;  %s8736_s28 = smov 17  }
  0x10   :  { %10842 = sst [smem:[#allocation65_spill]] %s8853_s14 }
  0x11   :  { %s6336_s30 = sld [smem:[%s10822_s0 + %s8731_s26]]  }
  0x12   :  { %s8871_s6 = sld [smem:[%s10822_s0 + %s8732_s1]]   ;;  %s8740_s1 = smov 21  }
  0x13   :  { %s8876_s12 = sld [smem:[%s10822_s0 + %s8733_s7]]   ;;  %s8737_s7 = smov 18  }
  0x14   :  { %s8881_s20 = sld [smem:[%s10822_s0 + %s8734_s15]]   ;;  %s8738_s15 = smov 19  }
  0x15   :  { %10843 = sst [smem:[#allocation66_spill]] %s8863_s24 }
  0x16   :  { %s8886_s27 = sld [smem:[%s10822_s0 + %s8735_s22]]   ;;  %s8739_s22 = smov 20  }
  0x17   :  { %s8891_s4 = sld [smem:[%s10822_s0 + %s8736_s28]]   ;;  %v77_v0 = vstv %s6336_s30  ;;  %s8741_s30 = smov 22  }
  0x18   :  { %s8896_s3 = sld [smem:[%s10822_s0 + %s8737_s7]]   ;;  %78 = vst [vmem:[#allocation2] sm:$0x1] %v77_v0 }
  0x19   :  { %10844 = sst [smem:[#allocation67_spill]] %s8876_s12  ;;  %s8744_s12 = smov 25  }
  0x1a   :  { %s8901_s23 = sld [smem:[%s10822_s0 + %s8738_s15]]   ;;  %s8742_s15 = smov 23  }
  0x1b   :  { %s8906_s28 = sld [smem:[%s10822_s0 + %s8739_s22]]  }
  0x1c   :  { %10845 = sst [smem:[#allocation68_spill]] %s8886_s27  ;;  %s8743_s27 = smov 24  }
  0x1d   :  { %s8911_s7 = sld [smem:[%s10822_s0 + %s8740_s1]]  }
  0x1e   :  { %10846 = sst [smem:[#allocation69_spill]] %s8896_s3 }
  0x1f   :  { %s8916_s16 = sld [smem:[%s10822_s0 + %s8741_s30]]   ;;  %s8745_s30 = smov 26  }
  0x20   :  { %10847 = sst [smem:[#allocation70_spill]] %s8901_s23  ;;  %s8746_s23 = smov 27  }
  0x21   :  { %s8921_s3 = sld [smem:[%s10822_s0 + %s8742_s15]]  }
  0x22   :  { %s8926_s24 = sld [smem:[%s10822_s0 + %s8743_s27]]   ;;  %s8747_s27 = smov 29  }
  0x23   :  { %10848 = sst [smem:[#allocation71_spill]] %s8911_s7 }
  0x24   :  { %s8931_s7 = sld [smem:[%s10822_s0 + %s8744_s12]]   ;;  %s8748_s12 = smov 30  }
  0x25   :  { %s8936_s14 = sld [smem:[%s10822_s0 + %s8745_s30]]   ;;  %s8749_s30 = smov 31  }
  0x26   :  { %s8956_s29 = sld [smem:[%s10822_s0 + %s8749_s30]]   ;;  %s8753_s30 = smov 35  }
  0x27   :  { %10849 = sst [smem:[#allocation72_spill]] %s8921_s3 }
  0x28   :  { %10850 = sst [smem:[#allocation73_spill]] %s8926_s24 }
  0x29   :  { %s8941_s3 = sld [smem:[%s10822_s0 + %s8746_s23]]   ;;  %s8750_s23 = smov 32  }
  0x2a   :  { %10851 = sst [smem:[#allocation74_spill]] %s8931_s7 }
  0x2b   :  { %s8946_s24 = sld [smem:[%s10822_s0 + %s8747_s27]]   ;;  %s8751_s27 = smov 33  }
  0x2c   :  { %s8951_s7 = sld [smem:[%s10822_s0 + %s8748_s12]]   ;;  %s8752_s12 = smov 34  }
  0x2d   :  { %10854 = sst [smem:[#allocation77_spill]] %s8956_s29 }
  0x2e   :  { %s8966_s21 = sld [smem:[%s10822_s0 + %s8751_s27]]  }
  0x2f   :  { %10852 = sst [smem:[#allocation75_spill]] %s8941_s3 }
  0x30   :  { %s8961_s3 = sld [smem:[%s10822_s0 + %s8750_s23]]   ;;  %s8754_s23 = smov 28  }
  0x31   :  { %s8976_s29 = sld [smem:[%s10822_s0 + %s8753_s30]]  }
  0x32   :  { %10853 = sst [smem:[#allocation76_spill]] %s8951_s7 }
  0x33   :  { %s8971_s7 = sld [smem:[%s10822_s0 + %s8752_s12]]  }
  0x36   :  { %10855 = sst [smem:[#allocation78_spill]] %s8961_s3 }
  0x37   :  { %s6352_s3 = sld [smem:[%s10822_s0 + %s8754_s23]]  }
  0x3d   :  { %v79_v1 = vstv %s6352_s3 }
  0x3e   :  { %80 = vst [vmem:[#allocation3] sm:$0x1] %v79_v1 }
  0x3f   :  { %81 = vsyncpa [#allocation5], 0 }
  0x40   :  { %82 = vsyncpa [#allocation8], 0 }
  0x41   :  { %83 = vsyncpa [#allocation11], 0 }
  0x42   :  { %84 = vsyncpa [#allocation14], 0 }
  0x43   :  { %85 = vsyncpa [#allocation17], 0 }
  0x44   :  { %86 = vsyncpa [#allocation20], 0 }
  0x45   :  { %87 = vsyncpa [#allocation23], 0 }
  0x46   :  { %88 = vsyncpa [#allocation26], 0 }
  0x47   :  { %89 = vsyncpa [#allocation29], 0 }
  0x48   :  { %90 = vsyncpa [#allocation32], 0 }
  0x49   :  { %91 = vsyncpa [#allocation35], 0 }
  0x4a   :  { %92 = vsyncpa [#allocation38], 0 }
  0x4b   :  { %93 = vsyncpa [#allocation41], 0 }
  0x4c   :  { %94 = vsyncpa [#allocation6], 0 }
  0x4d   :  { %95 = vsyncpa [#allocation45], 0  ;;  %s8755_s0 = smov [#allocation7]   ;;  %s8074_s27 = scalar_lea.hbm %s8813_s9, 64 }
  0x4e   :  { %s113_s3 = sshll.u32 %s8755_s0, 4  ;;  %p8075_p0 = scmp.ne.s32.totalorder %s8813_s9, %s8074_s27  ;;  %s114_s3 = int_to_ptr.vmem [resolvable:$true] %s113_s3 }
  0x4f   :  { %p8078_p1 = scmp.lt.u32.totalorder %s8074_s27, %s8813_s9 }
  0x51   :  { %p8080_p2 = pnand %p8078_p1, %p8075_p0 }
  0x53   :  { %8083 = shalt.err (!%p8080_p2)
}
  0x54   :  { %s8084_s22 = scalar_lea.vmem %s114_s3, 64  ;;  %p8089_p4 = scmp.lt.s32.totalorder %s114_s3, %s114_s3 }
  0x55   :  { %p8085_p3 = scmp.ne.s32.totalorder %s114_s3, %s8084_s22  ;;  %p8090_p5 = scmp.lt.s32.totalorder %s8084_s22, %s8084_s22 }
  0x57   :  { %p8091_p6 = por %p8090_p5, %p8089_p4 }
  0x59   :  { %p8092_p7 = pnand %p8091_p6, %p8085_p3 }
  0x5b   :  { %8095 = shalt.err (!%p8092_p7)
}
  0x5c   :  { %s8756_s26 = smov 32   ;;  %s8757_s12 = smov 2  }
  0x5d   :  { %119 = dma.hbm_to_vmem [thread:$0]  %s8813_s9, 64, %s114_s3, [#allocation8], %s8756_s26, %s8756_s26, %s8757_s12  }
  0x5e   :  { %s8758_s1 = smov [#allocation10]   ;;  %s8096_s30 = scalar_lea.hbm %s8823_s17, 16 }
  0x5f   :  { %s138_s2 = sshll.u32 %s8758_s1, 4  ;;  %p8097_p8 = scmp.ne.s32.totalorder %s8823_s17, %s8096_s30  ;;  %s139_s2 = int_to_ptr.vmem [resolvable:$true] %s138_s2 }
  0x60   :  { %p8100_p9 = scmp.lt.u32.totalorder %s8096_s30, %s8823_s17 }
  0x62   :  { %p8102_p10 = pnand %p8100_p9, %p8097_p8 }
  0x64   :  { %8105 = shalt.err (!%p8102_p10)
}
  0x65   :  { %s8106_s10 = scalar_lea.vmem %s139_s2, 16  ;;  %s8110_s11 = scalar_lea.vmem %s139_s2, 32 }
  0x66   :  { %p8107_p11 = scmp.ne.s32.totalorder %s139_s2, %s8106_s10  ;;  %p8111_p12 = scmp.lt.s32.totalorder %s139_s2, %s139_s2 }
  0x67   :  { %p8112_p13 = scmp.lt.s32.totalorder %s8110_s11, %s8106_s10 }
  0x69   :  { %p8113_p0 = por %p8112_p13, %p8111_p12 }
  0x6b   :  { %p8114_p1 = pnand %p8113_p0, %p8107_p11 }
  0x6d   :  { %8117 = shalt.err (!%p8114_p1)
}
  0x6e   :  { %141 = dma.hbm_to_vmem [thread:$0]  %s8823_s17, 16, %s139_s2, [#allocation11]  }
  0x6f   :  { %s8759_s9 = smov [#allocation13]   ;;  %s8760_s15 = smov [#allocation16]  }
  0x70   :  { %s159_s23 = sshll.u32 %s8759_s9, 4  ;;  %s184_s18 = sshll.u32 %s8760_s15, 4  ;;  %s160_s23 = int_to_ptr.vmem [resolvable:$true] %s159_s23  ;;  %s8991_s18 = int_to_ptr.vmem [resolvable:$true] %s184_s18 }
  0x71   :  { %s8118_s0 = scalar_lea.hbm %s8833_s25, 256 }
  0x72   :  { %p8119_p2 = scmp.ne.s32.totalorder %s8833_s25, %s8118_s0  ;;  %p8122_p3 = scmp.lt.u32.totalorder %s8118_s0, %s8833_s25 }
  0x74   :  { %p8124_p4 = pnand %p8122_p3, %p8119_p2 }
  0x76   :  { %8127 = shalt.err (!%p8124_p4)
}
  0x77   :  { %s8128_s3 = scalar_lea.vmem %s160_s23, 256  ;;  %p8133_p6 = scmp.lt.s32.totalorder %s160_s23, %s160_s23 }
  0x78   :  { %p8129_p5 = scmp.ne.s32.totalorder %s160_s23, %s8128_s3  ;;  %p8134_p7 = scmp.lt.s32.totalorder %s8128_s3, %s8128_s3 }
  0x7a   :  { %p8135_p8 = por %p8134_p7, %p8133_p6 }
  0x7c   :  { %p8136_p9 = pnand %p8135_p8, %p8129_p5 }
  0x7e   :  { %8139 = shalt.err (!%p8136_p9)
}
  0x7f   :  { %s8761_s17 = smov 64   ;;  %s8762_s27 = smov 4  }
  0x80   :  { %165 = dma.hbm_to_vmem [thread:$0]  %s8833_s25, 256, %s160_s23, [#allocation14], %s8761_s17, %s8761_s17, %s8762_s27  }
  0x81   :  { %s8140_s22 = scalar_lea.hbm %s8848_s8, 16 }
  0x82   :  { %p8141_p10 = scmp.ne.s32.totalorder %s8848_s8, %s8140_s22  ;;  %p8144_p11 = scmp.lt.u32.totalorder %s8140_s22, %s8848_s8 }
  0x84   :  { %p8146_p12 = pnand %p8144_p11, %p8141_p10 }
  0x86   :  { %8149 = shalt.err (!%p8146_p12)
}
  0x87   :  { %s8150_s12 = scalar_lea.vmem %s8991_s18, 16  ;;  %s8154_s1 = scalar_lea.vmem %s8991_s18, 32 }
  0x88   :  { %p8151_p13 = scmp.ne.s32.totalorder %s8991_s18, %s8150_s12  ;;  %p8155_p0 = scmp.lt.s32.totalorder %s8991_s18, %s8991_s18 }
  0x89   :  { %p8156_p1 = scmp.lt.s32.totalorder %s8154_s1, %s8150_s12 }
  0x8b   :  { %p8157_p2 = por %p8156_p1, %p8155_p0 }
  0x8d   :  { %p8158_p3 = pnand %p8157_p2, %p8151_p13 }
  0x8f   :  { %8161 = shalt.err (!%p8158_p3)
}
  0x90   :  { %187 = dma.hbm_to_vmem [thread:$0]  %s8848_s8, 16, %s8991_s18, [#allocation17]  }
  0x91   :  { %s8763_s25 = smov [#allocation19]   ;;  %s8764_s30 = smov [#allocation22]  }
  0x92   :  { %s206_s2 = sshll.u32 %s8763_s25, 4  ;;  %s227_s10 = sshll.u32 %s8764_s30, 4  ;;  %s207_s2 = int_to_ptr.vmem [resolvable:$true] %s206_s2  ;;  %s9010_s10 = int_to_ptr.vmem [resolvable:$true] %s227_s10 }
  0x93   :  { %s8162_s11 = scalar_lea.hbm %s8858_s19, 16 }
  0x94   :  { %p8163_p4 = scmp.ne.s32.totalorder %s8858_s19, %s8162_s11  ;;  %p8166_p5 = scmp.lt.u32.totalorder %s8162_s11, %s8858_s19 }
  0x96   :  { %p8168_p6 = pnand %p8166_p5, %p8163_p4 }
  0x98   :  { %8171 = shalt.err (!%p8168_p6)
}
  0x99   :  { %s8172_s9 = scalar_lea.vmem %s207_s2, 16  ;;  %s8176_s23 = scalar_lea.vmem %s207_s2, 32 }
  0x9a   :  { %p8173_p7 = scmp.ne.s32.totalorder %s207_s2, %s8172_s9  ;;  %p8177_p8 = scmp.lt.s32.totalorder %s207_s2, %s207_s2 }
  0x9b   :  { %p8178_p9 = scmp.lt.s32.totalorder %s8176_s23, %s8172_s9 }
  0x9d   :  { %p8179_p10 = por %p8178_p9, %p8177_p8 }
  0x9f   :  { %p8180_p11 = pnand %p8179_p10, %p8173_p7 }
  0xa1   :  { %8183 = shalt.err (!%p8180_p11)
}
  0xa2   :  { %209 = dma.hbm_to_vmem [thread:$0]  %s8858_s19, 16, %s207_s2, [#allocation20]  }
  0xa3   :  { %s8184_s8 = scalar_lea.hbm %s8871_s6, 256 }
  0xa4   :  { %p8185_p12 = scmp.ne.s32.totalorder %s8871_s6, %s8184_s8  ;;  %p8188_p13 = scmp.lt.u32.totalorder %s8184_s8, %s8871_s6 }
  0xa6   :  { %p8190_p0 = pnand %p8188_p13, %p8185_p12 }
  0xa8   :  { %8193 = shalt.err (!%p8190_p0)
}
  0xa9   :  { %s8194_s15 = scalar_lea.vmem %s9010_s10, 256  ;;  %p8199_p2 = scmp.lt.s32.totalorder %s9010_s10, %s9010_s10 }
  0xaa   :  { %p8195_p1 = scmp.ne.s32.totalorder %s9010_s10, %s8194_s15  ;;  %p8200_p3 = scmp.lt.s32.totalorder %s8194_s15, %s8194_s15 }
  0xac   :  { %p8201_p4 = por %p8200_p3, %p8199_p2 }
  0xae   :  { %p8202_p5 = pnand %p8201_p4, %p8195_p1 }
  0xb0   :  { %8205 = shalt.err (!%p8202_p5)
}
  0xb1   :  { %233 = dma.hbm_to_vmem [thread:$0]  %s8871_s6, 256, %s9010_s10, [#allocation23], %s8761_s17, %s8761_s17, %s8762_s27  }
  0xb2   :  { %s8765_s19 = smov [#allocation25]   ;;  %s8766_s0 = smov [#allocation28]  }
  0xb3   :  { %s249_s18 = sshll.u32 %s8765_s19, 4  ;;  %s271_s3 = sshll.u32 %s8766_s0, 4  ;;  %s250_s18 = int_to_ptr.vmem [resolvable:$true] %s249_s18  ;;  %s9028_s3 = int_to_ptr.vmem [resolvable:$true] %s271_s3 }
  0xb4   :  { %s8206_s22 = scalar_lea.hbm %s8881_s20, 256 }
  0xb5   :  { %p8207_p6 = scmp.ne.s32.totalorder %s8881_s20, %s8206_s22  ;;  %p8210_p7 = scmp.lt.u32.totalorder %s8206_s22, %s8881_s20 }
  0xb7   :  { %p8212_p8 = pnand %p8210_p7, %p8207_p6 }
  0xb9   :  { %8215 = shalt.err (!%p8212_p8)
}
  0xba   :  { %s8216_s12 = scalar_lea.vmem %s250_s18, 256  ;;  %p8221_p10 = scmp.lt.s32.totalorder %s250_s18, %s250_s18 }
  0xbb   :  { %p8217_p9 = scmp.ne.s32.totalorder %s250_s18, %s8216_s12  ;;  %p8222_p11 = scmp.lt.s32.totalorder %s8216_s12, %s8216_s12 }
  0xbd   :  { %p8223_p12 = por %p8222_p11, %p8221_p10 }
  0xbf   :  { %p8224_p13 = pnand %p8223_p12, %p8217_p9 }
  0xc1   :  { %8227 = shalt.err (!%p8224_p13)
}
  0xc2   :  { %255 = dma.hbm_to_vmem [thread:$0]  %s8881_s20, 256, %s250_s18, [#allocation26], %s8761_s17, %s8761_s17, %s8762_s27  }
  0xc3   :  { %s8228_s6 = scalar_lea.hbm %s8891_s4, 256 }
  0xc4   :  { %p8229_p0 = scmp.ne.s32.totalorder %s8891_s4, %s8228_s6  ;;  %p8232_p1 = scmp.lt.u32.totalorder %s8228_s6, %s8891_s4 }
  0xc6   :  { %p8234_p2 = pnand %p8232_p1, %p8229_p0 }
  0xc8   :  { %8237 = shalt.err (!%p8234_p2)
}
  0xc9   :  { %s8238_s1 = scalar_lea.vmem %s9028_s3, 256  ;;  %p8243_p4 = scmp.lt.s32.totalorder %s9028_s3, %s9028_s3 }
  0xca   :  { %p8239_p3 = scmp.ne.s32.totalorder %s9028_s3, %s8238_s1  ;;  %p8244_p5 = scmp.lt.s32.totalorder %s8238_s1, %s8238_s1 }
  0xcc   :  { %p8245_p6 = por %p8244_p5, %p8243_p4 }
  0xce   :  { %p8246_p7 = pnand %p8245_p6, %p8239_p3 }
  0xd0   :  { %8249 = shalt.err (!%p8246_p7)
}
  0xd1   :  { %277 = dma.hbm_to_vmem [thread:$0]  %s8891_s4, 256, %s9028_s3, [#allocation29], %s8761_s17, %s8761_s17, %s8762_s27  }
  0xd2   :  { %s8767_s20 = smov [#allocation31]   ;;  %s8768_s2 = smov [#allocation34]  }
  0xd3   :  { %s297_s25 = sshll.u32 %s8767_s20, 4  ;;  %s322_s30 = sshll.u32 %s8768_s2, 4  ;;  %s298_s25 = int_to_ptr.vmem [resolvable:$true] %s297_s25  ;;  %s323_s30 = int_to_ptr.vmem [resolvable:$true] %s322_s30 }
  0xd4   :  { %s8250_s10 = scalar_lea.hbm %s8906_s28, 256 }
  0xd5   :  { %p8251_p8 = scmp.ne.s32.totalorder %s8906_s28, %s8250_s10  ;;  %p8254_p9 = scmp.lt.u32.totalorder %s8250_s10, %s8906_s28 }
  0xd7   :  { %p8256_p10 = pnand %p8254_p9, %p8251_p8 }
  0xd9   :  { %8259 = shalt.err (!%p8256_p10)
}
  0xda   :  { %s8260_s11 = scalar_lea.vmem %s298_s25, 256  ;;  %p8265_p12 = scmp.lt.s32.totalorder %s298_s25, %s298_s25 }
  0xdb   :  { %p8261_p11 = scmp.ne.s32.totalorder %s298_s25, %s8260_s11  ;;  %p8266_p13 = scmp.lt.s32.totalorder %s8260_s11, %s8260_s11 }
  0xdd   :  { %p8267_p0 = por %p8266_p13, %p8265_p12 }
  0xdf   :  { %p8268_p1 = pnand %p8267_p0, %p8261_p11 }
  0xe1   :  { %8271 = shalt.err (!%p8268_p1)
}
  0xe2   :  { %303 = dma.hbm_to_vmem [thread:$0]  %s8906_s28, 256, %s298_s25, [#allocation32], %s8761_s17, %s8761_s17, %s8762_s27  }
  0xe3   :  { %s8272_s4 = scalar_lea.hbm %s8916_s16, 16 }
  0xe4   :  { %p8273_p2 = scmp.ne.s32.totalorder %s8916_s16, %s8272_s4  ;;  %p8276_p3 = scmp.lt.u32.totalorder %s8272_s4, %s8916_s16 }
  0xe6   :  { %p8278_p4 = pnand %p8276_p3, %p8273_p2 }
  0xe8   :  { %8281 = shalt.err (!%p8278_p4)
}
  0xe9   :  { %s8282_s9 = scalar_lea.vmem %s323_s30, 16  ;;  %s8286_s23 = scalar_lea.vmem %s323_s30, 32 }
  0xea   :  { %p8283_p5 = scmp.ne.s32.totalorder %s323_s30, %s8282_s9  ;;  %p8287_p6 = scmp.lt.s32.totalorder %s323_s30, %s323_s30 }
  0xeb   :  { %p8288_p7 = scmp.lt.s32.totalorder %s8286_s23, %s8282_s9 }
  0xed   :  { %p8289_p8 = por %p8288_p7, %p8287_p6 }
  0xef   :  { %p8290_p9 = pnand %p8289_p8, %p8283_p5 }
  0xf1   :  { %8293 = shalt.err (!%p8290_p9)
}
  0xf2   :  { %325 = dma.hbm_to_vmem [thread:$0]  %s8916_s16, 16, %s323_s30, [#allocation35]  }
  0xf3   :  { %s8769_s8 = smov [#allocation37]   ;;  %s8770_s15 = smov [#allocation40]  }
  0xf4   :  { %s346_s28 = sshll.u32 %s8769_s8, 4  ;;  %s367_s19 = sshll.u32 %s8770_s15, 4  ;;  %s347_s28 = int_to_ptr.vmem [resolvable:$true] %s346_s28  ;;  %s9060_s19 = int_to_ptr.vmem [resolvable:$true] %s367_s19 }
  0xf5   :  { %s8294_s18 = scalar_lea.hbm %s8936_s14, 16 }
  0xf6   :  { %p8295_p10 = scmp.ne.s32.totalorder %s8936_s14, %s8294_s18  ;;  %p8298_p11 = scmp.lt.u32.totalorder %s8294_s18, %s8936_s14 }
  0xf8   :  { %p8300_p12 = pnand %p8298_p11, %p8295_p10 }
  0xfa   :  { %8303 = shalt.err (!%p8300_p12)
}
  0xfb   :  { %s8304_s0 = scalar_lea.vmem %s347_s28, 16  ;;  %s8308_s3 = scalar_lea.vmem %s347_s28, 32 }
  0xfc   :  { %p8305_p13 = scmp.ne.s32.totalorder %s347_s28, %s8304_s0  ;;  %p8309_p0 = scmp.lt.s32.totalorder %s347_s28, %s347_s28 }
  0xfd   :  { %p8310_p1 = scmp.lt.s32.totalorder %s8308_s3, %s8304_s0 }
  0xff   :  { %p8311_p2 = por %p8310_p1, %p8309_p0 }
 0x101   :  { %p8312_p3 = pnand %p8311_p2, %p8305_p13 }
 0x103   :  { %8315 = shalt.err (!%p8312_p3)
}
 0x104   :  { %349 = dma.hbm_to_vmem [thread:$0]  %s8936_s14, 16, %s347_s28, [#allocation38]  }
 0x105   :  { %s8316_s16 = scalar_lea.hbm %s8946_s24, 256 }
 0x106   :  { %p8317_p4 = scmp.ne.s32.totalorder %s8946_s24, %s8316_s16  ;;  %p8320_p5 = scmp.lt.u32.totalorder %s8316_s16, %s8946_s24 }
 0x108   :  { %p8322_p6 = pnand %p8320_p5, %p8317_p4 }
 0x10a   :  { %8325 = shalt.err (!%p8322_p6)
}
 0x10b   :  { %s8326_s22 = scalar_lea.vmem %s9060_s19, 256  ;;  %p8331_p8 = scmp.lt.s32.totalorder %s9060_s19, %s9060_s19 }
 0x10c   :  { %p8327_p7 = scmp.ne.s32.totalorder %s9060_s19, %s8326_s22  ;;  %p8332_p9 = scmp.lt.s32.totalorder %s8326_s22, %s8326_s22 }
 0x10e   :  { %p8333_p10 = por %p8332_p9, %p8331_p8 }
 0x110   :  { %p8334_p11 = pnand %p8333_p10, %p8327_p7 }
 0x112   :  { %8337 = shalt.err (!%p8334_p11)
}
 0x113   :  { %373 = dma.hbm_to_vmem [thread:$0]  %s8946_s24, 256, %s9060_s19, [#allocation41], %s8761_s17, %s8761_s17, %s8762_s27  }
 0x114   :  { %s8771_s14 = smov [#allocation4]   ;;  %s8338_s6 = scalar_lea.hbm %s8808_s5, 256 }
 0x115   :  { %s101_s12 = sshll.u32 %s8771_s14, 4  ;;  %p8339_p12 = scmp.ne.s32.totalorder %s8808_s5, %s8338_s6  ;;  %s102_s12 = int_to_ptr.vmem [resolvable:$true] %s101_s12 }
 0x116   :  { %p8342_p13 = scmp.lt.u32.totalorder %s8338_s6, %s8808_s5 }
 0x118   :  { %p8344_p0 = pnand %p8342_p13, %p8339_p12 }
 0x11a   :  { %8347 = shalt.err (!%p8344_p0)
}
 0x11b   :  { %s8348_s1 = scalar_lea.vmem %s102_s12, 256  ;;  %p8353_p2 = scmp.lt.s32.totalorder %s102_s12, %s102_s12 }
 0x11c   :  { %p8349_p1 = scmp.ne.s32.totalorder %s102_s12, %s8348_s1  ;;  %p8354_p3 = scmp.lt.s32.totalorder %s8348_s1, %s8348_s1 }
 0x11e   :  { %p8355_p4 = por %p8354_p3, %p8353_p2 }
 0x120   :  { %p8356_p5 = pnand %p8355_p4, %p8349_p1 }
 0x122   :  { %8359 = shalt.err (!%p8356_p5)
}
 0x123   :  { %s8772_s20 = smov 128   ;;  %s8773_s24 = smov 8  }
 0x124   :  { %107 = dma.hbm_to_vmem [thread:$0]  %s8808_s5, 256, %s102_s12, [#allocation5], %s8772_s20, %s8772_s20, %s8773_s24  }
 0x125   :  { %s8774_s25 = smov [#allocation9]   ;;  %s8775_s30 = smov [#allocation12]  }
 0x126   :  { %s125_s2 = sshll.u32 %s8774_s25, 4  ;;  %s147_s10 = sshll.u32 %s8775_s30, 4  ;;  %s126_s2 = int_to_ptr.vmem [resolvable:$true] %s125_s2  ;;  %s148_s10 = int_to_ptr.vmem [resolvable:$true] %s147_s10 }
 0x127   :  { %s8360_s11 = scalar_lea.hbm %s8818_s13, 128 }
 0x128   :  { %p8361_p6 = scmp.ne.s32.totalorder %s8818_s13, %s8360_s11  ;;  %p8364_p7 = scmp.lt.u32.totalorder %s8360_s11, %s8818_s13 }
 0x12a   :  { %p8366_p8 = pnand %p8364_p7, %p8361_p6 }
 0x12c   :  { %8369 = shalt.err (!%p8366_p8)
}
 0x12d   :  { %s8370_s4 = scalar_lea.vmem %s126_s2, 128  ;;  %p8375_p10 = scmp.lt.s32.totalorder %s126_s2, %s126_s2 }
 0x12e   :  { %p8371_p9 = scmp.ne.s32.totalorder %s126_s2, %s8370_s4  ;;  %p8376_p11 = scmp.lt.s32.totalorder %s8370_s4, %s8370_s4 }
 0x130   :  { %p8377_p12 = por %p8376_p11, %p8375_p10 }
 0x132   :  { %p8378_p13 = pnand %p8377_p12, %p8371_p9 }
 0x134   :  { %8381 = shalt.err (!%p8378_p13)
}
 0x135   :  { %s10856_s5 = sld [smem:[#allocation62_spill]] }
 0x136   :  { %131 = dma.hbm_to_vmem [thread:$0]  %s8818_s13, 128, %s126_s2, [#allocation8], %s8761_s17, %s8761_s17, %s8762_s27  }
 0x13b   :  { %s8382_s9 = scalar_lea.hbm %s10856_s5, 256 }
 0x13c   :  { %p8383_p0 = scmp.ne.s32.totalorder %s10856_s5, %s8382_s9  ;;  %p8386_p1 = scmp.lt.u32.totalorder %s8382_s9, %s10856_s5 }
 0x13e   :  { %p8388_p2 = pnand %p8386_p1, %p8383_p0 }
 0x140   :  { %8391 = shalt.err (!%p8388_p2)
}
 0x141   :  { %s8392_s23 = scalar_lea.vmem %s148_s10, 256  ;;  %p8397_p4 = scmp.lt.s32.totalorder %s148_s10, %s148_s10 }
 0x142   :  { %p8393_p3 = scmp.ne.s32.totalorder %s148_s10, %s8392_s23  ;;  %p8398_p5 = scmp.lt.s32.totalorder %s8392_s23, %s8392_s23 }
 0x144   :  { %p8399_p6 = por %p8398_p5, %p8397_p4 }
 0x146   :  { %p8400_p7 = pnand %p8399_p6, %p8393_p3 }
 0x148   :  { %8403 = shalt.err (!%p8400_p7)
}
 0x149   :  { %s10857_s8 = sld [smem:[#allocation63_spill]]  ;;  %s8776_s13 = smov [#allocation15]  }
 0x14a   :  { %153 = dma.hbm_to_vmem [thread:$0]  %s10856_s5, 256, %s148_s10, [#allocation11], %s8761_s17, %s8761_s17, %s8762_s27  }
 0x14b   :  { %s172_s28 = sshll.u32 %s8776_s13, 4  ;;  %s8777_s15 = smov [#allocation18]   ;;  %s173_s28 = int_to_ptr.vmem [resolvable:$true] %s172_s28 }
 0x14c   :  { %s193_s19 = sshll.u32 %s8777_s15, 4  ;;  %s194_s19 = int_to_ptr.vmem [resolvable:$true] %s193_s19 }
 0x14f   :  { %s8404_s18 = scalar_lea.hbm %s10857_s8, 16 }
 0x150   :  { %p8405_p8 = scmp.ne.s32.totalorder %s10857_s8, %s8404_s18  ;;  %p8408_p9 = scmp.lt.u32.totalorder %s8404_s18, %s10857_s8 }
 0x152   :  { %p8410_p10 = pnand %p8408_p9, %p8405_p8 }
 0x154   :  { %8413 = shalt.err (!%p8410_p10)
}
 0x155   :  { %s8414_s0 = scalar_lea.vmem %s173_s28, 16  ;;  %s8418_s3 = scalar_lea.vmem %s173_s28, 32 }
 0x156   :  { %p8415_p11 = scmp.ne.s32.totalorder %s173_s28, %s8414_s0  ;;  %p8419_p12 = scmp.lt.s32.totalorder %s173_s28, %s173_s28 }
 0x157   :  { %p8420_p13 = scmp.lt.s32.totalorder %s8418_s3, %s8414_s0 }
 0x159   :  { %p8421_p0 = por %p8420_p13, %p8419_p12 }
 0x15b   :  { %p8422_p1 = pnand %p8421_p0, %p8415_p11 }
 0x15d   :  { %8425 = shalt.err (!%p8422_p1)
}
 0x15e   :  { %s10858_s16 = sld [smem:[#allocation65_spill]] }
 0x15f   :  { %175 = dma.hbm_to_vmem [thread:$0]  %s10857_s8, 16, %s173_s28, [#allocation14]  }
 0x164   :  { %s8426_s22 = scalar_lea.hbm %s10858_s16, 512 }
 0x165   :  { %p8427_p2 = scmp.ne.s32.totalorder %s10858_s16, %s8426_s22  ;;  %p8430_p3 = scmp.lt.u32.totalorder %s8426_s22, %s10858_s16 }
 0x167   :  { %p8432_p4 = pnand %p8430_p3, %p8427_p2 }
 0x169   :  { %8435 = shalt.err (!%p8432_p4)
}
 0x16a   :  { %s8436_s14 = scalar_lea.vmem %s194_s19, 512  ;;  %p8441_p6 = scmp.lt.s32.totalorder %s194_s19, %s194_s19 }
 0x16b   :  { %p8437_p5 = scmp.ne.s32.totalorder %s194_s19, %s8436_s14  ;;  %p8442_p7 = scmp.lt.s32.totalorder %s8436_s14, %s8436_s14 }
 0x16d   :  { %p8443_p8 = por %p8442_p7, %p8441_p6 }
 0x16f   :  { %p8444_p9 = pnand %p8443_p8, %p8437_p5 }
 0x171   :  { %8447 = shalt.err (!%p8444_p9)
}
 0x172   :  { %s10859_s12 = sld [smem:[#allocation66_spill]]  ;;  %s8778_s6 = smov [#allocation21]  }
 0x173   :  { %199 = dma.hbm_to_vmem [thread:$0]  %s10858_s16, 512, %s194_s19, [#allocation17], %s8761_s17, %s8761_s17, %s8762_s27  }
 0x174   :  { %s216_s1 = sshll.u32 %s8778_s6, 4  ;;  %s8779_s20 = smov [#allocation24]   ;;  %s217_s1 = int_to_ptr.vmem [resolvable:$true] %s216_s1 }
 0x175   :  { %s240_s24 = sshll.u32 %s8779_s20, 4  ;;  %s241_s24 = int_to_ptr.vmem [resolvable:$true] %s240_s24 }
 0x178   :  { %s8448_s25 = scalar_lea.hbm %s10859_s12, 16 }
 0x179   :  { %p8449_p10 = scmp.ne.s32.totalorder %s10859_s12, %s8448_s25  ;;  %p8452_p11 = scmp.lt.u32.totalorder %s8448_s25, %s10859_s12 }
 0x17b   :  { %p8454_p12 = pnand %p8452_p11, %p8449_p10 }
 0x17d   :  { %8457 = shalt.err (!%p8454_p12)
}
 0x17e   :  { %s8458_s2 = scalar_lea.vmem %s217_s1, 16  ;;  %s8462_s30 = scalar_lea.vmem %s217_s1, 32 }
 0x17f   :  { %p8459_p13 = scmp.ne.s32.totalorder %s217_s1, %s8458_s2  ;;  %p8463_p0 = scmp.lt.s32.totalorder %s217_s1, %s217_s1 }
 0x180   :  { %p8464_p1 = scmp.lt.s32.totalorder %s8462_s30, %s8458_s2 }
 0x182   :  { %p8465_p2 = por %p8464_p1, %p8463_p0 }
 0x184   :  { %p8466_p3 = pnand %p8465_p2, %p8459_p13 }
 0x186   :  { %8469 = shalt.err (!%p8466_p3)
}
 0x187   :  { %s10860_s10 = sld [smem:[#allocation67_spill]] }
 0x188   :  { %219 = dma.hbm_to_vmem [thread:$0]  %s10859_s12, 16, %s217_s1, [#allocation20]  }
 0x18d   :  { %s8470_s11 = scalar_lea.hbm %s10860_s10, 16 }
 0x18e   :  { %p8471_p4 = scmp.ne.s32.totalorder %s10860_s10, %s8470_s11  ;;  %p8474_p5 = scmp.lt.u32.totalorder %s8470_s11, %s10860_s10 }
 0x190   :  { %p8476_p6 = pnand %p8474_p5, %p8471_p4 }
 0x192   :  { %8479 = shalt.err (!%p8476_p6)
}
 0x193   :  { %s8480_s4 = scalar_lea.vmem %s241_s24, 16  ;;  %s8484_s5 = scalar_lea.vmem %s241_s24, 32 }
 0x194   :  { %p8481_p7 = scmp.ne.s32.totalorder %s241_s24, %s8480_s4  ;;  %p8485_p8 = scmp.lt.s32.totalorder %s241_s24, %s241_s24 }
 0x195   :  { %p8486_p9 = scmp.lt.s32.totalorder %s8484_s5, %s8480_s4 }
 0x197   :  { %p8487_p10 = por %p8486_p9, %p8485_p8 }
 0x199   :  { %p8488_p11 = pnand %p8487_p10, %p8481_p7 }
 0x19b   :  { %8491 = shalt.err (!%p8488_p11)
}
 0x19c   :  { %s10861_s9 = sld [smem:[#allocation68_spill]]  ;;  %s8780_s23 = smov [#allocation27]  }
 0x19d   :  { %243 = dma.hbm_to_vmem [thread:$0]  %s10860_s10, 16, %s241_s24, [#allocation23]  }
 0x19e   :  { %s262_s8 = sshll.u32 %s8780_s23, 4  ;;  %s8781_s13 = smov [#allocation30]   ;;  %s263_s8 = int_to_ptr.vmem [resolvable:$true] %s262_s8 }
 0x19f   :  { %s283_s28 = sshll.u32 %s8781_s13, 4  ;;  %s284_s28 = int_to_ptr.vmem [resolvable:$true] %s283_s28 }
 0x1a2   :  { %s8492_s15 = scalar_lea.hbm %s10861_s9, 16 }
 0x1a3   :  { %p8493_p12 = scmp.ne.s32.totalorder %s10861_s9, %s8492_s15  ;;  %p8496_p13 = scmp.lt.u32.totalorder %s8492_s15, %s10861_s9 }
 0x1a5   :  { %p8498_p0 = pnand %p8496_p13, %p8493_p12 }
 0x1a7   :  { %8501 = shalt.err (!%p8498_p0)
}
 0x1a8   :  { %s8502_s19 = scalar_lea.vmem %s263_s8, 16  ;;  %s8506_s18 = scalar_lea.vmem %s263_s8, 32 }
 0x1a9   :  { %p8503_p1 = scmp.ne.s32.totalorder %s263_s8, %s8502_s19  ;;  %p8507_p2 = scmp.lt.s32.totalorder %s263_s8, %s263_s8 }
 0x1aa   :  { %p8508_p3 = scmp.lt.s32.totalorder %s8506_s18, %s8502_s19 }
 0x1ac   :  { %p8509_p4 = por %p8508_p3, %p8507_p2 }
 0x1ae   :  { %p8510_p5 = pnand %p8509_p4, %p8503_p1 }
 0x1b0   :  { %8513 = shalt.err (!%p8510_p5)
}
 0x1b1   :  { %s10862_s0 = sld [smem:[#allocation69_spill]] }
 0x1b2   :  { %265 = dma.hbm_to_vmem [thread:$0]  %s10861_s9, 16, %s263_s8, [#allocation26]  }
 0x1b7   :  { %s8514_s3 = scalar_lea.hbm %s10862_s0, 256 }
 0x1b8   :  { %p8515_p6 = scmp.ne.s32.totalorder %s10862_s0, %s8514_s3  ;;  %p8518_p7 = scmp.lt.u32.totalorder %s8514_s3, %s10862_s0 }
 0x1ba   :  { %p8520_p8 = pnand %p8518_p7, %p8515_p6 }
 0x1bc   :  { %8523 = shalt.err (!%p8520_p8)
}
 0x1bd   :  { %s8524_s16 = scalar_lea.vmem %s284_s28, 256  ;;  %p8529_p10 = scmp.lt.s32.totalorder %s284_s28, %s284_s28 }
 0x1be   :  { %p8525_p9 = scmp.ne.s32.totalorder %s284_s28, %s8524_s16  ;;  %p8530_p11 = scmp.lt.s32.totalorder %s8524_s16, %s8524_s16 }
 0x1c0   :  { %p8531_p12 = por %p8530_p11, %p8529_p10 }
 0x1c2   :  { %p8532_p13 = pnand %p8531_p12, %p8525_p9 }
 0x1c4   :  { %8535 = shalt.err (!%p8532_p13)
}
 0x1c5   :  { %s10863_s22 = sld [smem:[#allocation71_spill]]  ;;  %s8782_s14 = smov [#allocation33]  }
 0x1c6   :  { %289 = dma.hbm_to_vmem [thread:$0]  %s10862_s0, 256, %s284_s28, [#allocation29], %s8761_s17, %s8761_s17, %s8762_s27  }
 0x1c7   :  { %s309_s12 = sshll.u32 %s8782_s14, 4  ;;  %s8783_s6 = smov [#allocation36]   ;;  %s310_s12 = int_to_ptr.vmem [resolvable:$true] %s309_s12 }
 0x1c8   :  { %s334_s1 = sshll.u32 %s8783_s6, 4  ;;  %s335_s1 = int_to_ptr.vmem [resolvable:$true] %s334_s1 }
 0x1cb   :  { %s8536_s20 = scalar_lea.hbm %s10863_s22, 256 }
 0x1cc   :  { %p8537_p0 = scmp.ne.s32.totalorder %s10863_s22, %s8536_s20  ;;  %p8540_p1 = scmp.lt.u32.totalorder %s8536_s20, %s10863_s22 }
 0x1ce   :  { %p8542_p2 = pnand %p8540_p1, %p8537_p0 }
 0x1d0   :  { %8545 = shalt.err (!%p8542_p2)
}
 0x1d1   :  { %s8546_s24 = scalar_lea.vmem %s310_s12, 256  ;;  %p8551_p4 = scmp.lt.s32.totalorder %s310_s12, %s310_s12 }
 0x1d2   :  { %p8547_p3 = scmp.ne.s32.totalorder %s310_s12, %s8546_s24  ;;  %p8552_p5 = scmp.lt.s32.totalorder %s8546_s24, %s8546_s24 }
 0x1d4   :  { %p8553_p6 = por %p8552_p5, %p8551_p4 }
 0x1d6   :  { %p8554_p7 = pnand %p8553_p6, %p8547_p3 }
 0x1d8   :  { %8557 = shalt.err (!%p8554_p7)
}
 0x1d9   :  { %s10864_s25 = sld [smem:[#allocation73_spill]] }
 0x1da   :  { %315 = dma.hbm_to_vmem [thread:$0]  %s10863_s22, 256, %s310_s12, [#allocation32], %s8761_s17, %s8761_s17, %s8762_s27  }
 0x1df   :  { %s8558_s2 = scalar_lea.hbm %s10864_s25, 16 }
 0x1e0   :  { %p8559_p8 = scmp.ne.s32.totalorder %s10864_s25, %s8558_s2  ;;  %p8562_p9 = scmp.lt.u32.totalorder %s8558_s2, %s10864_s25 }
 0x1e2   :  { %p8564_p10 = pnand %p8562_p9, %p8559_p8 }
 0x1e4   :  { %8567 = shalt.err (!%p8564_p10)
}
 0x1e5   :  { %s8568_s30 = scalar_lea.vmem %s335_s1, 16  ;;  %s8572_s10 = scalar_lea.vmem %s335_s1, 32 }
 0x1e6   :  { %p8569_p11 = scmp.ne.s32.totalorder %s335_s1, %s8568_s30  ;;  %p8573_p12 = scmp.lt.s32.totalorder %s335_s1, %s335_s1 }
 0x1e7   :  { %p8574_p13 = scmp.lt.s32.totalorder %s8572_s10, %s8568_s30 }
 0x1e9   :  { %p8575_p0 = por %p8574_p13, %p8573_p12 }
 0x1eb   :  { %p8576_p1 = pnand %p8575_p0, %p8569_p11 }
 0x1ed   :  { %8579 = shalt.err (!%p8576_p1)
}
 0x1ee   :  { %s10865_s11 = sld [smem:[#allocation75_spill]]  ;;  %s8784_s27 = smov [#allocation39]  }
 0x1ef   :  { %337 = dma.hbm_to_vmem [thread:$0]  %s10864_s25, 16, %s335_s1, [#allocation35]  }
 0x1f0   :  { %s356_s4 = sshll.u32 %s8784_s27, 4  ;;  %s8785_s5 = smov [#allocation42]   ;;  %s357_s4 = int_to_ptr.vmem [resolvable:$true] %s356_s4 }
 0x1f1   :  { %s380_s9 = sshll.u32 %s8785_s5, 4  ;;  %s381_s9 = int_to_ptr.vmem [resolvable:$true] %s380_s9 }
 0x1f4   :  { %s8580_s23 = scalar_lea.hbm %s10865_s11, 16 }
 0x1f5   :  { %p8581_p2 = scmp.ne.s32.totalorder %s10865_s11, %s8580_s23  ;;  %p8584_p3 = scmp.lt.u32.totalorder %s8580_s23, %s10865_s11 }
 0x1f7   :  { %p8586_p4 = pnand %p8584_p3, %p8581_p2 }
 0x1f9   :  { %8589 = shalt.err (!%p8586_p4)
}
 0x1fa   :  { %s8590_s8 = scalar_lea.vmem %s357_s4, 16  ;;  %s8594_s13 = scalar_lea.vmem %s357_s4, 32 }
 0x1fb   :  { %p8591_p5 = scmp.ne.s32.totalorder %s357_s4, %s8590_s8  ;;  %p8595_p6 = scmp.lt.s32.totalorder %s357_s4, %s357_s4 }
 0x1fc   :  { %p8596_p7 = scmp.lt.s32.totalorder %s8594_s13, %s8590_s8 }
 0x1fe   :  { %p8597_p8 = por %p8596_p7, %p8595_p6 }
 0x200   :  { %p8598_p9 = pnand %p8597_p8, %p8591_p5 }
 0x202   :  { %8601 = shalt.err (!%p8598_p9)
}
 0x203   :  { %s10866_s28 = sld [smem:[#allocation76_spill]] }
 0x204   :  { %359 = dma.hbm_to_vmem [thread:$0]  %s10865_s11, 16, %s357_s4, [#allocation38]  }
 0x209   :  { %s8602_s15 = scalar_lea.hbm %s10866_s28, 16 }
 0x20a   :  { %p8603_p10 = scmp.ne.s32.totalorder %s10866_s28, %s8602_s15  ;;  %p8606_p11 = scmp.lt.u32.totalorder %s8602_s15, %s10866_s28 }
 0x20c   :  { %p8608_p12 = pnand %p8606_p11, %p8603_p10 }
 0x20e   :  { %8611 = shalt.err (!%p8608_p12)
}
 0x20f   :  { %s8612_s19 = scalar_lea.vmem %s381_s9, 16  ;;  %s8616_s18 = scalar_lea.vmem %s381_s9, 32 }
 0x210   :  { %p8613_p13 = scmp.ne.s32.totalorder %s381_s9, %s8612_s19  ;;  %p8617_p0 = scmp.lt.s32.totalorder %s381_s9, %s381_s9 }
 0x211   :  { %p8618_p1 = scmp.lt.s32.totalorder %s8616_s18, %s8612_s19 }
 0x213   :  { %p8619_p2 = por %p8618_p1, %p8617_p0 }
 0x215   :  { %p8620_p3 = pnand %p8619_p2, %p8613_p13 }
 0x217   :  { %8623 = shalt.err (!%p8620_p3)
}
 0x218   :  { %383 = dma.hbm_to_vmem [thread:$0]  %s10866_s28, 16, %s381_s9, [#allocation41]  }
 0x219   :  { %8690 = dma.done.wait [#allocation5], 256  }
 0x21a   :  { %8691 = vsyncadd [#allocation5], 4294967040 }
 0x21b   :  { %8692 = dma.done.wait [#allocation8], 192  }
 0x21c   :  { %8693 = vsyncadd [#allocation8], 4294967104 }
 0x21d   :  { %8694 = dma.done.wait [#allocation11], 272  }
 0x21e   :  { %8695 = vsyncadd [#allocation11], 4294967024 }
 0x21f   :  { %8696 = dma.done.wait [#allocation14], 272  }
 0x220   :  { %8697 = vsyncadd [#allocation14], 4294967024 }
 0x221   :  { %8698 = dma.done.wait [#allocation17], 528  }
 0x222   :  { %8699 = vsyncadd [#allocation17], 4294966768 }
 0x223   :  { %8700 = dma.done.wait [#allocation20], 32  }
 0x224   :  { %8701 = vsyncadd [#allocation20], 4294967264 }
 0x225   :  { %8702 = dma.done.wait [#allocation23], 272  }
 0x226   :  { %8703 = vsyncadd [#allocation23], 4294967024 }
 0x227   :  { %8704 = dma.done.wait [#allocation26], 272  }
 0x228   :  { %8705 = vsyncadd [#allocation26], 4294967024 }
 0x229   :  { %8706 = dma.done.wait [#allocation29], 512  }
 0x22a   :  { %8707 = vsyncadd [#allocation29], 4294966784 }
 0x22b   :  { %8708 = dma.done.wait [#allocation32], 512  }
 0x22c   :  { %8709 = vsyncadd [#allocation32], 4294966784 }
 0x22d   :  { %8710 = dma.done.wait [#allocation35], 32  }
 0x22e   :  { %8711 = vsyncadd [#allocation35], 4294967264 }
 0x22f   :  { %8712 = dma.done.wait [#allocation38], 32  }
 0x230   :  { %8713 = vsyncadd [#allocation38], 4294967264 }
 0x231   :  { %8714 = dma.done.wait [#allocation41], 272  }
 0x232   :  { %8715 = vsyncadd [#allocation41], 4294967024  ;;  %v8786_v2 = vmov 0.0   ;;  %vm8787_vm0 = vmmov 0   ;;  %vm483_vm1 = vcmask 1041409   ;;  %v7783_v3 = vld [vmem:[#allocation9] sm:$0xff]  }
 0x233   :  { %6863 = vmatprep.subr.bf16.mxu0 %v8786_v2  ;;  %6865 = vmatprep.mubr.msk.bf16.mxu0 %vm8787_vm0, %v8786_v2  ;;  %vm490_vm2 = vcmask 1043459   ;;  %v465_v4 = vld [vmem:[#allocation4 + $0x8] sm:$0x1]  ;;  %vm497_vm3 = vcmask 1045509   ;;  %vm504_vm4 = vcmask 1047559   ;;  %vm530_vm5 = vcmask 1041408  }
 0x234   :  { %6869 = vmatprep.subr.bf16.mxu1 %v8786_v2  ;;  %6873 = vmatprep.mubr.msk.bf16.mxu1 %vm8787_vm0, %v8786_v2  ;;  %vm532_vm6 = vcmask 1043456   ;;  %v466_v5 = vld [vmem:[#allocation4 + $0x1] sm:$0x1]  ;;  %v467_v6 = vld [vmem:[#allocation4 + $0x9] sm:$0x1]  ;;  %vm534_vm7 = vcmask 1045504  }
 0x235   :  { %6864 = vmatpush3.bf16.msra.mxu0 %v7783_v3  ;;  %v468_v7 = vld [vmem:[#allocation4 + $0x2] sm:$0x1]  ;;  %v464_v8 = vld [vmem:[#allocation4] sm:$0x1]  ;;  %v469_v9 = vld [vmem:[#allocation4 + $0xa] sm:$0x1] }
 0x236   :  { %v470_v10 = vld [vmem:[#allocation4 + $0x3] sm:$0x1]  ;;  %v471_v11 = vld [vmem:[#allocation4 + $0xb] sm:$0x1]  ;;  %6877 = vmatprep.subr.bf16.mxu0 %v8786_v2  ;;  %v472_v12 = vld [vmem:[#allocation4 + $0x4] sm:$0x1] }
 0x237   :  { %v473_v13 = vld [vmem:[#allocation4 + $0xc] sm:$0x1]  ;;  %v474_v14 = vld [vmem:[#allocation4 + $0x5] sm:$0x1]  ;;  %v475_v15 = vld [vmem:[#allocation4 + $0xd] sm:$0x1] }
 0x238   :  { %v476_v16 = vld [vmem:[#allocation4 + $0x6] sm:$0x1]  ;;  %v477_v17 = vld [vmem:[#allocation4 + $0xe] sm:$0x1]  ;;  %v478_v18 = vld [vmem:[#allocation4 + $0x7] sm:$0x1] }
 0x239   :  { %v482_v19 = vrot.slane %v465_v4, 7  ;;  %v488_v20 = vrot.slane %v466_v5, 6  ;;  %v489_v21 = vrot.slane %v467_v6, 5  ;;  %v495_v22 = vrot.slane %v468_v7, 4  ;;  %v479_v23 = vld [vmem:[#allocation4 + $0xf] sm:$0x1] }
 0x23a   :  { %vm595_vm8 = vcmask 130048   ;;  %v496_v24 = vrot.slane %v469_v9, 3  ;;  %v502_v25 = vrot.slane %v470_v10, 2  ;;  %v503_v26 = vrot.slane %v471_v11, 1  ;;  %v9169_v49 = vld [vmem:[#allocation12] sm:$0xff]   ;;  %v7785_v50 = vld [vmem:[#allocation13] sm:$0xff]  }
 0x23b   :  { %v509_v27 = vrot.slane %v473_v13, 7  ;;  %v484_v28 = vsel %vm483_vm1, %v482_v19, %v464_v8  ;;  %v491_v29 = vsel %vm490_vm2, %v489_v21, %v488_v20  ;;  %v514_v30 = vrot.slane %v474_v14, 6  ;;  %6870 = vmatpush3.bf16.msra.mxu1 %v7785_v50  ;;  %v9174_v52 = vld [vmem:[#allocation12 + $0x8] sm:$0xff]   ;;  %v7787_v53 = vld [vmem:[#allocation13 + $0x8] sm:$0xff]   ;;  %s10867_s0 = sld [smem:[#allocation64_spill]]  ;;  %s8789_s3 = smov 127  }
 0x23c   :  { %v515_v31 = vrot.slane %v475_v15, 5  ;;  %v498_v32 = vsel %vm497_vm3, %v496_v24, %v495_v22  ;;  %v505_v33 = vsel %vm504_vm4, %v503_v26, %v502_v25  ;;  %v520_v35 = vrot.slane %v476_v16, 4  ;;  %6871 = vmatprep.subr.bf16.mxu1 %v8786_v2  ;;  %v6360_v54 = vld [vmem:[#allocation10] ss:$0 sm:$0xff]  ;;  %v9216_v9 = vld [vmem:[#allocation18] sm:$0xff]   ;;  %v9219_v10 = vld [vmem:[#allocation18 + $0x8] sm:$0xff]  }
 0x23d   :  { %v510_v34 = vsel %vm483_vm1, %v509_v27, %v472_v12  ;;  %v521_v37 = vrot.slane %v477_v17, 3  ;;  %v526_v38 = vrot.slane %v478_v18, 2  ;;  %v527_v39 = vrot.slane %v479_v23, 1  ;;  %v6363_v11 = vld [vmem:[#allocation15] ss:$0 sm:$0xff]  ;;  %v9232_v21 = vld [vmem:[#allocation18 + $0x10] sm:$0xff]  }
 0x23e   :  { %v516_v36 = vsel %vm490_vm2, %v515_v31, %v514_v30  ;;  %v531_v40 = vsel %vm530_vm5, %v484_v28, %v491_v29  ;;  %v8788_v51 = vmov 0   ;;  %vm661_vm9 = vcmask 261120   ;;  %v9236_v22 = vld [vmem:[#allocation18 + $0x18] sm:$0xff]   ;;  %v9246_v31 = vld [vmem:[#allocation19] ss:$0 sm:$0xff]  ;;  %s8790_s16 = smov 96  }
 0x23f   :  { %v536_v41 = vsel %vm530_vm5, %v510_v34, %v516_v36  ;;  %v522_v42 = vsel %vm497_vm3, %v521_v37, %v520_v35  ;;  %v528_v43 = vsel %vm504_vm4, %v527_v39, %v526_v38  ;;  %v533_v44 = vsel %vm532_vm6, %v531_v40, %v498_v32  ;;  %7782 = vset.pattern.permute.xlu1 %v8788_v51  ;;  %v9240_v23 = vld [vmem:[#allocation16] ss:$0 sm:$0xff]  ;;  %v9249_v36 = vld [vmem:[#allocation21] ss:$0 sm:$0xff]  ;;  %s8791_s22 = smov 126   ;;  %s8792_s14 = smov 125  }
 0x240   :  { %v535_v45 = vsel %vm534_vm7, %v533_v44, %v505_v33  ;;  %v537_v46 = vsel %vm532_vm6, %v536_v41, %v522_v42  ;;  %7781 = vset.pattern.permute.xlu0 %v8788_v51  ;;  %6872 = vmatpush3.bf16.msra.mxu1 %v7787_v53  ;;  %vm817_vm10 = vcmask 523264   ;;  %vm938_vm11 = vcmask 517120   ;;  %v9253_v41 = vld [vmem:[#allocation22] sm:$0xff]   ;;  %v9257_v42 = vld [vmem:[#allocation2] ss:$0 sm:$0xff]  ;;  %s8793_s12 = smov 124  }
 0x241   :  { %v538_v47 = vsel %vm534_vm7, %v537_v46, %v528_v43  ;;  %6885 = vmatprep.subr.bf16.mxu1 %v8786_v2  ;;  %v9189_v63 = vld [vmem:[%s10867_s0] sm:$0xff]   ;;  %v9199_v1 = vld [vmem:[%s10867_s0 + $0x8] sm:$0xff]   ;;  %v9207_v7 = vld [vmem:[%s10867_s0 + $0x10] sm:$0xff]   ;;  %s8794_s6 = smov 123   ;;  %s8795_s1 = smov 122   ;;  %vm6206_vm12 = vcmask 785408  }
 0x242   :  { %v582_v48 = vpack.c.bf16 %v538_v47, %v535_v45  ;;  %v9212_v8 = vld [vmem:[%s10867_s0 + $0x18] sm:$0xff]   ;;  %v9259_v43 = vld [vmem:[#allocation7] sm:$0x3]  ;;  %s8796_s20 = smov 121   ;;  %s10868_s24 = sld [smem:[#allocation70_spill]] }
 0x243   :  { %s10869_s25 = sld [smem:[#allocation72_spill]]  ;;  %s10870_s2 = sld [smem:[#allocation74_spill]] }
 0x244   :  { %6866 = vmatmul.mubr.msk.bf16.vlgmr.msra.gmra.mrb[0].mxu0 %vm595_vm8, %v582_v48  ;;  %s10871_s30 = sld [smem:[#allocation77_spill]]  ;;  %s10872_s10 = sld [smem:[#allocation78_spill]] }
 0x245   :  { %6881 = vmatprep.mubr.msk.bf16.mxu0 %vm8787_vm0, %v8786_v2  ;;  %6878 = vmatpush3.bf16.msra.mxu0 %v9169_v49  ;;  %s8798_s11 = smov [#allocation43]  }
 0x246   :  { %6879 = vmatprep.subr.bf16.mxu0 %v8786_v2  ;;  %s6277_s27 = sshll.u32 %s8798_s11, 4  ;;  %s6278_s27 = int_to_ptr.vmem [resolvable:$true] %s6277_s27 }
 0x249   :  { %6880 = vmatpush3.bf16.msra.mxu0 %v9174_v52 }
 0x24a   :  { %6897 = vmatprep.subr.bf16.mxu0 %v8786_v2 }
 0x24c   :  { %6882 = vmatmul.mubr.bf16.vlgmr.msra.gmra.mrb[4].mxu0 %v8788_v51 }
 0x24d   :  { %6905 = vmatprep.mubr.msk.bf16.mxu0 %vm8787_vm0, %v8786_v2  ;;  %6898 = vmatpush3.bf16.msra.mxu0 %v9216_v9 }
 0x24e   :  { %6899 = vmatprep.subr.bf16.mxu0 %v8786_v2 }
 0x251   :  { %6900 = vmatpush3.bf16.msra.mxu0 %v9219_v10 }
 0x252   :  { %6901 = vmatprep.subr.bf16.mxu0 %v8786_v2 }
 0x255   :  { %6902 = vmatpush3.bf16.msra.mxu0 %v9232_v21 }
 0x256   :  { %6903 = vmatprep.subr.bf16.mxu0 %v8786_v2 }
 0x259   :  { %6904 = vmatpush3.bf16.msra.mxu0 %v9236_v22 }
 0x25a   :  { %6917 = vmatprep.subr.bf16.mxu0 %v8786_v2 }
 0x317   :  { %v633_v55 = vpop.f32.mrb[0].mxu0 }
 0x318   :  { %v634_v56 = vadd.f32 %v6360_v54, %v633_v55  ;;  %v6867_v57 = vpop.f32.mrb[1].mxu0 }
 0x319   :  { %v636_v58 = vpop.f32.mrb[2].mxu0 }
 0x31a   :  { %v637_v59 = vadd.f32 %v6360_v54, %v636_v58  ;;  %v6868_v60 = vpop.f32.mrb[3].mxu0  ;;  %7820 = vtanh.f32 %v634_v56  ;;  %v9270_v58 = vld [vmem:[#allocation25] sm:$0xff]  }
 0x31b   :  { %v9278_v60 = vld [vmem:[#allocation25 + $0x8] sm:$0xff]  }
 0x31c   :  { %7822 = vtanh.f32 %v637_v59  ;;  %v9272_v59 = vld [vmem:[#allocation22 + $0x8] sm:$0xff]  }
 0x31f   :  { %v785_v3 = vpop.f32.mrb[4].mxu0 }
 0x320   :  { %v6883_v4 = vpop.f32.mrb[5].mxu0 }
 0x321   :  { %v788_v5 = vpop.f32.mrb[6].mxu0 }
 0x322   :  { %v6884_v6 = vpop.f32.mrb[7].mxu0 }
 0x324   :  { %v9184_v61 = vpop.eup %7820 }
 0x326   :  { %v9186_v62 = vpop.eup %7822 }
 0x327   :  { %v9193_v0 = vpack.c.bf16 %v9186_v62, %v9184_v61 }
 0x329   :  { %6874 = vmatmul.mubr.msk.bf16.vlgmr.msra.gmra.mrb[0].mxu1 %vm661_vm9, %v9193_v0 }
 0x32a   :  { %6886 = vmatpush3.bf16.msra.mxu1 %v9189_v63  ;;  %6893 = vmatprep.mubr.msk.bf16.mxu1 %vm8787_vm0, %v8786_v2 }
 0x32b   :  { %6887 = vmatprep.subr.bf16.mxu1 %v8786_v2 }
 0x32e   :  { %6888 = vmatpush3.bf16.msra.mxu1 %v9199_v1 }
 0x32f   :  { %6889 = vmatprep.subr.bf16.mxu1 %v8786_v2 }
 0x332   :  { %6890 = vmatpush3.bf16.msra.mxu1 %v9207_v7 }
 0x333   :  { %6891 = vmatprep.subr.bf16.mxu1 %v8786_v2 }
 0x336   :  { %6892 = vmatpush3.bf16.msra.mxu1 %v9212_v8 }
 0x337   :  { %6909 = vmatprep.subr.bf16.mxu1 %v8786_v2 }
 0x3fc   :  { %v699_v12 = vpop.f32.mrb[0].mxu1 }
 0x3fd   :  { %v9224_v13 = vadd.f32 %v6363_v11, %v699_v12  ;;  %v6875_v14 = vpop.f32.mrb[1].mxu1 }
 0x3fe   :  { %v702_v15 = vpop.f32.mrb[2].mxu1 }
 0x3ff   :  { %v786_v16 = vadd.f32 %v785_v3, %v9224_v13  ;;  %v9227_v17 = vadd.f32 %v6363_v11, %v702_v15  ;;  %v6876_v18 = vpop.f32.mrb[3].mxu1 }
 0x401   :  { %v791_v19 = vmax.f32 %v786_v16, 0.0 }
 0x403   :  { %v792_v20 = vpack.c.bf16 %v791_v19, %v791_v19 }
 0x405   :  { %6894 = vmatmul.mubr.msk.bf16.vlgmr.msra.gmra.mrb[4].mxu1 %vm817_vm10, %v792_v20 }
 0x406   :  { %6913 = vmatprep.mubr.msk.bf16.mxu1 %vm8787_vm0, %v8786_v2  ;;  %6910 = vmatpush3.bf16.msra.mxu1 %v9253_v41 }
 0x407   :  { %6911 = vmatprep.subr.bf16.mxu1 %v8786_v2 }
 0x40a   :  { %6912 = vmatpush3.bf16.msra.mxu1 %v9272_v59 }
 0x40b   :  { %6925 = vmatprep.subr.bf16.mxu1 %v8786_v2 }
 0x40d   :  { %6914 = vmatmul.mubr.bf16.vlgmr.msra.gmra.mrb[8].mxu1 %v8788_v51 }
 0x40e   :  { %6926 = vmatpush3.bf16.msra.mxu1 %v9169_v49  ;;  %6929 = vmatprep.mubr.msk.bf16.mxu1 %vm8787_vm0, %v8786_v2 }
 0x40f   :  { %6927 = vmatprep.subr.bf16.mxu1 %v8786_v2 }
 0x412   :  { %6928 = vmatpush3.bf16.msra.mxu1 %v9174_v52 }
 0x413   :  { %6945 = vmatprep.subr.bf16.mxu1 %v8786_v2 }
 0x4d8   :  { %v855_v24 = vpop.f32.mrb[4].mxu1 }
 0x4d9   :  { %v856_v25 = vadd.f32 %v9240_v23, %v855_v24  ;;  %v6895_v26 = vpop.f32.mrb[5].mxu1 }
 0x4da   :  { %v858_v27 = vpop.f32.mrb[6].mxu1 }
 0x4db   :  { %v861_v28 = vmax.f32 %v856_v25, 0.0  ;;  %v6896_v29 = vpop.f32.mrb[7].mxu1  ;;  %v1113_v27 = vrot.slane %v9224_v13, 2 }
 0x4dd   :  { %v862_v30 = vpack.c.bf16 %v861_v28, %v861_v28 }
 0x4df   :  { %6906 = vmatmul.mubr.msk.bf16.vlgmr.msra.gmra.mrb[8].mxu0 %vm817_vm10, %v862_v30 }
 0x4e0   :  { %6921 = vmatprep.mubr.msk.bf16.mxu0 %vm8787_vm0, %v8786_v2  ;;  %6918 = vmatpush3.bf16.msra.mxu0 %v9270_v58  ;;  %v9317_v15 = vpop.f32.mrb[8].mxu1 }
 0x4e1   :  { %6919 = vmatprep.subr.bf16.mxu0 %v8786_v2  ;;  %v6915_v16 = vpop.f32.mrb[9].mxu1 }
 0x4e2   :  { %v1000_v18 = vpop.f32.mrb[10].mxu1 }
 0x4e3   :  { %v6916_v19 = vpop.f32.mrb[11].mxu1 }
 0x4e4   :  { %6920 = vmatpush3.bf16.msra.mxu0 %v9278_v60 }
 0x4e5   :  { %6933 = vmatprep.subr.bf16.mxu0 %v8786_v2 }
 0x4e7   :  { %6922 = vmatmul.mubr.bf16.vlgmr.msra.gmra.mrb[12].mxu0 %v8788_v51 }
 0x4e8   :  { %6934 = vmatpush3.bf16.msra.mxu0 %v9189_v63  ;;  %6941 = vmatprep.mubr.msk.bf16.mxu0 %vm8787_vm0, %v8786_v2 }
 0x4e9   :  { %6935 = vmatprep.subr.bf16.mxu0 %v8786_v2 }
 0x4ec   :  { %6936 = vmatpush3.bf16.msra.mxu0 %v9199_v1 }
 0x4ed   :  { %6937 = vmatprep.subr.bf16.mxu0 %v8786_v2 }
 0x4f0   :  { %6938 = vmatpush3.bf16.msra.mxu0 %v9207_v7 }
 0x4f1   :  { %6939 = vmatprep.subr.bf16.mxu0 %v8786_v2 }
 0x4f4   :  { %6940 = vmatpush3.bf16.msra.mxu0 %v9212_v8 }
 0x4f5   :  { %6957 = vmatprep.subr.bf16.mxu0 %v8786_v2 }
 0x5b2   :  { %v924_v32 = vpop.f32.mrb[8].mxu0 }
 0x5b3   :  { %v925_v33 = vadd.f32 %v9246_v31, %v924_v32  ;;  %v6907_v34 = vpop.f32.mrb[9].mxu0 }
 0x5b4   :  { %v927_v35 = vpop.f32.mrb[10].mxu0 }
 0x5b5   :  { %v930_v37 = vmax.f32 %v925_v33, 0.0  ;;  %v6908_v38 = vpop.f32.mrb[11].mxu0 }
 0x5b7   :  { %v937_v39 = vmul.f32 %v9249_v36, %v930_v37 }
 0x5b9   :  { %v939_v40 = vsel %vm938_vm11, %v937_v39, 0.0 }
 0x5ba   :  { %940 = vadd.xlane.f32.xlu0 %v939_v40  ;;  %v9319_v20 = vpop.f32.mrb[12].mxu0 }
 0x5bb   :  { %v6923_v24 = vpop.f32.mrb[13].mxu0 }
 0x5bc   :  { %v1052_v25 = vpop.f32.mrb[14].mxu0 }
 0x5bd   :  { %v6924_v26 = vpop.f32.mrb[15].mxu0 }
 0x647   :  { %v941_v44 = vpop.xlane.xlu0 %940 }
 0x648   :  { %v942_v45 = vadd.f32 %v9257_v42, %v941_v44 }
 0x64a   :  { %v943_v46 = vadd.f32 %v942_v45, %v9259_v43 }
 0x64c   :  { %v6385_v47 = vmul.f32 -10.0, %v943_v46 }
 0x64e   :  { %v946_v48 = vmul.f32 1.442695, %v6385_v47 }
 0x650   :  { %7824 = vpow2.f32 %v946_v48 }
 0x65a   :  { %v7825_v50 = vpop.eup %7824 }
 0x65b   :  { %v948_v53 = vadd.f32 1.0, %v7825_v50 }
 0x65d   :  { %7826 = vrcp.f32 %v948_v53 }
 0x667   :  { %v9263_v54 = vpop.eup %7826 }
 0x668   :  { %v1081_v55 = vsub.f32 1.0, %v9263_v54 }
 0x66a   :  { %v1095_v56 = vmul.f32 0.0, %v1081_v55 }
 0x66c   :  { %1099 = vperm.xlu1 %7782, %v1095_v56   ;;  %v9268_v57 = vadd.f32 1.0, %v1095_v56 }
 0x66e   :  { %1106 = vperm.xlu0 %7781, %v9268_v57  }
 0x6eb   :  { %v1100_v4 = vpop.permute.xlu1 %1099 }
 0x6ec   :  { %v1102_v5 = vmul.f32 0.0, %v1100_v4 }
 0x6ed   :  { %v1107_v3 = vpop.permute.xlu0 %1106 }
 0x6ee   :  { %7828 = vrcp.f32 %v1107_v3  ;;  %v1103_v6 = vadd.f32 %v9184_v61, %v1102_v5 }
 0x6f8   :  { %v7829_v11 = vpop.eup %7828 }
 0x6f9   :  { %v9302_v12 = vmul.f32 %v7829_v11, %v1103_v6 }
 0x6fb   :  { %v1111_v14 = vpack.c.bf16 %v9302_v12, %v9302_v12 }
 0x6fd   :  { %6930 = vmatmul.mubr.msk.bf16.vlgmr.msra.gmra.mrb[12].mxu1 %vm661_vm9, %v1111_v14 }
 0x6fe   :  { %6946 = vmatpush3.bf16.msra.mxu1 %v9216_v9  ;;  %6953 = vmatprep.mubr.msk.bf16.mxu1 %vm8787_vm0, %v8786_v2 }
 0x6ff   :  { %6947 = vmatprep.subr.bf16.mxu1 %v8786_v2 }
 0x702   :  { %6948 = vmatpush3.bf16.msra.mxu1 %v9219_v10 }
 0x703   :  { %6949 = vmatprep.subr.bf16.mxu1 %v8786_v2 }
 0x706   :  { %6950 = vmatpush3.bf16.msra.mxu1 %v9232_v21 }
 0x707   :  { %6951 = vmatprep.subr.bf16.mxu1 %v8786_v2 }
 0x70a   :  { %6952 = vmatpush3.bf16.msra.mxu1 %v9236_v22 }
 0x70b   :  { %6965 = vmatprep.subr.bf16.mxu1 %v8786_v2 }
 0x7d0   :  { %v1152_v28 = vpop.f32.mrb[12].mxu1 }
 0x7d1   :  { %v1153_v29 = vadd.f32 %v1152_v28, %v1113_v27  ;;  %v6931_v30 = vpop.f32.mrb[13].mxu1 }
 0x7d2   :  { %v1155_v32 = vpop.f32.mrb[14].mxu1 }
 0x7d3   :  { %v1158_v33 = vmax.f32 %v1153_v29, 0.0  ;;  %v6932_v34 = vpop.f32.mrb[15].mxu1 }
 0x7d5   :  { %v1159_v35 = vpack.c.bf16 %v1158_v33, %v1158_v33 }
 0x7d7   :  { %6942 = vmatmul.mubr.msk.bf16.vlgmr.msra.gmra.mrb[16].mxu0 %vm817_vm10, %v1159_v35  ;;  %v9361_v35 = vld [vmem:[#allocation27] ss:$0 sm:$0xff] }
 0x7d8   :  { %6958 = vmatpush3.bf16.msra.mxu0 %v9253_v41  ;;  %6961 = vmatprep.mubr.msk.bf16.mxu0 %vm8787_vm0, %v8786_v2 }
 0x7d9   :  { %6959 = vmatprep.subr.bf16.mxu0 %v8786_v2 }
 0x7dc   :  { %6960 = vmatpush3.bf16.msra.mxu0 %v9272_v59 }
 0x7dd   :  { %6973 = vmatprep.subr.bf16.mxu0 %v8786_v2 }
 0x7df   :  { %6962 = vmatmul.mubr.msk.bf16.vlgmr.msra.gmra.mrb[20].mxu0 %vm661_vm9, %v1111_v14 }
 0x7e0   :  { %6974 = vmatpush3.bf16.msra.mxu0 %v9169_v49  ;;  %6977 = vmatprep.mubr.msk.bf16.mxu0 %vm8787_vm0, %v8786_v2 }
 0x7e1   :  { %6975 = vmatprep.subr.bf16.mxu0 %v8786_v2 }
 0x7e4   :  { %6976 = vmatpush3.bf16.msra.mxu0 %v9174_v52 }
 0x7e5   :  { %6993 = vmatprep.subr.bf16.mxu0 %v8786_v2 }
 0x8aa   :  { %v1197_v37 = vpop.f32.mrb[16].mxu0 }
 0x8ab   :  { %v1198_v38 = vadd.f32 %v9240_v23, %v1197_v37  ;;  %v6943_v39 = vpop.f32.mrb[17].mxu0  ;;  %v1050_v37 = vadd.f32 %v9361_v35, %v9319_v20 }
 0x8ac   :  { %v1200_v40 = vpop.f32.mrb[18].mxu0 }
 0x8ad   :  { %v1203_v44 = vmax.f32 %v1198_v38, 0.0  ;;  %v6944_v45 = vpop.f32.mrb[19].mxu0  ;;  %v9368_v38 = vld [vmem:[#allocation24] ss:$0 sm:$0xff] }
 0x8af   :  { %v1204_v46 = vpack.c.bf16 %v1203_v44, %v1203_v44 }
 0x8b1   :  { %6954 = vmatmul.mubr.msk.bf16.vlgmr.msra.gmra.mrb[16].mxu1 %vm817_vm10, %v1204_v46 }
 0x8b2   :  { %v9338_v47 = vpop.f32.mrb[20].mxu0  ;;  %6966 = vmatpush3.bf16.msra.mxu1 %v9270_v58  ;;  %6969 = vmatprep.mubr.msk.bf16.mxu1 %vm8787_vm0, %v8786_v2 }
 0x8b3   :  { %v6963_v48 = vpop.f32.mrb[21].mxu0  ;;  %6967 = vmatprep.subr.bf16.mxu1 %v8786_v2 }
 0x8b4   :  { %v1303_v50 = vpop.f32.mrb[22].mxu0 }
 0x8b5   :  { %v6964_v53 = vpop.f32.mrb[23].mxu0 }
 0x8b6   :  { %6968 = vmatpush3.bf16.msra.mxu1 %v9278_v60  ;;  %v1402_v53 = vrot.slane %v9184_v61, 2 }
 0x8b7   :  { %6981 = vmatprep.subr.bf16.mxu1 %v8786_v2 }
 0x984   :  { %v1242_v56 = vpop.f32.mrb[16].mxu1 }
 0x985   :  { %v1243_v3 = vadd.f32 %v9246_v31, %v1242_v56  ;;  %v6955_v4 = vpop.f32.mrb[17].mxu1 }
 0x986   :  { %v1245_v5 = vpop.f32.mrb[18].mxu1 }
 0x987   :  { %v1248_v6 = vmax.f32 %v1243_v3, 0.0  ;;  %v6956_v11 = vpop.f32.mrb[19].mxu1 }
 0x988   :  { %v1413_v11 = vrot.slane %v9224_v13, 4 }
 0x989   :  { %v1249_v14 = vmul.f32 %v9249_v36, %v1248_v6 }
 0x98b   :  { %v1250_v16 = vsel %vm938_vm11, %v1249_v14, 0.0 }
 0x98c   :  { %1251 = vadd.xlane.f32.xlu1 %v1250_v16 }
 0x99d   :  { %1255 = vrot.lane.b32.xlu1 %v9259_v43, %s8789_s3 }
 0xa19   :  { %v1252_v18 = vpop.xlane.xlu1 %1251 }
 0xa1a   :  { %v1253_v19 = vadd.f32 %v9257_v42, %v1252_v18 }
 0xa1d   :  { %v1256_v24 = vpop.permute.xlu1 %1255 }
 0xa1e   :  { %v1258_v25 = vadd.f32 %v1256_v24, %v1253_v19 }
 0xa20   :  { %v6394_v26 = vmul.f32 -10.0, %v1258_v25 }
 0xa22   :  { %v1261_v27 = vmul.f32 1.442695, %v6394_v26 }
 0xa24   :  { %7830 = vpow2.f32 %v1261_v27 }
 0xa2e   :  { %v7831_v28 = vpop.eup %7830 }
 0xa2f   :  { %v1263_v29 = vadd.f32 1.0, %v7831_v28 }
 0xa31   :  { %7832 = vrcp.f32 %v1263_v29 }
 0xa3b   :  { %v9352_v30 = vpop.eup %7832 }
 0xa3c   :  { %v1379_v32 = vsub.f32 1.0, %v9352_v30 }
 0xa3e   :  { %v1393_v33 = vmul.f32 %v1379_v32, %v9268_v57  ;;  %v998_v57 = vadd.f32 %v9368_v38, %v9317_v15 }
 0xa40   :  { %v9358_v34 = vadd.f32 1.0, %v1393_v33  ;;  %v1055_v39 = vadd.f32 %v1050_v37, %v998_v57 }
 0xa42   :  { %1407 = vperm.xlu0 %7781, %v9358_v34   ;;  %v6390_v40 = vmul.f32 -1.442695, %v1055_v39 }
 0xa44   :  { %7834 = vpow2.f32 %v6390_v40 }
 0xa46   :  { %1397 = vperm.xlu0 %7781, %v1393_v33  }
 0xa4a   :  { %1063 = vrot.lane.b32.xlu0 %v1050_v37, %s8761_s17 }
 0xa4e   :  { %1084 = vperm.xlu0 %7781, %v1081_v55   ;;  %v7835_v44 = vpop.eup %7834 }
 0xa4f   :  { %v1059_v45 = vadd.f32 1.0, %v7835_v44 }
 0xa51   :  { %7836 = vrcp.f32 %v1059_v45 }
 0xa5b   :  { %v7837_v50 = vpop.eup %7836 }
 0xa5c   :  { %v1073_v26 = vsub.f32 1.0, %v7837_v50  ;;  %v1079_v28 = vmul.f32 0.0, %v7837_v50 }
 0xac1   :  { %v1408_v46 = vpop.permute.xlu0 %1407 }
 0xac2   :  { %7838 = vrcp.f32 %v1408_v46 }
 0xac5   :  { %v1398_v48 = vpop.permute.xlu0 %1397 }
 0xac6   :  { %v1400_v20 = vmul.f32 %v1398_v48, %v9302_v12 }
 0xac8   :  { %v1404_v3 = vadd.f32 %v1402_v53, %v1400_v20 }
 0xac9   :  { %v1064_v55 = vpop.permute.xlu0 %1063 }
 0xaca   :  { %v1066_v56 = vmul.f32 %v7837_v50, %v1064_v55 }
 0xacc   :  { %v7839_v4 = vpop.eup %7838  ;;  %1068 = vrot.lane.b32.xlu1 %v1066_v56, %s8761_s17 }
 0xacd   :  { %v9375_v15 = vmul.f32 %v7839_v4, %v1404_v3  ;;  %v1085_v25 = vpop.permute.xlu0 %1084 }
 0xacf   :  { %v1412_v5 = vpack.c.bf16 %v9375_v15, %v9375_v15 }
 0xad0   :  { %1090 = vperm.xlu1 %7782, %v9263_v54  }
 0xad1   :  { %6978 = vmatmul.mubr.msk.bf16.vlgmr.msra.gmra.mrb[24].mxu0 %vm661_vm9, %v1412_v5 }
 0xad2   :  { %6994 = vmatpush3.bf16.msra.mxu0 %v9216_v9  ;;  %7001 = vmatprep.mubr.msk.bf16.mxu0 %vm8787_vm0, %v8786_v2 }
 0xad3   :  { %6995 = vmatprep.subr.bf16.mxu0 %v8786_v2 }
 0xad6   :  { %6996 = vmatpush3.bf16.msra.mxu0 %v9219_v10 }
 0xad7   :  { %6997 = vmatprep.subr.bf16.mxu0 %v8786_v2 }
 0xada   :  { %6998 = vmatpush3.bf16.msra.mxu0 %v9232_v21 }
 0xadb   :  { %6999 = vmatprep.subr.bf16.mxu0 %v8786_v2 }
 0xade   :  { %7000 = vmatpush3.bf16.msra.mxu0 %v9236_v22 }
 0xadf   :  { %7013 = vmatprep.subr.bf16.mxu0 %v8786_v2 }
 0xb3e   :  { %v1069_v54 = vpop.permute.xlu1 %1068 }
 0xb3f   :  { %v1071_v12 = vadd.f32 %v1069_v54, %v998_v57  ;;  %v1087_v57 = vmul.f32 0.0, %v1085_v25 }
 0xb41   :  { %7840 = vtanh.f32 %v1071_v12 }
 0xb4b   :  { %v7841_v6 = vpop.eup %7840 }
 0xb4c   :  { %1075 = vrot.lane.b32.xlu0 %v7841_v6, %s8790_s16 }
 0xb4f   :  { %v1091_v37 = vpop.permute.xlu1 %1090 }
 0xba4   :  { %v1452_v14 = vpop.f32.mrb[24].mxu0 }
 0xba5   :  { %v1453_v16 = vadd.f32 %v1452_v14, %v1413_v11  ;;  %v6979_v18 = vpop.f32.mrb[25].mxu0 }
 0xba6   :  { %v1455_v19 = vpop.f32.mrb[26].mxu0 }
 0xba7   :  { %v6980_v24 = vpop.f32.mrb[27].mxu0  ;;  %v1458_v46 = vmax.f32 %v1453_v16, 0.0 }
 0xba9   :  { %v1459_v48 = vpack.c.bf16 %v1458_v46, %v1458_v46 }
 0xbbe   :  { %v1076_v27 = vpop.permute.xlu0 %1075 }
 0xbbf   :  { %v1078_v29 = vmul.f32 %v1076_v27, %v1073_v26 }
 0xbc1   :  { %v1080_v33 = vadd.f32 %v1079_v28, %v1078_v29 }
 0xbc3   :  { %v1093_v39 = vmul.f32 %v1091_v37, %v1080_v33 }
 0xbc5   :  { %v9393_v40 = vadd.f32 %v1093_v39, %v1087_v57 }
 0xbc7   :  { %v1306_v44 = vpack.c.bf16 %v9393_v40, %v9393_v40 }
 0xbc9   :  { %1308 = vrot.lane.b32.xlu1 %v1306_v44, %s8790_s16 }
 0xbcd   :  { %1554 = vrot.lane.b32.xlu1 %v9259_v43, %s8791_s22 }
 0xc3b   :  { %v1309_v45 = vpop.permute.xlu1 %1308 }
 0xc3c   :  { %6970 = vmatmul.mubr.msk.bf16.vlgmr.msra.gmra.mrb[20].mxu1 %vm661_vm9, %v1309_v45 }
 0xc3d   :  { %6982 = vmatpush3.bf16.msra.mxu1 %v9189_v63  ;;  %6989 = vmatprep.mubr.msk.bf16.mxu1 %vm8787_vm0, %v8786_v2 }
 0xc3e   :  { %6983 = vmatprep.subr.bf16.mxu1 %v8786_v2 }
 0xc3f   :  { %v1555_v57 = vpop.permute.xlu1 %1554 }
 0xc41   :  { %6984 = vmatpush3.bf16.msra.mxu1 %v9199_v1 }
 0xc42   :  { %6985 = vmatprep.subr.bf16.mxu1 %v8786_v2 }
 0xc45   :  { %6986 = vmatpush3.bf16.msra.mxu1 %v9207_v7 }
 0xc46   :  { %6987 = vmatprep.subr.bf16.mxu1 %v8786_v2 }
 0xc49   :  { %6988 = vmatpush3.bf16.msra.mxu1 %v9212_v8 }
 0xc4a   :  { %7005 = vmatprep.subr.bf16.mxu1 %v8786_v2 }
 0xc4c   :  { %6990 = vmatmul.mubr.msk.bf16.vlgmr.msra.gmra.mrb[24].mxu1 %vm817_vm10, %v1459_v48 }
 0xc4d   :  { %7006 = vmatpush3.bf16.msra.mxu1 %v9253_v41  ;;  %7009 = vmatprep.mubr.msk.bf16.mxu1 %vm8787_vm0, %v8786_v2 }
 0xc4e   :  { %7007 = vmatprep.subr.bf16.mxu1 %v8786_v2 }
 0xc51   :  { %7008 = vmatpush3.bf16.msra.mxu1 %v9272_v59 }
 0xc52   :  { %7021 = vmatprep.subr.bf16.mxu1 %v8786_v2 }
 0xc54   :  { %7010 = vmatmul.mubr.msk.bf16.vlgmr.msra.gmra.mrb[28].mxu1 %vm661_vm9, %v1412_v5 }
 0xc55   :  { %7022 = vmatpush3.bf16.msra.mxu1 %v9169_v49  ;;  %7025 = vmatprep.mubr.msk.bf16.mxu1 %vm8787_vm0, %v8786_v2 }
 0xc56   :  { %7023 = vmatprep.subr.bf16.mxu1 %v8786_v2 }
 0xc59   :  { %7024 = vmatpush3.bf16.msra.mxu1 %v9174_v52 }
 0xc5a   :  { %7041 = vmatprep.subr.bf16.mxu1 %v8786_v2 }
 0xd0f   :  { %v1347_v20 = vpop.f32.mrb[20].mxu1 }
 0xd10   :  { %v6971_v50 = vpop.f32.mrb[21].mxu1 }
 0xd11   :  { %v1350_v53 = vpop.f32.mrb[22].mxu1 }
 0xd12   :  { %v6972_v55 = vpop.f32.mrb[23].mxu1 }
 0xd1f   :  { %v1497_v56 = vpop.f32.mrb[24].mxu1 }
 0xd20   :  { %v1498_v3 = vadd.f32 %v9240_v23, %v1497_v56  ;;  %v6991_v4 = vpop.f32.mrb[25].mxu1 }
 0xd21   :  { %v1500_v5 = vpop.f32.mrb[26].mxu1  ;;  %v1348_v4 = vadd.f32 %v9361_v35, %v1347_v20 }
 0xd22   :  { %v1503_v54 = vmax.f32 %v1498_v3, 0.0  ;;  %v6992_v12 = vpop.f32.mrb[27].mxu1  ;;  %v1301_v5 = vadd.f32 %v9368_v38, %v9338_v47 }
 0xd24   :  { %v1504_v6 = vpack.c.bf16 %v1503_v54, %v1503_v54  ;;  %v1353_v54 = vadd.f32 %v1348_v4, %v1301_v5 }
 0xd26   :  { %7002 = vmatmul.mubr.msk.bf16.vlgmr.msra.gmra.mrb[28].mxu0 %vm817_vm10, %v1504_v6  ;;  %v6397_v12 = vmul.f32 -1.442695, %v1353_v54 }
 0xd27   :  { %v9425_v11 = vpop.f32.mrb[28].mxu1  ;;  %7014 = vmatpush3.bf16.msra.mxu0 %v9270_v58  ;;  %7017 = vmatprep.mubr.msk.bf16.mxu0 %vm8787_vm0, %v8786_v2 }
 0xd28   :  { %v7011_v14 = vpop.f32.mrb[29].mxu1  ;;  %7015 = vmatprep.subr.bf16.mxu0 %v8786_v2 }
 0xd29   :  { %v1602_v16 = vpop.f32.mrb[30].mxu1 }
 0xd2a   :  { %v7012_v18 = vpop.f32.mrb[31].mxu1 }
 0xd2b   :  { %7016 = vmatpush3.bf16.msra.mxu0 %v9278_v60 }
 0xd2c   :  { %7029 = vmatprep.subr.bf16.mxu0 %v8786_v2 }
 0xdf9   :  { %v1542_v19 = vpop.f32.mrb[28].mxu0 }
 0xdfa   :  { %v1543_v24 = vadd.f32 %v9246_v31, %v1542_v19  ;;  %v7003_v25 = vpop.f32.mrb[29].mxu0 }
 0xdfb   :  { %v1545_v26 = vpop.f32.mrb[30].mxu0 }
 0xdfc   :  { %v1548_v27 = vmax.f32 %v1543_v24, 0.0  ;;  %v7004_v28 = vpop.f32.mrb[31].mxu0  ;;  %v1700_v24 = vrot.slane %v9184_v61, 4 }
 0xdfe   :  { %v1549_v29 = vmul.f32 %v9249_v36, %v1548_v27 }
 0xe00   :  { %v1550_v33 = vsel %vm938_vm11, %v1549_v29, 0.0 }
 0xe01   :  { %1551 = vadd.xlane.f32.xlu0 %v1550_v33 }
 0xe8e   :  { %v1552_v37 = vpop.xlane.xlu0 %1551 }
 0xe8f   :  { %v1553_v39 = vadd.f32 %v9257_v42, %v1552_v37 }
 0xe91   :  { %v1557_v44 = vadd.f32 %v1555_v57, %v1553_v39 }
 0xe93   :  { %v6401_v45 = vmul.f32 -10.0, %v1557_v44 }
 0xe95   :  { %v1560_v46 = vmul.f32 1.442695, %v6401_v45 }
 0xe97   :  { %7842 = vpow2.f32 %v1560_v46 }
 0xea1   :  { %v7843_v48 = vpop.eup %7842 }
 0xea2   :  { %v1562_v50 = vadd.f32 1.0, %v7843_v48 }
 0xea4   :  { %7844 = vrcp.f32 %v1562_v50 }
 0xea5   :  { %7846 = vpow2.f32 %v6397_v12 }
 0xeae   :  { %v9439_v53 = vpop.eup %7844 }
 0xeaf   :  { %v1678_v55 = vsub.f32 1.0, %v9439_v53  ;;  %v7847_v6 = vpop.eup %7846 }
 0xeb0   :  { %v1357_v14 = vadd.f32 1.0, %v7847_v6 }
 0xeb1   :  { %v1692_v56 = vmul.f32 %v1678_v55, %v9358_v34 }
 0xeb2   :  { %7848 = vrcp.f32 %v1357_v14 }
 0xeb3   :  { %v9445_v3 = vadd.f32 1.0, %v1692_v56 }
 0xeb5   :  { %1705 = vperm.xlu1 %7782, %v9445_v3  }
 0xeb9   :  { %1696 = vperm.xlu1 %7782, %v1692_v56  }
 0xebc   :  { %v7849_v19 = vpop.eup %7848 }
 0xebd   :  { %1361 = vrot.lane.b32.xlu1 %v1348_v4, %s8761_s17  ;;  %v1371_v48 = vsub.f32 1.0, %v7849_v19  ;;  %v1377_v56 = vmul.f32 %v7849_v19, %v9393_v40 }
 0xf34   :  { %v1706_v16 = vpop.permute.xlu1 %1705 }
 0xf35   :  { %7850 = vrcp.f32 %v1706_v16 }
 0xf38   :  { %v1697_v34 = vpop.permute.xlu1 %1696 }
 0xf39   :  { %v1699_v18 = vmul.f32 %v1697_v34, %v9375_v15 }
 0xf3b   :  { %v1702_v26 = vadd.f32 %v1700_v24, %v1699_v18 }
 0xf3c   :  { %v1362_v20 = vpop.permute.xlu1 %1361 }
 0xf3d   :  { %v1364_v25 = vmul.f32 %v7849_v19, %v1362_v20 }
 0xf3f   :  { %v7851_v27 = vpop.eup %7850  ;;  %1366 = vrot.lane.b32.xlu1 %v1364_v25, %s8761_s17 }
 0xf40   :  { %v9455_v47 = vmul.f32 %v7851_v27, %v1702_v26 }
 0xf42   :  { %v1710_v28 = vpack.c.bf16 %v9455_v47, %v9455_v47 }
 0xf43   :  { %1382 = vperm.xlu1 %7782, %v1379_v32  }
 0xf44   :  { %7026 = vmatmul.mubr.msk.bf16.vlgmr.msra.gmra.mrb[32].mxu1 %vm661_vm9, %v1710_v28 }
 0xf45   :  { %7042 = vmatpush3.bf16.msra.mxu1 %v9216_v9  ;;  %7049 = vmatprep.mubr.msk.bf16.mxu1 %vm8787_vm0, %v8786_v2 }
 0xf46   :  { %7043 = vmatprep.subr.bf16.mxu1 %v8786_v2 }
 0xf47   :  { %1388 = vperm.xlu1 %7782, %v9352_v30   ;;  %v1711_v30 = vrot.slane %v9224_v13, 6 }
 0xf49   :  { %7044 = vmatpush3.bf16.msra.mxu1 %v9219_v10 }
 0xf4a   :  { %7045 = vmatprep.subr.bf16.mxu1 %v8786_v2 }
 0xf4d   :  { %7046 = vmatpush3.bf16.msra.mxu1 %v9232_v21 }
 0xf4e   :  { %7047 = vmatprep.subr.bf16.mxu1 %v8786_v2 }
 0xf51   :  { %7048 = vmatpush3.bf16.msra.mxu1 %v9236_v22 }
 0xf52   :  { %7061 = vmatprep.subr.bf16.mxu1 %v8786_v2 }
 0xfb1   :  { %v1367_v32 = vpop.permute.xlu1 %1366 }
 0xfb2   :  { %v1369_v15 = vadd.f32 %v1367_v32, %v1301_v5 }
 0xfb4   :  { %7852 = vtanh.f32 %v1369_v15 }
 0xfbe   :  { %v7853_v29 = vpop.eup %7852 }
 0xfbf   :  { %1373 = vrot.lane.b32.xlu1 %v7853_v29, %s8790_s16 }
 0xfc2   :  { %v1383_v45 = vpop.permute.xlu1 %1382 }
 0xfc3   :  { %v1385_v5 = vmul.f32 %v1383_v45, %v9393_v40 }
 0xfc6   :  { %v1389_v46 = vpop.permute.xlu1 %1388 }
0x1017   :  { %v1750_v33 = vpop.f32.mrb[32].mxu1 }
0x1018   :  { %v1751_v37 = vadd.f32 %v1750_v33, %v1711_v30  ;;  %v7027_v57 = vpop.f32.mrb[33].mxu1 }
0x1019   :  { %v1753_v39 = vpop.f32.mrb[34].mxu1 }
0x101a   :  { %v7028_v44 = vpop.f32.mrb[35].mxu1  ;;  %v1756_v16 = vmax.f32 %v1751_v37, 0.0 }
0x101c   :  { %v1757_v34 = vpack.c.bf16 %v1756_v16, %v1756_v16 }
0x1031   :  { %v1374_v50 = vpop.permute.xlu1 %1373 }
0x1032   :  { %v1376_v4 = vmul.f32 %v1374_v50, %v1371_v48 }
0x1034   :  { %v1378_v54 = vadd.f32 %v1377_v56, %v1376_v4 }
0x1036   :  { %v1391_v12 = vmul.f32 %v1389_v46, %v1378_v54 }
0x1038   :  { %v9477_v6 = vadd.f32 %v1391_v12, %v1385_v5 }
0x103a   :  { %v1605_v13 = vpack.c.bf16 %v9477_v6, %v9477_v6 }
0x103c   :  { %1607 = vrot.lane.b32.xlu0 %v1605_v13, %s8790_s16 }
0x1040   :  { %1852 = vrot.lane.b32.xlu0 %v9259_v43, %s8792_s14 }
0x10ae   :  { %v1608_v14 = vpop.permute.xlu0 %1607 }
0x10af   :  { %7018 = vmatmul.mubr.msk.bf16.vlgmr.msra.gmra.mrb[32].mxu0 %vm661_vm9, %v1608_v14  ;;  %v1600_v14 = vadd.f32 %v9368_v38, %v9425_v11 }
0x10b0   :  { %7030 = vmatpush3.bf16.msra.mxu0 %v9189_v63  ;;  %7037 = vmatprep.mubr.msk.bf16.mxu0 %vm8787_vm0, %v8786_v2 }
0x10b1   :  { %7031 = vmatprep.subr.bf16.mxu0 %v8786_v2 }
0x10b2   :  { %v1853_v46 = vpop.permute.xlu0 %1852 }
0x10b4   :  { %7032 = vmatpush3.bf16.msra.mxu0 %v9199_v1 }
0x10b5   :  { %7033 = vmatprep.subr.bf16.mxu0 %v8786_v2 }
0x10b8   :  { %7034 = vmatpush3.bf16.msra.mxu0 %v9207_v7 }
0x10b9   :  { %7035 = vmatprep.subr.bf16.mxu0 %v8786_v2 }
0x10bc   :  { %7036 = vmatpush3.bf16.msra.mxu0 %v9212_v8 }
0x10bd   :  { %7053 = vmatprep.subr.bf16.mxu0 %v8786_v2 }
0x10bf   :  { %7038 = vmatmul.mubr.msk.bf16.vlgmr.msra.gmra.mrb[36].mxu0 %vm817_vm10, %v1757_v34 }
0x10c0   :  { %7054 = vmatpush3.bf16.msra.mxu0 %v9253_v41  ;;  %7057 = vmatprep.mubr.msk.bf16.mxu0 %vm8787_vm0, %v8786_v2 }
0x10c1   :  { %7055 = vmatprep.subr.bf16.mxu0 %v8786_v2 }
0x10c4   :  { %7056 = vmatpush3.bf16.msra.mxu0 %v9272_v59 }
0x10c5   :  { %7069 = vmatprep.subr.bf16.mxu0 %v8786_v2 }
0x10c7   :  { %7058 = vmatmul.mubr.msk.bf16.vlgmr.msra.gmra.mrb[40].mxu0 %vm661_vm9, %v1710_v28 }
0x10c8   :  { %7070 = vmatpush3.bf16.msra.mxu0 %v9169_v49  ;;  %7073 = vmatprep.mubr.msk.bf16.mxu0 %vm8787_vm0, %v8786_v2 }
0x10c9   :  { %7071 = vmatprep.subr.bf16.mxu0 %v8786_v2 }
0x10cc   :  { %7072 = vmatpush3.bf16.msra.mxu0 %v9174_v52 }
0x10cd   :  { %7089 = vmatprep.subr.bf16.mxu0 %v8786_v2 }
0x1182   :  { %v1646_v63 = vpop.f32.mrb[32].mxu0 }
0x1183   :  { %v7019_v1 = vpop.f32.mrb[33].mxu0  ;;  %v1647_v13 = vadd.f32 %v9361_v35, %v1646_v63 }
0x1184   :  { %v1649_v7 = vpop.f32.mrb[34].mxu0 }
0x1185   :  { %v7020_v8 = vpop.f32.mrb[35].mxu0  ;;  %v1652_v16 = vadd.f32 %v1647_v13, %v1600_v14 }
0x1187   :  { %v6404_v34 = vmul.f32 -1.442695, %v1652_v16 }
0x1192   :  { %v1795_v18 = vpop.f32.mrb[36].mxu0 }
0x1193   :  { %v1796_v19 = vadd.f32 %v9240_v23, %v1795_v18  ;;  %v7039_v24 = vpop.f32.mrb[37].mxu0 }
0x1194   :  { %v1798_v20 = vpop.f32.mrb[38].mxu0  ;;  %v1998_v24 = vrot.slane %v9184_v61, 6 }
0x1195   :  { %v1801_v25 = vmax.f32 %v1796_v19, 0.0  ;;  %v7040_v49 = vpop.f32.mrb[39].mxu0 }
0x1197   :  { %v1802_v26 = vpack.c.bf16 %v1801_v25, %v1801_v25 }
0x1199   :  { %7050 = vmatmul.mubr.msk.bf16.vlgmr.msra.gmra.mrb[36].mxu1 %vm817_vm10, %v1802_v26 }
0x119a   :  { %v9509_v27 = vpop.f32.mrb[40].mxu0  ;;  %7062 = vmatpush3.bf16.msra.mxu1 %v9270_v58  ;;  %7065 = vmatprep.mubr.msk.bf16.mxu1 %vm8787_vm0, %v8786_v2 }
0x119b   :  { %v7059_v52 = vpop.f32.mrb[41].mxu0  ;;  %7063 = vmatprep.subr.bf16.mxu1 %v8786_v2 }
0x119c   :  { %v1900_v28 = vpop.f32.mrb[42].mxu0 }
0x119d   :  { %v7060_v32 = vpop.f32.mrb[43].mxu0 }
0x119e   :  { %7064 = vmatpush3.bf16.msra.mxu1 %v9278_v60 }
0x119f   :  { %7077 = vmatprep.subr.bf16.mxu1 %v8786_v2 }
0x126c   :  { %v1840_v15 = vpop.f32.mrb[36].mxu1 }
0x126d   :  { %v1841_v29 = vadd.f32 %v9246_v31, %v1840_v15  ;;  %v7051_v30 = vpop.f32.mrb[37].mxu1 }
0x126e   :  { %v1843_v33 = vpop.f32.mrb[38].mxu1 }
0x126f   :  { %v1846_v37 = vmax.f32 %v1841_v29, 0.0  ;;  %v7052_v57 = vpop.f32.mrb[39].mxu1 }
0x1271   :  { %v1847_v39 = vmul.f32 %v9249_v36, %v1846_v37 }
0x1273   :  { %v1848_v44 = vsel %vm938_vm11, %v1847_v39, 0.0 }
0x1274   :  { %1849 = vadd.xlane.f32.xlu1 %v1848_v44 }
0x1285   :  { %1681 = vperm.xlu1 %7782, %v1678_v55  }
0x1289   :  { %2148 = vrot.lane.b32.xlu1 %v9259_v43, %s8793_s12 }
0x1301   :  { %v1850_v45 = vpop.xlane.xlu1 %1849 }
0x1302   :  { %v1851_v48 = vadd.f32 %v9257_v42, %v1850_v45 }
0x1304   :  { %v1855_v50 = vadd.f32 %v1853_v46, %v1851_v48  ;;  %v9567_v46 = vld [vmem:[%s10867_s0] sm:$0xff]   ;;  %v9574_v48 = vld [vmem:[%s10867_s0 + $0x8] sm:$0xff]  }
0x1305   :  { %v1682_v30 = vpop.permute.xlu1 %1681 }
0x1306   :  { %v6408_v56 = vmul.f32 -10.0, %v1855_v50  ;;  %v1684_v37 = vmul.f32 %v1682_v30, %v9477_v6 }
0x1308   :  { %v1858_v4 = vmul.f32 1.442695, %v6408_v56  ;;  %v9580_v56 = vld [vmem:[%s10867_s0 + $0x10] sm:$0xff]  }
0x130a   :  { %7854 = vpow2.f32 %v1858_v4 }
0x1314   :  { %v7855_v31 = vpop.eup %7854 }
0x1315   :  { %v1860_v54 = vadd.f32 1.0, %v7855_v31  ;;  %v9585_v31 = vld [vmem:[%s10867_s0 + $0x18] sm:$0xff]  }
0x1317   :  { %7856 = vrcp.f32 %v1860_v54 }
0x1318   :  { %7858 = vpow2.f32 %v6404_v34 }
0x1321   :  { %v9525_v5 = vpop.eup %7856 }
0x1322   :  { %v1976_v36 = vsub.f32 1.0, %v9525_v5  ;;  %v7859_v1 = vpop.eup %7858 }
0x1323   :  { %v1656_v7 = vadd.f32 1.0, %v7859_v1 }
0x1324   :  { %v1990_v12 = vmul.f32 %v1976_v36, %v9445_v3 }
0x1325   :  { %7860 = vrcp.f32 %v1656_v7 }
0x1326   :  { %v9531_v55 = vadd.f32 1.0, %v1990_v12 }
0x1328   :  { %2003 = vperm.xlu0 %7781, %v9531_v55  }
0x132c   :  { %1994 = vperm.xlu0 %7781, %v1990_v12   ;;  %v9597_v12 = vld [vmem:[#allocation12] sm:$0xff]  }
0x132f   :  { %v7861_v19 = vpop.eup %7860 }
0x1330   :  { %1660 = vrot.lane.b32.xlu0 %v1647_v13, %s8761_s17  ;;  %v1670_v15 = vsub.f32 1.0, %v7861_v19  ;;  %v1676_v29 = vmul.f32 %v7861_v19, %v9477_v6 }
0x13a7   :  { %v2004_v8 = vpop.permute.xlu0 %2003 }
0x13a8   :  { %7862 = vrcp.f32 %v2004_v8 }
0x13ab   :  { %v1995_v3 = vpop.permute.xlu0 %1994 }
0x13ac   :  { %v1997_v18 = vmul.f32 %v1995_v3, %v9455_v47 }
0x13ae   :  { %v2000_v25 = vadd.f32 %v1998_v24, %v1997_v18 }
0x13af   :  { %v1661_v63 = vpop.permute.xlu0 %1660 }
0x13b0   :  { %v1663_v20 = vmul.f32 %v7861_v19, %v1661_v63 }
0x13b2   :  { %v7863_v49 = vpop.eup %7862  ;;  %1665 = vrot.lane.b32.xlu0 %v1663_v20, %s8761_s17 }
0x13b3   :  { %v9541_v11 = vmul.f32 %v7863_v49, %v2000_v25  ;;  %v9619_v49 = vld [vmem:[#allocation19] ss:$0 sm:$0xff] }
0x13b5   :  { %v2008_v26 = vpack.c.bf16 %v9541_v11, %v9541_v11 }
0x13b6   :  { %1687 = vperm.xlu0 %7781, %v9439_v53  }
0x13b7   :  { %7074 = vmatmul.mubr.msk.bf16.vlgmr.msra.gmra.mrb[44].mxu0 %vm661_vm9, %v2008_v26 }
0x13b8   :  { %7090 = vmatpush3.bf16.msra.mxu0 %v9216_v9  ;;  %7097 = vmatprep.mubr.msk.bf16.mxu0 %vm8787_vm0, %v8786_v2 }
0x13b9   :  { %7091 = vmatprep.subr.bf16.mxu0 %v8786_v2 }
0x13bc   :  { %7092 = vmatpush3.bf16.msra.mxu0 %v9219_v10 }
0x13bd   :  { %7093 = vmatprep.subr.bf16.mxu0 %v8786_v2 }
0x13c0   :  { %7094 = vmatpush3.bf16.msra.mxu0 %v9232_v21 }
0x13c1   :  { %7095 = vmatprep.subr.bf16.mxu0 %v8786_v2 }
0x13c4   :  { %7096 = vmatpush3.bf16.msra.mxu0 %v9236_v22 }
0x13c5   :  { %7109 = vmatprep.subr.bf16.mxu0 %v8786_v2 }
0x1424   :  { %v1666_v61 = vpop.permute.xlu0 %1665 }
0x1425   :  { %v1668_v53 = vadd.f32 %v1666_v61, %v1600_v14 }
0x1427   :  { %7864 = vtanh.f32 %v1668_v53 }
0x1431   :  { %v7865_v9 = vpop.eup %7864 }
0x1432   :  { %1672 = vrot.lane.b32.xlu0 %v7865_v9, %s8790_s16 }
0x1435   :  { %v1688_v32 = vpop.permute.xlu0 %1687 }
0x148a   :  { %v2046_v47 = vpop.f32.mrb[44].mxu0 }
0x148b   :  { %v7075_v52 = vpop.f32.mrb[45].mxu0  ;;  %v2047_v50 = vadd.f32 %v2046_v47, %v9227_v17  ;;  %v9622_v47 = vld [vmem:[#allocation21] ss:$0 sm:$0xff] }
0x148c   :  { %v2049_v28 = vpop.f32.mrb[46].mxu0 }
0x148d   :  { %v7076_v10 = vpop.f32.mrb[47].mxu0  ;;  %v2052_v4 = vmax.f32 %v2047_v50, 0.0 }
0x148e   :  { %v2149_v10 = vpop.permute.xlu1 %2148 }
0x148f   :  { %v2053_v54 = vpack.c.bf16 %v2052_v4, %v2052_v4 }
0x14a4   :  { %v1673_v21 = vpop.permute.xlu0 %1672 }
0x14a5   :  { %v1675_v22 = vmul.f32 %v1673_v21, %v1670_v15 }
0x14a7   :  { %v1677_v33 = vadd.f32 %v1676_v29, %v1675_v22 }
0x14a9   :  { %v1690_v57 = vmul.f32 %v1688_v32, %v1677_v33 }
0x14ab   :  { %v9560_v39 = vadd.f32 %v1690_v57, %v1684_v37 }
0x14ad   :  { %v1903_v44 = vpack.c.bf16 %v9560_v39, %v9560_v39 }
0x14af   :  { %1905 = vrot.lane.b32.xlu0 %v1903_v44, %s8790_s16  ;;  %v1898_v44 = vadd.f32 %v9368_v38, %v9509_v27 }
0x1521   :  { %v1906_v45 = vpop.permute.xlu0 %1905 }
0x1522   :  { %7066 = vmatmul.mubr.msk.bf16.vlgmr.msra.gmra.mrb[40].mxu1 %vm661_vm9, %v1906_v45 }
0x1523   :  { %7078 = vmatpush3.bf16.msra.mxu1 %v9567_v46  ;;  %7085 = vmatprep.mubr.msk.bf16.mxu1 %vm8787_vm0, %v8786_v2 }
0x1524   :  { %7079 = vmatprep.subr.bf16.mxu1 %v8786_v2 }
0x1527   :  { %7080 = vmatpush3.bf16.msra.mxu1 %v9574_v48 }
0x1528   :  { %7081 = vmatprep.subr.bf16.mxu1 %v8786_v2 }
0x152b   :  { %7082 = vmatpush3.bf16.msra.mxu1 %v9580_v56 }
0x152c   :  { %7083 = vmatprep.subr.bf16.mxu1 %v8786_v2 }
0x152f   :  { %7084 = vmatpush3.bf16.msra.mxu1 %v9585_v31 }
0x1530   :  { %7101 = vmatprep.subr.bf16.mxu1 %v8786_v2 }
0x1532   :  { %7086 = vmatmul.mubr.msk.bf16.vlgmr.msra.gmra.mrb[44].mxu1 %vm817_vm10, %v2053_v54 }
0x1533   :  { %7102 = vmatpush3.bf16.msra.mxu1 %v9253_v41  ;;  %7105 = vmatprep.mubr.msk.bf16.mxu1 %vm8787_vm0, %v8786_v2  ;;  %v9603_v41 = vld [vmem:[#allocation12 + $0x8] sm:$0xff]  }
0x1534   :  { %7103 = vmatprep.subr.bf16.mxu1 %v8786_v2 }
0x1537   :  { %7104 = vmatpush3.bf16.msra.mxu1 %v9272_v59 }
0x1538   :  { %7117 = vmatprep.subr.bf16.mxu1 %v8786_v2 }
0x153a   :  { %7106 = vmatmul.mubr.msk.bf16.vlgmr.msra.gmra.mrb[48].mxu1 %vm661_vm9, %v2008_v26 }
0x153b   :  { %7118 = vmatpush3.bf16.msra.mxu1 %v9597_v12  ;;  %7121 = vmatprep.mubr.msk.bf16.mxu1 %vm8787_vm0, %v8786_v2 }
0x153c   :  { %7119 = vmatprep.subr.bf16.mxu1 %v8786_v2 }
0x153f   :  { %7120 = vmatpush3.bf16.msra.mxu1 %v9603_v41 }
0x1540   :  { %7137 = vmatprep.subr.bf16.mxu1 %v8786_v2 }
0x15f5   :  { %v1944_v59 = vpop.f32.mrb[40].mxu1 }
0x15f6   :  { %v7067_v13 = vpop.f32.mrb[41].mxu1 }
0x15f7   :  { %v1947_v14 = vpop.f32.mrb[42].mxu1 }
0x15f8   :  { %v7068_v16 = vpop.f32.mrb[43].mxu1 }
0x1605   :  { %v2091_v34 = vpop.f32.mrb[44].mxu1 }
0x1606   :  { %v2092_v1 = vadd.f32 %v9240_v23, %v2091_v34  ;;  %v7087_v7 = vpop.f32.mrb[45].mxu1 }
0x1607   :  { %v2094_v8 = vpop.f32.mrb[46].mxu1  ;;  %v9650_v7 = vld [vmem:[#allocation18] sm:$0xff]  }
0x1608   :  { %v2097_v3 = vmax.f32 %v2092_v1, 0.0  ;;  %v7088_v18 = vpop.f32.mrb[47].mxu1  ;;  %v9665_v8 = vld [vmem:[#allocation18 + $0x18] sm:$0xff]  }
0x160a   :  { %v2098_v19 = vpack.c.bf16 %v2097_v3, %v2097_v3 }
0x160c   :  { %7098 = vmatmul.mubr.msk.bf16.vlgmr.msra.gmra.mrb[48].mxu0 %vm817_vm10, %v2098_v19 }
0x160d   :  { %v9609_v24 = vpop.f32.mrb[48].mxu1  ;;  %7110 = vmatpush3.bf16.msra.mxu0 %v9270_v58  ;;  %7113 = vmatprep.mubr.msk.bf16.mxu0 %vm8787_vm0, %v8786_v2 }
0x160e   :  { %v7107_v63 = vpop.f32.mrb[49].mxu1  ;;  %7111 = vmatprep.subr.bf16.mxu0 %v8786_v2 }
0x160f   :  { %v2196_v20 = vpop.f32.mrb[50].mxu1 }
0x1610   :  { %v7108_v25 = vpop.f32.mrb[51].mxu1 }
0x1611   :  { %7112 = vmatpush3.bf16.msra.mxu0 %v9278_v60 }
0x1612   :  { %7125 = vmatprep.subr.bf16.mxu0 %v8786_v2 }
0x16df   :  { %v2136_v23 = vpop.f32.mrb[48].mxu0 }
0x16e0   :  { %v2137_v58 = vadd.f32 %v9619_v49, %v2136_v23  ;;  %v7099_v26 = vpop.f32.mrb[49].mxu0 }
0x16e1   :  { %v2139_v61 = vpop.f32.mrb[50].mxu0 }
0x16e2   :  { %v2142_v53 = vmax.f32 %v2137_v58, 0.0  ;;  %v7100_v9 = vpop.f32.mrb[51].mxu0 }
0x16e4   :  { %v2143_v52 = vmul.f32 %v9622_v47, %v2142_v53 }
0x16e6   :  { %v2144_v60 = vsel %vm938_vm11, %v2143_v52, 0.0 }
0x16e7   :  { %2145 = vadd.xlane.f32.xlu0 %v2144_v60 }
0x1774   :  { %v2146_v28 = vpop.xlane.xlu0 %2145 }
0x1775   :  { %v2147_v43 = vadd.f32 %v9257_v42, %v2146_v28  ;;  %v1945_v42 = vadd.f32 %v9361_v35, %v1944_v59 }
0x1777   :  { %v2151_v32 = vadd.f32 %v2149_v10, %v2147_v43  ;;  %v1950_v45 = vadd.f32 %v1945_v42, %v1898_v44 }
0x1779   :  { %v6415_v15 = vmul.f32 -10.0, %v2151_v32  ;;  %v6411_v50 = vmul.f32 -1.442695, %v1950_v45 }
0x177b   :  { %v2154_v21 = vmul.f32 1.442695, %v6415_v15  ;;  %v2304_v15 = vrot.slane %v9227_v17, 2 }
0x177d   :  { %7866 = vpow2.f32 %v2154_v21 }
0x1787   :  { %v7867_v29 = vpop.eup %7866 }
0x1788   :  { %v2156_v22 = vadd.f32 1.0, %v7867_v29 }
0x178a   :  { %7868 = vrcp.f32 %v2156_v22 }
0x178b   :  { %7870 = vpow2.f32 %v6411_v50 }
0x1794   :  { %v9627_v30 = vpop.eup %7868 }
0x1795   :  { %v2272_v33 = vsub.f32 1.0, %v9627_v30  ;;  %v7871_v4 = vpop.eup %7870 }
0x1796   :  { %v1954_v54 = vadd.f32 1.0, %v7871_v4 }
0x1797   :  { %v2286_v37 = vmul.f32 %v2272_v33, %v9531_v55 }
0x1798   :  { %7872 = vrcp.f32 %v1954_v54 }
0x1799   :  { %v9633_v57 = vadd.f32 1.0, %v2286_v37 }
0x179b   :  { %2297 = vperm.xlu1 %7782, %v9633_v57  }
0x179f   :  { %2290 = vperm.xlu1 %7782, %v2286_v37   ;;  %v9690_v37 = vld [vmem:[#allocation22] sm:$0xff]  }
0x17a2   :  { %v7873_v16 = vpop.eup %7872 }
0x17a3   :  { %1958 = vrot.lane.b32.xlu1 %v1945_v42, %s8761_s17  ;;  %v1968_v26 = vsub.f32 1.0, %v7873_v16  ;;  %v1974_v53 = vmul.f32 %v7873_v16, %v9560_v39  ;;  %v9696_v42 = vld [vmem:[#allocation22 + $0x8] sm:$0xff]  }
0x181a   :  { %v2298_v13 = vpop.permute.xlu1 %2297 }
0x181b   :  { %7874 = vrcp.f32 %v2298_v13  ;;  %v9707_v13 = vld [vmem:[#allocation16] ss:$0 sm:$0xff] }
0x181e   :  { %v2291_v55 = vpop.permute.xlu1 %2290 }
0x181f   :  { %v2293_v14 = vmul.f32 %v2291_v55, %v9541_v11  ;;  %v9657_v11 = vld [vmem:[#allocation18 + $0x8] sm:$0xff]  }
0x1821   :  { %v2294_v35 = vadd.f32 %v9186_v62, %v2293_v14 }
0x1822   :  { %v1959_v34 = vpop.permute.xlu1 %1958 }
0x1823   :  { %v1961_v1 = vmul.f32 %v7873_v16, %v1959_v34 }
0x1825   :  { %v7875_v59 = vpop.eup %7874  ;;  %1963 = vrot.lane.b32.xlu1 %v1961_v1, %s8761_s17 }
0x1826   :  { %v9643_v38 = vmul.f32 %v7875_v59, %v2294_v35 }
0x1828   :  { %v2302_v27 = vpack.c.bf16 %v9643_v38, %v9643_v38 }
0x1829   :  { %1979 = vperm.xlu1 %7782, %v1976_v36   ;;  %v9661_v36 = vld [vmem:[#allocation18 + $0x10] sm:$0xff]  }
0x182a   :  { %7122 = vmatmul.mubr.msk.bf16.vlgmr.msra.gmra.mrb[52].mxu1 %vm661_vm9, %v2302_v27 }
0x182b   :  { %7138 = vmatpush3.bf16.msra.mxu1 %v9650_v7  ;;  %7145 = vmatprep.mubr.msk.bf16.mxu1 %vm8787_vm0, %v8786_v2 }
0x182c   :  { %7139 = vmatprep.subr.bf16.mxu1 %v8786_v2 }
0x182d   :  { %1985 = vperm.xlu1 %7782, %v9525_v5  }
0x182f   :  { %7140 = vmatpush3.bf16.msra.mxu1 %v9657_v11 }
0x1830   :  { %7141 = vmatprep.subr.bf16.mxu1 %v8786_v2 }
0x1833   :  { %7142 = vmatpush3.bf16.msra.mxu1 %v9661_v36 }
0x1834   :  { %7143 = vmatprep.subr.bf16.mxu1 %v8786_v2 }
0x1837   :  { %7144 = vmatpush3.bf16.msra.mxu1 %v9665_v8 }
0x1838   :  { %7157 = vmatprep.subr.bf16.mxu1 %v8786_v2 }
0x1897   :  { %v1964_v3 = vpop.permute.xlu1 %1963 }
0x1898   :  { %v1966_v5 = vadd.f32 %v1964_v3, %v1898_v44 }
0x189a   :  { %7876 = vtanh.f32 %v1966_v5 }
0x18a4   :  { %v7877_v18 = vpop.eup %7876 }
0x18a5   :  { %1970 = vrot.lane.b32.xlu1 %v7877_v18, %s8790_s16 }
0x18a8   :  { %v1980_v23 = vpop.permute.xlu1 %1979 }
0x18a9   :  { %v1982_v60 = vmul.f32 %v1980_v23, %v9560_v39 }
0x18ac   :  { %v1986_v58 = vpop.permute.xlu1 %1985 }
0x18fd   :  { %v2343_v19 = vpop.f32.mrb[52].mxu1 }
0x18fe   :  { %v7123_v63 = vpop.f32.mrb[53].mxu1  ;;  %v2344_v21 = vadd.f32 %v2343_v19, %v2304_v15  ;;  %v9719_v19 = vld [vmem:[#allocation25 + $0x8] sm:$0xff]  }
0x18ff   :  { %v2346_v20 = vpop.f32.mrb[54].mxu1  ;;  %v9723_v63 = vld [vmem:[#allocation7] sm:$0x3] }
0x1900   :  { %v7124_v25 = vpop.f32.mrb[55].mxu1  ;;  %v2349_v29 = vmax.f32 %v2344_v21, 0.0 }
0x1902   :  { %v2350_v22 = vpack.c.bf16 %v2349_v29, %v2349_v29 }
0x1917   :  { %v1971_v61 = vpop.permute.xlu1 %1970 }
0x1918   :  { %v1973_v9 = vmul.f32 %v1971_v61, %v1968_v26 }
0x191a   :  { %v1975_v52 = vadd.f32 %v1974_v53, %v1973_v9 }
0x191c   :  { %v1988_v28 = vmul.f32 %v1986_v58, %v1975_v52 }
0x191e   :  { %v9672_v10 = vadd.f32 %v1988_v28, %v1982_v60  ;;  %v9732_v28 = vld [vmem:[#allocation2] ss:$0 sm:$0xff] }
0x1920   :  { %v2199_v43 = vpack.c.bf16 %v9672_v10, %v9672_v10 }
0x1922   :  { %2201 = vrot.lane.b32.xlu0 %v2199_v43, %s8790_s16 }
0x1926   :  { %2445 = vrot.lane.b32.xlu0 %v9723_v63, %s8794_s6 }
0x1994   :  { %v2202_v32 = vpop.permute.xlu0 %2201 }
0x1995   :  { %7114 = vmatmul.mubr.msk.bf16.vlgmr.msra.gmra.mrb[52].mxu0 %vm661_vm9, %v2202_v32 }
0x1996   :  { %7126 = vmatpush3.bf16.msra.mxu0 %v9567_v46  ;;  %7133 = vmatprep.mubr.msk.bf16.mxu0 %vm8787_vm0, %v8786_v2 }
0x1997   :  { %7127 = vmatprep.subr.bf16.mxu0 %v8786_v2 }
0x1998   :  { %v2446_v60 = vpop.permute.xlu0 %2445 }
0x199a   :  { %7128 = vmatpush3.bf16.msra.mxu0 %v9574_v48 }
0x199b   :  { %7129 = vmatprep.subr.bf16.mxu0 %v8786_v2 }
0x199e   :  { %7130 = vmatpush3.bf16.msra.mxu0 %v9580_v56 }
0x199f   :  { %7131 = vmatprep.subr.bf16.mxu0 %v8786_v2 }
0x19a2   :  { %7132 = vmatpush3.bf16.msra.mxu0 %v9585_v31 }
0x19a3   :  { %7149 = vmatprep.subr.bf16.mxu0 %v8786_v2 }
0x19a5   :  { %7134 = vmatmul.mubr.msk.bf16.vlgmr.msra.gmra.mrb[56].mxu0 %vm817_vm10, %v2350_v22 }
0x19a6   :  { %7150 = vmatpush3.bf16.msra.mxu0 %v9690_v37  ;;  %7153 = vmatprep.mubr.msk.bf16.mxu0 %vm8787_vm0, %v8786_v2 }
0x19a7   :  { %7151 = vmatprep.subr.bf16.mxu0 %v8786_v2 }
0x19aa   :  { %7152 = vmatpush3.bf16.msra.mxu0 %v9696_v42 }
0x19ab   :  { %7165 = vmatprep.subr.bf16.mxu0 %v8786_v2 }
0x19ad   :  { %7154 = vmatmul.mubr.msk.bf16.vlgmr.msra.gmra.mrb[60].mxu0 %vm661_vm9, %v2302_v27  ;;  %v9713_v27 = vld [vmem:[#allocation25] sm:$0xff]  }
0x19ae   :  { %7166 = vmatpush3.bf16.msra.mxu0 %v9597_v12  ;;  %7169 = vmatprep.mubr.msk.bf16.mxu0 %vm8787_vm0, %v8786_v2 }
0x19af   :  { %7167 = vmatprep.subr.bf16.mxu0 %v8786_v2 }
0x19b2   :  { %7168 = vmatpush3.bf16.msra.mxu0 %v9603_v41 }
0x19b3   :  { %7185 = vmatprep.subr.bf16.mxu0 %v8786_v2 }
0x1a68   :  { %v2240_v44 = vpop.f32.mrb[52].mxu0 }
0x1a69   :  { %v7115_v45 = vpop.f32.mrb[53].mxu0 }
0x1a6a   :  { %v2243_v50 = vpop.f32.mrb[54].mxu0 }
0x1a6b   :  { %v7116_v4 = vpop.f32.mrb[55].mxu0 }
0x1a78   :  { %v2388_v54 = vpop.f32.mrb[56].mxu0 }
0x1a79   :  { %v2389_v55 = vadd.f32 %v9707_v13, %v2388_v54  ;;  %v7135_v14 = vpop.f32.mrb[57].mxu0  ;;  %v9744_v54 = vld [vmem:[#allocation27] ss:$0 sm:$0xff] }
0x1a7a   :  { %v2391_v16 = vpop.f32.mrb[58].mxu0  ;;  %v9748_v14 = vld [vmem:[#allocation24] ss:$0 sm:$0xff] }
0x1a7b   :  { %v2394_v34 = vmax.f32 %v2389_v55, 0.0  ;;  %v7136_v1 = vpop.f32.mrb[59].mxu0  ;;  %v2241_v55 = vadd.f32 %v9744_v54, %v2240_v44  ;;  %v2194_v16 = vadd.f32 %v9748_v14, %v9609_v24  ;;  %v2592_v44 = vrot.slane %v9186_v62, 2 }
0x1a7d   :  { %v2395_v35 = vpack.c.bf16 %v2394_v34, %v2394_v34  ;;  %v2246_v34 = vadd.f32 %v2241_v55, %v2194_v16 }
0x1a7f   :  { %7146 = vmatmul.mubr.msk.bf16.vlgmr.msra.gmra.mrb[56].mxu1 %vm817_vm10, %v2395_v35  ;;  %v6418_v1 = vmul.f32 -1.442695, %v2246_v34 }
0x1a80   :  { %v9711_v59 = vpop.f32.mrb[60].mxu0  ;;  %7158 = vmatpush3.bf16.msra.mxu1 %v9713_v27  ;;  %7161 = vmatprep.mubr.msk.bf16.mxu1 %vm8787_vm0, %v8786_v2 }
0x1a81   :  { %v7155_v3 = vpop.f32.mrb[61].mxu0  ;;  %7159 = vmatprep.subr.bf16.mxu1 %v8786_v2 }
0x1a82   :  { %v2493_v5 = vpop.f32.mrb[62].mxu0 }
0x1a83   :  { %v7156_v18 = vpop.f32.mrb[63].mxu0 }
0x1a84   :  { %7160 = vmatpush3.bf16.msra.mxu1 %v9719_v19 }
0x1a85   :  { %7173 = vmatprep.subr.bf16.mxu1 %v8786_v2 }
0x1b52   :  { %v2433_v20 = vpop.f32.mrb[56].mxu1 }
0x1b53   :  { %v2434_v25 = vadd.f32 %v9619_v49, %v2433_v20  ;;  %v7147_v23 = vpop.f32.mrb[57].mxu1 }
0x1b54   :  { %v2436_v58 = vpop.f32.mrb[58].mxu1 }
0x1b55   :  { %v2439_v26 = vmax.f32 %v2434_v25, 0.0  ;;  %v7148_v61 = vpop.f32.mrb[59].mxu1 }
0x1b57   :  { %v2440_v53 = vmul.f32 %v9622_v47, %v2439_v26 }
0x1b59   :  { %v2441_v9 = vsel %vm938_vm11, %v2440_v53, 0.0 }
0x1b5a   :  { %2442 = vadd.xlane.f32.xlu1 %v2441_v9 }
0x1b6b   :  { %2275 = vperm.xlu1 %7782, %v2272_v33  }
0x1be7   :  { %v2443_v52 = vpop.xlane.xlu1 %2442 }
0x1be8   :  { %v2444_v43 = vadd.f32 %v9732_v28, %v2443_v52 }
0x1bea   :  { %v2448_v32 = vadd.f32 %v2446_v60, %v2444_v43 }
0x1bec   :  { %v6422_v15 = vmul.f32 -10.0, %v2448_v32 }
0x1bee   :  { %v2451_v21 = vmul.f32 1.442695, %v6422_v15 }
0x1bf0   :  { %7878 = vpow2.f32 %v2451_v21 }
0x1bfa   :  { %v7879_v29 = vpop.eup %7878 }
0x1bfb   :  { %v2453_v22 = vadd.f32 1.0, %v7879_v29 }
0x1bfd   :  { %7880 = vrcp.f32 %v2453_v22 }
0x1bfe   :  { %7882 = vpow2.f32 %v6418_v1 }
0x1c07   :  { %v9735_v45 = vpop.eup %7880 }
0x1c08   :  { %v2569_v50 = vsub.f32 1.0, %v9735_v45 }
0x1c0a   :  { %v2583_v33 = vmul.f32 %v2569_v50, %v9633_v57  ;;  %v7883_v57 = vpop.eup %7882 }
0x1c0b   :  { %v2250_v35 = vadd.f32 1.0, %v7883_v57 }
0x1c0c   :  { %v9741_v4 = vadd.f32 1.0, %v2583_v33 }
0x1c0d   :  { %7884 = vrcp.f32 %v2250_v35 }
0x1c0e   :  { %2597 = vperm.xlu0 %7781, %v9741_v4  }
0x1c12   :  { %2587 = vperm.xlu0 %7781, %v2583_v33   ;;  %v2276_v33 = vpop.permute.xlu1 %2275 }
0x1c13   :  { %v2278_v34 = vmul.f32 %v2276_v33, %v9672_v10 }
0x1c16   :  { %2254 = vrot.lane.b32.xlu0 %v2241_v55, %s8761_s17 }
0x1c17   :  { %v7885_v20 = vpop.eup %7884 }
0x1c18   :  { %v2264_v15 = vsub.f32 1.0, %v7885_v20  ;;  %v2270_v29 = vmul.f32 %v7885_v20, %v9672_v10 }
0x1c8d   :  { %v2598_v3 = vpop.permute.xlu0 %2597 }
0x1c8e   :  { %7886 = vrcp.f32 %v2598_v3  ;;  %v2603_v3 = vrot.slane %v9227_v17, 4 }
0x1c91   :  { %v2588_v5 = vpop.permute.xlu0 %2587 }
0x1c92   :  { %v2590_v18 = vmul.f32 %v2588_v5, %v9643_v38 }
0x1c94   :  { %v2594_v58 = vadd.f32 %v2592_v44, %v2590_v18 }
0x1c95   :  { %v2255_v25 = vpop.permute.xlu0 %2254 }
0x1c96   :  { %v2257_v23 = vmul.f32 %v7885_v20, %v2255_v25 }
0x1c98   :  { %v7887_v26 = vpop.eup %7886  ;;  %2259 = vrot.lane.b32.xlu0 %v2257_v23, %s8761_s17 }
0x1c99   :  { %v9755_v24 = vmul.f32 %v7887_v26, %v2594_v58 }
0x1c9b   :  { %v2602_v61 = vpack.c.bf16 %v9755_v24, %v9755_v24 }
0x1c9c   :  { %2281 = vperm.xlu0 %7781, %v9627_v30  }
0x1c9d   :  { %7170 = vmatmul.mubr.msk.bf16.vlgmr.msra.gmra.mrb[64].mxu0 %vm661_vm9, %v2602_v61 }
0x1c9e   :  { %7186 = vmatpush3.bf16.msra.mxu0 %v9650_v7  ;;  %7193 = vmatprep.mubr.msk.bf16.mxu0 %vm8787_vm0, %v8786_v2 }
0x1c9f   :  { %7187 = vmatprep.subr.bf16.mxu0 %v8786_v2 }
0x1ca2   :  { %7188 = vmatpush3.bf16.msra.mxu0 %v9657_v11 }
0x1ca3   :  { %7189 = vmatprep.subr.bf16.mxu0 %v8786_v2 }
0x1ca6   :  { %7190 = vmatpush3.bf16.msra.mxu0 %v9661_v36 }
0x1ca7   :  { %7191 = vmatprep.subr.bf16.mxu0 %v8786_v2 }
0x1caa   :  { %7192 = vmatpush3.bf16.msra.mxu0 %v9665_v8 }
0x1cab   :  { %7205 = vmatprep.subr.bf16.mxu0 %v8786_v2 }
0x1d0a   :  { %v2260_v30 = vpop.permute.xlu0 %2259 }
0x1d0b   :  { %v2262_v38 = vadd.f32 %v2260_v30, %v2194_v16 }
0x1d0d   :  { %7888 = vtanh.f32 %v2262_v38 }
0x1d17   :  { %v7889_v53 = vpop.eup %7888 }
0x1d18   :  { %2266 = vrot.lane.b32.xlu0 %v7889_v53, %s8790_s16 }
0x1d1b   :  { %v2282_v32 = vpop.permute.xlu0 %2281 }
0x1d70   :  { %v2642_v9 = vpop.f32.mrb[64].mxu0 }
0x1d71   :  { %v7171_v52 = vpop.f32.mrb[65].mxu0  ;;  %v2643_v5 = vadd.f32 %v2642_v9, %v2603_v3 }
0x1d72   :  { %v2645_v60 = vpop.f32.mrb[66].mxu0 }
0x1d73   :  { %v7172_v43 = vpop.f32.mrb[67].mxu0  ;;  %v2648_v18 = vmax.f32 %v2643_v5, 0.0 }
0x1d75   :  { %v2649_v20 = vpack.c.bf16 %v2648_v18, %v2648_v18 }
0x1d8a   :  { %v2267_v21 = vpop.permute.xlu0 %2266 }
0x1d8b   :  { %v2269_v22 = vmul.f32 %v2267_v21, %v2264_v15  ;;  %v2491_v15 = vadd.f32 %v9748_v14, %v9711_v59 }
0x1d8d   :  { %v2271_v55 = vadd.f32 %v2270_v29, %v2269_v22 }
0x1d8f   :  { %v2284_v1 = vmul.f32 %v2282_v32, %v2271_v55 }
0x1d91   :  { %v9774_v16 = vadd.f32 %v2284_v1, %v2278_v34 }
0x1d93   :  { %v2496_v57 = vpack.c.bf16 %v9774_v16, %v9774_v16 }
0x1d95   :  { %2498 = vrot.lane.b32.xlu0 %v2496_v57, %s8790_s16 }
0x1e07   :  { %v2499_v35 = vpop.permute.xlu0 %2498 }
0x1e08   :  { %7162 = vmatmul.mubr.msk.bf16.vlgmr.msra.gmra.mrb[60].mxu1 %vm661_vm9, %v2499_v35 }
0x1e09   :  { %7174 = vmatpush3.bf16.msra.mxu1 %v9567_v46  ;;  %7181 = vmatprep.mubr.msk.bf16.mxu1 %vm8787_vm0, %v8786_v2 }
0x1e0a   :  { %7175 = vmatprep.subr.bf16.mxu1 %v8786_v2 }
0x1e0d   :  { %7176 = vmatpush3.bf16.msra.mxu1 %v9574_v48 }
0x1e0e   :  { %7177 = vmatprep.subr.bf16.mxu1 %v8786_v2 }
0x1e11   :  { %7178 = vmatpush3.bf16.msra.mxu1 %v9580_v56 }
0x1e12   :  { %7179 = vmatprep.subr.bf16.mxu1 %v8786_v2 }
0x1e15   :  { %7180 = vmatpush3.bf16.msra.mxu1 %v9585_v31 }
0x1e16   :  { %7197 = vmatprep.subr.bf16.mxu1 %v8786_v2 }
0x1e18   :  { %7182 = vmatmul.mubr.msk.bf16.vlgmr.msra.gmra.mrb[64].mxu1 %vm817_vm10, %v2649_v20 }
0x1e19   :  { %7198 = vmatpush3.bf16.msra.mxu1 %v9690_v37  ;;  %7201 = vmatprep.mubr.msk.bf16.mxu1 %vm8787_vm0, %v8786_v2 }
0x1e1a   :  { %7199 = vmatprep.subr.bf16.mxu1 %v8786_v2 }
0x1e1d   :  { %7200 = vmatpush3.bf16.msra.mxu1 %v9696_v42 }
0x1e1e   :  { %7213 = vmatprep.subr.bf16.mxu1 %v8786_v2 }
0x1e20   :  { %7202 = vmatmul.mubr.msk.bf16.vlgmr.msra.gmra.mrb[68].mxu1 %vm661_vm9, %v2602_v61 }
0x1e21   :  { %7214 = vmatpush3.bf16.msra.mxu1 %v9597_v12  ;;  %7217 = vmatprep.mubr.msk.bf16.mxu1 %vm8787_vm0, %v8786_v2 }
0x1e22   :  { %7215 = vmatprep.subr.bf16.mxu1 %v8786_v2 }
0x1e25   :  { %7216 = vmatpush3.bf16.msra.mxu1 %v9603_v41 }
0x1e26   :  { %7233 = vmatprep.subr.bf16.mxu1 %v8786_v2 }
0x1edb   :  { %v2537_v44 = vpop.f32.mrb[60].mxu1 }
0x1edc   :  { %v2538_v25 = vadd.f32 %v9744_v54, %v2537_v44  ;;  %v7163_v23 = vpop.f32.mrb[61].mxu1 }
0x1edd   :  { %v2540_v58 = vpop.f32.mrb[62].mxu1 }
0x1ede   :  { %2551 = vrot.lane.b32.xlu0 %v2538_v25, %s8761_s17  ;;  %v7164_v26 = vpop.f32.mrb[63].mxu1  ;;  %v2543_v21 = vadd.f32 %v2538_v25, %v2491_v15 }
0x1ee0   :  { %v6425_v29 = vmul.f32 -1.442695, %v2543_v21 }
0x1ee2   :  { %7890 = vpow2.f32 %v6425_v29 }
0x1eeb   :  { %v2687_v61 = vpop.f32.mrb[64].mxu1 }
0x1eec   :  { %v2688_v12 = vadd.f32 %v9707_v13, %v2687_v61  ;;  %v7183_v30 = vpop.f32.mrb[65].mxu1  ;;  %v7891_v22 = vpop.eup %7890 }
0x1eed   :  { %v2690_v38 = vpop.f32.mrb[66].mxu1  ;;  %v2547_v33 = vadd.f32 1.0, %v7891_v22 }
0x1eee   :  { %v2693_v53 = vmax.f32 %v2688_v12, 0.0  ;;  %v7184_v9 = vpop.f32.mrb[67].mxu1 }
0x1eef   :  { %7892 = vrcp.f32 %v2547_v33 }
0x1ef0   :  { %v2694_v52 = vpack.c.bf16 %v2693_v53, %v2693_v53 }
0x1ef2   :  { %7194 = vmatmul.mubr.msk.bf16.vlgmr.msra.gmra.mrb[68].mxu0 %vm817_vm10, %v2694_v52 }
0x1ef3   :  { %v9809_v41 = vpop.f32.mrb[68].mxu1  ;;  %7206 = vmatpush3.bf16.msra.mxu0 %v9713_v27  ;;  %7209 = vmatprep.mubr.msk.bf16.mxu0 %vm8787_vm0, %v8786_v2 }
0x1ef4   :  { %v7203_v60 = vpop.f32.mrb[69].mxu1  ;;  %7207 = vmatprep.subr.bf16.mxu0 %v8786_v2 }
0x1ef5   :  { %v2792_v43 = vpop.f32.mrb[70].mxu1 }
0x1ef6   :  { %v7204_v32 = vpop.f32.mrb[71].mxu1 }
0x1ef7   :  { %7208 = vmatpush3.bf16.msra.mxu0 %v9719_v19 }
0x1ef8   :  { %7221 = vmatprep.subr.bf16.mxu0 %v8786_v2 }
0x1ef9   :  { %v7893_v55 = vpop.eup %7892 }
0x1efa   :  { %v2561_v61 = vsub.f32 1.0, %v7893_v55  ;;  %v2567_v30 = vmul.f32 %v7893_v55, %v9774_v16 }
0x1f50   :  { %v2552_v34 = vpop.permute.xlu0 %2551 }
0x1f51   :  { %v2554_v1 = vmul.f32 %v7893_v55, %v2552_v34 }
0x1f53   :  { %2556 = vrot.lane.b32.xlu1 %v2554_v1, %s8761_s17 }
0x1f57   :  { %2744 = vrot.lane.b32.xlu1 %v9723_v63, %s8795_s1 }
0x1f5b   :  { %2572 = vperm.xlu1 %7782, %v2569_v50  }
0x1f5f   :  { %2578 = vperm.xlu1 %7782, %v9735_v45  }
0x1fc5   :  { %v2732_v59 = vpop.f32.mrb[68].mxu0  ;;  %v2557_v57 = vpop.permute.xlu1 %2556 }
0x1fc6   :  { %v2733_v35 = vadd.f32 %v9619_v49, %v2732_v59  ;;  %v2559_v3 = vadd.f32 %v2557_v57, %v2491_v15  ;;  %v7195_v5 = vpop.f32.mrb[69].mxu0 }
0x1fc7   :  { %v2735_v18 = vpop.f32.mrb[70].mxu0  ;;  %v2890_v5 = vrot.slane %v9186_v62, 4 }
0x1fc8   :  { %v2738_v20 = vmax.f32 %v2733_v35, 0.0  ;;  %7894 = vtanh.f32 %v2559_v3  ;;  %v7196_v44 = vpop.f32.mrb[71].mxu0 }
0x1fc9   :  { %v2745_v50 = vpop.permute.xlu1 %2744 }
0x1fca   :  { %v2739_v25 = vmul.f32 %v9622_v47, %v2738_v20 }
0x1fcc   :  { %v2740_v23 = vsel %vm938_vm11, %v2739_v25, 0.0 }
0x1fcd   :  { %2741 = vadd.xlane.f32.xlu0 %v2740_v23 }
0x1fd2   :  { %v7895_v58 = vpop.eup %7894 }
0x1fd3   :  { %2563 = vrot.lane.b32.xlu1 %v7895_v58, %s8790_s16 }
0x1fda   :  { %v2573_v45 = vpop.permute.xlu1 %2572 }
0x1fdb   :  { %v2575_v9 = vmul.f32 %v2573_v45, %v9774_v16 }
0x1fde   :  { %v2579_v26 = vpop.permute.xlu1 %2578 }
0x2045   :  { %v2564_v12 = vpop.permute.xlu1 %2563 }
0x2046   :  { %v2566_v38 = vmul.f32 %v2564_v12, %v2561_v61 }
0x2048   :  { %v2568_v53 = vadd.f32 %v2567_v30, %v2566_v38 }
0x204a   :  { %v2581_v52 = vmul.f32 %v2579_v26, %v2568_v53 }
0x204c   :  { %v9831_v60 = vadd.f32 %v2581_v52, %v2575_v9 }
0x204e   :  { %v2795_v43 = vpack.c.bf16 %v9831_v60, %v9831_v60 }
0x2050   :  { %2797 = vrot.lane.b32.xlu1 %v2795_v43, %s8790_s16 }
0x205a   :  { %v2742_v32 = vpop.xlane.xlu0 %2741 }
0x205b   :  { %v2743_v15 = vadd.f32 %v9732_v28, %v2742_v32 }
0x205d   :  { %v2747_v21 = vadd.f32 %v2745_v50, %v2743_v15 }
0x205f   :  { %v6429_v29 = vmul.f32 -10.0, %v2747_v21 }
0x2061   :  { %v2750_v22 = vmul.f32 1.442695, %v6429_v29 }
0x2063   :  { %7896 = vpow2.f32 %v2750_v22 }
0x206d   :  { %v7897_v33 = vpop.eup %7896 }
0x206e   :  { %v2752_v55 = vadd.f32 1.0, %v7897_v33 }
0x2070   :  { %7898 = vrcp.f32 %v2752_v55 }
0x207a   :  { %v7899_v34 = vpop.eup %7898 }
0x207b   :  { %v2868_v1 = vsub.f32 1.0, %v7899_v34 }
0x207d   :  { %v2882_v59 = vmul.f32 %v2868_v1, %v9741_v4 }
0x207f   :  { %v9838_v57 = vadd.f32 1.0, %v2882_v59 }
0x2081   :  { %2895 = vperm.xlu1 %7782, %v9838_v57  }
0x2085   :  { %2886 = vperm.xlu1 %7782, %v2882_v59  }
0x20c2   :  { %v2798_v35 = vpop.permute.xlu1 %2797 }
0x20c3   :  { %7210 = vmatmul.mubr.msk.bf16.vlgmr.msra.gmra.mrb[72].mxu0 %vm661_vm9, %v2798_v35 }
0x20c4   :  { %7222 = vmatpush3.bf16.msra.mxu0 %v9567_v46  ;;  %7229 = vmatprep.mubr.msk.bf16.mxu0 %vm8787_vm0, %v8786_v2 }
0x20c5   :  { %7223 = vmatprep.subr.bf16.mxu0 %v8786_v2 }
0x20c8   :  { %7224 = vmatpush3.bf16.msra.mxu0 %v9574_v48 }
0x20c9   :  { %7225 = vmatprep.subr.bf16.mxu0 %v8786_v2 }
0x20cc   :  { %7226 = vmatpush3.bf16.msra.mxu0 %v9580_v56 }
0x20cd   :  { %7227 = vmatprep.subr.bf16.mxu0 %v8786_v2 }
0x20d0   :  { %7228 = vmatpush3.bf16.msra.mxu0 %v9585_v31 }
0x20d1   :  { %7245 = vmatprep.subr.bf16.mxu0 %v8786_v2 }
0x2100   :  { %v2896_v4 = vpop.permute.xlu1 %2895 }
0x2101   :  { %7900 = vrcp.f32 %v2896_v4 }
0x2104   :  { %v2887_v46 = vpop.permute.xlu1 %2886 }
0x2105   :  { %v2889_v3 = vmul.f32 %v2887_v46, %v9755_v24 }
0x2107   :  { %v2892_v18 = vadd.f32 %v2890_v5, %v2889_v3 }
0x210b   :  { %v7901_v20 = vpop.eup %7900 }
0x210c   :  { %v9854_v48 = vmul.f32 %v7901_v20, %v2892_v18 }
0x210e   :  { %v2900_v56 = vpack.c.bf16 %v9854_v48, %v9854_v48 }
0x2110   :  { %7218 = vmatmul.mubr.msk.bf16.vlgmr.msra.gmra.mrb[72].mxu1 %vm661_vm9, %v2900_v56 }
0x2111   :  { %7234 = vmatpush3.bf16.msra.mxu1 %v9650_v7  ;;  %7241 = vmatprep.mubr.msk.bf16.mxu1 %vm8787_vm0, %v8786_v2 }
0x2112   :  { %7235 = vmatprep.subr.bf16.mxu1 %v8786_v2 }
0x2115   :  { %7236 = vmatpush3.bf16.msra.mxu1 %v9657_v11  ;;  %v2901_v11 = vrot.slane %v9227_v17, 6 }
0x2116   :  { %7237 = vmatprep.subr.bf16.mxu1 %v8786_v2 }
0x2119   :  { %7238 = vmatpush3.bf16.msra.mxu1 %v9661_v36 }
0x211a   :  { %7239 = vmatprep.subr.bf16.mxu1 %v8786_v2 }
0x211d   :  { %7240 = vmatpush3.bf16.msra.mxu1 %v9665_v8  ;;  %v2790_v8 = vadd.f32 %v9748_v14, %v9809_v41 }
0x211e   :  { %7253 = vmatprep.subr.bf16.mxu1 %v8786_v2 }
0x2196   :  { %v2836_v31 = vpop.f32.mrb[72].mxu0 }
0x2197   :  { %v2837_v7 = vadd.f32 %v9744_v54, %v2836_v31  ;;  %v7211_v24 = vpop.f32.mrb[73].mxu0 }
0x2198   :  { %v2839_v44 = vpop.f32.mrb[74].mxu0 }
0x2199   :  { %2850 = vrot.lane.b32.xlu1 %v2837_v7, %s8761_s17  ;;  %v7212_v25 = vpop.f32.mrb[75].mxu0  ;;  %v2842_v61 = vadd.f32 %v2837_v7, %v2790_v8 }
0x219b   :  { %v6432_v30 = vmul.f32 -1.442695, %v2842_v61 }
0x219d   :  { %2871 = vperm.xlu1 %7782, %v2868_v1   ;;  %7902 = vpow2.f32 %v6432_v30 }
0x21a1   :  { %2877 = vperm.xlu1 %7782, %v7899_v34  }
0x21a7   :  { %v7903_v17 = vpop.eup %7902 }
0x21a8   :  { %v2846_v41 = vadd.f32 1.0, %v7903_v17 }
0x21aa   :  { %7904 = vrcp.f32 %v2846_v41 }
0x21b4   :  { %v7905_v38 = vpop.eup %7904 }
0x21b5   :  { %v2860_v4 = vsub.f32 1.0, %v7905_v38  ;;  %v2866_v3 = vmul.f32 %v7905_v38, %v9831_v60 }
0x21e3   :  { %v2940_v23 = vpop.f32.mrb[72].mxu1 }
0x21e4   :  { %v2941_v36 = vadd.f32 %v2940_v23, %v2901_v11  ;;  %v7219_v58 = vpop.f32.mrb[73].mxu1 }
0x21e5   :  { %v2943_v50 = vpop.f32.mrb[74].mxu1 }
0x21e6   :  { %v2946_v45 = vmax.f32 %v2941_v36, 0.0  ;;  %v7220_v26 = vpop.f32.mrb[75].mxu1 }
0x21e8   :  { %v2947_v12 = vpack.c.bf16 %v2946_v45, %v2946_v45 }
0x21ea   :  { %7230 = vmatmul.mubr.msk.bf16.vlgmr.msra.gmra.mrb[76].mxu0 %vm817_vm10, %v2947_v12 }
0x21eb   :  { %7246 = vmatpush3.bf16.msra.mxu0 %v9690_v37  ;;  %7249 = vmatprep.mubr.msk.bf16.mxu0 %vm8787_vm0, %v8786_v2 }
0x21ec   :  { %7247 = vmatprep.subr.bf16.mxu0 %v8786_v2 }
0x21ef   :  { %7248 = vmatpush3.bf16.msra.mxu0 %v9696_v42 }
0x21f0   :  { %7261 = vmatprep.subr.bf16.mxu0 %v8786_v2 }
0x21f2   :  { %7250 = vmatmul.mubr.msk.bf16.vlgmr.msra.gmra.mrb[80].mxu0 %vm661_vm9, %v2900_v56 }
0x21f3   :  { %7262 = vmatpush3.bf16.msra.mxu0 %v9690_v37  ;;  %7265 = vmatprep.mubr.msk.bf16.mxu0 %vm8787_vm0, %v8786_v2 }
0x21f4   :  { %7263 = vmatprep.subr.bf16.mxu0 %v8786_v2 }
0x21f7   :  { %7264 = vmatpush3.bf16.msra.mxu0 %v9696_v42 }
0x21f8   :  { %7277 = vmatprep.subr.bf16.mxu0 %v8786_v2 }
0x220b   :  { %v2851_v53 = vpop.permute.xlu1 %2850 }
0x220c   :  { %v2853_v9 = vmul.f32 %v7905_v38, %v2851_v53 }
0x220e   :  { %2855 = vrot.lane.b32.xlu0 %v2853_v9, %s8761_s17 }
0x2280   :  { %v2856_v52 = vpop.permute.xlu0 %2855 }
0x2281   :  { %v2858_v43 = vadd.f32 %v2856_v52, %v2790_v8 }
0x2283   :  { %7906 = vtanh.f32 %v2858_v43 }
0x228d   :  { %v7907_v37 = vpop.eup %7906 }
0x228e   :  { %2862 = vrot.lane.b32.xlu1 %v7907_v37, %s8790_s16 }
0x22bd   :  { %v2985_v32 = vpop.f32.mrb[76].mxu0 }
0x22be   :  { %v2986_v15 = vadd.f32 %v9707_v13, %v2985_v32  ;;  %v7231_v42 = vpop.f32.mrb[77].mxu0  ;;  %v2872_v13 = vpop.permute.xlu1 %2871 }
0x22bf   :  { %v2988_v21 = vpop.f32.mrb[78].mxu0  ;;  %v2874_v20 = vmul.f32 %v2872_v13, %v9831_v60 }
0x22c0   :  { %v2991_v29 = vmax.f32 %v2986_v15, 0.0  ;;  %v7232_v22 = vpop.f32.mrb[79].mxu0 }
0x22c2   :  { %v2992_v33 = vpack.c.bf16 %v2991_v29, %v2991_v29  ;;  %v2878_v35 = vpop.permute.xlu1 %2877 }
0x22c4   :  { %7242 = vmatmul.mubr.msk.bf16.vlgmr.msra.gmra.mrb[76].mxu1 %vm817_vm10, %v2992_v33 }
0x22c5   :  { %v3087_v55 = vpop.f32.mrb[80].mxu0  ;;  %7254 = vmatpush3.bf16.msra.mxu1 %v9713_v27  ;;  %7257 = vmatprep.mubr.msk.bf16.mxu1 %vm8787_vm0, %v8786_v2 }
0x22c6   :  { %v7251_v34 = vpop.f32.mrb[81].mxu0  ;;  %7255 = vmatprep.subr.bf16.mxu1 %v8786_v2 }
0x22c7   :  { %v3090_v1 = vpop.f32.mrb[82].mxu0 }
0x22c8   :  { %v7252_v59 = vpop.f32.mrb[83].mxu0 }
0x22c9   :  { %7256 = vmatpush3.bf16.msra.mxu1 %v9719_v19 }
0x22ca   :  { %7269 = vmatprep.subr.bf16.mxu1 %v8786_v2 }
0x2300   :  { %v2863_v46 = vpop.permute.xlu1 %2862 }
0x2301   :  { %v2865_v5 = vmul.f32 %v2863_v46, %v2860_v4 }
0x2303   :  { %v2867_v18 = vadd.f32 %v2866_v3, %v2865_v5 }
0x2305   :  { %v2880_v56 = vmul.f32 %v2878_v35, %v2867_v18 }
0x2307   :  { %v9900_v31 = vadd.f32 %v2880_v56, %v2874_v20  ;;  %v3316_v20 = vrot.slane %v9477_v6, 6  ;;  %v3319_v56 = vrot.slane %v9560_v39, 4 }
0x2309   :  { %v3093_v7 = vpack.c.bf16 %v9900_v31, %v9900_v31 }
0x230b   :  { %3095 = vrot.lane.b32.xlu1 %v3093_v7, %s8790_s16  ;;  %v3328_v7 = vrot.slane %v9900_v31, 4 }
0x237d   :  { %v3096_v24 = vpop.permute.xlu1 %3095 }
0x237e   :  { %7258 = vmatmul.mubr.msk.bf16.vlgmr.msra.gmra.mrb[80].mxu1 %vm661_vm9, %v3096_v24 }
0x237f   :  { %7270 = vmatpush3.bf16.msra.mxu1 %v9713_v27  ;;  %7273 = vmatprep.mubr.msk.bf16.mxu1 %vm8787_vm0, %v8786_v2 }
0x2380   :  { %7271 = vmatprep.subr.bf16.mxu1 %v8786_v2 }
0x2383   :  { %7272 = vmatpush3.bf16.msra.mxu1 %v9719_v19 }
0x2384   :  { %7285 = vmatprep.subr.bf16.mxu1 %v8786_v2 }
0x2397   :  { %v3030_v44 = vpop.f32.mrb[76].mxu1 }
0x2398   :  { %v3031_v25 = vadd.f32 %v9619_v49, %v3030_v44  ;;  %v7243_v11 = vpop.f32.mrb[77].mxu1  ;;  %v3088_v49 = vadd.f32 %v9748_v14, %v3087_v55  ;;  %v3322_v44 = vrot.slane %v9672_v10, 2 }
0x2399   :  { %v3033_v23 = vpop.f32.mrb[78].mxu1 }
0x239a   :  { %v3036_v36 = vmax.f32 %v3031_v25, 0.0  ;;  %v7244_v58 = vpop.f32.mrb[79].mxu1  ;;  %v3333_v23 = vsel %vm530_vm5, %v9393_v40, %v3316_v20 }
0x239c   :  { %v3037_v50 = vmul.f32 %v9622_v47, %v3036_v36 }
0x239e   :  { %v3038_v27 = vsel %vm938_vm11, %v3037_v50, 0.0 }
0x239f   :  { %3039 = vadd.xlane.f32.xlu0 %v3038_v27 }
0x242c   :  { %v3040_v38 = vpop.xlane.xlu0 %3039 }
0x242d   :  { %v3041_v52 = vadd.f32 %v9732_v28, %v3040_v38 }
0x2451   :  { %v3134_v8 = vpop.f32.mrb[80].mxu1 }
0x2452   :  { %v3135_v45 = vadd.f32 %v9744_v54, %v3134_v8  ;;  %v7259_v26 = vpop.f32.mrb[81].mxu1 }
0x2453   :  { %v3137_v61 = vpop.f32.mrb[82].mxu1  ;;  %v7800_v26 = vld [vmem:[#allocation30] sm:$0xff]  }
0x2454   :  { %3148 = vrot.lane.b32.xlu1 %v3135_v45, %s8761_s17  ;;  %v7260_v19 = vpop.f32.mrb[83].mxu1  ;;  %v3140_v12 = vadd.f32 %v3135_v45, %v3088_v49 }
0x2455   :  { %v7801_v19 = vld [vmem:[#allocation30 + $0x8] sm:$0xff]  }
0x2456   :  { %v6439_v30 = vmul.f32 -1.442695, %v3140_v12 }
0x2458   :  { %3042 = vrot.lane.b32.xlu1 %v9723_v63, %s8796_s20  ;;  %7908 = vpow2.f32 %v6439_v30  ;;  %v9965_v30 = vld [vmem:[#allocation31] sm:$0xff]  }
0x2462   :  { %v7909_v47 = vpop.eup %7908 }
0x2463   :  { %v3144_v17 = vadd.f32 1.0, %v7909_v47  ;;  %v7804_v47 = vld [vmem:[#allocation33] sm:$0xff]  }
0x2465   :  { %7910 = vrcp.f32 %v3144_v17  ;;  %v9968_v17 = vld [vmem:[#allocation31 + $0x8] sm:$0xff]  }
0x246f   :  { %v7911_v41 = vpop.eup %7910 }
0x2470   :  { %v3158_v13 = vsub.f32 1.0, %v7911_v41  ;;  %v3164_v4 = vmul.f32 %v7911_v41, %v9900_v31 }
0x24c6   :  { %v3149_v53 = vpop.permute.xlu1 %3148 }
0x24c7   :  { %v3151_v9 = vmul.f32 %v7911_v41, %v3149_v53  ;;  %v7806_v41 = vld [vmem:[#allocation33 + $0x8] sm:$0xff]  }
0x24c9   :  { %3153 = vrot.lane.b32.xlu1 %v3151_v9, %s8761_s17 }
0x24ca   :  { %v3043_v43 = vpop.permute.xlu1 %3042 }
0x24cb   :  { %v3045_v37 = vadd.f32 %v3043_v43, %v3041_v52 }
0x24cd   :  { %v6436_v32 = vmul.f32 -10.0, %v3045_v37 }
0x24cf   :  { %v3048_v63 = vmul.f32 1.442695, %v6436_v32 }
0x24d1   :  { %7912 = vpow2.f32 %v3048_v63 }
0x24db   :  { %v7913_v15 = vpop.eup %7912 }
0x24dc   :  { %v3050_v42 = vadd.f32 1.0, %v7913_v15 }
0x24de   :  { %7914 = vrcp.f32 %v3050_v42 }
0x24e8   :  { %v7915_v21 = vpop.eup %7914 }
0x24e9   :  { %3175 = vperm.xlu1 %7782, %v7915_v21   ;;  %v3166_v29 = vsub.f32 1.0, %v7915_v21 }
0x24eb   :  { %v3180_v55 = vmul.f32 %v3166_v29, %v9838_v57  ;;  %v3325_v57 = vrot.slane %v9831_v60, 6  ;;  %v3334_v60 = vsel %vm532_vm6, %v3333_v23, %v3319_v56  ;;  %v6450_v23 = vld [vmem:[#allocation34] ss:$0 sm:$0xff] }
0x24ed   :  { %3169 = vperm.xlu1 %7782, %v3166_v29   ;;  %v3181_v34 = vadd.f32 1.0, %v3180_v55  ;;  %v3336_v6 = vsel %vm530_vm5, %v9774_v16, %v3325_v57  ;;  %v3188_v16 = vrot.slane %v9186_v62, 6  ;;  %v7803_v62 = vld [vmem:[#allocation28 + $0x8] sm:$0xff]   ;;  %v6449_v29 = vld [vmem:[%s10868_s24] ss:$0 sm:$0xff] }
0x24ee   :  { %v3337_v39 = vsel %vm532_vm6, %v3336_v6, %v3328_v7  ;;  %v10003_v57 = vld [vmem:[%s10869_s25 + $0x10] sm:$0xff]  }
0x253b   :  { %v3154_v22 = vpop.permute.xlu1 %3153 }
0x253c   :  { %v3156_v33 = vadd.f32 %v3154_v22, %v3088_v49 }
0x253e   :  { %7916 = vtanh.f32 %v3156_v33 }
0x2548   :  { %v7917_v28 = vpop.eup %7916 }
0x2549   :  { %3160 = vrot.lane.b32.xlu1 %v7917_v28, %s8790_s16 }
0x254d   :  { %3193 = vperm.xlu1 %7782, %v3181_v34  }
0x2551   :  { %3184 = vperm.xlu1 %7782, %v3180_v55  }
0x2568   :  { %v3176_v1 = vpop.permute.xlu1 %3175 }
0x256c   :  { %v3170_v59 = vpop.permute.xlu1 %3169 }
0x256d   :  { %v3172_v5 = vmul.f32 %v3170_v59, %v9900_v31  ;;  %v3335_v31 = vsel %vm534_vm7, %v3334_v60, %v3322_v44  ;;  %v10008_v44 = vld [vmem:[%s10869_s25 + $0x18] sm:$0xff]  }
0x25bb   :  { %v3161_v35 = vpop.permute.xlu1 %3160 }
0x25bc   :  { %v3163_v46 = vmul.f32 %v3161_v35, %v3158_v13 }
0x25be   :  { %v3165_v3 = vadd.f32 %v3164_v4, %v3163_v46  ;;  %v9988_v46 = vld [vmem:[%s10869_s25] sm:$0xff]  }
0x25c0   :  { %v3178_v18 = vmul.f32 %v3176_v1, %v3165_v3 }
0x25c2   :  { %v9930_v24 = vadd.f32 %v3178_v18, %v3172_v5  ;;  %v9995_v5 = vld [vmem:[%s10869_s25 + $0x8] sm:$0xff]  }
0x25c4   :  { %v3242_v25 = vpack.c.bf16 %v9930_v24, %v9930_v24  ;;  %v3331_v11 = vrot.slane %v9930_v24, 2 }
0x25c6   :  { %3244 = vrot.lane.b32.xlu1 %v3242_v25, %s8790_s16  ;;  %v3338_v10 = vsel %vm534_vm7, %v3337_v39, %v3331_v11  ;;  %v10013_v25 = vld [vmem:[%s10870_s2] sm:$0xff]   ;;  %v10017_v11 = vld [vmem:[%s10870_s2 + $0x8] sm:$0xff]  }
0x25c7   :  { %v3389_v36 = vpack.c.bf16 %v3338_v10, %v3335_v31 }
0x25c9   :  { %3391 = vrot.lane.b32.xlu0 %v3389_v36, %s8790_s16 }
0x25cc   :  { %v3194_v58 = vpop.permute.xlu1 %3193 }
0x25cd   :  { %7918 = vrcp.f32 %v3194_v58 }
0x25d0   :  { %v3185_v50 = vpop.permute.xlu1 %3184 }
0x25d1   :  { %v3187_v40 = vmul.f32 %v3185_v50, %v9854_v48  ;;  %v7802_v48 = vld [vmem:[#allocation28] sm:$0xff]  }
0x25d3   :  { %v3190_v27 = vadd.f32 %v3188_v16, %v3187_v40  ;;  %v10031_v16 = vld [vmem:[%s10870_s2 + $0x10] sm:$0xff]  }
0x25d7   :  { %v7919_v8 = vpop.eup %7918 }
0x25d8   :  { %v3197_v45 = vmul.f32 %v7919_v8, %v3190_v27  ;;  %v10036_v27 = vld [vmem:[%s10870_s2 + $0x18] sm:$0xff]   ;;  %v10040_v8 = vld [vmem:[#allocation36] ss:$0 sm:$0xff] }
0x25da   :  { %v3198_v61 = vpack.c.bf16 %v3197_v45, %v3197_v45 }
0x25dc   :  { %7266 = vmatmul.mubr.msk.bf16.vlgmr.msra.gmra.mrb[84].mxu0 %vm661_vm9, %v3198_v61 }
0x25dd   :  { %7278 = vmatpush3.bf16.msra.mxu0 %v7800_v26  ;;  %7281 = vmatprep.mubr.msk.bf16.mxu0 %vm8787_vm0, %v8786_v2 }
0x25de   :  { %7279 = vmatprep.subr.bf16.mxu0 %v8786_v2 }
0x25e1   :  { %7280 = vmatpush3.bf16.msra.mxu0 %v7801_v19 }
0x25e2   :  { %7293 = vmatprep.subr.bf16.mxu0 %v8786_v2 }
0x2638   :  { %v3245_v49 = vpop.permute.xlu1 %3244 }
0x2639   :  { %7274 = vmatmul.mubr.msk.bf16.vlgmr.msra.gmra.mrb[84].mxu1 %vm661_vm9, %v3245_v49 }
0x263a   :  { %7286 = vmatpush3.bf16.msra.mxu1 %v7802_v48  ;;  %7289 = vmatprep.mubr.msk.bf16.mxu1 %vm8787_vm0, %v8786_v2 }
0x263b   :  { %v3392_v12 = vpop.permute.xlu0 %3391  ;;  %7287 = vmatprep.subr.bf16.mxu1 %v8786_v2 }
0x263c   :  { %7282 = vmatmul.mubr.msk.bf16.vlgmr.msra.gmra.mrb[88].mxu0 %vm661_vm9, %v3392_v12  ;;  %v10046_v12 = vld [vmem:[#allocation37] ss:$0 sm:$0xff] }
0x263d   :  { %7297 = vmatprep.mubr.msk.bf16.mxu0 %vm8787_vm0, %v8786_v2  ;;  %7294 = vmatpush3.bf16.msra.mxu0 %v7804_v47 }
0x263e   :  { %7288 = vmatpush3.bf16.msra.mxu1 %v7803_v62  ;;  %7295 = vmatprep.subr.bf16.mxu0 %v8786_v2 }
0x263f   :  { %7301 = vmatprep.subr.bf16.mxu1 %v8786_v2 }
0x2641   :  { %7290 = vmatmul.mubr.msk.bf16.vlgmr.msra.gmra.mrb[88].mxu1 %vm661_vm9, %v9193_v0  ;;  %7296 = vmatpush3.bf16.msra.mxu0 %v7806_v41 }
0x2642   :  { %7305 = vmatprep.mubr.msk.bf16.mxu1 %vm8787_vm0, %v8786_v2  ;;  %7302 = vmatpush3.bf16.msra.mxu1 %v9965_v30 }
0x2643   :  { %7303 = vmatprep.subr.bf16.mxu1 %v8786_v2  ;;  %7309 = vmatprep.subr.bf16.mxu0 %v8786_v2 }
0x2646   :  { %7304 = vmatpush3.bf16.msra.mxu1 %v9968_v17 }
0x2647   :  { %7321 = vmatprep.subr.bf16.mxu1 %v8786_v2 }
0x2649   :  { %7306 = vmatmul.mubr.bf16.vlgmr.msra.gmra.mrb[92].mxu1 %v8788_v51 }
0x264a   :  { %7329 = vmatprep.mubr.msk.bf16.mxu1 %vm8787_vm0, %v8786_v2  ;;  %7322 = vmatpush3.bf16.msra.mxu1 %v10013_v25 }
0x264b   :  { %7323 = vmatprep.subr.bf16.mxu1 %v8786_v2 }
0x264e   :  { %7324 = vmatpush3.bf16.msra.mxu1 %v10017_v11 }
0x264f   :  { %7325 = vmatprep.subr.bf16.mxu1 %v8786_v2 }
0x2652   :  { %7326 = vmatpush3.bf16.msra.mxu1 %v10031_v16 }
0x2653   :  { %7327 = vmatprep.subr.bf16.mxu1 %v8786_v2 }
0x2656   :  { %7328 = vmatpush3.bf16.msra.mxu1 %v10036_v27 }
0x2657   :  { %7341 = vmatprep.subr.bf16.mxu1 %v8786_v2 }
0x26af   :  { %v9978_v0 = vpop.f32.mrb[84].mxu0 }
0x26b0   :  { %v7267_v38 = vpop.f32.mrb[85].mxu0 }
0x26b1   :  { %v3239_v53 = vpop.f32.mrb[86].mxu0 }
0x26b2   :  { %v7268_v9 = vpop.f32.mrb[87].mxu0 }
0x26b3   :  { %v10049_v9 = vld [vmem:[#allocation39] ss:$0 sm:$0xff] }
0x270c   :  { %v9980_v52 = vpop.f32.mrb[84].mxu1 }
0x270d   :  { %v7275_v43 = vpop.f32.mrb[85].mxu1 }
0x270e   :  { %v3286_v37 = vpop.f32.mrb[86].mxu1 }
0x270f   :  { %v7276_v32 = vpop.f32.mrb[87].mxu1  ;;  %v3442_v63 = vpop.f32.mrb[88].mxu0 }
0x2710   :  { %v7283_v15 = vpop.f32.mrb[89].mxu0 }
0x2711   :  { %v3445_v42 = vpop.f32.mrb[90].mxu0  ;;  %v10053_v15 = vld [vmem:[#allocation3] ss:$0 sm:$0xff] }
0x2712   :  { %v7284_v21 = vpop.f32.mrb[91].mxu0 }
0x2714   :  { %v3495_v22 = vpop.f32.mrb[88].mxu1 }
0x2715   :  { %v3496_v33 = vadd.f32 %v3495_v22, %v3442_v63  ;;  %v7291_v55 = vpop.f32.mrb[89].mxu1 }
0x2716   :  { %v3498_v28 = vpop.f32.mrb[90].mxu1 }
0x2717   :  { %v3508_v34 = vadd.f32 %v6449_v29, %v3496_v33  ;;  %v3499_v1 = vadd.f32 %v3498_v28, %v3445_v42  ;;  %v7292_v59 = vpop.f32.mrb[91].mxu1  ;;  %v10055_v42 = vld [vmem:[#allocation7 + $0x2] sm:$0x3] }
0x2719   :  { %v3509_v13 = vadd.f32 %v6449_v29, %v3499_v1  ;;  %7920 = vtanh.f32 %v3508_v34 }
0x271b   :  { %7922 = vtanh.f32 %v3509_v13 }
0x271c   :  { %v3651_v18 = vpop.f32.mrb[92].mxu1 }
0x271d   :  { %v7307_v20 = vpop.f32.mrb[93].mxu1 }
0x271e   :  { %v3654_v56 = vpop.f32.mrb[94].mxu1  ;;  %v10071_v20 = vld [vmem:[#allocation40 + $0x8] sm:$0xff]  }
0x271f   :  { %v7308_v7 = vpop.f32.mrb[95].mxu1  ;;  %v3284_v56 = vadd.f32 %v9744_v54, %v9980_v52  ;;  %v3237_v54 = vadd.f32 %v9748_v14, %v9978_v0 }
0x2721   :  { %v3289_v52 = vadd.f32 %v3284_v56, %v3237_v54 }
0x2723   :  { %v9983_v35 = vpop.eup %7920  ;;  %v6442_v7 = vmul.f32 -1.442695, %v3289_v52 }
0x2725   :  { %v9985_v4 = vpop.eup %7922 }
0x2726   :  { %v3512_v3 = vpack.c.bf16 %v9985_v4, %v9983_v35 }
0x2728   :  { %7298 = vmatmul.mubr.msk.bf16.vlgmr.msra.gmra.mrb[92].mxu0 %vm661_vm9, %v3512_v3 }
0x2729   :  { %7310 = vmatpush3.bf16.msra.mxu0 %v9988_v46  ;;  %7317 = vmatprep.mubr.msk.bf16.mxu0 %vm8787_vm0, %v8786_v2 }
0x272a   :  { %7311 = vmatprep.subr.bf16.mxu0 %v8786_v2 }
0x272d   :  { %7312 = vmatpush3.bf16.msra.mxu0 %v9995_v5 }
0x272e   :  { %7313 = vmatprep.subr.bf16.mxu0 %v8786_v2 }
0x2731   :  { %7314 = vmatpush3.bf16.msra.mxu0 %v10003_v57 }
0x2732   :  { %7315 = vmatprep.subr.bf16.mxu0 %v8786_v2 }
0x2735   :  { %7316 = vmatpush3.bf16.msra.mxu0 %v10008_v44 }
0x2736   :  { %7333 = vmatprep.subr.bf16.mxu0 %v8786_v2 }
0x27fb   :  { %v3568_v6 = vpop.f32.mrb[92].mxu0 }
0x27fc   :  { %v10022_v60 = vadd.f32 %v6450_v23, %v3568_v6  ;;  %v7299_v39 = vpop.f32.mrb[93].mxu0 }
0x27fd   :  { %v3571_v31 = vpop.f32.mrb[94].mxu0 }
0x27fe   :  { %v3652_v10 = vadd.f32 %v3651_v18, %v10022_v60  ;;  %v10025_v36 = vadd.f32 %v6450_v23, %v3571_v31  ;;  %v7300_v58 = vpop.f32.mrb[95].mxu0  ;;  %v10066_v18 = vld [vmem:[#allocation40] sm:$0xff]  }
0x2800   :  { %v3657_v50 = vmax.f32 %v3652_v10, 0.0 }
0x2802   :  { %v3658_v40 = vpack.c.bf16 %v3657_v50, %v3657_v50 }
0x2804   :  { %7318 = vmatmul.mubr.msk.bf16.vlgmr.msra.gmra.mrb[96].mxu0 %vm817_vm10, %v3658_v40 }
0x2805   :  { %7337 = vmatprep.mubr.msk.bf16.mxu0 %vm8787_vm0, %v8786_v2  ;;  %7334 = vmatpush3.bf16.msra.mxu0 %v10066_v18 }
0x2806   :  { %7335 = vmatprep.subr.bf16.mxu0 %v8786_v2 }
0x2809   :  { %7336 = vmatpush3.bf16.msra.mxu0 %v10071_v20 }
0x280a   :  { %7349 = vmatprep.subr.bf16.mxu0 %v8786_v2 }
0x280c   :  { %7338 = vmatmul.mubr.bf16.vlgmr.msra.gmra.mrb[100].mxu0 %v8788_v51 }
0x280d   :  { %7350 = vmatpush3.bf16.msra.mxu0 %v9965_v30  ;;  %7353 = vmatprep.mubr.msk.bf16.mxu0 %vm8787_vm0, %v8786_v2 }
0x280e   :  { %7351 = vmatprep.subr.bf16.mxu0 %v8786_v2 }
0x2811   :  { %7352 = vmatpush3.bf16.msra.mxu0 %v9968_v17 }
0x2812   :  { %7369 = vmatprep.subr.bf16.mxu0 %v8786_v2 }
0x28d7   :  { %v3720_v45 = vpop.f32.mrb[96].mxu0 }
0x28d8   :  { %v3721_v26 = vadd.f32 %v10040_v8, %v3720_v45  ;;  %v7319_v61 = vpop.f32.mrb[97].mxu0 }
0x28d9   :  { %v3723_v19 = vpop.f32.mrb[98].mxu0 }
0x28da   :  { %v3726_v48 = vmax.f32 %v3721_v26, 0.0  ;;  %v7320_v49 = vpop.f32.mrb[99].mxu0 }
0x28dc   :  { %v3727_v62 = vpack.c.bf16 %v3726_v48, %v3726_v48 }
0x28de   :  { %7330 = vmatmul.mubr.msk.bf16.vlgmr.msra.gmra.mrb[96].mxu1 %vm817_vm10, %v3727_v62 }
0x28df   :  { %7345 = vmatprep.mubr.msk.bf16.mxu1 %vm8787_vm0, %v8786_v2  ;;  %v10104_v0 = vpop.f32.mrb[100].mxu0 }
0x28e0   :  { %v7339_v61 = vpop.f32.mrb[101].mxu0 }
0x28e1   :  { %v3864_v19 = vpop.f32.mrb[102].mxu0 }
0x28e2   :  { %v7340_v48 = vpop.f32.mrb[103].mxu0 }
0x29b1   :  { %v3789_v47 = vpop.f32.mrb[96].mxu1 }
0x29b2   :  { %v3790_v41 = vadd.f32 %v10046_v12, %v3789_v47  ;;  %v7331_v38 = vpop.f32.mrb[97].mxu1  ;;  %v10107_v47 = vld [vmem:[%s10871_s30] sm:$0xff]  }
0x29b3   :  { %v3792_v53 = vpop.f32.mrb[98].mxu1  ;;  %7342 = vmatpush3.bf16.msra.mxu1 %v10107_v47 }
0x29b4   :  { %v3795_v43 = vmax.f32 %v3790_v41, 0.0  ;;  %v7332_v37 = vpop.f32.mrb[99].mxu1  ;;  %v10111_v41 = vld [vmem:[%s10871_s30 + $0x8] sm:$0xff]   ;;  %7343 = vmatprep.subr.bf16.mxu1 %v8786_v2  ;;  %v3984_v53 = vrot.slane %v10022_v60, 2 }
0x29b6   :  { %v3802_v32 = vmul.f32 %v10049_v9, %v3795_v43 }
0x29b7   :  { %7344 = vmatpush3.bf16.msra.mxu1 %v10111_v41 }
0x29b8   :  { %v3803_v63 = vsel %vm938_vm11, %v3802_v32, 0.0  ;;  %7357 = vmatprep.subr.bf16.mxu1 %v8786_v2 }
0x29b9   :  { %3804 = vadd.xlane.f32.xlu1 %v3803_v63 }
0x2a46   :  { %v3805_v21 = vpop.xlane.xlu1 %3804 }
0x2a47   :  { %v3806_v29 = vadd.f32 %v10053_v15, %v3805_v21 }
0x2a49   :  { %v3807_v22 = vadd.f32 %v3806_v29, %v10055_v42 }
0x2a4b   :  { %v6472_v33 = vmul.f32 -10.0, %v3807_v22 }
0x2a4d   :  { %v3810_v55 = vmul.f32 1.442695, %v6472_v33 }
0x2a4f   :  { %7924 = vpow2.f32 %v3810_v55 }
0x2a59   :  { %v7925_v28 = vpop.eup %7924 }
0x2a5a   :  { %v3812_v34 = vadd.f32 1.0, %v7925_v28 }
0x2a5c   :  { %7926 = vrcp.f32 %v3812_v34 }
0x2a5d   :  { %7928 = vpow2.f32 %v6442_v7 }
0x2a66   :  { %v10059_v1 = vpop.eup %7926 }
0x2a67   :  { %v3952_v59 = vsub.f32 1.0, %v10059_v1  ;;  %v7929_v23 = vpop.eup %7928 }
0x2a68   :  { %v3293_v6 = vadd.f32 1.0, %v7929_v23 }
0x2a69   :  { %v3966_v13 = vmul.f32 0.0, %v3952_v59 }
0x2a6a   :  { %7930 = vrcp.f32 %v3293_v6 }
0x2a6b   :  { %v10064_v3 = vadd.f32 1.0, %v3966_v13 }
0x2a6d   :  { %3977 = vperm.xlu0 %7781, %v10064_v3  }
0x2a71   :  { %3970 = vperm.xlu0 %7781, %v3966_v13  }
0x2a74   :  { %v7931_v10 = vpop.eup %7930 }
0x2a75   :  { %3297 = vrot.lane.b32.xlu0 %v3284_v56, %s8761_s17  ;;  %v3307_v29 = vsub.f32 1.0, %v7931_v10  ;;  %v3313_v33 = vmul.f32 %v7931_v10, %v9930_v24 }
0x2aec   :  { %v3978_v51 = vpop.permute.xlu0 %3977 }
0x2aed   :  { %7932 = vrcp.f32 %v3978_v51 }
0x2af0   :  { %v3971_v39 = vpop.permute.xlu0 %3970 }
0x2af1   :  { %v3973_v31 = vmul.f32 0.0, %v3971_v39 }
0x2af3   :  { %v3974_v40 = vadd.f32 %v9983_v35, %v3973_v31 }
0x2af4   :  { %v3298_v58 = vpop.permute.xlu0 %3297 }
0x2af5   :  { %v3300_v50 = vmul.f32 %v7931_v10, %v3298_v58 }
0x2af7   :  { %v7933_v45 = vpop.eup %7932  ;;  %3302 = vrot.lane.b32.xlu0 %v3300_v50, %s8761_s17 }
0x2af8   :  { %v10089_v26 = vmul.f32 %v7933_v45, %v3974_v40 }
0x2afa   :  { %v3982_v14 = vpack.c.bf16 %v10089_v26, %v10089_v26 }
0x2afc   :  { %7354 = vmatmul.mubr.msk.bf16.vlgmr.msra.gmra.mrb[104].mxu0 %vm661_vm9, %v3982_v14 }
0x2afd   :  { %7370 = vmatpush3.bf16.msra.mxu0 %v10013_v25  ;;  %7377 = vmatprep.mubr.msk.bf16.mxu0 %vm8787_vm0, %v8786_v2 }
0x2afe   :  { %7371 = vmatprep.subr.bf16.mxu0 %v8786_v2 }
0x2b01   :  { %7372 = vmatpush3.bf16.msra.mxu0 %v10017_v11 }
0x2b02   :  { %7373 = vmatprep.subr.bf16.mxu0 %v8786_v2 }
0x2b05   :  { %7374 = vmatpush3.bf16.msra.mxu0 %v10031_v16 }
0x2b06   :  { %7375 = vmatprep.subr.bf16.mxu0 %v8786_v2 }
0x2b09   :  { %7376 = vmatpush3.bf16.msra.mxu0 %v10036_v27 }
0x2b0a   :  { %7389 = vmatprep.subr.bf16.mxu0 %v8786_v2 }
0x2b69   :  { %v3303_v49 = vpop.permute.xlu0 %3302 }
0x2b6a   :  { %v3305_v62 = vadd.f32 %v3303_v49, %v3237_v54 }
0x2b6c   :  { %7934 = vtanh.f32 %v3305_v62 }
0x2b76   :  { %v7935_v38 = vpop.eup %7934 }
0x2b77   :  { %3309 = vrot.lane.b32.xlu1 %v7935_v38, %s8790_s16 }
0x2b7b   :  { %4126 = vrot.lane.b32.xlu1 %v10055_v42, %s8789_s3 }
0x2bcf   :  { %v4023_v43 = vpop.f32.mrb[104].mxu0 }
0x2bd0   :  { %v4024_v37 = vadd.f32 %v4023_v43, %v3984_v53  ;;  %v7355_v32 = vpop.f32.mrb[105].mxu0 }
0x2bd1   :  { %v4026_v63 = vpop.f32.mrb[106].mxu0 }
0x2bd2   :  { %v7356_v21 = vpop.f32.mrb[107].mxu0  ;;  %v4029_v24 = vmax.f32 %v4024_v37, 0.0 }
0x2bd4   :  { %v4030_v56 = vpack.c.bf16 %v4029_v24, %v4029_v24 }
0x2be9   :  { %v3310_v22 = vpop.permute.xlu1 %3309 }
0x2bea   :  { %v3312_v55 = vmul.f32 %v3310_v22, %v3307_v29 }
0x2bec   :  { %v10121_v28 = vadd.f32 %v3313_v33, %v3312_v55 }
0x2bed   :  { %v4127_v63 = vpop.permute.xlu1 %4126 }
0x2bee   :  { %v3867_v34 = vpack.c.bf16 %v10121_v28, %v10121_v28 }
0x2bf0   :  { %3869 = vrot.lane.b32.xlu0 %v3867_v34, %s8790_s16 }
0x2c62   :  { %v3870_v13 = vpop.permute.xlu0 %3869 }
0x2c63   :  { %7346 = vmatmul.mubr.msk.bf16.vlgmr.msra.gmra.mrb[100].mxu1 %vm661_vm9, %v3870_v13 }
0x2c64   :  { %7358 = vmatpush3.bf16.msra.mxu1 %v9988_v46  ;;  %7365 = vmatprep.mubr.msk.bf16.mxu1 %vm8787_vm0, %v8786_v2 }
0x2c65   :  { %7359 = vmatprep.subr.bf16.mxu1 %v8786_v2 }
0x2c68   :  { %7360 = vmatpush3.bf16.msra.mxu1 %v9995_v5 }
0x2c69   :  { %7361 = vmatprep.subr.bf16.mxu1 %v8786_v2 }
0x2c6c   :  { %7362 = vmatpush3.bf16.msra.mxu1 %v10003_v57 }
0x2c6d   :  { %7363 = vmatprep.subr.bf16.mxu1 %v8786_v2 }
0x2c70   :  { %7364 = vmatpush3.bf16.msra.mxu1 %v10008_v44 }
0x2c71   :  { %7381 = vmatprep.subr.bf16.mxu1 %v8786_v2 }
0x2c73   :  { %7366 = vmatmul.mubr.msk.bf16.vlgmr.msra.gmra.mrb[104].mxu1 %vm817_vm10, %v4030_v56 }
0x2c74   :  { %7382 = vmatpush3.bf16.msra.mxu1 %v10066_v18  ;;  %7385 = vmatprep.mubr.msk.bf16.mxu1 %vm8787_vm0, %v8786_v2 }
0x2c75   :  { %7383 = vmatprep.subr.bf16.mxu1 %v8786_v2 }
0x2c78   :  { %7384 = vmatpush3.bf16.msra.mxu1 %v10071_v20 }
0x2c79   :  { %7397 = vmatprep.subr.bf16.mxu1 %v8786_v2 }
0x2c7b   :  { %7386 = vmatmul.mubr.msk.bf16.vlgmr.msra.gmra.mrb[108].mxu1 %vm661_vm9, %v3982_v14 }
0x2c7c   :  { %7398 = vmatpush3.bf16.msra.mxu1 %v9965_v30  ;;  %7401 = vmatprep.mubr.msk.bf16.mxu1 %vm8787_vm0, %v8786_v2 }
0x2c7d   :  { %7399 = vmatprep.subr.bf16.mxu1 %v8786_v2 }
0x2c80   :  { %7400 = vmatpush3.bf16.msra.mxu1 %v9968_v17 }
0x2c81   :  { %7417 = vmatprep.subr.bf16.mxu1 %v8786_v2 }
0x2d36   :  { %v3920_v54 = vpop.f32.mrb[100].mxu1 }
0x2d37   :  { %v7347_v52 = vpop.f32.mrb[101].mxu1 }
0x2d38   :  { %v3923_v7 = vpop.f32.mrb[102].mxu1  ;;  %v10179_v52 = vld [vmem:[%s10872_s10] ss:$0 sm:$0xff] }
0x2d39   :  { %v7348_v23 = vpop.f32.mrb[103].mxu1  ;;  %v3921_v7 = vadd.f32 %v10179_v52, %v3920_v54  ;;  %v4273_v54 = vrot.slane %v9983_v35, 2 }
0x2d3a   :  { %v10183_v23 = vld [vmem:[#allocation42] ss:$0 sm:$0xff] }
0x2d46   :  { %v4068_v6 = vpop.f32.mrb[104].mxu1 }
0x2d47   :  { %v4069_v51 = vadd.f32 %v10040_v8, %v4068_v6  ;;  %v7367_v39 = vpop.f32.mrb[105].mxu1  ;;  %v3862_v6 = vadd.f32 %v10183_v23, %v10104_v0 }
0x2d48   :  { %v4071_v31 = vpop.f32.mrb[106].mxu1 }
0x2d49   :  { %v4074_v10 = vmax.f32 %v4069_v51, 0.0  ;;  %v7368_v58 = vpop.f32.mrb[107].mxu1  ;;  %v3926_v51 = vadd.f32 %v3921_v7, %v3862_v6 }
0x2d4b   :  { %v4075_v50 = vpack.c.bf16 %v4074_v10, %v4074_v10  ;;  %v6478_v39 = vmul.f32 -1.442695, %v3926_v51 }
0x2d4d   :  { %7378 = vmatmul.mubr.msk.bf16.vlgmr.msra.gmra.mrb[108].mxu0 %vm817_vm10, %v4075_v50 }
0x2d4e   :  { %v10153_v40 = vpop.f32.mrb[108].mxu1  ;;  %7390 = vmatpush3.bf16.msra.mxu0 %v10107_v47  ;;  %7393 = vmatprep.mubr.msk.bf16.mxu0 %vm8787_vm0, %v8786_v2 }
0x2d4f   :  { %v7387_v45 = vpop.f32.mrb[109].mxu1  ;;  %7391 = vmatprep.subr.bf16.mxu0 %v8786_v2 }
0x2d50   :  { %v4174_v14 = vpop.f32.mrb[110].mxu1 }
0x2d51   :  { %v7388_v61 = vpop.f32.mrb[111].mxu1 }
0x2d52   :  { %7392 = vmatpush3.bf16.msra.mxu0 %v10111_v41 }
0x2d53   :  { %7405 = vmatprep.subr.bf16.mxu0 %v8786_v2 }
0x2e20   :  { %v4113_v19 = vpop.f32.mrb[108].mxu0 }
0x2e21   :  { %v4114_v48 = vadd.f32 %v10046_v12, %v4113_v19  ;;  %v7379_v49 = vpop.f32.mrb[109].mxu0 }
0x2e22   :  { %v4116_v62 = vpop.f32.mrb[110].mxu0 }
0x2e23   :  { %v4119_v38 = vmax.f32 %v4114_v48, 0.0  ;;  %v7380_v53 = vpop.f32.mrb[111].mxu0 }
0x2e25   :  { %v4120_v43 = vmul.f32 %v10049_v9, %v4119_v38  ;;  %v4284_v38 = vrot.slane %v10022_v60, 4 }
0x2e27   :  { %v4121_v37 = vsel %vm938_vm11, %v4120_v43, 0.0 }
0x2e28   :  { %4122 = vadd.xlane.f32.xlu0 %v4121_v37 }
0x2e3e   :  { %3955 = vperm.xlu0 %7781, %v3952_v59  }
0x2e42   :  { %4425 = vrot.lane.b32.xlu0 %v10055_v42, %s8791_s22 }
0x2eb5   :  { %v4123_v32 = vpop.xlane.xlu0 %4122 }
0x2eb6   :  { %v4124_v21 = vadd.f32 %v10053_v15, %v4123_v32 }
0x2eb8   :  { %v4129_v29 = vadd.f32 %v4127_v63, %v4124_v21 }
0x2eba   :  { %v6482_v22 = vmul.f32 -10.0, %v4129_v29 }
0x2ebc   :  { %v4132_v33 = vmul.f32 1.442695, %v6482_v22 }
0x2ebe   :  { %7936 = vpow2.f32 %v4132_v33 }
0x2ec8   :  { %v7937_v55 = vpop.eup %7936 }
0x2ec9   :  { %v4134_v34 = vadd.f32 1.0, %v7937_v55 }
0x2ecb   :  { %7938 = vrcp.f32 %v4134_v34  ;;  %v3956_v34 = vpop.permute.xlu0 %3955 }
0x2ecc   :  { %7940 = vpow2.f32 %v6478_v39 }
0x2ed5   :  { %v10169_v13 = vpop.eup %7938 }
0x2ed6   :  { %v4250_v24 = vsub.f32 1.0, %v10169_v13 }
0x2ed8   :  { %v4264_v59 = vmul.f32 %v4250_v24, %v10064_v3  ;;  %v7941_v3 = vpop.eup %7940 }
0x2ed9   :  { %v3930_v31 = vadd.f32 1.0, %v7941_v3 }
0x2eda   :  { %v10175_v56 = vadd.f32 1.0, %v4264_v59 }
0x2edb   :  { %7942 = vrcp.f32 %v3930_v31 }
0x2edc   :  { %4278 = vperm.xlu1 %7782, %v10175_v56  }
0x2ee0   :  { %4268 = vperm.xlu1 %7782, %v4264_v59  }
0x2ee4   :  { %3934 = vrot.lane.b32.xlu1 %v3921_v7, %s8761_s17  ;;  %v3958_v7 = vmul.f32 %v3956_v34, %v10121_v28 }
0x2ee5   :  { %v7943_v45 = vpop.eup %7942 }
0x2ee6   :  { %v3944_v29 = vsub.f32 1.0, %v7943_v45  ;;  %v3950_v33 = vmul.f32 %v7943_v45, %v10121_v28 }
0x2f5b   :  { %v4279_v10 = vpop.permute.xlu1 %4278 }
0x2f5c   :  { %7944 = vrcp.f32 %v4279_v10 }
0x2f5f   :  { %v4269_v58 = vpop.permute.xlu1 %4268 }
0x2f60   :  { %v4271_v50 = vmul.f32 %v4269_v58, %v10089_v26 }
0x2f62   :  { %v4275_v19 = vadd.f32 %v4273_v54, %v4271_v50 }
0x2f63   :  { %v3935_v14 = vpop.permute.xlu1 %3934 }
0x2f64   :  { %v3937_v61 = vmul.f32 %v7943_v45, %v3935_v14 }
0x2f66   :  { %v7945_v0 = vpop.eup %7944  ;;  %3939 = vrot.lane.b32.xlu1 %v3937_v61, %s8761_s17 }
0x2f67   :  { %v10192_v48 = vmul.f32 %v7945_v0, %v4275_v19 }
0x2f69   :  { %v4283_v49 = vpack.c.bf16 %v10192_v48, %v10192_v48 }
0x2f6a   :  { %3961 = vperm.xlu1 %7782, %v10059_v1  }
0x2f6b   :  { %7402 = vmatmul.mubr.msk.bf16.vlgmr.msra.gmra.mrb[112].mxu1 %vm661_vm9, %v4283_v49 }
0x2f6c   :  { %7418 = vmatpush3.bf16.msra.mxu1 %v10013_v25  ;;  %7425 = vmatprep.mubr.msk.bf16.mxu1 %vm8787_vm0, %v8786_v2 }
0x2f6d   :  { %7419 = vmatprep.subr.bf16.mxu1 %v8786_v2 }
0x2f70   :  { %7420 = vmatpush3.bf16.msra.mxu1 %v10017_v11 }
0x2f71   :  { %7421 = vmatprep.subr.bf16.mxu1 %v8786_v2 }
0x2f74   :  { %7422 = vmatpush3.bf16.msra.mxu1 %v10031_v16 }
0x2f75   :  { %7423 = vmatprep.subr.bf16.mxu1 %v8786_v2 }
0x2f78   :  { %7424 = vmatpush3.bf16.msra.mxu1 %v10036_v27 }
0x2f79   :  { %7437 = vmatprep.subr.bf16.mxu1 %v8786_v2 }
0x2fd8   :  { %v3940_v1 = vpop.permute.xlu1 %3939 }
0x2fd9   :  { %v3942_v26 = vadd.f32 %v3940_v1, %v3862_v6 }
0x2fdb   :  { %7946 = vtanh.f32 %v3942_v26 }
0x2fe5   :  { %v7947_v62 = vpop.eup %7946 }
0x2fe6   :  { %3946 = vrot.lane.b32.xlu1 %v7947_v62, %s8790_s16 }
0x2fe9   :  { %v3962_v21 = vpop.permute.xlu1 %3961 }
0x303e   :  { %v4323_v53 = vpop.f32.mrb[112].mxu1 }
0x303f   :  { %v4324_v43 = vadd.f32 %v4323_v53, %v4284_v38  ;;  %v7403_v37 = vpop.f32.mrb[113].mxu1 }
0x3040   :  { %v4326_v32 = vpop.f32.mrb[114].mxu1 }
0x3041   :  { %v7404_v63 = vpop.f32.mrb[115].mxu1  ;;  %v4329_v28 = vmax.f32 %v4324_v43, 0.0 }
0x3043   :  { %v4330_v31 = vpack.c.bf16 %v4329_v28, %v4329_v28 }
0x3058   :  { %v3947_v22 = vpop.permute.xlu1 %3946 }
0x3059   :  { %v3949_v55 = vmul.f32 %v3947_v22, %v3944_v29 }
0x305b   :  { %v3951_v59 = vadd.f32 %v3950_v33, %v3949_v55 }
0x305d   :  { %v3964_v6 = vmul.f32 %v3962_v21, %v3951_v59  ;;  %v4426_v59 = vpop.permute.xlu0 %4425 }
0x305f   :  { %v10212_v51 = vadd.f32 %v3964_v6, %v3958_v7 }
0x3061   :  { %v4177_v39 = vpack.c.bf16 %v10212_v51, %v10212_v51 }
0x3063   :  { %4179 = vrot.lane.b32.xlu1 %v4177_v39, %s8790_s16 }
0x30d5   :  { %v4180_v3 = vpop.permute.xlu1 %4179 }
0x30d6   :  { %7394 = vmatmul.mubr.msk.bf16.vlgmr.msra.gmra.mrb[112].mxu0 %vm661_vm9, %v4180_v3 }
0x30d7   :  { %7406 = vmatpush3.bf16.msra.mxu0 %v9988_v46  ;;  %7413 = vmatprep.mubr.msk.bf16.mxu0 %vm8787_vm0, %v8786_v2 }
0x30d8   :  { %7407 = vmatprep.subr.bf16.mxu0 %v8786_v2 }
0x30db   :  { %7408 = vmatpush3.bf16.msra.mxu0 %v9995_v5 }
0x30dc   :  { %7409 = vmatprep.subr.bf16.mxu0 %v8786_v2 }
0x30df   :  { %7410 = vmatpush3.bf16.msra.mxu0 %v10003_v57 }
0x30e0   :  { %7411 = vmatprep.subr.bf16.mxu0 %v8786_v2 }
0x30e3   :  { %7412 = vmatpush3.bf16.msra.mxu0 %v10008_v44 }
0x30e4   :  { %7429 = vmatprep.subr.bf16.mxu0 %v8786_v2 }
0x30e6   :  { %7414 = vmatmul.mubr.msk.bf16.vlgmr.msra.gmra.mrb[116].mxu0 %vm817_vm10, %v4330_v31 }
0x30e7   :  { %7430 = vmatpush3.bf16.msra.mxu0 %v10066_v18  ;;  %7433 = vmatprep.mubr.msk.bf16.mxu0 %vm8787_vm0, %v8786_v2 }
0x30e8   :  { %7431 = vmatprep.subr.bf16.mxu0 %v8786_v2 }
0x30eb   :  { %7432 = vmatpush3.bf16.msra.mxu0 %v10071_v20 }
0x30ec   :  { %7445 = vmatprep.subr.bf16.mxu0 %v8786_v2 }
0x30ee   :  { %7434 = vmatmul.mubr.msk.bf16.vlgmr.msra.gmra.mrb[120].mxu0 %vm661_vm9, %v4283_v49 }
0x30ef   :  { %7446 = vmatpush3.bf16.msra.mxu0 %v9965_v30  ;;  %7449 = vmatprep.mubr.msk.bf16.mxu0 %vm8787_vm0, %v8786_v2 }
0x30f0   :  { %7447 = vmatprep.subr.bf16.mxu0 %v8786_v2 }
0x30f3   :  { %7448 = vmatpush3.bf16.msra.mxu0 %v9968_v17 }
0x30f4   :  { %7465 = vmatprep.subr.bf16.mxu0 %v8786_v2 }
0x31a9   :  { %v4218_v10 = vpop.f32.mrb[112].mxu0 }
0x31aa   :  { %v7395_v58 = vpop.f32.mrb[113].mxu0 }
0x31ab   :  { %v4221_v50 = vpop.f32.mrb[114].mxu0 }
0x31ac   :  { %v7396_v45 = vpop.f32.mrb[115].mxu0 }
0x31b9   :  { %v4368_v14 = vpop.f32.mrb[116].mxu0 }
0x31ba   :  { %v4369_v61 = vadd.f32 %v10040_v8, %v4368_v14  ;;  %v7415_v19 = vpop.f32.mrb[117].mxu0 }
0x31bb   :  { %v4371_v0 = vpop.f32.mrb[118].mxu0  ;;  %v4172_v19 = vadd.f32 %v10183_v23, %v10153_v40 }
0x31bc   :  { %v4374_v49 = vmax.f32 %v4369_v61, 0.0  ;;  %v7416_v1 = vpop.f32.mrb[119].mxu0  ;;  %v4219_v61 = vadd.f32 %v10179_v52, %v4218_v10 }
0x31be   :  { %v4375_v26 = vpack.c.bf16 %v4374_v49, %v4374_v49  ;;  %v4224_v0 = vadd.f32 %v4219_v61, %v4172_v19 }
0x31c0   :  { %7426 = vmatmul.mubr.msk.bf16.vlgmr.msra.gmra.mrb[116].mxu1 %vm817_vm10, %v4375_v26  ;;  %v6485_v49 = vmul.f32 -1.442695, %v4224_v0 }
0x31c1   :  { %v10244_v62 = vpop.f32.mrb[120].mxu0  ;;  %7438 = vmatpush3.bf16.msra.mxu1 %v10107_v47  ;;  %7441 = vmatprep.mubr.msk.bf16.mxu1 %vm8787_vm0, %v8786_v2 }
0x31c2   :  { %v7435_v38 = vpop.f32.mrb[121].mxu0  ;;  %7439 = vmatprep.subr.bf16.mxu1 %v8786_v2 }
0x31c3   :  { %v4473_v53 = vpop.f32.mrb[122].mxu0 }
0x31c4   :  { %v7436_v43 = vpop.f32.mrb[123].mxu0 }
0x31c5   :  { %7440 = vmatpush3.bf16.msra.mxu1 %v10111_v41 }
0x31c6   :  { %7453 = vmatprep.subr.bf16.mxu1 %v8786_v2 }
0x3293   :  { %v4413_v37 = vpop.f32.mrb[116].mxu1 }
0x3294   :  { %v4414_v32 = vadd.f32 %v10046_v12, %v4413_v37  ;;  %v7427_v63 = vpop.f32.mrb[117].mxu1  ;;  %v4571_v37 = vrot.slane %v9983_v35, 4 }
0x3295   :  { %v4416_v21 = vpop.f32.mrb[118].mxu1 }
0x3296   :  { %v4419_v29 = vmax.f32 %v4414_v32, 0.0  ;;  %v7428_v22 = vpop.f32.mrb[119].mxu1 }
0x3298   :  { %v4420_v33 = vmul.f32 %v10049_v9, %v4419_v29 }
0x329a   :  { %v4421_v55 = vsel %vm938_vm11, %v4420_v33, 0.0 }
0x329b   :  { %4422 = vadd.xlane.f32.xlu1 %v4421_v55 }
0x3328   :  { %v4423_v34 = vpop.xlane.xlu1 %4422 }
0x3329   :  { %v4424_v7 = vadd.f32 %v10053_v15, %v4423_v34 }
0x332b   :  { %v4428_v6 = vadd.f32 %v4426_v59, %v4424_v7 }
0x332d   :  { %v6489_v39 = vmul.f32 -10.0, %v4428_v6 }
0x332f   :  { %v4431_v3 = vmul.f32 1.442695, %v6489_v39 }
0x3331   :  { %7948 = vpow2.f32 %v4431_v3 }
0x333b   :  { %v7949_v28 = vpop.eup %7948 }
0x333c   :  { %v4433_v31 = vadd.f32 1.0, %v7949_v28 }
0x333e   :  { %7950 = vrcp.f32 %v4433_v31 }
0x333f   :  { %7952 = vpow2.f32 %v6485_v49 }
0x3348   :  { %v10256_v58 = vpop.eup %7950 }
0x3349   :  { %v4549_v50 = vsub.f32 1.0, %v10256_v58  ;;  %v7953_v1 = vpop.eup %7952 }
0x334a   :  { %v4228_v26 = vadd.f32 1.0, %v7953_v1 }
0x334b   :  { %v4563_v45 = vmul.f32 %v4549_v50, %v10175_v56 }
0x334c   :  { %7954 = vrcp.f32 %v4228_v26 }
0x334d   :  { %v10262_v14 = vadd.f32 1.0, %v4563_v45 }
0x334f   :  { %4576 = vperm.xlu0 %7781, %v10262_v14  }
0x3353   :  { %4567 = vperm.xlu0 %7781, %v4563_v45  }
0x3356   :  { %v7955_v43 = vpop.eup %7954 }
0x3357   :  { %4232 = vrot.lane.b32.xlu0 %v4219_v61, %s8761_s17  ;;  %v4242_v39 = vsub.f32 1.0, %v7955_v43  ;;  %v4248_v28 = vmul.f32 %v7955_v43, %v10212_v51 }
0x33ce   :  { %v4577_v38 = vpop.permute.xlu0 %4576 }
0x33cf   :  { %7956 = vrcp.f32 %v4577_v38 }
0x33d2   :  { %v4568_v56 = vpop.permute.xlu0 %4567 }
0x33d3   :  { %v4570_v53 = vmul.f32 %v4568_v56, %v10192_v48 }
0x33d5   :  { %v4573_v63 = vadd.f32 %v4571_v37, %v4570_v53 }
0x33d6   :  { %v4233_v10 = vpop.permute.xlu0 %4232 }
0x33d7   :  { %v4235_v32 = vmul.f32 %v7955_v43, %v4233_v10 }
0x33d9   :  { %v7957_v40 = vpop.eup %7956  ;;  %4237 = vrot.lane.b32.xlu0 %v4235_v32, %s8761_s17 }
0x33da   :  { %v10274_v21 = vmul.f32 %v7957_v40, %v4573_v63 }
0x33dc   :  { %v4581_v29 = vpack.c.bf16 %v10274_v21, %v10274_v21 }
0x33dd   :  { %4253 = vperm.xlu0 %7781, %v4250_v24  }
0x33de   :  { %7450 = vmatmul.mubr.msk.bf16.vlgmr.msra.gmra.mrb[124].mxu0 %vm661_vm9, %v4581_v29 }
0x33df   :  { %7466 = vmatpush3.bf16.msra.mxu0 %v10013_v25  ;;  %7473 = vmatprep.mubr.msk.bf16.mxu0 %vm8787_vm0, %v8786_v2 }
0x33e0   :  { %7467 = vmatprep.subr.bf16.mxu0 %v8786_v2 }
0x33e1   :  { %4259 = vperm.xlu0 %7781, %v10169_v13   ;;  %v4582_v13 = vrot.slane %v10022_v60, 6 }
0x33e3   :  { %7468 = vmatpush3.bf16.msra.mxu0 %v10017_v11 }
0x33e4   :  { %7469 = vmatprep.subr.bf16.mxu0 %v8786_v2 }
0x33e7   :  { %7470 = vmatpush3.bf16.msra.mxu0 %v10031_v16 }
0x33e8   :  { %7471 = vmatprep.subr.bf16.mxu0 %v8786_v2 }
0x33eb   :  { %7472 = vmatpush3.bf16.msra.mxu0 %v10036_v27 }
0x33ec   :  { %7485 = vmatprep.subr.bf16.mxu0 %v8786_v2 }
0x344b   :  { %v4238_v24 = vpop.permute.xlu0 %4237 }
0x344c   :  { %v4240_v48 = vadd.f32 %v4238_v24, %v4172_v19 }
0x344e   :  { %7958 = vtanh.f32 %v4240_v48 }
0x3458   :  { %v7959_v22 = vpop.eup %7958 }
0x3459   :  { %4244 = vrot.lane.b32.xlu1 %v7959_v22, %s8790_s16 }
0x345c   :  { %v4254_v6 = vpop.permute.xlu0 %4253 }
0x345d   :  { %4723 = vrot.lane.b32.xlu1 %v10055_v42, %s8792_s14  ;;  %v4256_v19 = vmul.f32 %v4254_v6, %v10212_v51 }
0x3460   :  { %v4260_v61 = vpop.permute.xlu0 %4259 }
0x34b1   :  { %v4621_v33 = vpop.f32.mrb[124].mxu0 }
0x34b2   :  { %v4622_v55 = vadd.f32 %v4621_v33, %v4582_v13  ;;  %v7451_v34 = vpop.f32.mrb[125].mxu0 }
0x34b3   :  { %v4624_v59 = vpop.f32.mrb[126].mxu0 }
0x34b4   :  { %v7452_v7 = vpop.f32.mrb[127].mxu0  ;;  %v4627_v26 = vmax.f32 %v4622_v55, 0.0 }
0x34b6   :  { %v4628_v38 = vpack.c.bf16 %v4627_v26, %v4627_v26 }
0x34cb   :  { %v4245_v3 = vpop.permute.xlu1 %4244 }
0x34cc   :  { %v4247_v31 = vmul.f32 %v4245_v3, %v4242_v39 }
0x34ce   :  { %v4249_v45 = vadd.f32 %v4248_v28, %v4247_v31 }
0x34cf   :  { %v4724_v6 = vpop.permute.xlu1 %4723 }
0x34d0   :  { %v4262_v0 = vmul.f32 %v4260_v61, %v4249_v45 }
0x34d2   :  { %v10298_v49 = vadd.f32 %v4262_v0, %v4256_v19  ;;  %v4471_v19 = vadd.f32 %v10183_v23, %v10244_v62 }
0x34d4   :  { %v4476_v60 = vpack.c.bf16 %v10298_v49, %v10298_v49 }
0x34d6   :  { %4478 = vrot.lane.b32.xlu0 %v4476_v60, %s8790_s16 }
0x3548   :  { %v4479_v1 = vpop.permute.xlu0 %4478 }
0x3549   :  { %7442 = vmatmul.mubr.msk.bf16.vlgmr.msra.gmra.mrb[120].mxu1 %vm661_vm9, %v4479_v1 }
0x354a   :  { %7454 = vmatpush3.bf16.msra.mxu1 %v9988_v46  ;;  %7461 = vmatprep.mubr.msk.bf16.mxu1 %vm8787_vm0, %v8786_v2 }
0x354b   :  { %7455 = vmatprep.subr.bf16.mxu1 %v8786_v2 }
0x354e   :  { %7456 = vmatpush3.bf16.msra.mxu1 %v9995_v5 }
0x354f   :  { %7457 = vmatprep.subr.bf16.mxu1 %v8786_v2 }
0x3552   :  { %7458 = vmatpush3.bf16.msra.mxu1 %v10003_v57 }
0x3553   :  { %7459 = vmatprep.subr.bf16.mxu1 %v8786_v2 }
0x3556   :  { %7460 = vmatpush3.bf16.msra.mxu1 %v10008_v44 }
0x3557   :  { %7477 = vmatprep.subr.bf16.mxu1 %v8786_v2 }
0x3559   :  { %7462 = vmatmul.mubr.msk.bf16.vlgmr.msra.gmra.mrb[124].mxu1 %vm817_vm10, %v4628_v38 }
0x355a   :  { %7478 = vmatpush3.bf16.msra.mxu1 %v10066_v18  ;;  %7481 = vmatprep.mubr.msk.bf16.mxu1 %vm8787_vm0, %v8786_v2 }
0x355b   :  { %7479 = vmatprep.subr.bf16.mxu1 %v8786_v2 }
0x355e   :  { %7480 = vmatpush3.bf16.msra.mxu1 %v10071_v20 }
0x355f   :  { %7493 = vmatprep.subr.bf16.mxu1 %v8786_v2 }
0x3561   :  { %7482 = vmatmul.mubr.msk.bf16.vlgmr.msra.gmra.mrb[128].mxu1 %vm661_vm9, %v4581_v29 }
0x3562   :  { %7494 = vmatpush3.bf16.msra.mxu1 %v9965_v30  ;;  %7497 = vmatprep.mubr.msk.bf16.mxu1 %vm8787_vm0, %v8786_v2 }
0x3563   :  { %7495 = vmatprep.subr.bf16.mxu1 %v8786_v2 }
0x3566   :  { %7496 = vmatpush3.bf16.msra.mxu1 %v9968_v17 }
0x3567   :  { %7513 = vmatprep.subr.bf16.mxu1 %v8786_v2 }
0x361c   :  { %v4517_v46 = vpop.f32.mrb[120].mxu1 }
0x361d   :  { %v7443_v5 = vpop.f32.mrb[121].mxu1 }
0x361e   :  { %v4520_v57 = vpop.f32.mrb[122].mxu1 }
0x361f   :  { %v7444_v44 = vpop.f32.mrb[123].mxu1 }
0x3620   :  { %v4869_v44 = vrot.slane %v9983_v35, 6 }
0x362c   :  { %v4666_v56 = vpop.f32.mrb[124].mxu1 }
0x362d   :  { %v4667_v53 = vadd.f32 %v10040_v8, %v4666_v56  ;;  %v7463_v43 = vpop.f32.mrb[125].mxu1 }
0x362e   :  { %v4669_v10 = vpop.f32.mrb[126].mxu1 }
0x362f   :  { %v4672_v32 = vmax.f32 %v4667_v53, 0.0  ;;  %v7464_v30 = vpop.f32.mrb[127].mxu1 }
0x3631   :  { %v4673_v63 = vpack.c.bf16 %v4672_v32, %v4672_v32 }
0x3633   :  { %7474 = vmatmul.mubr.msk.bf16.vlgmr.msra.gmra.mrb[128].mxu0 %vm817_vm10, %v4673_v63 }
0x3634   :  { %v10330_v40 = vpop.f32.mrb[128].mxu1  ;;  %7486 = vmatpush3.bf16.msra.mxu0 %v10107_v47  ;;  %7489 = vmatprep.mubr.msk.bf16.mxu0 %vm8787_vm0, %v8786_v2 }
0x3635   :  { %v7483_v17 = vpop.f32.mrb[129].mxu1  ;;  %7487 = vmatprep.subr.bf16.mxu0 %v8786_v2 }
0x3636   :  { %v4771_v29 = vpop.f32.mrb[130].mxu1 }
0x3637   :  { %v7484_v24 = vpop.f32.mrb[131].mxu1 }
0x3638   :  { %7488 = vmatpush3.bf16.msra.mxu0 %v10111_v41 }
0x3639   :  { %7501 = vmatprep.subr.bf16.mxu0 %v8786_v2 }
0x3706   :  { %v4711_v8 = vpop.f32.mrb[128].mxu0 }
0x3707   :  { %v4712_v48 = vadd.f32 %v10046_v12, %v4711_v8  ;;  %v7475_v22 = vpop.f32.mrb[129].mxu0 }
0x3708   :  { %v4714_v13 = vpop.f32.mrb[130].mxu0 }
0x3709   :  { %v4717_v33 = vmax.f32 %v4712_v48, 0.0  ;;  %v7476_v55 = vpop.f32.mrb[131].mxu0 }
0x370b   :  { %v4718_v34 = vmul.f32 %v10049_v9, %v4717_v33 }
0x370d   :  { %v4719_v59 = vsel %vm938_vm11, %v4718_v34, 0.0 }
0x370e   :  { %4720 = vadd.xlane.f32.xlu0 %v4719_v59  ;;  %v10390_v59 = vld [vmem:[%s10869_s25] sm:$0xff]  }
0x3724   :  { %4552 = vperm.xlu0 %7781, %v4549_v50  }
0x3728   :  { %5019 = vrot.lane.b32.xlu0 %v10055_v42, %s8793_s12 }
0x379b   :  { %v4721_v7 = vpop.xlane.xlu0 %4720 }
0x379c   :  { %v4722_v39 = vadd.f32 %v10053_v15, %v4721_v7  ;;  %v4518_v15 = vadd.f32 %v10179_v52, %v4517_v46  ;;  %v10397_v7 = vld [vmem:[%s10869_s25 + $0x8] sm:$0xff]  }
0x379e   :  { %v4726_v12 = vadd.f32 %v4724_v6, %v4722_v39  ;;  %v4523_v0 = vadd.f32 %v4518_v15, %v4471_v19  ;;  %v10403_v39 = vld [vmem:[%s10869_s25 + $0x10] sm:$0xff]  }
0x37a0   :  { %v6496_v3 = vmul.f32 -10.0, %v4726_v12  ;;  %v6492_v60 = vmul.f32 -1.442695, %v4523_v0  ;;  %v10430_v0 = vld [vmem:[#allocation36] ss:$0 sm:$0xff] }
0x37a2   :  { %v4729_v28 = vmul.f32 1.442695, %v6496_v3  ;;  %v10408_v3 = vld [vmem:[%s10869_s25 + $0x18] sm:$0xff]  }
0x37a3   :  { %v4553_v8 = vpop.permute.xlu0 %4552 }
0x37a4   :  { %7960 = vpow2.f32 %v4729_v28  ;;  %v4555_v22 = vmul.f32 %v4553_v8, %v10298_v49 }
0x37ae   :  { %v7961_v31 = vpop.eup %7960 }
0x37af   :  { %v4731_v45 = vadd.f32 1.0, %v7961_v31  ;;  %v10420_v31 = vld [vmem:[#allocation31] sm:$0xff]  }
0x37b1   :  { %7962 = vrcp.f32 %v4731_v45 }
0x37b2   :  { %7964 = vpow2.f32 %v6492_v60 }
0x37bb   :  { %v10346_v9 = vpop.eup %7962 }
0x37bc   :  { %v4847_v61 = vsub.f32 1.0, %v10346_v9  ;;  %v7965_v1 = vpop.eup %7964 }
0x37bd   :  { %v4527_v26 = vadd.f32 1.0, %v7965_v1 }
0x37be   :  { %v4861_v50 = vmul.f32 %v4847_v61, %v10262_v14 }
0x37bf   :  { %7966 = vrcp.f32 %v4527_v26 }
0x37c0   :  { %v10352_v42 = vadd.f32 1.0, %v4861_v50 }
0x37c2   :  { %4874 = vperm.xlu1 %7782, %v10352_v42  }
0x37c6   :  { %4865 = vperm.xlu1 %7782, %v4861_v50  }
0x37c9   :  { %v7967_v57 = vpop.eup %7966 }
0x37ca   :  { %4531 = vrot.lane.b32.xlu1 %v4518_v15, %s8761_s17  ;;  %v4541_v29 = vsub.f32 1.0, %v7967_v57  ;;  %v4547_v24 = vmul.f32 %v7967_v57, %v10298_v49 }
0x3841   :  { %v4875_v38 = vpop.permute.xlu1 %4874 }
0x3842   :  { %7968 = vrcp.f32 %v4875_v38 }
0x3845   :  { %v4866_v14 = vpop.permute.xlu1 %4865 }
0x3846   :  { %v4868_v5 = vmul.f32 %v4866_v14, %v10274_v21 }
0x3848   :  { %v4871_v53 = vadd.f32 %v4869_v44, %v4868_v5 }
0x3849   :  { %v4532_v46 = vpop.permute.xlu1 %4531 }
0x384a   :  { %v4534_v56 = vmul.f32 %v7967_v57, %v4532_v46 }
0x384c   :  { %v7969_v62 = vpop.eup %7968  ;;  %4536 = vrot.lane.b32.xlu1 %v4534_v56, %s8761_s17 }
0x384d   :  { %v10364_v43 = vmul.f32 %v7969_v62, %v4871_v53 }
0x384f   :  { %v4879_v10 = vpack.c.bf16 %v10364_v43, %v10364_v43 }
0x3850   :  { %4558 = vperm.xlu1 %7782, %v10256_v58  }
0x3851   :  { %7498 = vmatmul.mubr.msk.bf16.vlgmr.msra.gmra.mrb[132].mxu1 %vm661_vm9, %v4879_v10 }
0x3852   :  { %7514 = vmatpush3.bf16.msra.mxu1 %v10013_v25  ;;  %7521 = vmatprep.mubr.msk.bf16.mxu1 %vm8787_vm0, %v8786_v2 }
0x3853   :  { %7515 = vmatprep.subr.bf16.mxu1 %v8786_v2 }
0x3856   :  { %7516 = vmatpush3.bf16.msra.mxu1 %v10017_v11 }
0x3857   :  { %7517 = vmatprep.subr.bf16.mxu1 %v8786_v2 }
0x385a   :  { %7518 = vmatpush3.bf16.msra.mxu1 %v10031_v16 }
0x385b   :  { %7519 = vmatprep.subr.bf16.mxu1 %v8786_v2 }
0x385e   :  { %7520 = vmatpush3.bf16.msra.mxu1 %v10036_v27 }
0x385f   :  { %7533 = vmatprep.subr.bf16.mxu1 %v8786_v2 }
0x38be   :  { %v4537_v58 = vpop.permute.xlu1 %4536 }
0x38bf   :  { %v4539_v21 = vadd.f32 %v4537_v58, %v4471_v19 }
0x38c1   :  { %7970 = vtanh.f32 %v4539_v21 }
0x38cb   :  { %v7971_v25 = vpop.eup %7970 }
0x38cc   :  { %4543 = vrot.lane.b32.xlu1 %v7971_v25, %s8790_s16 }
0x38cf   :  { %v4559_v17 = vpop.permute.xlu1 %4558 }
0x3924   :  { %v4917_v32 = vpop.f32.mrb[132].mxu1 }
0x3925   :  { %v7499_v30 = vpop.f32.mrb[133].mxu1  ;;  %v4918_v6 = vadd.f32 %v4917_v32, %v10025_v36 }
0x3926   :  { %v4920_v63 = vpop.f32.mrb[134].mxu1  ;;  %v10445_v30 = vld [vmem:[#allocation39] ss:$0 sm:$0xff] }
0x3927   :  { %v7500_v11 = vpop.f32.mrb[135].mxu1  ;;  %v4923_v12 = vmax.f32 %v4918_v6, 0.0 }
0x3929   :  { %v4924_v28 = vpack.c.bf16 %v4923_v12, %v4923_v12 }
0x393e   :  { %v4544_v16 = vpop.permute.xlu1 %4543 }
0x393f   :  { %v4546_v27 = vmul.f32 %v4544_v16, %v4541_v29  ;;  %v10449_v29 = vld [vmem:[#allocation3] ss:$0 sm:$0xff] }
0x3941   :  { %v4548_v48 = vadd.f32 %v4547_v24, %v4546_v27 }
0x3943   :  { %v4561_v13 = vmul.f32 %v4559_v17, %v4548_v48 }
0x3945   :  { %v10383_v33 = vadd.f32 %v4561_v13, %v4555_v22 }
0x3947   :  { %v4774_v55 = vpack.c.bf16 %v10383_v33, %v10383_v33 }
0x3949   :  { %4776 = vrot.lane.b32.xlu1 %v4774_v55, %s8790_s16 }
0x39bb   :  { %v4777_v34 = vpop.permute.xlu1 %4776 }
0x39bc   :  { %7490 = vmatmul.mubr.msk.bf16.vlgmr.msra.gmra.mrb[132].mxu0 %vm661_vm9, %v4777_v34 }
0x39bd   :  { %7502 = vmatpush3.bf16.msra.mxu0 %v10390_v59  ;;  %7509 = vmatprep.mubr.msk.bf16.mxu0 %vm8787_vm0, %v8786_v2 }
0x39be   :  { %7503 = vmatprep.subr.bf16.mxu0 %v8786_v2 }
0x39c1   :  { %7504 = vmatpush3.bf16.msra.mxu0 %v10397_v7 }
0x39c2   :  { %7505 = vmatprep.subr.bf16.mxu0 %v8786_v2 }
0x39c5   :  { %7506 = vmatpush3.bf16.msra.mxu0 %v10403_v39 }
0x39c6   :  { %7507 = vmatprep.subr.bf16.mxu0 %v8786_v2 }
0x39c9   :  { %7508 = vmatpush3.bf16.msra.mxu0 %v10408_v3 }
0x39ca   :  { %7525 = vmatprep.subr.bf16.mxu0 %v8786_v2 }
0x39cc   :  { %7510 = vmatmul.mubr.msk.bf16.vlgmr.msra.gmra.mrb[136].mxu0 %vm817_vm10, %v4924_v28  ;;  %v4769_v28 = vadd.f32 %v10183_v23, %v10330_v40 }
0x39cd   :  { %7526 = vmatpush3.bf16.msra.mxu0 %v10066_v18  ;;  %7529 = vmatprep.mubr.msk.bf16.mxu0 %vm8787_vm0, %v8786_v2  ;;  %v10426_v18 = vld [vmem:[#allocation31 + $0x8] sm:$0xff]  }
0x39ce   :  { %7527 = vmatprep.subr.bf16.mxu0 %v8786_v2 }
0x39d1   :  { %7528 = vmatpush3.bf16.msra.mxu0 %v10071_v20 }
0x39d2   :  { %7541 = vmatprep.subr.bf16.mxu0 %v8786_v2 }
0x39d4   :  { %7530 = vmatmul.mubr.msk.bf16.vlgmr.msra.gmra.mrb[140].mxu0 %vm661_vm9, %v4879_v10  ;;  %v10442_v10 = vld [vmem:[#allocation37] ss:$0 sm:$0xff] }
0x39d5   :  { %7542 = vmatpush3.bf16.msra.mxu0 %v10420_v31  ;;  %7545 = vmatprep.mubr.msk.bf16.mxu0 %vm8787_vm0, %v8786_v2 }
0x39d6   :  { %7543 = vmatprep.subr.bf16.mxu0 %v8786_v2 }
0x39d9   :  { %7544 = vmatpush3.bf16.msra.mxu0 %v10426_v18 }
0x39da   :  { %7561 = vmatprep.subr.bf16.mxu0 %v8786_v2 }
0x3a8f   :  { %v4815_v20 = vpop.f32.mrb[132].mxu0 }
0x3a90   :  { %v7491_v45 = vpop.f32.mrb[133].mxu0  ;;  %v4816_v12 = vadd.f32 %v10179_v52, %v4815_v20 }
0x3a91   :  { %v4818_v50 = vpop.f32.mrb[134].mxu0 }
0x3a92   :  { %v7492_v15 = vpop.f32.mrb[135].mxu0  ;;  %v4821_v45 = vadd.f32 %v4816_v12, %v4769_v28 }
0x3a94   :  { %v6499_v50 = vmul.f32 -1.442695, %v4821_v45 }
0x3a9f   :  { %v4962_v19 = vpop.f32.mrb[136].mxu0 }
0x3aa0   :  { %v4963_v60 = vadd.f32 %v10430_v0, %v4962_v19  ;;  %v7511_v1 = vpop.f32.mrb[137].mxu0 }
0x3aa1   :  { %v4965_v26 = vpop.f32.mrb[138].mxu0 }
0x3aa2   :  { %v4968_v38 = vmax.f32 %v4963_v60, 0.0  ;;  %v7512_v14 = vpop.f32.mrb[139].mxu0 }
0x3aa4   :  { %v4969_v5 = vpack.c.bf16 %v4968_v38, %v4968_v38 }
0x3aa6   :  { %7522 = vmatmul.mubr.msk.bf16.vlgmr.msra.gmra.mrb[136].mxu1 %vm817_vm10, %v4969_v5  ;;  %v10487_v5 = vld [vmem:[%s10870_s2 + $0x8] sm:$0xff]  }
0x3aa7   :  { %v10434_v57 = vpop.f32.mrb[140].mxu0  ;;  %7534 = vmatpush3.bf16.msra.mxu1 %v10107_v47  ;;  %7537 = vmatprep.mubr.msk.bf16.mxu1 %vm8787_vm0, %v8786_v2 }
0x3aa8   :  { %v7531_v46 = vpop.f32.mrb[141].mxu0  ;;  %7535 = vmatprep.subr.bf16.mxu1 %v8786_v2 }
0x3aa9   :  { %v5067_v56 = vpop.f32.mrb[142].mxu0  ;;  %v10497_v46 = vld [vmem:[%s10870_s2 + $0x18] sm:$0xff]  }
0x3aaa   :  { %v7532_v53 = vpop.f32.mrb[143].mxu0 }
0x3aab   :  { %7536 = vmatpush3.bf16.msra.mxu1 %v10111_v41  ;;  %v5020_v41 = vpop.permute.xlu0 %5019 }
0x3aac   :  { %7549 = vmatprep.subr.bf16.mxu1 %v8786_v2 }
0x3b79   :  { %v5007_v62 = vpop.f32.mrb[136].mxu1 }
0x3b7a   :  { %v5008_v58 = vadd.f32 %v10442_v10, %v5007_v62  ;;  %v7523_v21 = vpop.f32.mrb[137].mxu1  ;;  %v10502_v62 = vld [vmem:[#allocation7 + $0x2] sm:$0x3] }
0x3b7b   :  { %v5010_v25 = vpop.f32.mrb[138].mxu1 }
0x3b7c   :  { %v5013_v47 = vmax.f32 %v5008_v58, 0.0  ;;  %v7524_v32 = vpop.f32.mrb[139].mxu1 }
0x3b7e   :  { %v5014_v63 = vmul.f32 %v10445_v30, %v5013_v47 }
0x3b80   :  { %v5015_v11 = vsel %vm938_vm11, %v5014_v63, 0.0 }
0x3b81   :  { %5016 = vadd.xlane.f32.xlu1 %v5015_v11 }
0x3c0e   :  { %v5017_v17 = vpop.xlane.xlu1 %5016 }
0x3c0f   :  { %v5018_v16 = vadd.f32 %v10449_v29, %v5017_v17 }
0x3c11   :  { %v5022_v24 = vadd.f32 %v5020_v41, %v5018_v16 }
0x3c13   :  { %v6503_v27 = vmul.f32 -10.0, %v5022_v24 }
0x3c15   :  { %v5025_v8 = vmul.f32 1.442695, %v6503_v27 }
0x3c17   :  { %7972 = vpow2.f32 %v5025_v8 }
0x3c21   :  { %v7973_v48 = vpop.eup %7972 }
0x3c22   :  { %v5027_v22 = vadd.f32 1.0, %v7973_v48 }
0x3c24   :  { %7974 = vrcp.f32 %v5027_v22 }
0x3c25   :  { %7976 = vpow2.f32 %v6499_v50 }
0x3c2e   :  { %v10452_v13 = vpop.eup %7974 }
0x3c2f   :  { %v5143_v55 = vsub.f32 1.0, %v10452_v13  ;;  %v7977_v15 = vpop.eup %7976 }
0x3c30   :  { %v4825_v19 = vadd.f32 1.0, %v7977_v15  ;;  %v10526_v15 = vld [vmem:[#allocation40] sm:$0xff]  }
0x3c31   :  { %v5157_v34 = vmul.f32 %v5143_v55, %v10352_v42 }
0x3c32   :  { %7978 = vrcp.f32 %v4825_v19  ;;  %v10532_v19 = vld [vmem:[#allocation40 + $0x8] sm:$0xff]  }
0x3c33   :  { %v10458_v6 = vadd.f32 1.0, %v5157_v34 }
0x3c35   :  { %5168 = vperm.xlu0 %7781, %v10458_v6  }
0x3c39   :  { %5161 = vperm.xlu0 %7781, %v5157_v34  }
0x3c3c   :  { %v7979_v26 = vpop.eup %7978 }
0x3c3d   :  { %4829 = vrot.lane.b32.xlu0 %v4816_v12, %s8761_s17  ;;  %v4839_v63 = vsub.f32 1.0, %v7979_v26  ;;  %v4845_v17 = vmul.f32 %v7979_v26, %v10383_v33  ;;  %v5175_v12 = vrot.slane %v10025_v36, 2 }
0x3cb4   :  { %v5169_v42 = vpop.permute.xlu0 %5168 }
0x3cb5   :  { %7980 = vrcp.f32 %v5169_v42 }
0x3cb8   :  { %v5162_v60 = vpop.permute.xlu0 %5161 }
0x3cb9   :  { %v5164_v1 = vmul.f32 %v5162_v60, %v10364_v43  ;;  %v10479_v43 = vld [vmem:[%s10870_s2] sm:$0xff]  }
0x3cbb   :  { %v5165_v38 = vadd.f32 %v9985_v4, %v5164_v1 }
0x3cbc   :  { %v4830_v52 = vpop.permute.xlu0 %4829 }
0x3cbd   :  { %v4832_v20 = vmul.f32 %v7979_v26, %v4830_v52 }
0x3cbf   :  { %v7981_v23 = vpop.eup %7980  ;;  %4834 = vrot.lane.b32.xlu0 %v4832_v20, %s8761_s17 }
0x3cc0   :  { %v10468_v40 = vmul.f32 %v7981_v23, %v5165_v38 }
0x3cc2   :  { %v10472_v14 = vpack.c.bf16 %v10468_v40, %v10468_v40 }
0x3cc3   :  { %4850 = vperm.xlu0 %7781, %v4847_v61   ;;  %v10492_v61 = vld [vmem:[%s10870_s2 + $0x10] sm:$0xff]  }
0x3cc4   :  { %7546 = vmatmul.mubr.msk.bf16.vlgmr.msra.gmra.mrb[144].mxu0 %vm661_vm9, %v10472_v14 }
0x3cc5   :  { %7562 = vmatpush3.bf16.msra.mxu0 %v10479_v43  ;;  %7569 = vmatprep.mubr.msk.bf16.mxu0 %vm8787_vm0, %v8786_v2 }
0x3cc6   :  { %7563 = vmatprep.subr.bf16.mxu0 %v8786_v2 }
0x3cc7   :  { %4856 = vperm.xlu0 %7781, %v10346_v9  }
0x3cc9   :  { %7564 = vmatpush3.bf16.msra.mxu0 %v10487_v5 }
0x3cca   :  { %7565 = vmatprep.subr.bf16.mxu0 %v8786_v2 }
0x3ccd   :  { %7566 = vmatpush3.bf16.msra.mxu0 %v10492_v61 }
0x3cce   :  { %7567 = vmatprep.subr.bf16.mxu0 %v8786_v2 }
0x3cd1   :  { %7568 = vmatpush3.bf16.msra.mxu0 %v10497_v46 }
0x3cd2   :  { %7581 = vmatprep.subr.bf16.mxu0 %v8786_v2 }
0x3d31   :  { %v4835_v56 = vpop.permute.xlu0 %4834 }
0x3d32   :  { %v4837_v9 = vadd.f32 %v4835_v56, %v4769_v28 }
0x3d34   :  { %7982 = vtanh.f32 %v4837_v9 }
0x3d3e   :  { %v7983_v53 = vpop.eup %7982 }
0x3d3f   :  { %4841 = vrot.lane.b32.xlu1 %v7983_v53, %s8790_s16 }
0x3d42   :  { %v4851_v32 = vpop.permute.xlu0 %4850 }
0x3d43   :  { %5316 = vrot.lane.b32.xlu1 %v10502_v62, %s8794_s6  ;;  %v4853_v27 = vmul.f32 %v4851_v32, %v10383_v33  ;;  %v10556_v32 = vld [vmem:[%s10871_s30 + $0x8] sm:$0xff]  }
0x3d46   :  { %v4857_v24 = vpop.permute.xlu0 %4856 }
0x3d97   :  { %v5214_v58 = vpop.f32.mrb[144].mxu0 }
0x3d98   :  { %v7547_v21 = vpop.f32.mrb[145].mxu0  ;;  %v5215_v28 = vadd.f32 %v5214_v58, %v5175_v12  ;;  %v10549_v58 = vld [vmem:[%s10871_s30] sm:$0xff]  }
0x3d99   :  { %v5217_v25 = vpop.f32.mrb[146].mxu0 }
0x3d9a   :  { %v7548_v47 = vpop.f32.mrb[147].mxu0  ;;  %v5220_v45 = vmax.f32 %v5215_v28, 0.0 }
0x3d9c   :  { %v5221_v50 = vpack.c.bf16 %v5220_v45, %v5220_v45 }
0x3db1   :  { %v4842_v11 = vpop.permute.xlu1 %4841 }
0x3db2   :  { %v4844_v41 = vmul.f32 %v4842_v11, %v4839_v63 }
0x3db4   :  { %v4846_v16 = vadd.f32 %v4845_v17, %v4844_v41 }
0x3db6   :  { %v4859_v8 = vmul.f32 %v4857_v24, %v4846_v16 }
0x3db8   :  { %v10508_v48 = vadd.f32 %v4859_v8, %v4853_v27 }
0x3dba   :  { %v5070_v22 = vpack.c.bf16 %v10508_v48, %v10508_v48 }
0x3dbc   :  { %5072 = vrot.lane.b32.xlu0 %v5070_v22, %s8790_s16 }
0x3e2e   :  { %v5073_v34 = vpop.permute.xlu0 %5072 }
0x3e2f   :  { %7538 = vmatmul.mubr.msk.bf16.vlgmr.msra.gmra.mrb[140].mxu1 %vm661_vm9, %v5073_v34  ;;  %v5317_v34 = vpop.permute.xlu1 %5316 }
0x3e30   :  { %7550 = vmatpush3.bf16.msra.mxu1 %v10390_v59  ;;  %7557 = vmatprep.mubr.msk.bf16.mxu1 %vm8787_vm0, %v8786_v2 }
0x3e31   :  { %7551 = vmatprep.subr.bf16.mxu1 %v8786_v2 }
0x3e34   :  { %7552 = vmatpush3.bf16.msra.mxu1 %v10397_v7 }
0x3e35   :  { %7553 = vmatprep.subr.bf16.mxu1 %v8786_v2 }
0x3e38   :  { %7554 = vmatpush3.bf16.msra.mxu1 %v10403_v39 }
0x3e39   :  { %7555 = vmatprep.subr.bf16.mxu1 %v8786_v2 }
0x3e3c   :  { %7556 = vmatpush3.bf16.msra.mxu1 %v10408_v3 }
0x3e3d   :  { %7573 = vmatprep.subr.bf16.mxu1 %v8786_v2 }
0x3e3f   :  { %7558 = vmatmul.mubr.msk.bf16.vlgmr.msra.gmra.mrb[144].mxu1 %vm817_vm10, %v5221_v50 }
0x3e40   :  { %7574 = vmatpush3.bf16.msra.mxu1 %v10526_v15  ;;  %7577 = vmatprep.mubr.msk.bf16.mxu1 %vm8787_vm0, %v8786_v2 }
0x3e41   :  { %7575 = vmatprep.subr.bf16.mxu1 %v8786_v2 }
0x3e44   :  { %7576 = vmatpush3.bf16.msra.mxu1 %v10532_v19 }
0x3e45   :  { %7589 = vmatprep.subr.bf16.mxu1 %v8786_v2 }
0x3e47   :  { %7578 = vmatmul.mubr.msk.bf16.vlgmr.msra.gmra.mrb[148].mxu1 %vm661_vm9, %v10472_v14 }
0x3e48   :  { %7590 = vmatpush3.bf16.msra.mxu1 %v10420_v31  ;;  %7593 = vmatprep.mubr.msk.bf16.mxu1 %vm8787_vm0, %v8786_v2 }
0x3e49   :  { %7591 = vmatprep.subr.bf16.mxu1 %v8786_v2 }
0x3e4c   :  { %7592 = vmatpush3.bf16.msra.mxu1 %v10426_v18 }
0x3e4d   :  { %7609 = vmatprep.subr.bf16.mxu1 %v8786_v2 }
0x3f02   :  { %v5111_v42 = vpop.f32.mrb[140].mxu1 }
0x3f03   :  { %v7539_v60 = vpop.f32.mrb[141].mxu1 }
0x3f04   :  { %v5114_v1 = vpop.f32.mrb[142].mxu1 }
0x3f05   :  { %v7540_v26 = vpop.f32.mrb[143].mxu1 }
0x3f12   :  { %v5259_v52 = vpop.f32.mrb[144].mxu1 }
0x3f13   :  { %v5260_v20 = vadd.f32 %v10430_v0, %v5259_v52  ;;  %v7559_v38 = vpop.f32.mrb[145].mxu1 }
0x3f14   :  { %v5262_v23 = vpop.f32.mrb[146].mxu1  ;;  %v10573_v38 = vld [vmem:[%s10872_s10] ss:$0 sm:$0xff] }
0x3f15   :  { %v5265_v14 = vmax.f32 %v5260_v20, 0.0  ;;  %v7560_v56 = vpop.f32.mrb[147].mxu1  ;;  %v5112_v23 = vadd.f32 %v10573_v38, %v5111_v42  ;;  %v5463_v42 = vrot.slane %v9985_v4, 2 }
0x3f17   :  { %v5266_v9 = vpack.c.bf16 %v5265_v14, %v5265_v14  ;;  %v10577_v14 = vld [vmem:[#allocation42] ss:$0 sm:$0xff] }
0x3f18   :  { %v5065_v56 = vadd.f32 %v10577_v14, %v10434_v57 }
0x3f19   :  { %7570 = vmatmul.mubr.msk.bf16.vlgmr.msra.gmra.mrb[148].mxu0 %vm817_vm10, %v5266_v9 }
0x3f1a   :  { %v10546_v53 = vpop.f32.mrb[148].mxu1  ;;  %7582 = vmatpush3.bf16.msra.mxu0 %v10549_v58  ;;  %7585 = vmatprep.mubr.msk.bf16.mxu0 %vm8787_vm0, %v8786_v2  ;;  %v5117_v9 = vadd.f32 %v5112_v23, %v5065_v56 }
0x3f1b   :  { %v7579_v21 = vpop.f32.mrb[149].mxu1  ;;  %7583 = vmatprep.subr.bf16.mxu0 %v8786_v2 }
0x3f1c   :  { %v5364_v25 = vpop.f32.mrb[150].mxu1  ;;  %v6506_v21 = vmul.f32 -1.442695, %v5117_v9 }
0x3f1d   :  { %v7580_v47 = vpop.f32.mrb[151].mxu1 }
0x3f1e   :  { %7584 = vmatpush3.bf16.msra.mxu0 %v10556_v32 }
0x3f1f   :  { %7597 = vmatprep.subr.bf16.mxu0 %v8786_v2 }
0x3fec   :  { %v5304_v63 = vpop.f32.mrb[148].mxu0 }
0x3fed   :  { %v5305_v11 = vadd.f32 %v10442_v10, %v5304_v63  ;;  %v7571_v17 = vpop.f32.mrb[149].mxu0 }
0x3fee   :  { %v5307_v41 = vpop.f32.mrb[150].mxu0 }
0x3fef   :  { %v5310_v16 = vmax.f32 %v5305_v11, 0.0  ;;  %v7572_v24 = vpop.f32.mrb[151].mxu0 }
0x3ff1   :  { %v5311_v27 = vmul.f32 %v10445_v30, %v5310_v16 }
0x3ff3   :  { %v5312_v8 = vsel %vm938_vm11, %v5311_v27, 0.0 }
0x3ff4   :  { %5313 = vadd.xlane.f32.xlu0 %v5312_v8 }
0x400a   :  { %5146 = vperm.xlu0 %7781, %v5143_v55  }
0x400e   :  { %5615 = vrot.lane.b32.xlu0 %v10502_v62, %s8795_s1 }
0x4081   :  { %v5314_v22 = vpop.xlane.xlu0 %5313 }
0x4082   :  { %v5315_v12 = vadd.f32 %v10449_v29, %v5314_v22 }
0x4084   :  { %v5319_v28 = vadd.f32 %v5317_v34, %v5315_v12 }
0x4086   :  { %v6510_v45 = vmul.f32 -10.0, %v5319_v28 }
0x4088   :  { %v5322_v50 = vmul.f32 1.442695, %v6510_v45 }
0x408a   :  { %7984 = vpow2.f32 %v5322_v50 }
0x4094   :  { %v7985_v60 = vpop.eup %7984 }
0x4095   :  { %v5324_v1 = vadd.f32 1.0, %v7985_v60 }
0x4097   :  { %7986 = vrcp.f32 %v5324_v1 }
0x4098   :  { %7988 = vpow2.f32 %v6506_v21 }
0x40a1   :  { %v7987_v26 = vpop.eup %7986 }
0x40a2   :  { %v5440_v52 = vsub.f32 1.0, %v7987_v26 }
0x40a4   :  { %5443 = vperm.xlu0 %7781, %v5440_v52   ;;  %v5454_v55 = vmul.f32 %v5440_v52, %v10458_v6  ;;  %v7989_v6 = vpop.eup %7988 }
0x40a5   :  { %v5121_v25 = vadd.f32 1.0, %v7989_v6 }
0x40a6   :  { %v10569_v20 = vadd.f32 1.0, %v5454_v55 }
0x40a7   :  { %7990 = vrcp.f32 %v5121_v25 }
0x40a8   :  { %5449 = vperm.xlu0 %7781, %v7987_v26   ;;  %5468 = vperm.xlu1 %7782, %v10569_v20  }
0x40ac   :  { %5458 = vperm.xlu1 %7782, %v5454_v55   ;;  %v5147_v55 = vpop.permute.xlu0 %5146 }
0x40ad   :  { %v5149_v9 = vmul.f32 %v5147_v55, %v10508_v48 }
0x40b0   :  { %5125 = vrot.lane.b32.xlu1 %v5112_v23, %s8761_s17 }
0x40b1   :  { %v7991_v17 = vpop.eup %7990 }
0x40b2   :  { %v5135_v60 = vsub.f32 1.0, %v7991_v17  ;;  %v5141_v26 = vmul.f32 %v7991_v17, %v10508_v48 }
0x4127   :  { %v5469_v47 = vpop.permute.xlu1 %5468 }
0x4128   :  { %7992 = vrcp.f32 %v5469_v47  ;;  %v5474_v47 = vrot.slane %v10025_v36, 4 }
0x412b   :  { %v5459_v63 = vpop.permute.xlu1 %5458 }
0x412c   :  { %v5461_v11 = vmul.f32 %v5459_v63, %v10468_v40 }
0x412e   :  { %v5465_v24 = vadd.f32 %v5463_v42, %v5461_v11 }
0x412f   :  { %v5126_v41 = vpop.permute.xlu1 %5125 }
0x4130   :  { %v5128_v16 = vmul.f32 %v7991_v17, %v5126_v41 }
0x4132   :  { %v7993_v57 = vpop.eup %7992  ;;  %5130 = vrot.lane.b32.xlu1 %v5128_v16, %s8761_s17 }
0x4133   :  { %v10586_v27 = vmul.f32 %v7993_v57, %v5465_v24 }
0x4135   :  { %v5473_v8 = vpack.c.bf16 %v10586_v27, %v10586_v27 }
0x4136   :  { %5152 = vperm.xlu1 %7782, %v10452_v13  }
0x4137   :  { %7594 = vmatmul.mubr.msk.bf16.vlgmr.msra.gmra.mrb[152].mxu1 %vm661_vm9, %v5473_v8 }
0x4138   :  { %7610 = vmatpush3.bf16.msra.mxu1 %v10479_v43  ;;  %7617 = vmatprep.mubr.msk.bf16.mxu1 %vm8787_vm0, %v8786_v2 }
0x4139   :  { %7611 = vmatprep.subr.bf16.mxu1 %v8786_v2 }
0x413c   :  { %7612 = vmatpush3.bf16.msra.mxu1 %v10487_v5 }
0x413d   :  { %7613 = vmatprep.subr.bf16.mxu1 %v8786_v2 }
0x4140   :  { %7614 = vmatpush3.bf16.msra.mxu1 %v10492_v61 }
0x4141   :  { %7615 = vmatprep.subr.bf16.mxu1 %v8786_v2 }
0x4144   :  { %7616 = vmatpush3.bf16.msra.mxu1 %v10497_v46 }
0x4145   :  { %7629 = vmatprep.subr.bf16.mxu1 %v8786_v2 }
0x41a4   :  { %v5131_v13 = vpop.permute.xlu1 %5130 }
0x41a5   :  { %v5133_v40 = vadd.f32 %v5131_v13, %v5065_v56 }
0x41a7   :  { %7994 = vtanh.f32 %v5133_v40 }
0x41b1   :  { %v7995_v22 = vpop.eup %7994 }
0x41b2   :  { %5137 = vrot.lane.b32.xlu1 %v7995_v22, %s8790_s16 }
0x41b5   :  { %v5153_v50 = vpop.permute.xlu1 %5152 }
0x420a   :  { %v5513_v34 = vpop.f32.mrb[152].mxu1 }
0x420b   :  { %v7595_v12 = vpop.f32.mrb[153].mxu1  ;;  %v5514_v63 = vadd.f32 %v5513_v34, %v5474_v47 }
0x420c   :  { %v5516_v28 = vpop.f32.mrb[154].mxu1 }
0x420d   :  { %v7596_v45 = vpop.f32.mrb[155].mxu1  ;;  %v5519_v11 = vmax.f32 %v5514_v63, 0.0 }
0x420f   :  { %v5520_v17 = vpack.c.bf16 %v5519_v11, %v5519_v11 }
0x4224   :  { %v5138_v1 = vpop.permute.xlu1 %5137 }
0x4225   :  { %v5140_v52 = vmul.f32 %v5138_v1, %v5135_v60  ;;  %v5362_v1 = vadd.f32 %v10577_v14, %v10546_v53 }
0x4227   :  { %v5142_v23 = vadd.f32 %v5141_v26, %v5140_v52 }
0x4229   :  { %v5155_v21 = vmul.f32 %v5153_v50, %v5142_v23 }
0x422b   :  { %v10605_v56 = vadd.f32 %v5155_v21, %v5149_v9 }
0x422d   :  { %v5367_v6 = vpack.c.bf16 %v10605_v56, %v10605_v56 }
0x422f   :  { %5369 = vrot.lane.b32.xlu1 %v5367_v6, %s8790_s16 }
0x42a1   :  { %v5370_v25 = vpop.permute.xlu1 %5369 }
0x42a2   :  { %7586 = vmatmul.mubr.msk.bf16.vlgmr.msra.gmra.mrb[152].mxu0 %vm661_vm9, %v5370_v25 }
0x42a3   :  { %7598 = vmatpush3.bf16.msra.mxu0 %v10390_v59  ;;  %7605 = vmatprep.mubr.msk.bf16.mxu0 %vm8787_vm0, %v8786_v2 }
0x42a4   :  { %7599 = vmatprep.subr.bf16.mxu0 %v8786_v2 }
0x42a7   :  { %7600 = vmatpush3.bf16.msra.mxu0 %v10397_v7 }
0x42a8   :  { %7601 = vmatprep.subr.bf16.mxu0 %v8786_v2 }
0x42ab   :  { %7602 = vmatpush3.bf16.msra.mxu0 %v10403_v39 }
0x42ac   :  { %7603 = vmatprep.subr.bf16.mxu0 %v8786_v2 }
0x42af   :  { %7604 = vmatpush3.bf16.msra.mxu0 %v10408_v3 }
0x42b0   :  { %7621 = vmatprep.subr.bf16.mxu0 %v8786_v2 }
0x42b2   :  { %7606 = vmatmul.mubr.msk.bf16.vlgmr.msra.gmra.mrb[156].mxu0 %vm817_vm10, %v5520_v17 }
0x42b3   :  { %7622 = vmatpush3.bf16.msra.mxu0 %v10526_v15  ;;  %7625 = vmatprep.mubr.msk.bf16.mxu0 %vm8787_vm0, %v8786_v2 }
0x42b4   :  { %7623 = vmatprep.subr.bf16.mxu0 %v8786_v2 }
0x42b7   :  { %7624 = vmatpush3.bf16.msra.mxu0 %v10532_v19 }
0x42b8   :  { %7637 = vmatprep.subr.bf16.mxu0 %v8786_v2 }
0x42ba   :  { %7626 = vmatmul.mubr.msk.bf16.vlgmr.msra.gmra.mrb[160].mxu0 %vm661_vm9, %v5473_v8 }
0x42bb   :  { %7638 = vmatpush3.bf16.msra.mxu0 %v10420_v31  ;;  %7641 = vmatprep.mubr.msk.bf16.mxu0 %vm8787_vm0, %v8786_v2 }
0x42bc   :  { %7639 = vmatprep.subr.bf16.mxu0 %v8786_v2 }
0x42bf   :  { %7640 = vmatpush3.bf16.msra.mxu0 %v10426_v18 }
0x42c0   :  { %7657 = vmatprep.subr.bf16.mxu0 %v8786_v2 }
0x4375   :  { %v5408_v41 = vpop.f32.mrb[152].mxu0 }
0x4376   :  { %v5409_v16 = vadd.f32 %v10573_v38, %v5408_v41  ;;  %v7587_v24 = vpop.f32.mrb[153].mxu0 }
0x4377   :  { %v5411_v57 = vpop.f32.mrb[154].mxu0 }
0x4378   :  { %5422 = vrot.lane.b32.xlu1 %v5409_v16, %s8761_s17  ;;  %v7588_v13 = vpop.f32.mrb[155].mxu0  ;;  %v5414_v26 = vadd.f32 %v5409_v16, %v5362_v1 }
0x437a   :  { %v6513_v52 = vmul.f32 -1.442695, %v5414_v26 }
0x437c   :  { %7996 = vpow2.f32 %v6513_v52 }
0x4385   :  { %v5558_v8 = vpop.f32.mrb[156].mxu0 }
0x4386   :  { %v5559_v31 = vadd.f32 %v10430_v0, %v5558_v8  ;;  %v7607_v40 = vpop.f32.mrb[157].mxu0  ;;  %v7997_v55 = vpop.eup %7996 }
0x4387   :  { %v5561_v22 = vpop.f32.mrb[158].mxu0  ;;  %v5418_v23 = vadd.f32 1.0, %v7997_v55  ;;  %v5616_v8 = vpop.permute.xlu0 %5615 }
0x4388   :  { %v5564_v34 = vmax.f32 %v5559_v31, 0.0  ;;  %v7608_v12 = vpop.f32.mrb[159].mxu0 }
0x4389   :  { %7998 = vrcp.f32 %v5418_v23 }
0x438a   :  { %v5565_v28 = vpack.c.bf16 %v5564_v34, %v5564_v34 }
0x438b   :  { %v5444_v31 = vpop.permute.xlu0 %5443 }
0x438c   :  { %7618 = vmatmul.mubr.msk.bf16.vlgmr.msra.gmra.mrb[156].mxu1 %vm817_vm10, %v5565_v28 }
0x438d   :  { %v10640_v18 = vpop.f32.mrb[160].mxu0  ;;  %7630 = vmatpush3.bf16.msra.mxu1 %v10549_v58  ;;  %7633 = vmatprep.mubr.msk.bf16.mxu1 %vm8787_vm0, %v8786_v2 }
0x438e   :  { %v7627_v45 = vpop.f32.mrb[161].mxu0  ;;  %7631 = vmatprep.subr.bf16.mxu1 %v8786_v2 }
0x438f   :  { %v5663_v50 = vpop.f32.mrb[162].mxu0  ;;  %v5450_v40 = vpop.permute.xlu0 %5449 }
0x4390   :  { %v7628_v60 = vpop.f32.mrb[163].mxu0  ;;  %v5446_v50 = vmul.f32 %v5444_v31, %v10605_v56 }
0x4391   :  { %7632 = vmatpush3.bf16.msra.mxu1 %v10556_v32 }
0x4392   :  { %7645 = vmatprep.subr.bf16.mxu1 %v8786_v2 }
0x4393   :  { %v7999_v9 = vpop.eup %7998 }
0x4394   :  { %v5432_v22 = vsub.f32 1.0, %v7999_v9  ;;  %v5438_v12 = vmul.f32 %v7999_v9, %v10605_v56 }
0x43ea   :  { %v5423_v21 = vpop.permute.xlu1 %5422 }
0x43eb   :  { %v5425_v6 = vmul.f32 %v7999_v9, %v5423_v21 }
0x43ed   :  { %5427 = vrot.lane.b32.xlu1 %v5425_v6, %s8761_s17 }
0x445f   :  { %v5603_v25 = vpop.f32.mrb[156].mxu1  ;;  %v5428_v47 = vpop.permute.xlu1 %5427 }
0x4460   :  { %v5604_v63 = vadd.f32 %v10442_v10, %v5603_v25  ;;  %v5430_v11 = vadd.f32 %v5428_v47, %v5362_v1  ;;  %v7619_v17 = vpop.f32.mrb[157].mxu1 }
0x4461   :  { %v5606_v41 = vpop.f32.mrb[158].mxu1 }
0x4462   :  { %v5609_v24 = vmax.f32 %v5604_v63, 0.0  ;;  %8000 = vtanh.f32 %v5430_v11  ;;  %v7620_v53 = vpop.f32.mrb[159].mxu1 }
0x4464   :  { %v5610_v16 = vmul.f32 %v10445_v30, %v5609_v24  ;;  %v5761_v24 = vrot.slane %v9985_v4, 4 }
0x4466   :  { %v5611_v57 = vsel %vm938_vm11, %v5610_v16, 0.0 }
0x4467   :  { %5612 = vadd.xlane.f32.xlu1 %v5611_v57 }
0x446c   :  { %v8001_v13 = vpop.eup %8000 }
0x446d   :  { %5434 = vrot.lane.b32.xlu0 %v8001_v13, %s8790_s16 }
0x44df   :  { %v5435_v34 = vpop.permute.xlu0 %5434 }
0x44e0   :  { %v5437_v28 = vmul.f32 %v5435_v34, %v5432_v22  ;;  %v5661_v22 = vadd.f32 %v10577_v14, %v10640_v18 }
0x44e2   :  { %v5439_v45 = vadd.f32 %v5438_v12, %v5437_v28 }
0x44e4   :  { %v5452_v60 = vmul.f32 %v5450_v40, %v5439_v45 }
0x44e6   :  { %v10657_v1 = vadd.f32 %v5452_v60, %v5446_v50 }
0x44e8   :  { %v5666_v26 = vpack.c.bf16 %v10657_v1, %v10657_v1 }
0x44ea   :  { %5668 = vrot.lane.b32.xlu0 %v5666_v26, %s8790_s16 }
0x44f4   :  { %v5613_v52 = vpop.xlane.xlu1 %5612 }
0x44f5   :  { %v5614_v55 = vadd.f32 %v10449_v29, %v5613_v52 }
0x44f7   :  { %v5618_v23 = vadd.f32 %v5616_v8, %v5614_v55 }
0x44f9   :  { %v6517_v21 = vmul.f32 -10.0, %v5618_v23 }
0x44fb   :  { %v5621_v6 = vmul.f32 1.442695, %v6517_v21 }
0x44fd   :  { %8002 = vpow2.f32 %v5621_v6 }
0x4507   :  { %v8003_v9 = vpop.eup %8002 }
0x4508   :  { %v5623_v25 = vadd.f32 1.0, %v8003_v9 }
0x450a   :  { %8004 = vrcp.f32 %v5623_v25 }
0x4514   :  { %v10663_v47 = vpop.eup %8004 }
0x4515   :  { %v5739_v63 = vsub.f32 1.0, %v10663_v47 }
0x4517   :  { %5742 = vperm.xlu1 %7782, %v5739_v63   ;;  %v5753_v11 = vmul.f32 %v5739_v63, %v10569_v20 }
0x4519   :  { %v10667_v17 = vadd.f32 1.0, %v5753_v11 }
0x451b   :  { %5766 = vperm.xlu0 %7781, %v10667_v17   ;;  %5913 = vrot.lane.b32.xlu1 %v10502_v62, %s8796_s20 }
0x451f   :  { %5757 = vperm.xlu0 %7781, %v5753_v11  }
0x455c   :  { %v5669_v41 = vpop.permute.xlu0 %5668 }
0x455d   :  { %7634 = vmatmul.mubr.msk.bf16.vlgmr.msra.gmra.mrb[160].mxu1 %vm661_vm9, %v5669_v41 }
0x455e   :  { %7646 = vmatpush3.bf16.msra.mxu1 %v10390_v59  ;;  %7653 = vmatprep.mubr.msk.bf16.mxu1 %vm8787_vm0, %v8786_v2 }
0x455f   :  { %7647 = vmatprep.subr.bf16.mxu1 %v8786_v2 }
0x4562   :  { %7648 = vmatpush3.bf16.msra.mxu1 %v10397_v7 }
0x4563   :  { %7649 = vmatprep.subr.bf16.mxu1 %v8786_v2 }
0x4566   :  { %7650 = vmatpush3.bf16.msra.mxu1 %v10403_v39 }
0x4567   :  { %7651 = vmatprep.subr.bf16.mxu1 %v8786_v2 }
0x456a   :  { %7652 = vmatpush3.bf16.msra.mxu1 %v10408_v3 }
0x456b   :  { %7669 = vmatprep.subr.bf16.mxu1 %v8786_v2 }
0x459a   :  { %v5767_v62 = vpop.permute.xlu0 %5766 }
0x459b   :  { %8006 = vrcp.f32 %v5767_v62 }
0x459e   :  { %v5758_v59 = vpop.permute.xlu0 %5757 }
0x459f   :  { %v5760_v20 = vmul.f32 %v5758_v59, %v10586_v27 }
0x45a1   :  { %v5763_v7 = vadd.f32 %v5761_v24, %v5760_v20 }
0x45a5   :  { %v8007_v53 = vpop.eup %8006 }
0x45a6   :  { %v10687_v16 = vmul.f32 %v8007_v53, %v5763_v7 }
0x45a8   :  { %v5771_v39 = vpack.c.bf16 %v10687_v16, %v10687_v16 }
0x45aa   :  { %7642 = vmatmul.mubr.msk.bf16.vlgmr.msra.gmra.mrb[164].mxu0 %vm661_vm9, %v5771_v39 }
0x45ab   :  { %7658 = vmatpush3.bf16.msra.mxu0 %v10479_v43  ;;  %7665 = vmatprep.mubr.msk.bf16.mxu0 %vm8787_vm0, %v8786_v2 }
0x45ac   :  { %7659 = vmatprep.subr.bf16.mxu0 %v8786_v2 }
0x45af   :  { %7660 = vmatpush3.bf16.msra.mxu0 %v10487_v5  ;;  %v5772_v5 = vrot.slane %v10025_v36, 6 }
0x45b0   :  { %7661 = vmatprep.subr.bf16.mxu0 %v8786_v2 }
0x45b3   :  { %7662 = vmatpush3.bf16.msra.mxu0 %v10492_v61 }
0x45b4   :  { %7663 = vmatprep.subr.bf16.mxu0 %v8786_v2 }
0x45b7   :  { %7664 = vmatpush3.bf16.msra.mxu0 %v10497_v46 }
0x45b8   :  { %7677 = vmatprep.subr.bf16.mxu0 %v8786_v2 }
0x4630   :  { %v5707_v3 = vpop.f32.mrb[160].mxu1 }
0x4631   :  { %v5708_v43 = vadd.f32 %v10573_v38, %v5707_v3  ;;  %v7635_v27 = vpop.f32.mrb[161].mxu1 }
0x4632   :  { %v5710_v57 = vpop.f32.mrb[162].mxu1 }
0x4633   :  { %5721 = vrot.lane.b32.xlu0 %v5708_v43, %s8761_s17  ;;  %v7636_v13 = vpop.f32.mrb[163].mxu1  ;;  %v5713_v12 = vadd.f32 %v5708_v43, %v5661_v22 }
0x4635   :  { %v6520_v45 = vmul.f32 -1.442695, %v5713_v12 }
0x4637   :  { %8008 = vpow2.f32 %v6520_v45 }
0x4641   :  { %v8009_v36 = vpop.eup %8008 }
0x4642   :  { %v5717_v18 = vadd.f32 1.0, %v8009_v36 }
0x4644   :  { %8010 = vrcp.f32 %v5717_v18 }
0x464e   :  { %v8011_v50 = vpop.eup %8010 }
0x464f   :  { %v5731_v59 = vsub.f32 1.0, %v8011_v50  ;;  %v5737_v7 = vmul.f32 %v8011_v50, %v10657_v1 }
0x467d   :  { %v5811_v8 = vpop.f32.mrb[164].mxu0 }
0x467e   :  { %v5812_v31 = vadd.f32 %v5811_v8, %v5772_v5  ;;  %v7643_v40 = vpop.f32.mrb[165].mxu0 }
0x467f   :  { %v5814_v61 = vpop.f32.mrb[166].mxu0 }
0x4680   :  { %v5817_v46 = vmax.f32 %v5812_v31, 0.0  ;;  %v7644_v34 = vpop.f32.mrb[167].mxu0 }
0x4682   :  { %v5818_v28 = vpack.c.bf16 %v5817_v46, %v5817_v46 }
0x4684   :  { %7654 = vmatmul.mubr.msk.bf16.vlgmr.msra.gmra.mrb[164].mxu1 %vm817_vm10, %v5818_v28 }
0x4685   :  { %7670 = vmatpush3.bf16.msra.mxu1 %v10526_v15  ;;  %7673 = vmatprep.mubr.msk.bf16.mxu1 %vm8787_vm0, %v8786_v2 }
0x4686   :  { %7671 = vmatprep.subr.bf16.mxu1 %v8786_v2 }
0x4689   :  { %7672 = vmatpush3.bf16.msra.mxu1 %v10532_v19 }
0x468a   :  { %7685 = vmatprep.subr.bf16.mxu1 %v8786_v2 }
0x468c   :  { %7674 = vmatmul.mubr.msk.bf16.vlgmr.msra.gmra.mrb[168].mxu1 %vm661_vm9, %v5771_v39  ;;  %v5743_v39 = vpop.permute.xlu1 %5742 }
0x468d   :  { %7686 = vmatpush3.bf16.msra.mxu1 %v10526_v15  ;;  %7689 = vmatprep.mubr.msk.bf16.mxu1 %vm8787_vm0, %v8786_v2  ;;  %v5745_v43 = vmul.f32 %v5743_v39, %v10657_v1 }
0x468e   :  { %7687 = vmatprep.subr.bf16.mxu1 %v8786_v2 }
0x4691   :  { %7688 = vmatpush3.bf16.msra.mxu1 %v10532_v19 }
0x46a5   :  { %v5722_v60 = vpop.permute.xlu0 %5721 }
0x46a6   :  { %v5724_v26 = vmul.f32 %v8011_v50, %v5722_v60 }
0x46a8   :  { %5726 = vrot.lane.b32.xlu0 %v5724_v26, %s8761_s17 }
0x46ac   :  { %5748 = vperm.xlu0 %7781, %v10663_v47  }
0x471a   :  { %v5727_v52 = vpop.permute.xlu0 %5726 }
0x471b   :  { %v5729_v55 = vadd.f32 %v5727_v52, %v5661_v22 }
0x471d   :  { %8012 = vtanh.f32 %v5729_v55 }
0x4727   :  { %v8013_v15 = vpop.eup %8012 }
0x4728   :  { %5733 = vrot.lane.b32.xlu0 %v8013_v15, %s8790_s16 }
0x4757   :  { %v5856_v23 = vpop.f32.mrb[164].mxu1 }
0x4758   :  { %v5857_v21 = vadd.f32 %v10430_v0, %v5856_v23  ;;  %v7655_v19 = vpop.f32.mrb[165].mxu1  ;;  %v5749_v0 = vpop.permute.xlu0 %5748 }
0x4759   :  { %v5859_v6 = vpop.f32.mrb[166].mxu1  ;;  %v5914_v23 = vpop.permute.xlu1 %5913 }
0x475a   :  { %v5862_v9 = vmax.f32 %v5857_v21, 0.0  ;;  %v7656_v25 = vpop.f32.mrb[167].mxu1 }
0x475c   :  { %v5863_v63 = vpack.c.bf16 %v5862_v9, %v5862_v9 }
0x475e   :  { %7666 = vmatmul.mubr.msk.bf16.vlgmr.msra.gmra.mrb[168].mxu0 %vm817_vm10, %v5863_v63 }
0x475f   :  { %v5958_v11 = vpop.f32.mrb[168].mxu1  ;;  %7678 = vmatpush3.bf16.msra.mxu0 %v10549_v58  ;;  %7681 = vmatprep.mubr.msk.bf16.mxu0 %vm8787_vm0, %v8786_v2 }
0x4760   :  { %v7675_v47 = vpop.f32.mrb[169].mxu1  ;;  %7679 = vmatprep.subr.bf16.mxu0 %v8786_v2 }
0x4761   :  { %v5961_v41 = vpop.f32.mrb[170].mxu1 }
0x4762   :  { %v7676_v62 = vpop.f32.mrb[171].mxu1 }
0x4763   :  { %7680 = vmatpush3.bf16.msra.mxu0 %v10556_v32 }
0x4764   :  { %7693 = vmatprep.subr.bf16.mxu0 %v8786_v2 }
0x479a   :  { %v5734_v20 = vpop.permute.xlu0 %5733 }
0x479b   :  { %v5736_v53 = vmul.f32 %v5734_v20, %v5731_v59 }
0x479d   :  { %v5738_v3 = vadd.f32 %v5737_v7, %v5736_v53 }
0x479f   :  { %v5751_v27 = vmul.f32 %v5749_v0, %v5738_v3 }
0x47a1   :  { %v10733_v57 = vadd.f32 %v5751_v27, %v5745_v43 }
0x47a3   :  { %v5964_v13 = vpack.c.bf16 %v10733_v57, %v10733_v57 }
0x47a5   :  { %5966 = vrot.lane.b32.xlu0 %v5964_v13, %s8790_s16 }
0x4817   :  { %v5967_v5 = vpop.permute.xlu0 %5966 }
0x4818   :  { %7682 = vmatmul.mubr.msk.bf16.vlgmr.msra.gmra.mrb[172].mxu0 %vm661_vm9, %v5967_v5 }
0x4819   :  { %7694 = vmatpush3.bf16.msra.mxu0 %v10549_v58  ;;  %7697 = vmatprep.mubr.msk.bf16.mxu0 %vm8787_vm0, %v8786_v2 }
0x481a   :  { %7695 = vmatprep.subr.bf16.mxu0 %v8786_v2 }
0x481d   :  { %7696 = vmatpush3.bf16.msra.mxu0 %v10556_v32  ;;  %v5959_v32 = vadd.f32 %v10577_v14, %v5958_v11 }
0x4831   :  { %v5901_v8 = vpop.f32.mrb[168].mxu0 }
0x4832   :  { %v7667_v31 = vpop.f32.mrb[169].mxu0  ;;  %v5902_v58 = vadd.f32 %v10442_v10, %v5901_v8 }
0x4833   :  { %v5904_v40 = vpop.f32.mrb[170].mxu0 }
0x4834   :  { %v7668_v61 = vpop.f32.mrb[171].mxu0  ;;  %v5907_v45 = vmax.f32 %v5902_v58, 0.0 }
0x4836   :  { %v5908_v36 = vmul.f32 %v10445_v30, %v5907_v45 }
0x4838   :  { %v5909_v2 = vsel %vm938_vm11, %v5908_v36, 0.0 }
0x48eb   :  { %v6005_v22 = vpop.f32.mrb[172].mxu0 }
0x48ec   :  { %v6006_v46 = vadd.f32 %v10573_v38, %v6005_v22  ;;  %v7683_v34 = vpop.f32.mrb[173].mxu0 }
0x48ed   :  { %v6008_v12 = vpop.f32.mrb[174].mxu0 }
0x48ee   :  { %6019 = vrot.lane.b32.xlu0 %v6006_v46, %s8761_s17  ;;  %v7684_v28 = vpop.f32.mrb[175].mxu0  ;;  %v6011_v18 = vadd.f32 %v6006_v46, %v5959_v32  ;;  %v6059_v46 = vrot.slane %v9985_v4, 6 }
0x48f0   :  { %v6527_v50 = vmul.f32 -1.442695, %v6011_v18 }
0x48f2   :  { %8014 = vpow2.f32 %v6527_v50 }
0x48fc   :  { %v8015_v60 = vpop.eup %8014 }
0x48fd   :  { %v6015_v26 = vadd.f32 1.0, %v8015_v60 }
0x48ff   :  { %8016 = vrcp.f32 %v6015_v26 }
0x4909   :  { %v8017_v52 = vpop.eup %8016 }
0x490a   :  { %v6035_v7 = vmul.f32 %v8017_v52, %v10733_v57 }
0x490d   :  { %5910 = vadd.xlane.f32.xlu0 %v5909_v2 }
0x4960   :  { %v6020_v55 = vpop.permute.xlu0 %6019 }
0x4961   :  { %v6022_v15 = vmul.f32 %v8017_v52, %v6020_v55 }
0x4963   :  { %6024 = vrot.lane.b32.xlu1 %v6022_v15, %s8761_s17 }
0x499a   :  { %v5911_v10 = vpop.xlane.xlu0 %5910 }
0x499b   :  { %v5912_v30 = vadd.f32 %v10449_v29, %v5911_v10  ;;  %v6029_v29 = vsub.f32 1.0, %v8017_v52 }
0x499d   :  { %v5916_v21 = vadd.f32 %v5914_v23, %v5912_v30 }
0x499f   :  { %v6524_v19 = vmul.f32 -10.0, %v5916_v21 }
0x49a1   :  { %v5919_v6 = vmul.f32 1.442695, %v6524_v19 }
0x49a3   :  { %8018 = vpow2.f32 %v5919_v6 }
0x49ad   :  { %v8019_v9 = vpop.eup %8018 }
0x49ae   :  { %v5921_v25 = vadd.f32 1.0, %v8019_v9 }
0x49b0   :  { %8020 = vrcp.f32 %v5921_v25 }
0x49ba   :  { %v8021_v63 = vpop.eup %8020 }
0x49bb   :  { %6046 = vperm.xlu1 %7782, %v8021_v63   ;;  %v6037_v11 = vsub.f32 1.0, %v8021_v63 }
0x49bd   :  { %v6051_v5 = vmul.f32 %v6037_v11, %v10667_v17 }
0x49bf   :  { %6040 = vperm.xlu1 %7782, %v6037_v11   ;;  %v6052_v8 = vadd.f32 1.0, %v6051_v5 }
0x49d5   :  { %v6025_v47 = vpop.permute.xlu1 %6024 }
0x49d6   :  { %v6027_v41 = vadd.f32 %v6025_v47, %v5959_v32 }
0x49d8   :  { %8022 = vtanh.f32 %v6027_v41 }
0x49e2   :  { %v8023_v62 = vpop.eup %8022 }
0x49e3   :  { %6031 = vrot.lane.b32.xlu1 %v8023_v62, %s8790_s16 }
0x4a3a   :  { %v6047_v0 = vpop.permute.xlu1 %6046 }
0x4a3e   :  { %v6041_v59 = vpop.permute.xlu1 %6040 }
0x4a3f   :  { %v6043_v3 = vmul.f32 %v6041_v59, %v10733_v57 }
0x4a55   :  { %v6032_v20 = vpop.permute.xlu1 %6031 }
0x4a56   :  { %v6034_v53 = vmul.f32 %v6032_v20, %v6029_v29 }
0x4a58   :  { %v6036_v39 = vadd.f32 %v6035_v7, %v6034_v53 }
0x4a5a   :  { %v6049_v43 = vmul.f32 %v6047_v0, %v6036_v39 }
0x4a5c   :  { %v6050_v27 = vadd.f32 %v6049_v43, %v6043_v3 }
0x4a5e   :  { %v6113_v13 = vpack.c.bf16 %v6050_v27, %v6050_v27 }
0x4a60   :  { %6115 = vrot.lane.b32.xlu1 %v6113_v13, %s8790_s16 }
0x4a64   :  { %6064 = vperm.xlu1 %7782, %v6052_v8  }
0x4a68   :  { %6055 = vperm.xlu1 %7782, %v6051_v5  }
0x4ad2   :  { %v6116_v31 = vpop.permute.xlu1 %6115 }
0x4ad3   :  { %7698 = vmatmul.mubr.msk.bf16.vlgmr.msra.gmra.mrb[176].mxu0 %vm661_vm9, %v6116_v31 }
0x4ae3   :  { %v6065_v40 = vpop.permute.xlu1 %6064 }
0x4ae4   :  { %8024 = vrcp.f32 %v6065_v40 }
0x4ae7   :  { %v6056_v61 = vpop.permute.xlu1 %6055 }
0x4ae8   :  { %v6058_v22 = vmul.f32 %v6056_v61, %v10687_v16 }
0x4aea   :  { %v6061_v34 = vadd.f32 %v6059_v46, %v6058_v22 }
0x4aee   :  { %v8025_v12 = vpop.eup %8024 }
0x4aef   :  { %v6068_v28 = vmul.f32 %v8025_v12, %v6061_v34 }
0x4af1   :  { %v6069_v58 = vpack.c.bf16 %v6068_v28, %v6068_v28 }
0x4af3   :  { %7690 = vmatmul.mubr.msk.bf16.vlgmr.msra.gmra.mrb[172].mxu1 %vm661_vm9, %v6069_v58 }
0x4ba6   :  { %v6154_v17 = vpop.f32.mrb[176].mxu0 }
0x4ba7   :  { %v6155_v45 = vadd.f32 %v10573_v38, %v6154_v17  ;;  %v7699_v36 = vpop.f32.mrb[177].mxu0 }
0x4ba8   :  { %v6157_v2 = vpop.f32.mrb[178].mxu0 }
0x4ba9   :  { %6168 = vrot.lane.b32.xlu0 %v6155_v45, %s8761_s17  ;;  %v7700_v32 = vpop.f32.mrb[179].mxu0 }
0x4bad   :  { %6228 = vrot.lane.b32.xlu0 %v10383_v33, %s8756_s26 }
0x4bb1   :  { %6189 = vrot.lane.b32.xlu0 %v4571_v37, %s8761_s17 }
0x4bb5   :  { %6232 = vrot.lane.b32.xlu0 %v10508_v48, %s8761_s17 }
0x4bb9   :  { %6192 = vrot.lane.b32.xlu0 %v4869_v44, %s8790_s16 }
0x4bc6   :  { %v6107_v38 = vpop.f32.mrb[172].mxu1 }
0x4bc7   :  { %v7691_v16 = vpop.f32.mrb[173].mxu1  ;;  %v6108_v60 = vadd.f32 %v10577_v14, %v6107_v38 }
0x4bc8   :  { %v6110_v18 = vpop.f32.mrb[174].mxu1 }
0x4bc9   :  { %v7692_v50 = vpop.f32.mrb[175].mxu1  ;;  %v6160_v26 = vadd.f32 %v6155_v45, %v6108_v60 }
0x4bcb   :  { %v6530_v52 = vmul.f32 -1.442695, %v6160_v26 }
0x4bcd   :  { %8026 = vpow2.f32 %v6530_v52 }
0x4bd7   :  { %v8027_v33 = vpop.eup %8026 }
0x4bd8   :  { %v6164_v55 = vadd.f32 1.0, %v8027_v33 }
0x4bda   :  { %8028 = vrcp.f32 %v6164_v55 }
0x4be4   :  { %v8029_v37 = vpop.eup %8028 }
0x4c1b   :  { %v6169_v15 = vpop.permute.xlu0 %6168 }
0x4c1c   :  { %v6171_v10 = vmul.f32 %v8029_v37, %v6169_v15 }
0x4c1e   :  { %6173 = vrot.lane.b32.xlu1 %v6171_v10, %s8761_s17 }
0x4c1f   :  { %v6229_v6 = vpop.permute.xlu0 %6228 }
0x4c23   :  { %v6190_v9 = vpop.permute.xlu0 %6189 }
0x4c27   :  { %v6233_v11 = vpop.permute.xlu0 %6232 }
0x4c90   :  { %v6174_v48 = vpop.permute.xlu1 %6173 }
0x4c91   :  { %v6176_v23 = vadd.f32 %v6174_v48, %v6108_v60 }
0x4c93   :  { %8030 = vtanh.f32 %v6176_v23 }
0x4c9d   :  { %v8031_v44 = vpop.eup %8030 }
0x4c9e   :  { %6180 = vrot.lane.b32.xlu1 %v8031_v44, %s8790_s16 }
0x4ca2   :  { %6224 = vrot.lane.b32.xlu1 %v10212_v51, %s8790_s16  ;;  %v6178_v51 = vsub.f32 1.0, %v8029_v37 }
0x4ca6   :  { %6236 = vrot.lane.b32.xlu1 %v10605_v56, %s8790_s16  ;;  %v6184_v56 = vmul.f32 %v8029_v37, %v6050_v27 }
0x4caa   :  { %6186 = vrot.lane.b32.xlu1 %v4273_v54, %s8756_s26 }
0x4cae   :  { %6195 = vrot.lane.b32.xlu1 %v5463_v42, %s8756_s26 }
0x4cb2   :  { %6240 = vrot.lane.b32.xlu1 %v10733_v57, %s8756_s26  ;;  %s8797_s26 = smov [#allocation44]  }
0x4cb6   :  { %6198 = vrot.lane.b32.xlu1 %v5761_v24, %s8761_s17 }
0x4cba   :  { %6244 = vrot.lane.b32.xlu1 %v6050_v27, %s8761_s17  ;;  %s6287_s17 = sshll.u32 %s8797_s26, 4  ;;  %s6288_s17 = int_to_ptr.vmem [resolvable:$true] %s6287_s17 }
0x4cbb   :  { %s8624_s4 = scalar_lea.vmem %s6288_s17, 64  ;;  %p8629_p5 = scmp.lt.s32.totalorder %s6288_s17, %s6288_s17 }
0x4cbc   :  { %p8625_p4 = scmp.ne.s32.totalorder %s6288_s17, %s8624_s4  ;;  %p8630_p6 = scmp.lt.s32.totalorder %s8624_s4, %s8624_s4 }
0x4cbe   :  { %6201 = vrot.lane.b32.xlu1 %v6059_v46, %s8790_s16  ;;  %p8631_p7 = por %p8630_p6, %p8629_p5 }
0x4cc0   :  { %p8632_p8 = pnand %p8631_p7, %p8625_p4 }
0x4d10   :  { %v6181_v14 = vpop.permute.xlu1 %6180 }
0x4d11   :  { %v6183_v30 = vmul.f32 %v6181_v14, %v6178_v51 }
0x4d13   :  { %v6185_v54 = vadd.f32 %v6184_v56, %v6183_v30 }
0x4d14   :  { %v6225_v21 = vpop.permute.xlu1 %6224 }
0x4d15   :  { %6266 = vrot.lane.b32.xlu0 %v6185_v54, %s8790_s16  ;;  %v6247_v24 = vsel %vm661_vm9, %v6225_v21, %v10298_v49 }
0x4d16   :  { %v6248_v47 = vsel %vm817_vm10, %v6247_v24, %v6229_v6 }
0x4d17   :  { %v6249_v29 = vsel %vm6206_vm12, %v6248_v47, %v6233_v11 }
0x4d18   :  { %v6237_v42 = vpop.permute.xlu1 %6236 }
0x4d19   :  { %v6250_v41 = vsel %vm661_vm9, %v6237_v42, %v10657_v1  ;;  %v6193_v1 = vpop.permute.xlu0 %6192 }
0x4d1c   :  { %v6187_v19 = vpop.permute.xlu1 %6186 }
0x4d1d   :  { %v6204_v62 = vsel %vm661_vm9, %v9983_v35, %v6187_v19 }
0x4d1e   :  { %v6205_v20 = vsel %vm817_vm10, %v6204_v62, %v6190_v9 }
0x4d1f   :  { %v6207_v3 = vsel %vm6206_vm12, %v6205_v20, %v6193_v1 }
0x4d20   :  { %v6196_v57 = vpop.permute.xlu1 %6195 }
0x4d21   :  { %v6208_v53 = vsel %vm661_vm9, %v9985_v4, %v6196_v57 }
0x4d24   :  { %v6241_v25 = vpop.permute.xlu1 %6240 }
0x4d25   :  { %v6251_v0 = vsel %vm817_vm10, %v6250_v41, %v6241_v25 }
0x4d28   :  { %v6199_v63 = vpop.permute.xlu1 %6198 }
0x4d29   :  { %v6209_v35 = vsel %vm817_vm10, %v6208_v53, %v6199_v63 }
0x4d2c   :  { %v6245_v59 = vpop.permute.xlu1 %6244 }
0x4d2d   :  { %v6252_v49 = vsel %vm6206_vm12, %v6251_v0, %v6245_v59 }
0x4d2e   :  { %v6255_v7 = vcombine.low %v6249_v29, %v6252_v49 }
0x4d30   :  { %6532 = vst.sshfl [vmem:[#allocation44] sm:$0x33 pattern:$0x76325410] %v6255_v7  ;;  %v6202_v39 = vpop.permute.xlu1 %6201 }
0x4d31   :  { %v6210_v43 = vsel %vm6206_vm12, %v6209_v35, %v6202_v39 }
0x4d32   :  { %8635 = shalt.err (!%p8632_p8)
}
0x4d33   :  { %s8636_s5 = scalar_lea.hbm %s8971_s7, 64 }
0x4d34   :  { %p8637_p9 = scmp.ne.s32.totalorder %s8971_s7, %s8636_s5  ;;  %p8640_p10 = scmp.lt.u32.totalorder %s8636_s5, %s8971_s7 }
0x4d36   :  { %p8642_p11 = pnand %p8640_p10, %p8637_p9 }
0x4d38   :  { %8645 = shalt.err (!%p8642_p11)
}
0x4d39   :  { %6290 = dma.vmem_to_hbm [thread:$0]  %s6288_s17, 64, %s8971_s7, [#allocation45]   ;;  %v6213_v4 = vcombine.low %v6207_v3, %v6210_v43 }
0x4d3a   :  { %s8646_s9 = scalar_lea.vmem %s6278_s27, 64  ;;  %p8651_p13 = scmp.lt.s32.totalorder %s6278_s27, %s6278_s27 }
0x4d3b   :  { %6531 = vst.sshfl [vmem:[#allocation43] sm:$0x33 pattern:$0x76325410] %v6213_v4  ;;  %p8647_p12 = scmp.ne.s32.totalorder %s6278_s27, %s8646_s9  ;;  %p8652_p0 = scmp.lt.s32.totalorder %s8646_s9, %s8646_s9 }
0x4d3d   :  { %p8653_p1 = por %p8652_p0, %p8651_p13 }
0x4d3f   :  { %p8654_p2 = pnand %p8653_p1, %p8647_p12 }
0x4d41   :  { %8657 = shalt.err (!%p8654_p2)
}
0x4d42   :  { %s8658_s23 = scalar_lea.hbm %s8966_s21, 64 }
0x4d43   :  { %p8659_p3 = scmp.ne.s32.totalorder %s8966_s21, %s8658_s23  ;;  %p8662_p4 = scmp.lt.u32.totalorder %s8658_s23, %s8966_s21 }
0x4d45   :  { %p8664_p5 = pnand %p8662_p4, %p8659_p3 }
0x4d47   :  { %8667 = shalt.err (!%p8664_p5)
}
0x4d48   :  { %6280 = dma.vmem_to_hbm [thread:$0]  %s6278_s27, 64, %s8966_s21, [#allocation6]   ;;  %vm6269_vm13 = vcmask 254976  }
0x4d49   :  { %s8799_s7 = smov [#allocation46]  }
0x4d4a   :  { %s6297_s8 = sshll.u32 %s8799_s7, 4  ;;  %s6298_s8 = int_to_ptr.vmem [resolvable:$true] %s6297_s8 }
0x4d4b   :  { %s8668_s13 = scalar_lea.vmem %s6298_s8, 32  ;;  %p8673_p7 = scmp.lt.s32.totalorder %s6298_s8, %s6298_s8 }
0x4d4c   :  { %p8669_p6 = scmp.ne.s32.totalorder %s6298_s8, %s8668_s13  ;;  %p8674_p8 = scmp.lt.s32.totalorder %s8668_s13, %s8668_s13 }
0x4d4e   :  { %p8675_p9 = por %p8674_p8, %p8673_p7 }
0x4d50   :  { %p8676_p10 = pnand %p8675_p9, %p8669_p6 }
0x4d87   :  { %v6267_v27 = vpop.permute.xlu0 %6266 }
0x4d88   :  { %6270 = vst.msk [vmem:[#allocation46] sm:$0x3] %vm6269_vm13, %v6267_v27 }
0x4d89   :  { %8679 = shalt.err (!%p8676_p10)
}
0x4d8a   :  { %s8680_s28 = scalar_lea.hbm %s8976_s29, 32 }
0x4d8b   :  { %p8681_p11 = scmp.ne.s32.totalorder %s8976_s29, %s8680_s28  ;;  %p8684_p12 = scmp.lt.u32.totalorder %s8680_s28, %s8976_s29 }
0x4d8d   :  { %p8686_p13 = pnand %p8684_p12, %p8681_p11 }
0x4d8f   :  { %8689 = shalt.err (!%p8686_p13)
}
0x4d90   :  { %6300 = dma.vmem_to_hbm [thread:$0]  %s6298_s8, 32, %s8976_s29, [#allocation45]  }
0x4d91   :  { %8716 = dma.done.wait [#allocation6], 64  }
0x4d92   :  { %8717 = vsyncadd [#allocation6], 4294967232 }
0x4d93   :  { %8718 = dma.done.wait [#allocation45], 96  }
0x4d94   :  { %8719 = vsyncadd [#allocation45], 4294967200 }
0x4d95   :  { %6310 = vsyncpa [#allocation5], 1 }
0x4d96   :  { %6311 = vsyncpa [#allocation8], 1 }
0x4d97   :  { %6312 = vsyncpa [#allocation11], 1 }
0x4d98   :  { %6313 = vsyncpa [#allocation14], 1 }
0x4d99   :  { %6314 = vsyncpa [#allocation17], 1 }
0x4d9a   :  { %6315 = vsyncpa [#allocation20], 1 }
0x4d9b   :  { %6316 = vsyncpa [#allocation23], 1 }
0x4d9c   :  { %6317 = vsyncpa [#allocation26], 1 }
0x4d9d   :  { %6318 = vsyncpa [#allocation29], 1 }
0x4d9e   :  { %6319 = vsyncpa [#allocation32], 1 }
0x4d9f   :  { %6320 = vsyncpa [#allocation35], 1 }
0x4da0   :  { %6321 = vsyncpa [#allocation38], 1 }
0x4da1   :  { %6322 = vsyncpa [#allocation41], 1 }
0x4da2   :  { %6323 = vsyncpa [#allocation6], 1 }
0x4da3   :  { %6324 = vsyncpa [#allocation45], 1 }

</bundles_post_ra>
